<compile_context>
chip_gen: v5e
topology: v5e:2x2
jax: 0.10.0
libtpu: 0.0.40
codegen_flags: <defaults>
</compile_context>

<pallas_src>
import jax
import jax.numpy as jnp
from jax.experimental import pallas as pl
from jax.experimental.pallas import tpu as pltpu

EPS = 1e-5


def _reflect_pad1(x):
    # x: (H, W, C) -> (H+2, W+2, C), ReflectionPad2d(1) semantics (assumes H,W >= 2).
    x = jnp.concatenate([x[1:2], x, x[-2:-1]], axis=0)
    x = jnp.concatenate([x[:, 1:2], x, x[:, -2:-1]], axis=1)
    return x


def _conv3x3_from_padded(xpad, w_ref, b_ref):
    # xpad: (H+2, W+2, Cin) f32; w_ref: (9*Cin, Cout) bf16; b_ref: (1, Cout) f32.
    Hp, Wp, Cin = xpad.shape
    H, W = Hp - 2, Wp - 2
    Cout = w_ref.shape[-1]
    # im2col slab: concat the 9 taps along the (lane-dense) channel axis.
    cols = [xpad[dy:dy + H, dx:dx + W, :] for dy in range(3) for dx in range(3)]
    slab = jnp.concatenate(cols, axis=-1).astype(jnp.bfloat16)      # (H, W, 9*Cin)
    out = jnp.dot(slab.reshape(H * W, 9 * Cin), w_ref[...],
                  preferred_element_type=jnp.float32)               # one MXU call
    return out.reshape(H, W, Cout) + b_ref[0]


def _instance_norm(x, g_ref, b_ref):
    # Per-sample, per-channel stats over H*W (biased variance), affine.
    mean = jnp.mean(x, axis=(0, 1), keepdims=True)
    var = jnp.mean((x - mean) ** 2, axis=(0, 1), keepdims=True)
    return (x - mean) * jax.lax.rsqrt(var + EPS) * g_ref[0] + b_ref[0]


def residual_kernel(xpad_ref, w1_ref, b1_ref, g1_ref, be1_ref,
                    w2_ref, b2_ref, g2_ref, be2_ref, o_ref):
    xpad = xpad_ref[0].astype(jnp.float32)                          # (H+2, W+2, C)
    Hp, Wp, _ = xpad.shape
    H, W = Hp - 2, Wp - 2

    h = _conv3x3_from_padded(xpad, w1_ref, b1_ref)                  # conv1
    h = _instance_norm(h, g1_ref, be1_ref)
    h = jnp.maximum(h, 0.0)                                         # ReLU
    h = _conv3x3_from_padded(_reflect_pad1(h), w2_ref, b2_ref)      # conv2
    h = _instance_norm(h, g2_ref, be2_ref)

    x = xpad[1:H + 1, 1:W + 1, :]                                   # interior == x
    o_ref[0] = (h + x).astype(o_ref.dtype)                          # residual add


def residual_layer_nhwc(x_nhwc, params):
    """x_nhwc: (N, H, W, C) f32. Params in PyTorch layouts. Returns (N, H, W, C)."""
    N, H, W, C = x_nhwc.shape
    w1, b1, g1, be1, w2, b2, g2, be2 = params

    def wmat(w):  # (Cout, Cin, 3, 3) -> (9*Cin, Cout) bf16, matching im2col order
        return jnp.transpose(w, (2, 3, 1, 0)).reshape(9 * C, C).astype(jnp.bfloat16)

    # Reflect-pad the input once in XLA; kernel gets the padded block directly.
    xpad = jnp.pad(x_nhwc, ((0, 0), (1, 1), (1, 1), (0, 0)), mode="reflect")

    def rep(shape):  # replicated (grid-invariant) operand
        return pl.BlockSpec(shape, lambda n, _s=shape: (0,) * len(_s))

    # Advisory cost estimate so XLA can overlap surrounding ops with the kernel.
    flops = int(4 * N * H * W * (9 * C) * C)            # 2 convs x 2 flops/MAC
    bytes_accessed = int(xpad.size * 4 + N * H * W * C * 4
                         + 2 * 9 * C * C * 2 + 8 * C * 4)
    cost = pl.CostEstimate(flops=flops, transcendentals=int(2 * N * C),
                           bytes_accessed=bytes_accessed)

    # VMEM budget: double-buffered in/out blocks + resident bf16 weights + kernel
    # intermediates (im2col slab, conv outputs, padded intermediate), with headroom.
    f32 = 4
    blk_in = (H + 2) * (W + 2) * C * f32
    blk_out = H * W * C * f32
    wbytes = 2 * (9 * C * C * 2 + 3 * C * f32)
    scratch = H * W * 9 * C * 2 + 4 * H * W * C * f32 + (H + 2) * (W + 2) * C * f32
    vmem_limit = int(min(100 * 2 ** 20,
                         max(2 * (blk_in + blk_out) + wbytes + 2 * scratch,
                             8 * 2 ** 20)))

    return pl.pallas_call(
        residual_kernel,
        out_shape=jax.ShapeDtypeStruct((N, H, W, C), x_nhwc.dtype),
        grid=(N,),
        in_specs=[
            pl.BlockSpec((1, H + 2, W + 2, C), lambda n: (n, 0, 0, 0)),
            rep((9 * C, C)), rep((1, C)), rep((1, C)), rep((1, C)),
            rep((9 * C, C)), rep((1, C)), rep((1, C)), rep((1, C)),
        ],
        out_specs=pl.BlockSpec((1, H, W, C), lambda n: (n, 0, 0, 0)),
        compiler_params=pltpu.CompilerParams(
            dimension_semantics=("parallel",),
            vmem_limit_bytes=vmem_limit),
        cost_estimate=cost,
    )(xpad, wmat(w1), b1.reshape(1, C), g1.reshape(1, C), be1.reshape(1, C),
      wmat(w2), b2.reshape(1, C), g2.reshape(1, C), be2.reshape(1, C))


def residual_layer(x_nchw, params):
    """PyTorch-layout entry point: (N, C, H, W) -> (N, C, H, W).

    When chaining residual blocks, call residual_layer_nhwc directly to avoid
    round-tripping through HBM transposes between blocks.
    """
    x = jnp.transpose(x_nchw, (0, 2, 3, 1))                         # NCHW -> NHWC
    out = residual_layer_nhwc(x, params)
    return jnp.transpose(out, (0, 3, 1, 2))                         # NHWC -> NCHW


def ref_forward(x, params):
    # Pure-JAX f32 reference (NCHW) mirroring the PyTorch module.
    w1, b1, g1, be1, w2, b2, g2, be2 = params

    def block(h, w, b, g, be, relu):
        hp = jnp.pad(h, ((0, 0), (0, 0), (1, 1), (1, 1)), mode='reflect')
        y = jax.lax.conv_general_dilated(
            hp, w, (1, 1), 'VALID',
            dimension_numbers=('NCHW', 'OIHW', 'NCHW'),
        ) + b[None, :, None, None]
        mean = y.mean(axis=(2, 3), keepdims=True)
        var = ((y - mean) ** 2).mean(axis=(2, 3), keepdims=True)
        y = (y - mean) / jnp.sqrt(var + EPS) * g[None, :, None, None] \
            + be[None, :, None, None]
        return jnp.maximum(y, 0.0) if relu else y

    h = block(x, w1, b1, g1, be1, True)
    h = block(h, w2, b2, g2, be2, False)
    return h + x


if __name__ == "__main__":
    # Module default is channels=128 (lane-dense); keep spatial small.
    N, C, H, W = 2, 128, 16, 16
    key = jax.random.PRNGKey(0)
    ks = jax.random.split(key, 9)
    x = jax.random.normal(ks[0], (N, C, H, W), jnp.float32)
    params = (
        0.1 * jax.random.normal(ks[1], (C, C, 3, 3), jnp.float32),  # conv1 weight
        0.1 * jax.random.normal(ks[2], (C,), jnp.float32),          # conv1 bias
        1.0 + 0.1 * jax.random.normal(ks[3], (C,), jnp.float32),    # in1 gamma
        0.1 * jax.random.normal(ks[4], (C,), jnp.float32),          # in1 beta
        0.1 * jax.random.normal(ks[5], (C, C, 3, 3), jnp.float32),  # conv2 weight
        0.1 * jax.random.normal(ks[6], (C,), jnp.float32),          # conv2 bias
        1.0 + 0.1 * jax.random.normal(ks[7], (C,), jnp.float32),    # in2 gamma
        0.1 * jax.random.normal(ks[8], (C,), jnp.float32),          # in2 beta
    )

    out = jax.block_until_ready(residual_layer(x, params))
    ref = jax.block_until_ready(ref_forward(x, params))
    assert out.shape == (N, C, H, W)
    # bf16 MXU operands (f32 accumulate) -> ~1e-2-level abs error vs f32 reference;
    # InstanceNorm renormalization keeps it well within 3e-2.
    max_err = float(jnp.max(jnp.abs(out - ref)))
    assert jnp.allclose(out, ref, rtol=3e-2, atol=3e-2), max_err
    print("KERNEL_OK")
</pallas_src>

<mosaic_0001>
module attributes {stable_mosaic.version = 11 : i64} {
  func.func @residual_kernel(%arg0: i32, %arg1: memref<1x18x18x128xf32, #tpu.memory_space<vmem>>, %arg2: memref<1152x128xbf16, #tpu.memory_space<vmem>>, %arg3: memref<1x128xf32, #tpu.memory_space<vmem>>, %arg4: memref<1x128xf32, #tpu.memory_space<vmem>>, %arg5: memref<1x128xf32, #tpu.memory_space<vmem>>, %arg6: memref<1152x128xbf16, #tpu.memory_space<vmem>>, %arg7: memref<1x128xf32, #tpu.memory_space<vmem>>, %arg8: memref<1x128xf32, #tpu.memory_space<vmem>>, %arg9: memref<1x128xf32, #tpu.memory_space<vmem>>, %arg10: memref<1x16x16x128xf32, #tpu.memory_space<vmem>>) attributes {dimension_semantics = [#tpu.dimension_semantics<parallel>], iteration_bounds = array<i64: 2>, scalar_prefetch = 0 : i64, scratch_operands = 0 : i64, tpu.core_type = #tpu.core_type<tc>, window_params = [{transform_indices = @transform_0, window_bounds = array<i64: 1, 18, 18, 128>}, {pipeline_mode = #tpu.pipeline_mode<synchronous>, transform_indices = @transform_1, window_bounds = array<i64: 1152, 128>}, {pipeline_mode = #tpu.pipeline_mode<synchronous>, transform_indices = @transform_2, window_bounds = array<i64: 1, 128>}, {pipeline_mode = #tpu.pipeline_mode<synchronous>, transform_indices = @transform_3, window_bounds = array<i64: 1, 128>}, {pipeline_mode = #tpu.pipeline_mode<synchronous>, transform_indices = @transform_4, window_bounds = array<i64: 1, 128>}, {pipeline_mode = #tpu.pipeline_mode<synchronous>, transform_indices = @transform_5, window_bounds = array<i64: 1152, 128>}, {pipeline_mode = #tpu.pipeline_mode<synchronous>, transform_indices = @transform_6, window_bounds = array<i64: 1, 128>}, {pipeline_mode = #tpu.pipeline_mode<synchronous>, transform_indices = @transform_7, window_bounds = array<i64: 1, 128>}, {pipeline_mode = #tpu.pipeline_mode<synchronous>, transform_indices = @transform_8, window_bounds = array<i64: 1, 128>}, {transform_indices = @transform_9, window_bounds = array<i64: 1, 16, 16, 128>}]} {
    %c0 = arith.constant 0 : index
    %c0_0 = arith.constant 0 : index
    %c0_1 = arith.constant 0 : index
    %c0_2 = arith.constant 0 : index
    %0 = vector.load %arg1[%c0, %c0_0, %c0_1, %c0_2] : memref<1x18x18x128xf32, #tpu.memory_space<vmem>>, vector<1x18x18x128xf32>
    %1 = vector.shape_cast %0 : vector<1x18x18x128xf32> to vector<18x18x128xf32>
    %2 = vector.extract_strided_slice %1 {offsets = [0, 0, 0], sizes = [16, 16, 128], strides = [1, 1, 1]} : vector<18x18x128xf32> to vector<16x16x128xf32>
    %3 = vector.extract_strided_slice %1 {offsets = [0, 1, 0], sizes = [16, 16, 128], strides = [1, 1, 1]} : vector<18x18x128xf32> to vector<16x16x128xf32>
    %4 = vector.extract_strided_slice %1 {offsets = [0, 2, 0], sizes = [16, 16, 128], strides = [1, 1, 1]} : vector<18x18x128xf32> to vector<16x16x128xf32>
    %5 = vector.extract_strided_slice %1 {offsets = [1, 0, 0], sizes = [16, 16, 128], strides = [1, 1, 1]} : vector<18x18x128xf32> to vector<16x16x128xf32>
    %6 = vector.extract_strided_slice %1 {offsets = [1, 1, 0], sizes = [16, 16, 128], strides = [1, 1, 1]} : vector<18x18x128xf32> to vector<16x16x128xf32>
    %7 = vector.extract_strided_slice %1 {offsets = [1, 2, 0], sizes = [16, 16, 128], strides = [1, 1, 1]} : vector<18x18x128xf32> to vector<16x16x128xf32>
    %8 = vector.extract_strided_slice %1 {offsets = [2, 0, 0], sizes = [16, 16, 128], strides = [1, 1, 1]} : vector<18x18x128xf32> to vector<16x16x128xf32>
    %9 = vector.extract_strided_slice %1 {offsets = [2, 1, 0], sizes = [16, 16, 128], strides = [1, 1, 1]} : vector<18x18x128xf32> to vector<16x16x128xf32>
    %10 = vector.extract_strided_slice %1 {offsets = [2, 2, 0], sizes = [16, 16, 128], strides = [1, 1, 1]} : vector<18x18x128xf32> to vector<16x16x128xf32>
    %11 = tpu.concatenate %2, %3, %4, %5, %6, %7, %8, %9, %10 in 2 : vector<16x16x128xf32>, vector<16x16x128xf32>, vector<16x16x128xf32>, vector<16x16x128xf32>, vector<16x16x128xf32>, vector<16x16x128xf32>, vector<16x16x128xf32>, vector<16x16x128xf32>, vector<16x16x128xf32> -> vector<16x16x1152xf32>
    %12 = arith.truncf %11 : vector<16x16x1152xf32> to vector<16x16x1152xbf16>
    %13 = vector.shape_cast %12 : vector<16x16x1152xbf16> to vector<256x1152xbf16>
    %c0_3 = arith.constant 0 : index
    %c0_4 = arith.constant 0 : index
    %14 = vector.load %arg2[%c0_3, %c0_4] : memref<1152x128xbf16, #tpu.memory_space<vmem>>, vector<1152x128xbf16>
    %cst = arith.constant dense<0.000000e+00> : vector<256x128xf32>
    %15 = tpu.matmul %13, %14, %cst {dimension_numbers = #tpu.dot_dimension_numbers<[1], [0], [0], [1], [0, 0, 1, 1], [], []>} : vector<256x1152xbf16>, vector<1152x128xbf16>, vector<256x128xf32> -> vector<256x128xf32>
    %16 = vector.shape_cast %15 : vector<256x128xf32> to vector<16x16x128xf32>
    %c0_5 = arith.constant 0 : index
    %c0_6 = arith.constant 0 : index
    %17 = vector.load %arg3[%c0_5, %c0_6] : memref<1x128xf32, #tpu.memory_space<vmem>>, vector<1x128xf32>
    %18 = vector.shape_cast %17 : vector<1x128xf32> to vector<128xf32>
    %19 = vector.shape_cast %18 : vector<128xf32> to vector<1x1x128xf32>
    %20 = vector.broadcast %19 : vector<1x1x128xf32> to vector<16x16x128xf32>
    %21 = arith.addf %16, %20 : vector<16x16x128xf32>
    %cst_7 = arith.constant dense<0.000000e+00> : vector<128xf32>
    %22 = vector.multi_reduction <add>, %21, %cst_7 [0, 1] : vector<16x16x128xf32> to vector<128xf32>
    %23 = vector.shape_cast %22 : vector<128xf32> to vector<1x1x128xf32>
    %cst_8 = arith.constant 2.560000e+02 : f32
    %24 = vector.broadcast %cst_8 : f32 to vector<1x1x128xf32>
    %25 = arith.divf %23, %24 : vector<1x1x128xf32>
    %26 = vector.broadcast %25 : vector<1x1x128xf32> to vector<16x16x128xf32>
    %27 = arith.subf %21, %26 : vector<16x16x128xf32>
    %28 = arith.mulf %27, %27 : vector<16x16x128xf32>
    %cst_9 = arith.constant dense<0.000000e+00> : vector<128xf32>
    %29 = vector.multi_reduction <add>, %28, %cst_9 [0, 1] : vector<16x16x128xf32> to vector<128xf32>
    %30 = vector.shape_cast %29 : vector<128xf32> to vector<1x1x128xf32>
    %cst_10 = arith.constant 2.560000e+02 : f32
    %31 = vector.broadcast %cst_10 : f32 to vector<1x1x128xf32>
    %32 = arith.divf %30, %31 : vector<1x1x128xf32>
    %33 = vector.broadcast %25 : vector<1x1x128xf32> to vector<16x16x128xf32>
    %34 = arith.subf %21, %33 : vector<16x16x128xf32>
    %cst_11 = arith.constant 9.99999974E-6 : f32
    %35 = vector.broadcast %cst_11 : f32 to vector<1x1x128xf32>
    %36 = arith.addf %32, %35 : vector<1x1x128xf32>
    %37 = math.rsqrt %36 : vector<1x1x128xf32>
    %38 = vector.broadcast %37 : vector<1x1x128xf32> to vector<16x16x128xf32>
    %39 = arith.mulf %34, %38 : vector<16x16x128xf32>
    %c0_12 = arith.constant 0 : index
    %c0_13 = arith.constant 0 : index
    %40 = vector.load %arg4[%c0_12, %c0_13] : memref<1x128xf32, #tpu.memory_space<vmem>>, vector<1x128xf32>
    %41 = vector.shape_cast %40 : vector<1x128xf32> to vector<128xf32>
    %42 = vector.shape_cast %41 : vector<128xf32> to vector<1x1x128xf32>
    %43 = vector.broadcast %42 : vector<1x1x128xf32> to vector<16x16x128xf32>
    %44 = arith.mulf %39, %43 : vector<16x16x128xf32>
    %c0_14 = arith.constant 0 : index
    %c0_15 = arith.constant 0 : index
    %45 = vector.load %arg5[%c0_14, %c0_15] : memref<1x128xf32, #tpu.memory_space<vmem>>, vector<1x128xf32>
    %46 = vector.shape_cast %45 : vector<1x128xf32> to vector<128xf32>
    %47 = vector.shape_cast %46 : vector<128xf32> to vector<1x1x128xf32>
    %48 = vector.broadcast %47 : vector<1x1x128xf32> to vector<16x16x128xf32>
    %49 = arith.addf %44, %48 : vector<16x16x128xf32>
    %cst_16 = arith.constant 0.000000e+00 : f32
    %50 = vector.broadcast %cst_16 : f32 to vector<16x16x128xf32>
    %51 = arith.maximumf %49, %50 : vector<16x16x128xf32>
    %52 = vector.extract_strided_slice %51 {offsets = [1, 0, 0], sizes = [1, 16, 128], strides = [1, 1, 1]} : vector<16x16x128xf32> to vector<1x16x128xf32>
    %53 = vector.extract_strided_slice %51 {offsets = [14, 0, 0], sizes = [1, 16, 128], strides = [1, 1, 1]} : vector<16x16x128xf32> to vector<1x16x128xf32>
    %54 = tpu.concatenate %52, %51, %53 in 0 : vector<1x16x128xf32>, vector<16x16x128xf32>, vector<1x16x128xf32> -> vector<18x16x128xf32>
    %55 = vector.extract_strided_slice %54 {offsets = [0, 1, 0], sizes = [18, 1, 128], strides = [1, 1, 1]} : vector<18x16x128xf32> to vector<18x1x128xf32>
    %56 = vector.extract_strided_slice %54 {offsets = [0, 14, 0], sizes = [18, 1, 128], strides = [1, 1, 1]} : vector<18x16x128xf32> to vector<18x1x128xf32>
    %57 = tpu.concatenate %55, %54, %56 in 1 : vector<18x1x128xf32>, vector<18x16x128xf32>, vector<18x1x128xf32> -> vector<18x18x128xf32>
    %58 = vector.extract_strided_slice %57 {offsets = [0, 0, 0], sizes = [16, 16, 128], strides = [1, 1, 1]} : vector<18x18x128xf32> to vector<16x16x128xf32>
    %59 = vector.extract_strided_slice %57 {offsets = [0, 1, 0], sizes = [16, 16, 128], strides = [1, 1, 1]} : vector<18x18x128xf32> to vector<16x16x128xf32>
    %60 = vector.extract_strided_slice %57 {offsets = [0, 2, 0], sizes = [16, 16, 128], strides = [1, 1, 1]} : vector<18x18x128xf32> to vector<16x16x128xf32>
    %61 = vector.extract_strided_slice %57 {offsets = [1, 0, 0], sizes = [16, 16, 128], strides = [1, 1, 1]} : vector<18x18x128xf32> to vector<16x16x128xf32>
    %62 = vector.extract_strided_slice %57 {offsets = [1, 1, 0], sizes = [16, 16, 128], strides = [1, 1, 1]} : vector<18x18x128xf32> to vector<16x16x128xf32>
    %63 = vector.extract_strided_slice %57 {offsets = [1, 2, 0], sizes = [16, 16, 128], strides = [1, 1, 1]} : vector<18x18x128xf32> to vector<16x16x128xf32>
    %64 = vector.extract_strided_slice %57 {offsets = [2, 0, 0], sizes = [16, 16, 128], strides = [1, 1, 1]} : vector<18x18x128xf32> to vector<16x16x128xf32>
    %65 = vector.extract_strided_slice %57 {offsets = [2, 1, 0], sizes = [16, 16, 128], strides = [1, 1, 1]} : vector<18x18x128xf32> to vector<16x16x128xf32>
    %66 = vector.extract_strided_slice %57 {offsets = [2, 2, 0], sizes = [16, 16, 128], strides = [1, 1, 1]} : vector<18x18x128xf32> to vector<16x16x128xf32>
    %67 = tpu.concatenate %58, %59, %60, %61, %62, %63, %64, %65, %66 in 2 : vector<16x16x128xf32>, vector<16x16x128xf32>, vector<16x16x128xf32>, vector<16x16x128xf32>, vector<16x16x128xf32>, vector<16x16x128xf32>, vector<16x16x128xf32>, vector<16x16x128xf32>, vector<16x16x128xf32> -> vector<16x16x1152xf32>
    %68 = arith.truncf %67 : vector<16x16x1152xf32> to vector<16x16x1152xbf16>
    %69 = vector.shape_cast %68 : vector<16x16x1152xbf16> to vector<256x1152xbf16>
    %c0_17 = arith.constant 0 : index
    %c0_18 = arith.constant 0 : index
    %70 = vector.load %arg6[%c0_17, %c0_18] : memref<1152x128xbf16, #tpu.memory_space<vmem>>, vector<1152x128xbf16>
    %cst_19 = arith.constant dense<0.000000e+00> : vector<256x128xf32>
    %71 = tpu.matmul %69, %70, %cst_19 {dimension_numbers = #tpu.dot_dimension_numbers<[1], [0], [0], [1], [0, 0, 1, 1], [], []>} : vector<256x1152xbf16>, vector<1152x128xbf16>, vector<256x128xf32> -> vector<256x128xf32>
    %72 = vector.shape_cast %71 : vector<256x128xf32> to vector<16x16x128xf32>
    %c0_20 = arith.constant 0 : index
    %c0_21 = arith.constant 0 : index
    %73 = vector.load %arg7[%c0_20, %c0_21] : memref<1x128xf32, #tpu.memory_space<vmem>>, vector<1x128xf32>
    %74 = vector.shape_cast %73 : vector<1x128xf32> to vector<128xf32>
    %75 = vector.shape_cast %74 : vector<128xf32> to vector<1x1x128xf32>
    %76 = vector.broadcast %75 : vector<1x1x128xf32> to vector<16x16x128xf32>
    %77 = arith.addf %72, %76 : vector<16x16x128xf32>
    %cst_22 = arith.constant dense<0.000000e+00> : vector<128xf32>
    %78 = vector.multi_reduction <add>, %77, %cst_22 [0, 1] : vector<16x16x128xf32> to vector<128xf32>
    %79 = vector.shape_cast %78 : vector<128xf32> to vector<1x1x128xf32>
    %cst_23 = arith.constant 2.560000e+02 : f32
    %80 = vector.broadcast %cst_23 : f32 to vector<1x1x128xf32>
    %81 = arith.divf %79, %80 : vector<1x1x128xf32>
    %82 = vector.broadcast %81 : vector<1x1x128xf32> to vector<16x16x128xf32>
    %83 = arith.subf %77, %82 : vector<16x16x128xf32>
    %84 = arith.mulf %83, %83 : vector<16x16x128xf32>
    %cst_24 = arith.constant dense<0.000000e+00> : vector<128xf32>
    %85 = vector.multi_reduction <add>, %84, %cst_24 [0, 1] : vector<16x16x128xf32> to vector<128xf32>
    %86 = vector.shape_cast %85 : vector<128xf32> to vector<1x1x128xf32>
    %cst_25 = arith.constant 2.560000e+02 : f32
    %87 = vector.broadcast %cst_25 : f32 to vector<1x1x128xf32>
    %88 = arith.divf %86, %87 : vector<1x1x128xf32>
    %89 = vector.broadcast %81 : vector<1x1x128xf32> to vector<16x16x128xf32>
    %90 = arith.subf %77, %89 : vector<16x16x128xf32>
    %cst_26 = arith.constant 9.99999974E-6 : f32
    %91 = vector.broadcast %cst_26 : f32 to vector<1x1x128xf32>
    %92 = arith.addf %88, %91 : vector<1x1x128xf32>
    %93 = math.rsqrt %92 : vector<1x1x128xf32>
    %94 = vector.broadcast %93 : vector<1x1x128xf32> to vector<16x16x128xf32>
    %95 = arith.mulf %90, %94 : vector<16x16x128xf32>
    %c0_27 = arith.constant 0 : index
    %c0_28 = arith.constant 0 : index
    %96 = vector.load %arg8[%c0_27, %c0_28] : memref<1x128xf32, #tpu.memory_space<vmem>>, vector<1x128xf32>
    %97 = vector.shape_cast %96 : vector<1x128xf32> to vector<128xf32>
    %98 = vector.shape_cast %97 : vector<128xf32> to vector<1x1x128xf32>
    %99 = vector.broadcast %98 : vector<1x1x128xf32> to vector<16x16x128xf32>
    %100 = arith.mulf %95, %99 : vector<16x16x128xf32>
    %c0_29 = arith.constant 0 : index
    %c0_30 = arith.constant 0 : index
    %101 = vector.load %arg9[%c0_29, %c0_30] : memref<1x128xf32, #tpu.memory_space<vmem>>, vector<1x128xf32>
    %102 = vector.shape_cast %101 : vector<1x128xf32> to vector<128xf32>
    %103 = vector.shape_cast %102 : vector<128xf32> to vector<1x1x128xf32>
    %104 = vector.broadcast %103 : vector<1x1x128xf32> to vector<16x16x128xf32>
    %105 = arith.addf %100, %104 : vector<16x16x128xf32>
    %106 = vector.extract_strided_slice %1 {offsets = [1, 1, 0], sizes = [16, 16, 128], strides = [1, 1, 1]} : vector<18x18x128xf32> to vector<16x16x128xf32>
    %107 = arith.addf %105, %106 : vector<16x16x128xf32>
    %c0_31 = arith.constant 0 : index
    %c0_32 = arith.constant 0 : index
    %c0_33 = arith.constant 0 : index
    %c0_34 = arith.constant 0 : index
    %108 = vector.load %arg10[%c0_31, %c0_32, %c0_33, %c0_34] : memref<1x16x16x128xf32, #tpu.memory_space<vmem>>, vector<1x16x16x128xf32>
    %109 = vector.shape_cast %108 : vector<1x16x16x128xf32> to vector<16x16x128xf32>
    %110 = vector.shape_cast %107 : vector<16x16x128xf32> to vector<1x16x16x128xf32>
    tpu.vector_store %arg10[%c0_31, %c0_32, %c0_33, %c0_34], %110 {strides = array<i32>} : memref<1x16x16x128xf32, #tpu.memory_space<vmem>>, vector<1x16x16x128xf32>,
    return
  }
  func.func @transform_0(%arg0: i32) -> (i32, i32, i32, i32) {
    %c0_i32 = arith.constant 0 : i32
    %c0_i32_0 = arith.constant 0 : i32
    %c0_i32_1 = arith.constant 0 : i32
    %c0_i32_2 = arith.constant 0 : i32
    return %arg0, %c0_i32, %c0_i32_0, %c0_i32_1 : i32, i32, i32, i32
  }
  func.func @transform_1(%arg0: i32) -> (i32, i32) {
    %c0_i32 = arith.constant 0 : i32
    %c0_i32_0 = arith.constant 0 : i32
    %c0_i32_1 = arith.constant 0 : i32
    return %c0_i32, %c0_i32_0 : i32, i32
  }
  func.func @transform_2(%arg0: i32) -> (i32, i32) {
    %c0_i32 = arith.constant 0 : i32
    %c0_i32_0 = arith.constant 0 : i32
    %c0_i32_1 = arith.constant 0 : i32
    return %c0_i32, %c0_i32_0 : i32, i32
  }
  func.func @transform_3(%arg0: i32) -> (i32, i32) {
    %c0_i32 = arith.constant 0 : i32
    %c0_i32_0 = arith.constant 0 : i32
    %c0_i32_1 = arith.constant 0 : i32
    return %c0_i32, %c0_i32_0 : i32, i32
  }
  func.func @transform_4(%arg0: i32) -> (i32, i32) {
    %c0_i32 = arith.constant 0 : i32
    %c0_i32_0 = arith.constant 0 : i32
    %c0_i32_1 = arith.constant 0 : i32
    return %c0_i32, %c0_i32_0 : i32, i32
  }
  func.func @transform_5(%arg0: i32) -> (i32, i32) {
    %c0_i32 = arith.constant 0 : i32
    %c0_i32_0 = arith.constant 0 : i32
    %c0_i32_1 = arith.constant 0 : i32
    return %c0_i32, %c0_i32_0 : i32, i32
  }
  func.func @transform_6(%arg0: i32) -> (i32, i32) {
    %c0_i32 = arith.constant 0 : i32
    %c0_i32_0 = arith.constant 0 : i32
    %c0_i32_1 = arith.constant 0 : i32
    return %c0_i32, %c0_i32_0 : i32, i32
  }
  func.func @transform_7(%arg0: i32) -> (i32, i32) {
    %c0_i32 = arith.constant 0 : i32
    %c0_i32_0 = arith.constant 0 : i32
    %c0_i32_1 = arith.constant 0 : i32
    return %c0_i32, %c0_i32_0 : i32, i32
  }
  func.func @transform_8(%arg0: i32) -> (i32, i32) {
    %c0_i32 = arith.constant 0 : i32
    %c0_i32_0 = arith.constant 0 : i32
    %c0_i32_1 = arith.constant 0 : i32
    return %c0_i32, %c0_i32_0 : i32, i32
  }
  func.func @transform_9(%arg0: i32) -> (i32, i32, i32, i32) {
    %c0_i32 = arith.constant 0 : i32
    %c0_i32_0 = arith.constant 0 : i32
    %c0_i32_1 = arith.constant 0 : i32
    %c0_i32_2 = arith.constant 0 : i32
    return %arg0, %c0_i32, %c0_i32_0, %c0_i32_1 : i32, i32, i32, i32
  }
}

</mosaic_0001>

<bundles_post_ra>
// kernel: tpu_custom_call.1
= control target key start
LH: loop header
LB: loop body
LE: loop exit
PB: predicated region body
PF: predicated region fallthrough
CT: control target
= control target key end

     0   :  { %14 = vsyncpa [#allocation3], 0  ;;  %s11059_s0 = inlined_call_operand.vmem [shape: f32[2,18,18,128], index: 0, kind: input, shape index: {}]   ;;  %s11060_s1 = inlined_call_operand.vmem [shape: bf16[1152,128], index: 1, kind: input, shape index: {}]   ;;  %s11061_s2 = inlined_call_operand.vmem [shape: f32[1,128], index: 2, kind: input, shape index: {}]   ;;  %s11062_s3 = inlined_call_operand.vmem [shape: f32[1,128], index: 3, kind: input, shape index: {}]   ;;  %s11063_s4 = inlined_call_operand.vmem [shape: f32[1,128], index: 4, kind: input, shape index: {}]   ;;  %s11064_s5 = inlined_call_operand.vmem [shape: bf16[1152,128], index: 5, kind: input, shape index: {}]   ;;  %s11065_s6 = inlined_call_operand.vmem [shape: f32[1,128], index: 6, kind: input, shape index: {}]   ;;  %s11066_s7 = inlined_call_operand.vmem [shape: f32[1,128], index: 7, kind: input, shape index: {}]   ;;  %s11067_s8 = inlined_call_operand.vmem [shape: f32[1,128], index: 8, kind: input, shape index: {}]   ;;  %s11068_s9 = inlined_call_operand.hbm [shape: f32[2,16,16,128], index: 9, kind: output, shape index: {}]  }
   0x1   :  { %16 = vsyncpa [#allocation3 + $0x1], 0  ;;  %s7059_s30 = smov 0   ;;  %s7061_s10 = smov 0  }
   0x2   :  { %s7063_s11 = smov 0   ;;  %s7065_s12 = smov 0  }
   0x3 LB: > { %s7080_s13 = sadd.s32 4294967295, %s7004_s12   ;;  %s6115_s14 = sadd.s32 4294967294, %s7004_s12   ;;  %s7004_s12 = sphi %s7065_s12, %s11784_s12   ;;  %s7000_s11 = sphi %s7063_s11, %s11783_s11   ;;  %s6996_s10 = sphi %s7061_s10, %s11782_s10   ;;  %s6992_s30 = sphi %s7059_s30, %s11781_s30  }
   0x4   : > { %s7084_s15 = sadd.s32 1, %s7004_s12   ;;  %s223_s16 = sadd.s32 1, %s7000_s11 }
   0x5   : > { %s220_s17 = ssub.s32 %s7004_s12, %s7084_s15  ;;  %p233_p0 = scmp.ne.s32.totalorder %s7000_s11, %s6996_s10 }
   0x6   : > { %p221_p1 = scmp.eq.s32.totalorder %s220_s17, 0  ;;  %p234_p2 = scmp.eq.s32.totalorder %s7080_s13, 1 }
   0x7   : > { %p239_p3 = scmp.ne.s32.totalorder %s6996_s10, %s6992_s30  ;;  %p240_p4 = scmp.eq.s32.totalorder %s6115_s14, 1 }
   0x8   : > { %s7095_s18 = scalar_select %p221_p1, %s7000_s11, %s223_s16  }
   0x9   : > { %p7097_p5 = por %p234_p2, %p233_p0  ;;  %p7101_p6 = por %p240_p4, %p239_p3 }
   0xa   : > { %p6118_p7 = scmp.ge.s32.totalorder %s7004_s12, 1  ;;  %p290_p8 = scmp.lt.s32.totalorder %s7004_s12, 3 }
   0xc   : > { %p291_p9 = pnand %p6118_p7, %p290_p8 }
   0xe   : > { %294 = sbr.rel (%p291_p9) target bundleno = 2055 (0x807), region = 56 }
  0x13   : > { %v6709_v0 = vld [vmem:[%s11060_s1 + $0x38] sm:$0xff]  ;;  %p326_p10 = scmp.lt.s32.totalorder %s7080_s13, 1  ;;  %v6708_v2 = vld [vmem:[%s11060_s1 + $0x30] sm:$0xff]  ;;  %v6707_v4 = vld [vmem:[%s11060_s1 + $0x28] sm:$0xff]  ;;  %vm433_vm0 = vcmask 1046528   ;;  %vm546_vm1 = vcmask 1045504  }
  0x14   : > { %v6717_v1 = vld [vmem:[%s11060_s1 + $0x78] sm:$0xff]  ;;  %6847 = vmatpush.bf16.msra.mxu2 %v6709_v0  ;;  %v6716_v3 = vld [vmem:[%s11060_s1 + $0x70] sm:$0xff]  ;;  %1997 = vmatpush.bf16.msra.mxu0 %v6709_v0  ;;  %v6715_v5 = vld [vmem:[%s11060_s1 + $0x68] sm:$0xff]  ;;  %vm3192_vm6 = vcmask 1040384   ;;  %s323_s23 = sand.u32 1, %s6996_s10   ;;  %s6846_s28 = sshll.u32 %s7080_s13, 8 }
  0x15   : > { %6855 = vmatpush.bf16.msra.mxu3 %v6717_v1  ;;  %s327_s29 = scalar_select %p326_p10, %s7080_s13, 1  ;;  %2086 = vmatpush.bf16.msra.mxu1 %v6717_v1  ;;  %v6706_v6 = vld [vmem:[%s11060_s1 + $0x20] sm:$0xff]  ;;  %v6705_v14 = vld [vmem:[%s11060_s1 + $0x18] sm:$0xff]  ;;  %v6704_v22 = vld [vmem:[%s11060_s1 + $0x10] sm:$0xff] }
  0x16   : > { %v6714_v7 = vld [vmem:[%s11060_s1 + $0x60] sm:$0xff]  ;;  %v6713_v15 = vld [vmem:[%s11060_s1 + $0x58] sm:$0xff]  ;;  %v6712_v23 = vld [vmem:[%s11060_s1 + $0x50] sm:$0xff]  ;;  %s6119_s26 = sshll.u32 %s323_s23, 8  ;;  %s6038_s21 = scalar_lea.sflag [#allocation3], %s323_s23 }
  0x17   : > { %s6863_s14 = smul.u32 432, %s327_s29  ;;  %v6703_v30 = vld [vmem:[%s11060_s1 + $0x8] sm:$0xff]  ;;  %v6702_v34 = vld [vmem:[%s11060_s1] sm:$0xff]  ;;  %v6725_v40 = vld [vmem:[%s11060_s1 + $0xb8] sm:$0xff]  ;;  %s10836_s27 = scalar_lea.vmem [#allocation2], %s6119_s26 }
  0x18   : > { %6848 = vmatpush.bf16.msra.mxu2 %v6708_v2  ;;  %1998 = vmatpush.bf16.msra.mxu0 %v6708_v2  ;;  %v6711_v31 = vld [vmem:[%s11060_s1 + $0x48] sm:$0xff]  ;;  %v6710_v39 = vld [vmem:[%s11060_s1 + $0x40] sm:$0xff]  ;;  %v6733_v46 = vld [vmem:[%s11060_s1 + $0xf8] sm:$0xff]  ;;  %s6050_s16 = sshll.u32 %s10836_s27, 4  ;;  %s6051_s16 = int_to_ptr.vmem [resolvable:$true] %s6050_s16 }
  0x19   : > { %6856 = vmatpush.bf16.msra.mxu3 %v6716_v3  ;;  %2087 = vmatpush.bf16.msra.mxu1 %v6716_v3  ;;  %s7130_s25 = scalar_lea.vmem %s11059_s0, %s6863_s14  ;;  %v6741_v59 = vld [vmem:[%s11060_s1 + $0x138] sm:$0xff]  ;;  %v6724_v63 = vld [vmem:[%s11060_s1 + $0xb0] sm:$0xff]  ;;  %s6049_s14 = scalar_lea.hbm %s11068_s9, %s6846_s28 }
  0x1a   : > { %v355_v8 = vld [vmem:[%s7130_s25 + $0xc0] sm:$0xff]  ;;  %v356_v9 = vld [vmem:[%s7130_s25 + $0xc8] sm:$0xff]  ;;  %v357_v10 = vld [vmem:[%s7130_s25 + $0xd0] sm:$0x3]  ;;  %s6052_s17 = sshll.u32 %s6049_s14, 4  ;;  %s6962_s28 = scalar_lea.hbm %s11068_s9, 512  ;;  %s6053_s17 = int_to_ptr.hbm [resolvable:$true] %s6052_s17 }
  0x1b   : > { %v7142_v11 = vld [vmem:[%s7130_s25] sm:$0xff]  ;;  %v7145_v12 = vld [vmem:[%s7130_s25 + $0x8] sm:$0xff]  ;;  %v7148_v13 = vld [vmem:[%s7130_s25 + $0x10] sm:$0x3]  ;;  %v474_v16 = vrot.slane %v355_v8, 1  ;;  %v475_v17 = vrot.slane %v356_v9, 1 }
  0x1c   : > { %6849 = vmatpush.bf16.msra.mxu2 %v6707_v4  ;;  %1999 = vmatpush.bf16.msra.mxu0 %v6707_v4  ;;  %v477_v18 = vrot.slane %v357_v10, 1  ;;  %v434_v19 = vrot.slane %v7142_v11, 1  ;;  %v435_v20 = vrot.slane %v7145_v12, 1  ;;  %v437_v21 = vrot.slane %v7148_v13, 1  ;;  %v358_v45 = vld [vmem:[%s7130_s25 + $0xd8] sm:$0xff]  ;;  %v359_v47 = vld [vmem:[%s7130_s25 + $0xe0] sm:$0xff] }
  0x1d   : > { %6857 = vmatpush.bf16.msra.mxu3 %v6715_v5  ;;  %2088 = vmatpush.bf16.msra.mxu1 %v6715_v5  ;;  %v7166_v24 = vsel %vm433_vm0, %v474_v16, %v475_v17  ;;  %v360_v48 = vld [vmem:[%s7130_s25 + $0xe8] sm:$0x3]  ;;  %v7199_v49 = vld [vmem:[%s7130_s25 + $0x18] sm:$0xff]  ;;  %v7202_v50 = vld [vmem:[%s7130_s25 + $0x20] sm:$0xff]  ;;  %v479_v54 = vrot.slane %v358_v45, 1  ;;  %v480_v57 = vrot.slane %v359_v47, 1 }
  0x1e   : > { %11253 = vst [vmem:[#allocation5_spill] sm:$0xff] %v7166_v24  ;;  %v7169_v25 = vsel %vm433_vm0, %v475_v17, %v477_v18  ;;  %v436_v26 = vsel %vm433_vm0, %v434_v19, %v435_v20  ;;  %v438_v27 = vsel %vm433_vm0, %v435_v20, %v437_v21  ;;  %v747_v28 = vpack.c.bf16 %v7166_v24, %v355_v8  ;;  %v7205_v51 = vld [vmem:[%s7130_s25 + $0x28] sm:$0x3]  ;;  %v6732_v0 = vld [vmem:[%s11060_s1 + $0xf0] sm:$0xff]  ;;  %s6956_s22 = sshra.s32 %s6053_s17, 4  ;;  %s6957_s22 = int_to_ptr.hbm [resolvable:$true] %s6956_s22 }
  0x1f   : > { %11254 = vst [vmem:[#allocation6_spill] sm:$0xff] %v7169_v25  ;;  %v751_v29 = vpack.c.bf16 %v7169_v25, %v356_v9  ;;  %v693_v32 = vpack.c.bf16 %v436_v26, %v7142_v11  ;;  %v698_v33 = vpack.c.bf16 %v438_v27, %v7145_v12  ;;  %v482_v58 = vrot.slane %v360_v48, 1  ;;  %v6740_v5 = vld [vmem:[%s11060_s1 + $0x130] sm:$0xff]  ;;  %v362_v27 = vld [vmem:[%s7130_s25 + $0xf8] sm:$0xff]  ;;  %s6958_s24 = scalar_lea.hbm %s6957_s22, 256  ;;  %p6963_p0 = scmp.lt.s32.totalorder %s6957_s22, %s11068_s9 }
  0x20   : > { %6850 = vmatpush.bf16.msra.mxu2 %v6706_v6  ;;  %2000 = vmatpush.bf16.msra.mxu0 %v6706_v6  ;;  %v1197_v35 = vunpack.c.l.b16 %v747_v28  ;;  %v1198_v37 = vunpack.c.h.b16 %v747_v28  ;;  %v439_v60 = vrot.slane %v7199_v49, 1  ;;  %v440_v61 = vrot.slane %v7202_v50, 1  ;;  %v6723_v6 = vld [vmem:[%s11060_s1 + $0xa8] sm:$0xff]  ;;  %v361_v20 = vld [vmem:[%s7130_s25 + $0xf0] sm:$0xff]  ;;  %v363_v28 = vld [vmem:[%s7130_s25 + $0x100] sm:$0x3]  ;;  %p6959_p11 = scmp.ne.s32.totalorder %s6957_s22, %s6958_s24  ;;  %p6964_p1 = scmp.lt.s32.totalorder %s6962_s28, %s6958_s24 }
  0x21   : > { %6858 = vmatpush.bf16.msra.mxu3 %v6714_v7  ;;  %2089 = vmatpush.bf16.msra.mxu1 %v6714_v7  ;;  %v1204_v36 = vunpack.c.l.b16 %v751_v29  ;;  %v1205_v38 = vunpack.c.h.b16 %v751_v29  ;;  %v1101_v41 = vunpack.c.l.b16 %v693_v32  ;;  %v1110_v42 = vunpack.c.l.b16 %v698_v33  ;;  %v6731_v7 = vld [vmem:[%s11060_s1 + $0xe8] sm:$0xff] }
  0x22   : > { %v1102_v43 = vunpack.c.h.b16 %v693_v32  ;;  %v1111_v44 = vunpack.c.h.b16 %v698_v33  ;;  %v442_v62 = vrot.slane %v7205_v51, 1  ;;  %v7226_v1 = vsel %vm433_vm0, %v479_v54, %v480_v57  ;;  %v7265_v32 = vld [vmem:[%s7130_s25 + $0x40] sm:$0x3]  ;;  %p6960_p12 = pnand %p6959_p11, %p7097_p5  ;;  %p6965_p2 = por %p6964_p1, %p6963_p0 }
  0x23   : > { %v7207_v52 = vpack.c.b16 %v1204_v36, %v1197_v35  ;;  %v7209_v53 = vpack.c.b16 %v1205_v38, %v1198_v37  ;;  %v1333_v55 = vpack.c.b16 %v1110_v42, %v1101_v41  ;;  %11257 = vst [vmem:[#allocation9_spill] sm:$0xff] %v7226_v1  ;;  %v7229_v2 = vsel %vm433_vm0, %v480_v57, %v482_v58 }
  0x24   : > { %6851 = vmatpush.bf16.msra.mxu2 %v6705_v14  ;;  %2001 = vmatpush.bf16.msra.mxu0 %v6705_v14  ;;  %v1334_v56 = vpack.c.b16 %v1111_v44, %v1102_v43  ;;  %11258 = vst [vmem:[#allocation10_spill] sm:$0xff] %v7229_v2  ;;  %v7232_v3 = vsel %vm433_vm0, %v439_v60, %v440_v61  ;;  %v484_v29 = vrot.slane %v361_v20, 1  ;;  %v485_v35 = vrot.slane %v362_v27, 1  ;;  %v6722_v44 = vld [vmem:[%s11060_s1 + $0xa0] sm:$0xff]  ;;  %p6961_p13 = pneg %p6960_p12 }
  0x25   : > { %6859 = vmatpush.bf16.msra.mxu3 %v6713_v15  ;;  %2090 = vmatpush.bf16.msra.mxu1 %v6713_v15  ;;  %11255 = vst [vmem:[#allocation7_spill] sm:$0xff] %v7207_v52  ;;  %v7235_v4 = vsel %vm433_vm0, %v440_v61, %v442_v62  ;;  %v755_v8 = vpack.c.bf16 %v7226_v1, %v358_v45  ;;  %v6739_v15 = vld [vmem:[%s11060_s1 + $0x128] sm:$0xff]  ;;  %v487_v36 = vrot.slane %v363_v28, 1  ;;  %v447_v41 = vrot.slane %v7265_v32, 1  ;;  %v6730_v45 = vld [vmem:[%s11060_s1 + $0xe0] sm:$0xff] }
  0x26   : > { %11256 = vst [vmem:[#allocation8_spill] sm:$0xff] %v7209_v53  ;;  %v759_v9 = vpack.c.bf16 %v7229_v2, %v359_v47  ;;  %v703_v10 = vpack.c.bf16 %v7232_v3, %v7199_v49  ;;  %v708_v14 = vpack.c.bf16 %v7235_v4, %v7202_v50  ;;  %v7277_v42 = vsel %vm433_vm0, %v484_v29, %v485_v35  ;;  %v6721_v29 = vld [vmem:[%s11060_s1 + $0x98] sm:$0xff]  ;;  %p6966_p3 = pnand %p6965_p2, %p6961_p13 }
  0x27   : > { %11259 = vst [vmem:[#allocation11_spill] sm:$0xff] %v7232_v3  ;;  %v1211_v16 = vunpack.c.l.b16 %v755_v8  ;;  %v1212_v18 = vunpack.c.h.b16 %v755_v8  ;;  %v7280_v43 = vsel %vm433_vm0, %v485_v35, %v487_v36  ;;  %v763_v54 = vpack.c.bf16 %v7277_v42, %v361_v20  ;;  %v366_v8 = vld [vmem:[%s7130_s25 + $0x118] sm:$0x3] }
  0x28   : > { %6852 = vmatpush.bf16.msra.mxu2 %v6704_v22  ;;  %2002 = vmatpush.bf16.msra.mxu0 %v6704_v22  ;;  %11260 = vst [vmem:[#allocation12_spill] sm:$0xff] %v7235_v4  ;;  %v1218_v17 = vunpack.c.l.b16 %v759_v9  ;;  %v1219_v19 = vunpack.c.h.b16 %v759_v9  ;;  %v1119_v21 = vunpack.c.l.b16 %v703_v10  ;;  %v1128_v22 = vunpack.c.l.b16 %v708_v14  ;;  %v6729_v35 = vld [vmem:[%s11060_s1 + $0xd8] sm:$0xff] }
  0x29   : > { %6860 = vmatpush.bf16.msra.mxu3 %v6712_v23  ;;  %2091 = vmatpush.bf16.msra.mxu1 %v6712_v23  ;;  %v1120_v23 = vunpack.c.h.b16 %v703_v10  ;;  %v1129_v26 = vunpack.c.h.b16 %v708_v14  ;;  %11263 = vst [vmem:[#allocation15_spill] sm:$0xff] %v7277_v42  ;;  %v1225_v58 = vunpack.c.l.b16 %v763_v54  ;;  %v1226_v60 = vunpack.c.h.b16 %v763_v54  ;;  %v7309_v10 = vld [vmem:[%s7130_s25 + $0x48] sm:$0xff]  ;;  %v7312_v14 = vld [vmem:[%s7130_s25 + $0x50] sm:$0xff]  ;;  %v6737_v36 = vld [vmem:[%s11060_s1 + $0x118] sm:$0xff] }
  0x2a   : > { %v7267_v33 = vpack.c.b16 %v1218_v17, %v1211_v16  ;;  %v1342_v37 = vpack.c.b16 %v1128_v22, %v1119_v21  ;;  %11264 = vst [vmem:[#allocation16_spill] sm:$0xff] %v7280_v43  ;;  %v449_v22 = vrot.slane %v7309_v10, 1 }
  0x2b   : > { %v1343_v38 = vpack.c.b16 %v1129_v26, %v1120_v23  ;;  %v450_v23 = vrot.slane %v7312_v14, 1 }
  0x2c   : > { %6853 = vmatpush.bf16.msra.mxu2 %v6703_v30  ;;  %2003 = vmatpush.bf16.msra.mxu0 %v6703_v30  ;;  %v7259_v30 = vld [vmem:[%s7130_s25 + $0x30] sm:$0xff]  ;;  %11261 = vst [vmem:[#allocation13_spill] sm:$0xff] %v7267_v33 }
  0x2d   : > { %6861 = vmatpush.bf16.msra.mxu3 %v6711_v31  ;;  %2092 = vmatpush.bf16.msra.mxu1 %v6711_v31  ;;  %v7262_v31 = vld [vmem:[%s7130_s25 + $0x38] sm:$0xff] }
  0x30   : > { %6854 = vmatpush.bf16.msra.mxu2 %v6702_v34  ;;  %2004 = vmatpush.bf16.msra.mxu0 %v6702_v34  ;;  %v7269_v34 = vpack.c.b16 %v1219_v19, %v1212_v18  ;;  %v492_v19 = vrot.slane %v366_v8, 1 }
  0x31   : > { %6862 = vmatpush.bf16.msra.mxu3 %v6710_v39  ;;  %2093 = vmatpush.bf16.msra.mxu1 %v6710_v39  ;;  %v444_v39 = vrot.slane %v7259_v30, 1 }
  0x32   : > { %11262 = vst [vmem:[#allocation14_spill] sm:$0xff] %v7269_v34 }
  0x33   : > { %2045 = vmatmul.bf16.vlgmr.msra.gmra.mxu2 %v7207_v52  ;;  %2005 = vmatmul.bf16.vlgmr.msra.gmra.mxu0 %v1333_v55  ;;  %v767_v55 = vpack.c.bf16 %v7280_v43, %v362_v27  ;;  %v7478_v52 = vld [vmem:[%s7130_s25 + $0xa0] sm:$0x3] }
  0x34   : > { %2175 = vmatpush.bf16.msrb.mxu2 %v6725_v40  ;;  %2134 = vmatmul.bf16.vlgmr.msra.gmra.mxu3 %v7209_v53  ;;  %v445_v40 = vrot.slane %v7262_v31, 1  ;;  %v7472_v53 = vld [vmem:[%s7130_s25 + $0x90] sm:$0xff] }
  0x35   : > { %2264 = vmatpush.bf16.msrb.mxu3 %v6733_v46  ;;  %2094 = vmatmul.bf16.vlgmr.msra.gmra.mxu1 %v1334_v56  ;;  %v6738_v46 = vld [vmem:[%s11060_s1 + $0x120] sm:$0xff]  ;;  %v1233_v61 = vunpack.c.h.b16 %v767_v55 }
  0x36   : > { %2353 = vmatpush.bf16.msrb.mxu0 %v6741_v59  ;;  %v7292_v47 = vsel %vm433_vm0, %v444_v39, %v445_v40  ;;  %v7295_v48 = vsel %vm433_vm0, %v445_v40, %v447_v41  ;;  %v1232_v59 = vunpack.c.l.b16 %v767_v55 }
  0x37   : > { %11265 = vst [vmem:[#allocation17_spill] sm:$0xff] %v7292_v47  ;;  %v696_v56 = vpack.c.bf16 %v7292_v47, %v7259_v30  ;;  %v701_v57 = vpack.c.bf16 %v7295_v48, %v7262_v31  ;;  %v7317_v16 = vpack.c.b16 %v1233_v61, %v1226_v60  ;;  %v367_v60 = vld [vmem:[%s7130_s25 + $0x120] sm:$0xff]  ;;  %v368_v61 = vld [vmem:[%s7130_s25 + $0x128] sm:$0xff] }
  0x38   : > { %2176 = vmatpush.bf16.msrb.mxu2 %v6724_v63  ;;  %11266 = vst [vmem:[#allocation18_spill] sm:$0xff] %v7295_v48  ;;  %v7306_v9 = vpack.c.b16 %v1232_v59, %v1225_v58  ;;  %v494_v8 = vrot.slane %v367_v60, 1 }
  0x39   : > { %2265 = vmatpush.bf16.msrb.mxu3 %v6732_v0  ;;  %v1107_v62 = vunpack.c.l.b16 %v696_v56  ;;  %v1116_v63 = vunpack.c.l.b16 %v701_v57  ;;  %v1108_v0 = vunpack.c.h.b16 %v696_v56  ;;  %11268 = vst [vmem:[#allocation20_spill] sm:$0xff] %v7317_v16 }
  0x3a   : > { %2354 = vmatpush.bf16.msrb.mxu0 %v6740_v5  ;;  %v1117_v5 = vunpack.c.h.b16 %v701_v57  ;;  %11267 = vst [vmem:[#allocation19_spill] sm:$0xff] %v7306_v9 }
  0x3b   : > { %v7319_v20 = vpack.c.b16 %v1116_v63, %v1107_v62  ;;  %v369_v62 = vld [vmem:[%s7130_s25 + $0x130] sm:$0x3] }
  0x3c   : > { %2177 = vmatpush.bf16.msrb.mxu2 %v6723_v6  ;;  %v364_v6 = vld [vmem:[%s7130_s25 + $0x108] sm:$0xff]  ;;  %v7321_v21 = vpack.c.b16 %v1117_v5, %v1108_v0  ;;  %v7363_v0 = vld [vmem:[%s7130_s25 + $0x60] sm:$0xff] }
  0x3d   : > { %2266 = vmatpush.bf16.msrb.mxu3 %v6731_v7  ;;  %v365_v7 = vld [vmem:[%s7130_s25 + $0x110] sm:$0xff]  ;;  %v489_v17 = vrot.slane %v364_v6, 1  ;;  %11269 = vst [vmem:[#allocation21_spill] sm:$0xff] %v7319_v20  ;;  %v7366_v5 = vld [vmem:[%s7130_s25 + $0x68] sm:$0xff] }
  0x3e   : > { %2355 = vmatpush.bf16.msrb.mxu0 %v6739_v15  ;;  %v7315_v15 = vld [vmem:[%s7130_s25 + $0x58] sm:$0x3]  ;;  %v490_v18 = vrot.slane %v365_v7, 1  ;;  %11270 = vst [vmem:[#allocation22_spill] sm:$0xff] %v7321_v21 }
  0x3f   : > { %v452_v26 = vrot.slane %v7315_v15, 1 }
  0x40   : > { %2178 = vmatpush.bf16.msrb.mxu2 %v6722_v44  ;;  %v7329_v27 = vsel %vm433_vm0, %v489_v17, %v490_v18  ;;  %v7332_v28 = vsel %vm433_vm0, %v490_v18, %v492_v19  ;;  %v495_v17 = vrot.slane %v368_v61, 1  ;;  %v497_v18 = vrot.slane %v369_v62, 1 }
  0x41   : > { %2267 = vmatpush.bf16.msrb.mxu3 %v6730_v45  ;;  %11271 = vst [vmem:[#allocation23_spill] sm:$0xff] %v7329_v27  ;;  %v771_v39 = vpack.c.bf16 %v7329_v27, %v364_v6  ;;  %v775_v40 = vpack.c.bf16 %v7332_v28, %v365_v7  ;;  %v7369_v6 = vld [vmem:[%s7130_s25 + $0x70] sm:$0x3] }
  0x42   : > { %2356 = vmatpush.bf16.msrb.mxu0 %v6738_v46  ;;  %11272 = vst [vmem:[#allocation24_spill] sm:$0xff] %v7332_v28 }
  0x43   : > { %2050 = vmatmul.bf16.gmra.mxu2 %v7267_v33  ;;  %2010 = vmatmul.bf16.gmra.mxu0 %v1342_v37  ;;  %v7346_v37 = vsel %vm433_vm0, %v449_v22, %v450_v23  ;;  %v1239_v45 = vunpack.c.l.b16 %v771_v39  ;;  %v1246_v46 = vunpack.c.l.b16 %v775_v40  ;;  %v1240_v54 = vunpack.c.h.b16 %v771_v39  ;;  %v6720_v39 = vld [vmem:[%s11060_s1 + $0x90] sm:$0xff] }
  0x44   : > { %2139 = vmatmul.bf16.gmra.mxu3 %v7269_v34  ;;  %11273 = vst [vmem:[#allocation25_spill] sm:$0xff] %v7346_v37  ;;  %2179 = vmatpush.bf16.msrb.mxu2 %v6721_v29  ;;  %v706_v41 = vpack.c.bf16 %v7346_v37, %v7309_v10  ;;  %v1247_v55 = vunpack.c.h.b16 %v775_v40  ;;  %v457_v29 = vrot.slane %v7369_v6, 1  ;;  %v6728_v40 = vld [vmem:[%s11060_s1 + $0xd0] sm:$0xff]  ;;  %v375_v34 = vld [vmem:[%s7130_s25 + $0x160] sm:$0x3] }
  0x45   : > { %2099 = vmatmul.bf16.gmra.mxu1 %v1343_v38  ;;  %v7349_v38 = vsel %vm433_vm0, %v450_v23, %v452_v26  ;;  %2268 = vmatpush.bf16.msrb.mxu3 %v6729_v35  ;;  %v7360_v63 = vpack.c.b16 %v1246_v46, %v1239_v45  ;;  %v454_v23 = vrot.slane %v7363_v0, 1  ;;  %v455_v26 = vrot.slane %v7366_v5, 1 }
  0x46   : > { %11274 = vst [vmem:[#allocation26_spill] sm:$0xff] %v7349_v38  ;;  %2357 = vmatpush.bf16.msrb.mxu0 %v6737_v36  ;;  %v711_v44 = vpack.c.bf16 %v7349_v38, %v7312_v14  ;;  %v1125_v56 = vunpack.c.l.b16 %v706_v41  ;;  %v1126_v58 = vunpack.c.h.b16 %v706_v41  ;;  %v7371_v7 = vpack.c.b16 %v1247_v55, %v1240_v54  ;;  %v6736_v41 = vld [vmem:[%s11060_s1 + $0x110] sm:$0xff] }
  0x47   : > { %11275 = vst [vmem:[#allocation27_spill] sm:$0xff] %v7360_v63  ;;  %v7383_v35 = vsel %vm433_vm0, %v494_v8, %v495_v17  ;;  %v7386_v36 = vsel %vm433_vm0, %v495_v17, %v497_v18  ;;  %v7403_v45 = vsel %vm433_vm0, %v455_v26, %v457_v29 }
  0x48   : > { %v1134_v57 = vunpack.c.l.b16 %v711_v44  ;;  %v1135_v59 = vunpack.c.h.b16 %v711_v44  ;;  %11276 = vst [vmem:[#allocation28_spill] sm:$0xff] %v7371_v7  ;;  %v7400_v44 = vsel %vm433_vm0, %v454_v23, %v455_v26  ;;  %2180 = vmatpush.bf16.msrb.mxu2 %v6720_v39  ;;  %v779_v46 = vpack.c.bf16 %v7383_v35, %v367_v60  ;;  %v371_v23 = vld [vmem:[%s7130_s25 + $0x140] sm:$0xff]  ;;  %v372_v26 = vld [vmem:[%s7130_s25 + $0x148] sm:$0x3]  ;;  %v7417_v39 = vld [vmem:[%s7130_s25 + $0x78] sm:$0xff] }
  0x49   : > { %11279 = vst [vmem:[#allocation31_spill] sm:$0xff] %v7383_v35  ;;  %v783_v54 = vpack.c.bf16 %v7386_v36, %v368_v61  ;;  %2269 = vmatpush.bf16.msrb.mxu3 %v6728_v40  ;;  %v715_v55 = vpack.c.bf16 %v7400_v44, %v7363_v0  ;;  %v370_v61 = vld [vmem:[%s7130_s25 + $0x138] sm:$0xff]  ;;  %v7420_v40 = vld [vmem:[%s7130_s25 + $0x80] sm:$0xff] }
  0x4a   : > { %v7373_v19 = vpack.c.b16 %v1134_v57, %v1125_v56  ;;  %v7375_v22 = vpack.c.b16 %v1135_v59, %v1126_v58  ;;  %11280 = vst [vmem:[#allocation32_spill] sm:$0xff] %v7386_v36  ;;  %2358 = vmatpush.bf16.msrb.mxu0 %v6736_v41  ;;  %v719_v56 = vpack.c.bf16 %v7403_v45, %v7366_v5  ;;  %v1253_v57 = vunpack.c.l.b16 %v779_v46  ;;  %v7423_v41 = vld [vmem:[%s7130_s25 + $0x88] sm:$0x3] }
  0x4b   : > { %11281 = vst [vmem:[#allocation33_spill] sm:$0xff] %v7400_v44  ;;  %v1260_v58 = vunpack.c.l.b16 %v783_v54  ;;  %v1254_v59 = vunpack.c.h.b16 %v779_v46  ;;  %v1261_v62 = vunpack.c.h.b16 %v783_v54  ;;  %v1141_v8 = vunpack.c.l.b16 %v715_v55 }
  0x4c   : > { %11277 = vst [vmem:[#allocation29_spill] sm:$0xff] %v7373_v19  ;;  %v1148_v60 = vunpack.c.l.b16 %v719_v56  ;;  %v1142_v17 = vunpack.c.h.b16 %v715_v55  ;;  %v1149_v18 = vunpack.c.h.b16 %v719_v56  ;;  %v500_v46 = vrot.slane %v371_v23, 1 }
  0x4d   : > { %11278 = vst [vmem:[#allocation30_spill] sm:$0xff] %v7375_v22  ;;  %v7414_v29 = vpack.c.b16 %v1260_v58, %v1253_v57  ;;  %v502_v54 = vrot.slane %v372_v26, 1  ;;  %v459_v56 = vrot.slane %v7417_v39, 1  ;;  %v460_v57 = vrot.slane %v7420_v40, 1 }
  0x4e   : > { %11282 = vst [vmem:[#allocation34_spill] sm:$0xff] %v7403_v45  ;;  %v7429_v55 = vpack.c.b16 %v1149_v18, %v1142_v17  ;;  %v462_v58 = vrot.slane %v7423_v41, 1  ;;  %v6749_v17 = vld [vmem:[%s11060_s1 + $0x178] sm:$0xff] }
  0x4f   : > { %11283 = vst [vmem:[#allocation35_spill] sm:$0xff] %v7414_v29  ;;  %v7457_v18 = vsel %vm433_vm0, %v459_v56, %v460_v57  ;;  %2442 = vmatpush.bf16.msrb.mxu1 %v6749_v17  ;;  %v7475_v17 = vld [vmem:[%s7130_s25 + $0x98] sm:$0xff] }
  0x50   : > { %11286 = vst [vmem:[#allocation38_spill] sm:$0xff] %v7429_v55  ;;  %v7460_v26 = vsel %vm433_vm0, %v460_v57, %v462_v58 }
  0x51   : > { %11289 = vst [vmem:[#allocation41_spill] sm:$0xff] %v7457_v18  ;;  %v727_v56 = vpack.c.bf16 %v7460_v26, %v7420_v40 }
  0x52   : > { %11290 = vst [vmem:[#allocation42_spill] sm:$0xff] %v7460_v26 }
  0x53   : > { %2055 = vmatmul.bf16.gmra.mxu2 %v7306_v9  ;;  %2015 = vmatmul.bf16.gmra.mxu0 %v7319_v20  ;;  %v373_v9 = vld [vmem:[%s7130_s25 + $0x150] sm:$0xff] }
  0x54   : > { %2144 = vmatmul.bf16.gmra.mxu3 %v7317_v16  ;;  %v7427_v16 = vpack.c.b16 %v1148_v60, %v1141_v8  ;;  %v6719_v8 = vld [vmem:[%s11060_s1 + $0x88] sm:$0xff] }
  0x55   : > { %2104 = vmatmul.bf16.gmra.mxu1 %v7321_v21  ;;  %v6727_v60 = vld [vmem:[%s11060_s1 + $0xc8] sm:$0xff]  ;;  %2181 = vmatpush.bf16.msrb.mxu2 %v6719_v8  ;;  %v465_v21 = vrot.slane %v7475_v17, 1 }
  0x56   : > { %11285 = vst [vmem:[#allocation37_spill] sm:$0xff] %v7427_v16  ;;  %2270 = vmatpush.bf16.msrb.mxu3 %v6727_v60  ;;  %v1162_v60 = vunpack.c.l.b16 %v727_v56 }
  0x63   : > { %2060 = vmatmul.bf16.gmra.mxu2 %v7360_v63  ;;  %2020 = vmatmul.bf16.gmra.mxu0 %v7373_v19  ;;  %v499_v63 = vrot.slane %v370_v61, 1  ;;  %v507_v19 = vrot.slane %v375_v34, 1  ;;  %v6748_v34 = vld [vmem:[%s11060_s1 + $0x170] sm:$0xff] }
  0x64   : > { %2149 = vmatmul.bf16.gmra.mxu3 %v7371_v7  ;;  %v7425_v7 = vpack.c.b16 %v1261_v62, %v1254_v59  ;;  %v7440_v62 = vsel %vm433_vm0, %v500_v46, %v502_v54  ;;  %2443 = vmatpush.bf16.msrb.mxu1 %v6748_v34 }
  0x65   : > { %2109 = vmatmul.bf16.gmra.mxu1 %v7375_v22  ;;  %v7437_v59 = vsel %vm433_vm0, %v499_v63, %v500_v46  ;;  %11288 = vst [vmem:[#allocation40_spill] sm:$0xff] %v7440_v62  ;;  %v6735_v63 = vld [vmem:[%s11060_s1 + $0x108] sm:$0xff]  ;;  %v791_v54 = vpack.c.bf16 %v7440_v62, %v371_v23 }
  0x66   : > { %11284 = vst [vmem:[#allocation36_spill] sm:$0xff] %v7425_v7  ;;  %v787_v46 = vpack.c.bf16 %v7437_v59, %v370_v61  ;;  %2359 = vmatpush.bf16.msrb.mxu0 %v6735_v63  ;;  %v374_v61 = vld [vmem:[%s7130_s25 + $0x158] sm:$0xff]  ;;  %v1163_v63 = vunpack.c.h.b16 %v727_v56 }
  0x67   : > { %11287 = vst [vmem:[#allocation39_spill] sm:$0xff] %v7437_v59  ;;  %v1274_v57 = vunpack.c.l.b16 %v791_v54  ;;  %v1275_v8 = vunpack.c.h.b16 %v791_v54  ;;  %v505_v22 = vrot.slane %v374_v61, 1  ;;  %v464_v54 = vrot.slane %v7472_v53, 1 }
  0x68   : > { %v1268_v58 = vunpack.c.h.b16 %v787_v46 }
  0x73   : > { %2065 = vmatmul.bf16.gmra.mxu2 %v7414_v29  ;;  %2025 = vmatmul.bf16.gmra.mxu0 %v7427_v16  ;;  %v1267_v29 = vunpack.c.l.b16 %v787_v46  ;;  %v504_v16 = vrot.slane %v373_v9, 1  ;;  %v7482_v46 = vpack.c.b16 %v1275_v8, %v1268_v58  ;;  %v6734_v8 = vld [vmem:[%s11060_s1 + $0x100] sm:$0xff] }
  0x74   : > { %2154 = vmatmul.bf16.gmra.mxu3 %v7425_v7  ;;  %v723_v7 = vpack.c.bf16 %v7457_v18, %v7417_v39  ;;  %2360 = vmatpush.bf16.msrb.mxu0 %v6734_v8 }
  0x75   : > { %2114 = vmatmul.bf16.gmra.mxu1 %v7429_v55  ;;  %v7480_v55 = vpack.c.b16 %v1274_v57, %v1267_v29  ;;  %11292 = vst [vmem:[#allocation44_spill] sm:$0xff] %v7482_v46  ;;  %v7492_v62 = vsel %vm433_vm0, %v504_v16, %v505_v22  ;;  %v7495_v29 = vsel %vm433_vm0, %v505_v22, %v507_v19  ;;  %v6718_v16 = vld [vmem:[%s11060_s1 + $0x80] sm:$0xff] }
  0x76   : > { %v1155_v23 = vunpack.c.l.b16 %v723_v7  ;;  %v1156_v33 = vunpack.c.h.b16 %v723_v7  ;;  %v467_v7 = vrot.slane %v7478_v52, 1  ;;  %11295 = vst [vmem:[#allocation47_spill] sm:$0xff] %v7492_v62  ;;  %v7503_v57 = vsel %vm433_vm0, %v464_v54, %v465_v21  ;;  %v6726_v19 = vld [vmem:[%s11060_s1 + $0xc0] sm:$0xff]  ;;  %2182 = vmatpush.bf16.msrb.mxu2 %v6718_v16 }
  0x77   : > { %11291 = vst [vmem:[#allocation43_spill] sm:$0xff] %v7480_v55  ;;  %v795_v22 = vpack.c.bf16 %v7492_v62, %v373_v9  ;;  %v799_v58 = vpack.c.bf16 %v7495_v29, %v374_v61  ;;  %2271 = vmatpush.bf16.msrb.mxu3 %v6726_v19  ;;  %v547_v9 = vrot.slane %v7142_v11, 2  ;;  %v548_v61 = vrot.slane %v7145_v12, 2  ;;  %v6746_v19 = vld [vmem:[%s11060_s1 + $0x160] sm:$0xff]  ;;  %v376_v11 = vld [vmem:[%s7130_s25 + $0x168] sm:$0xff]  ;;  %v377_v12 = vld [vmem:[%s7130_s25 + $0x170] sm:$0xff] }
  0x78   : > { %v7487_v56 = vpack.c.b16 %v1162_v60, %v1155_v23  ;;  %v7489_v20 = vpack.c.b16 %v1163_v63, %v1156_v33  ;;  %11296 = vst [vmem:[#allocation48_spill] sm:$0xff] %v7495_v29  ;;  %v7506_v33 = vsel %vm433_vm0, %v465_v21, %v467_v7  ;;  %v6747_v21 = vld [vmem:[%s11060_s1 + $0x168] sm:$0xff]  ;;  %v731_v23 = vpack.c.bf16 %v7503_v57, %v7472_v53 }
  0x79   : > { %11297 = vst [vmem:[#allocation49_spill] sm:$0xff] %v7503_v57  ;;  %v735_v60 = vpack.c.bf16 %v7506_v33, %v7475_v17  ;;  %v550_v63 = vrot.slane %v7148_v13, 2  ;;  %v1281_v54 = vunpack.c.l.b16 %v795_v22  ;;  %v1288_v7 = vunpack.c.l.b16 %v799_v58  ;;  %2444 = vmatpush.bf16.msrb.mxu1 %v6747_v21  ;;  %v6745_v21 = vld [vmem:[%s11060_s1 + $0x158] sm:$0xff] }
  0x7a   : > { %11293 = vst [vmem:[#allocation45_spill] sm:$0xff] %v7487_v56  ;;  %v1282_v34 = vunpack.c.h.b16 %v795_v22  ;;  %v1289_v16 = vunpack.c.h.b16 %v799_v58  ;;  %v549_v13 = vsel %vm546_vm1, %v547_v9, %v548_v61  ;;  %v378_v22 = vld [vmem:[%s7130_s25 + $0x178] sm:$0x3]  ;;  %v7540_v58 = vld [vmem:[%s7130_s25 + $0xa8] sm:$0xff]  ;;  %v509_v27 = vrot.slane %v376_v11, 1 }
  0x7b   : > { %11294 = vst [vmem:[#allocation46_spill] sm:$0xff] %v7489_v20  ;;  %v1176_v8 = vunpack.c.l.b16 %v735_v60  ;;  %v7547_v29 = vpack.c.b16 %v1288_v7, %v1281_v54  ;;  %v512_v43 = vrot.slane %v378_v22, 1  ;;  %v6744_v7 = vld [vmem:[%s11060_s1 + $0x150] sm:$0xff] }
  0x7c   : > { %11298 = vst [vmem:[#allocation50_spill] sm:$0xff] %v7506_v33  ;;  %v7549_v62 = vpack.c.b16 %v1289_v16, %v1282_v34  ;;  %v6757_v34 = vld [vmem:[%s11060_s1 + $0x1b8] sm:$0xff] }
  0x7d   : > { %2445 = vmatpush.bf16.msrb.mxu1 %v6746_v19  ;;  %11299 = vst [vmem:[#allocation51_spill] sm:$0xff] %v7547_v29  ;;  %2531 = vmatpush.bf16.msra.mxu2 %v6757_v34 }
  0x7e   : > { %11300 = vst [vmem:[#allocation52_spill] sm:$0xff] %v7549_v62 }
  0x81   : > { %2446 = vmatpush.bf16.msrb.mxu1 %v6745_v21 }
  0x83   : > { %2070 = vmatmul.bf16.gmra.mxu2 %v7480_v55  ;;  %2030 = vmatmul.bf16.gmra.mxu0 %v7487_v56  ;;  %v1170_v55 = vunpack.c.h.b16 %v731_v23  ;;  %v551_v56 = vsel %vm546_vm1, %v548_v61, %v550_v63  ;;  %v7556_v61 = vld [vmem:[%s7130_s25 + $0xb0] sm:$0xff]  ;;  %v7559_v63 = vld [vmem:[%s7130_s25 + $0xb8] sm:$0x3] }
  0x84   : > { %2159 = vmatmul.bf16.gmra.mxu3 %v7482_v46  ;;  %v1169_v46 = vunpack.c.l.b16 %v731_v23  ;;  %v694_v23 = vpack.c.bf16 %v7199_v49, %v549_v13  ;;  %v510_v13 = vrot.slane %v377_v12, 1  ;;  %v470_v54 = vrot.slane %v7556_v61, 1 }
  0x85   : > { %2119 = vmatmul.bf16.gmra.mxu1 %v7489_v20  ;;  %v1177_v20 = vunpack.c.h.b16 %v735_v60  ;;  %v699_v60 = vpack.c.bf16 %v7202_v50, %v551_v56  ;;  %v469_v56 = vrot.slane %v7540_v58, 1 }
  0x86   : > { %v7551_v59 = vpack.c.b16 %v1176_v8, %v1169_v46  ;;  %v1103_v19 = vunpack.c.l.b16 %v694_v23  ;;  %v1104_v35 = vunpack.c.h.b16 %v694_v23  ;;  %v472_v46 = vrot.slane %v7559_v63, 1  ;;  %2447 = vmatpush.bf16.msrb.mxu1 %v6744_v7 }
  0x87   : > { %v7553_v9 = vpack.c.b16 %v1177_v20, %v1170_v55  ;;  %v1112_v36 = vunpack.c.l.b16 %v699_v60  ;;  %v1113_v28 = vunpack.c.h.b16 %v699_v60  ;;  %v7575_v16 = vsel %vm433_vm0, %v509_v27, %v510_v13  ;;  %v6743_v27 = vld [vmem:[%s11060_s1 + $0x148] sm:$0xff]  ;;  %v6742_v60 = vld [vmem:[%s11060_s1 + $0x140] sm:$0xff] }
  0x88   : > { %11301 = vst [vmem:[#allocation53_spill] sm:$0xff] %v7551_v59  ;;  %v7587_v8 = vsel %vm433_vm0, %v470_v54, %v472_v46 }
  0x89   : > { %11302 = vst [vmem:[#allocation54_spill] sm:$0xff] %v7553_v9  ;;  %v1335_v20 = vpack.c.b16 %v1112_v36, %v1103_v19  ;;  %v1336_v55 = vpack.c.b16 %v1113_v28, %v1104_v35  ;;  %v7578_v28 = vsel %vm433_vm0, %v510_v13, %v512_v43  ;;  %v6765_v35 = vld [vmem:[%s11060_s1 + $0x1f8] sm:$0xff]  ;;  %v7584_v36 = vsel %vm433_vm0, %v469_v56, %v470_v54 }
  0x8a   : > { %11303 = vst [vmem:[#allocation55_spill] sm:$0xff] %v7575_v16  ;;  %2620 = vmatpush.bf16.msra.mxu3 %v6765_v35  ;;  %v803_v43 = vpack.c.bf16 %v7575_v16, %v376_v11  ;;  %v807_v22 = vpack.c.bf16 %v7578_v28, %v377_v12  ;;  %v739_v21 = vpack.c.bf16 %v7584_v36, %v7540_v58  ;;  %v6773_v19 = vld [vmem:[%s11060_s1 + $0x238] sm:$0xff] }
  0x8b   : > { %11304 = vst [vmem:[#allocation56_spill] sm:$0xff] %v7578_v28  ;;  %v743_v23 = vpack.c.bf16 %v7587_v8, %v7556_v61  ;;  %2448 = vmatpush.bf16.msrb.mxu1 %v6743_v27  ;;  %2709 = vmatpush.bf16.msra.mxu0 %v6773_v19 }
  0x8c   : > { %11305 = vst [vmem:[#allocation57_spill] sm:$0xff] %v7584_v36  ;;  %v1295_v13 = vunpack.c.l.b16 %v803_v43  ;;  %v1302_v56 = vunpack.c.l.b16 %v807_v22  ;;  %v1296_v11 = vunpack.c.h.b16 %v803_v43  ;;  %v1303_v54 = vunpack.c.h.b16 %v807_v22 }
  0x8d   : > { %11306 = vst [vmem:[#allocation58_spill] sm:$0xff] %v7587_v8  ;;  %v1183_v12 = vunpack.c.l.b16 %v739_v21  ;;  %v1190_v46 = vunpack.c.l.b16 %v743_v23  ;;  %v1184_v7 = vunpack.c.h.b16 %v739_v21  ;;  %v1191_v34 = vunpack.c.h.b16 %v743_v23 }
  0x8e   : > { %v7604_v35 = vpack.c.b16 %v1302_v56, %v1295_v13  ;;  %v7606_v27 = vpack.c.b16 %v1303_v54, %v1296_v11  ;;  %v555_v43 = vrot.slane %v7205_v51, 2 }
  0x8f   : > { %2449 = vmatpush.bf16.msrb.mxu1 %v6742_v60 }
  0x90   : > { %11307 = vst [vmem:[#allocation59_spill] sm:$0xff] %v7604_v35 }
  0x91   : > { %11308 = vst [vmem:[#allocation60_spill] sm:$0xff] %v7606_v27 }
  0x93   : > { %2075 = vmatmul.bf16.gmra.mxu2 %v7547_v29  ;;  %2035 = vmatmul.bf16.gmra.mxu0 %v7551_v59  ;;  %v7610_v29 = vpack.c.b16 %v1191_v34, %v1184_v7  ;;  %v553_v59 = vrot.slane %v7202_v50, 2  ;;  %v6764_v34 = vld [vmem:[%s11060_s1 + $0x1f0] sm:$0xff] }
  0x94   : > { %2164 = vmatmul.bf16.gmra.mxu3 %v7549_v62  ;;  %v7608_v62 = vpack.c.b16 %v1190_v46, %v1183_v12  ;;  %v557_v12 = vrot.slane %v7259_v30, 2  ;;  %v558_v46 = vrot.slane %v7262_v31, 2 }
  0x95   : > { %2124 = vmatmul.bf16.gmra.mxu1 %v7553_v9  ;;  %11310 = vst [vmem:[#allocation62_spill] sm:$0xff] %v7610_v29  ;;  %v552_v9 = vrot.slane %v7199_v49, 2  ;;  %v556_v21 = vsel %vm546_vm1, %v553_v59, %v555_v43  ;;  %2621 = vmatpush.bf16.msra.mxu3 %v6764_v34 }
  0x96   : > { %11309 = vst [vmem:[#allocation61_spill] sm:$0xff] %v7608_v62  ;;  %v700_v49 = vpack.c.bf16 %v556_v21, %v7235_v4  ;;  %v7635_v43 = vsel %vm546_vm1, %v557_v12, %v558_v46 }
  0x97   : > { %v554_v22 = vsel %vm546_vm1, %v552_v9, %v553_v59  ;;  %v560_v9 = vrot.slane %v7265_v32, 2  ;;  %v6756_v59 = vld [vmem:[%s11060_s1 + $0x1b0] sm:$0xff] }
  0x98   : > { %v695_v23 = vpack.c.bf16 %v554_v22, %v7232_v3  ;;  %v1114_v50 = vunpack.c.l.b16 %v700_v49  ;;  %v1115_v51 = vunpack.c.h.b16 %v700_v49  ;;  %2532 = vmatpush.bf16.msra.mxu2 %v6756_v59  ;;  %v704_v49 = vpack.c.bf16 %v7259_v30, %v554_v22 }
  0x99   : > { %v562_v3 = vrot.slane %v7309_v10, 2 }
  0x9a   : > { %v1105_v60 = vunpack.c.l.b16 %v695_v23  ;;  %v1106_v19 = vunpack.c.h.b16 %v695_v23  ;;  %v7638_v23 = vsel %vm546_vm1, %v558_v46, %v560_v9  ;;  %v1122_v46 = vunpack.c.h.b16 %v704_v49 }
  0x9c   : > { %v1337_v13 = vpack.c.b16 %v1114_v50, %v1105_v60  ;;  %v1338_v56 = vpack.c.b16 %v1115_v51, %v1106_v19  ;;  %v709_v60 = vpack.c.bf16 %v7262_v31, %v556_v21  ;;  %v705_v50 = vpack.c.bf16 %v7635_v43, %v7292_v47 }
  0x9d   : > { %v710_v19 = vpack.c.bf16 %v7638_v23, %v7295_v48 }
  0x9e   : > { %v1130_v12 = vunpack.c.l.b16 %v709_v60  ;;  %v1131_v30 = vunpack.c.h.b16 %v709_v60  ;;  %v1123_v22 = vunpack.c.l.b16 %v705_v50  ;;  %v1124_v21 = vunpack.c.h.b16 %v705_v50 }
  0x9f   : > { %v1132_v31 = vunpack.c.l.b16 %v710_v19  ;;  %v1133_v9 = vunpack.c.h.b16 %v710_v19  ;;  %v565_v60 = vrot.slane %v7315_v15, 2 }
  0xa1   : > { %v1347_v48 = vpack.c.b16 %v1133_v9, %v1124_v21 }
  0xa3   : > { %2080 = vmatmul.bf16.gmra.mxu2 %v7604_v35  ;;  %2040 = vmatmul.bf16.gmra.mxu0 %v7608_v62 }
  0xa4   : > { %2169 = vmatmul.bf16.gmra.mxu3 %v7606_v27 }
  0xa5   : > { %2129 = vmatmul.bf16.gmra.mxu1 %v7610_v29 }
  0xb0   : > { %v2006_v11 = vpop.f32.mrf.mxu0 }
  0xb2   : > { %v2095_v54 = vpop.f32.mrf.mxu1 }
  0xb3   : > { %v7626_v7 = vadd.f32 %v2095_v54, %v2006_v11  ;;  %2183 = vmatmul.bf16.vlgmr.msrb.gmra.mxu2 %v1335_v20  ;;  %2361 = vmatmul.bf16.vlgmr.msrb.gmra.mxu0 %v1337_v13  ;;  %v6772_v11 = vld [vmem:[%s11060_s1 + $0x230] sm:$0xff]  ;;  %v1121_v54 = vunpack.c.l.b16 %v704_v49  ;;  %v563_v49 = vrot.slane %v7312_v14, 2 }
  0xb4   : > { %2272 = vmatmul.bf16.vlgmr.msrb.gmra.mxu3 %v1336_v55  ;;  %2710 = vmatpush.bf16.msra.mxu0 %v6772_v11 }
  0xb5   : > { %2450 = vmatmul.bf16.vlgmr.msrb.gmra.mxu1 %v1338_v56  ;;  %v7661_v50 = vsel %vm546_vm1, %v562_v3, %v563_v49  ;;  %v7664_v19 = vsel %vm546_vm1, %v563_v49, %v565_v60 }
  0xb6   : > { %v2046_v32 = vpop.f32.mrf.mxu2  ;;  %v718_v3 = vpack.c.bf16 %v7664_v19, %v7349_v38 }
  0xb7   : > { %v2135_v20 = vpop.f32.mrf.mxu3 }
  0xb8   : > { %v7640_v55 = vadd.f32 %v2135_v20, %v2046_v32  ;;  %v2008_v51 = vpop.f32.mrf.mxu0  ;;  %v1344_v20 = vpack.c.b16 %v1130_v12, %v1121_v54 }
  0xba   : > { %v2097_v13 = vpop.f32.mrf.mxu1 }
  0xbb   : > { %v7648_v56 = vadd.f32 %v2097_v13, %v2008_v51  ;;  %v1345_v51 = vpack.c.b16 %v1131_v30, %v1122_v46  ;;  %v1346_v13 = vpack.c.b16 %v1132_v31, %v1123_v22  ;;  %v713_v46 = vpack.c.bf16 %v7309_v10, %v7635_v43 }
  0xbd   : > { %v1137_v22 = vunpack.c.l.b16 %v713_v46  ;;  %v1138_v21 = vunpack.c.h.b16 %v713_v46  ;;  %v570_v46 = vrot.slane %v7369_v6, 2 }
  0xbe   : > { %v2048_v59 = vpop.f32.mrf.mxu2 }
  0xbf   : > { %v2137_v34 = vpop.f32.mrf.mxu3 }
  0xc0   : > { %v7653_v32 = vadd.f32 %v2137_v34, %v2048_v59  ;;  %v2011_v47 = vpop.f32.mrf.mxu0  ;;  %v1146_v34 = vunpack.c.l.b16 %v718_v3 }
  0xc2   : > { %v2100_v4 = vpop.f32.mrf.mxu1 }
  0xc3   : > { %v7658_v27 = vadd.f32 %v2100_v4, %v2011_v47  ;;  %2188 = vmatmul.bf16.gmra.mxu2 %v1344_v20  ;;  %2366 = vmatmul.bf16.gmra.mxu0 %v1346_v13  ;;  %v717_v4 = vpack.c.bf16 %v7312_v14, %v7638_v23  ;;  %v714_v47 = vpack.c.bf16 %v7661_v50, %v7346_v37  ;;  %v1147_v20 = vunpack.c.h.b16 %v718_v3  ;;  %v6763_v3 = vld [vmem:[%s11060_s1 + $0x1e8] sm:$0xff] }
  0xc4   : > { %2277 = vmatmul.bf16.gmra.mxu3 %v1345_v51 }
  0xc5   : > { %2455 = vmatmul.bf16.gmra.mxu1 %v1347_v48  ;;  %v1144_v31 = vunpack.c.l.b16 %v717_v4  ;;  %v1145_v9 = vunpack.c.h.b16 %v717_v4  ;;  %v1139_v59 = vunpack.c.l.b16 %v714_v47  ;;  %v1140_v10 = vunpack.c.h.b16 %v714_v47  ;;  %v6755_v47 = vld [vmem:[%s11060_s1 + $0x1a8] sm:$0xff]  ;;  %2622 = vmatpush.bf16.msra.mxu3 %v6763_v3 }
  0xc6   : > { %v2051_v11 = vpop.f32.mrf.mxu2  ;;  %2533 = vmatpush.bf16.msra.mxu2 %v6755_v47 }
  0xc7   : > { %v2140_v54 = vpop.f32.mrf.mxu3  ;;  %v1351_v49 = vpack.c.b16 %v1144_v31, %v1137_v22  ;;  %v1352_v60 = vpack.c.b16 %v1145_v9, %v1138_v21  ;;  %v721_v21 = vpack.c.bf16 %v7363_v0, %v7661_v50  ;;  %v725_v9 = vpack.c.bf16 %v7366_v5, %v7664_v19 }
  0xc8   : > { %v7666_v12 = vadd.f32 %v2140_v54, %v2051_v11  ;;  %v2013_v48 = vpop.f32.mrf.mxu0  ;;  %v1353_v11 = vpack.c.b16 %v1146_v34, %v1139_v59  ;;  %v1354_v54 = vpack.c.b16 %v1147_v20, %v1140_v10 }
  0xca   : > { %v2102_v15 = vpop.f32.mrf.mxu1 }
  0xcb   : > { %v7676_v30 = vadd.f32 %v2102_v15, %v2013_v48  ;;  %v567_v48 = vrot.slane %v7363_v0, 2  ;;  %v568_v15 = vrot.slane %v7366_v5, 2  ;;  %v1152_v0 = vunpack.c.h.b16 %v721_v21 }
  0xcd   : > { %v7692_v22 = vsel %vm546_vm1, %v567_v48, %v568_v15  ;;  %v7695_v31 = vsel %vm546_vm1, %v568_v15, %v570_v46 }
  0xce   : > { %v2053_v51 = vpop.f32.mrf.mxu2  ;;  %v722_v59 = vpack.c.bf16 %v7692_v22, %v7400_v44  ;;  %v726_v34 = vpack.c.bf16 %v7695_v31, %v7403_v45  ;;  %v572_v45 = vrot.slane %v7417_v39, 2  ;;  %v573_v44 = vrot.slane %v7420_v40, 2 }
  0xcf   : > { %v2142_v14 = vpop.f32.mrf.mxu3 }
  0xd0   : > { %v7678_v13 = vadd.f32 %v2142_v14, %v2053_v51  ;;  %v2016_v38 = vpop.f32.mrf.mxu0  ;;  %v6771_v14 = vld [vmem:[%s11060_s1 + $0x228] sm:$0xff]  ;;  %v1160_v5 = vunpack.c.l.b16 %v726_v34  ;;  %v1154_v48 = vunpack.c.h.b16 %v722_v59  ;;  %v1161_v15 = vunpack.c.h.b16 %v726_v34 }
  0xd1   : > { %2711 = vmatpush.bf16.msra.mxu0 %v6771_v14 }
  0xd2   : > { %v2105_v37 = vpop.f32.mrf.mxu1 }
  0xd3   : > { %v7683_v4 = vadd.f32 %v2105_v37, %v2016_v38  ;;  %2193 = vmatmul.bf16.gmra.mxu2 %v1351_v49  ;;  %2371 = vmatmul.bf16.gmra.mxu0 %v1353_v11  ;;  %v1151_v49 = vunpack.c.l.b16 %v721_v21  ;;  %v1159_v11 = vunpack.c.h.b16 %v725_v9  ;;  %v575_v21 = vrot.slane %v7423_v41, 2 }
  0xd4   : > { %2282 = vmatmul.bf16.gmra.mxu3 %v1352_v60  ;;  %v1158_v60 = vunpack.c.l.b16 %v725_v9  ;;  %v729_v41 = vpack.c.bf16 %v7417_v39, %v7692_v22 }
  0xd5   : > { %2460 = vmatmul.bf16.gmra.mxu1 %v1354_v54  ;;  %v1153_v54 = vunpack.c.l.b16 %v722_v59  ;;  %v7720_v59 = vsel %vm546_vm1, %v572_v45, %v573_v44  ;;  %v7723_v34 = vsel %vm546_vm1, %v573_v44, %v575_v21 }
  0xd6   : > { %v2056_v37 = vpop.f32.mrf.mxu2  ;;  %v734_v45 = vpack.c.bf16 %v7723_v34, %v7460_v26  ;;  %v577_v26 = vrot.slane %v7472_v53, 2 }
  0xd7   : > { %v2145_v38 = vpop.f32.mrf.mxu3 }
  0xd8   : > { %v7697_v6 = vadd.f32 %v2145_v38, %v2056_v37  ;;  %v2018_v10 = vpop.f32.mrf.mxu0  ;;  %v1358_v37 = vpack.c.b16 %v1158_v60, %v1151_v49  ;;  %v1359_v38 = vpack.c.b16 %v1159_v11, %v1152_v0  ;;  %v730_v0 = vpack.c.bf16 %v7720_v59, %v7457_v18 }
  0xda   : > { %v2107_v20 = vpop.f32.mrf.mxu1  ;;  %v1168_v39 = vunpack.c.h.b16 %v730_v0 }
  0xdb   : > { %v7707_v51 = vadd.f32 %v2107_v20, %v2018_v10  ;;  %v1360_v10 = vpack.c.b16 %v1160_v5, %v1153_v54  ;;  %v1361_v20 = vpack.c.b16 %v1161_v15, %v1154_v48  ;;  %v1165_v5 = vunpack.c.l.b16 %v729_v41 }
  0xdc   : > { %v1166_v15 = vunpack.c.h.b16 %v729_v41 }
  0xde   : > { %v2058_v46 = vpop.f32.mrf.mxu2 }
  0xdf   : > { %v2147_v47 = vpop.f32.mrf.mxu3 }
  0xe0   : > { %v7712_v3 = vadd.f32 %v2147_v47, %v2058_v46  ;;  %v2021_v9 = vpop.f32.mrf.mxu0  ;;  %v1167_v47 = vunpack.c.l.b16 %v730_v0  ;;  %v6754_v0 = vld [vmem:[%s11060_s1 + $0x1a0] sm:$0xff] }
  0xe1   : > { %2534 = vmatpush.bf16.msra.mxu2 %v6754_v0 }
  0xe2   : > { %v2110_v35 = vpop.f32.mrf.mxu1 }
  0xe3   : > { %v7717_v29 = vadd.f32 %v2110_v35, %v2021_v9  ;;  %2198 = vmatmul.bf16.gmra.mxu2 %v1358_v37  ;;  %2376 = vmatmul.bf16.gmra.mxu0 %v1360_v10  ;;  %v733_v35 = vpack.c.bf16 %v7420_v40, %v7695_v31  ;;  %v1174_v37 = vunpack.c.l.b16 %v734_v45 }
  0xe4   : > { %2287 = vmatmul.bf16.gmra.mxu3 %v1359_v38  ;;  %v1175_v38 = vunpack.c.h.b16 %v734_v45  ;;  %v6762_v45 = vld [vmem:[%s11060_s1 + $0x1e0] sm:$0xff] }
  0xe5   : > { %2465 = vmatmul.bf16.gmra.mxu1 %v1361_v20  ;;  %v1172_v48 = vunpack.c.l.b16 %v733_v35  ;;  %v1173_v46 = vunpack.c.h.b16 %v733_v35  ;;  %2623 = vmatpush.bf16.msra.mxu3 %v6762_v45 }
  0xe6   : > { %v2061_v14 = vpop.f32.mrf.mxu2 }
  0xe7   : > { %v2150_v49 = vpop.f32.mrf.mxu3  ;;  %v1365_v21 = vpack.c.b16 %v1172_v48, %v1165_v5  ;;  %v1366_v9 = vpack.c.b16 %v1173_v46, %v1166_v15 }
  0xe8   : > { %v7725_v60 = vadd.f32 %v2150_v49, %v2061_v14  ;;  %v2023_v11 = vpop.f32.mrf.mxu0  ;;  %v1367_v14 = vpack.c.b16 %v1174_v37, %v1167_v47  ;;  %v1368_v49 = vpack.c.b16 %v1175_v38, %v1168_v39  ;;  %v737_v47 = vpack.c.bf16 %v7472_v53, %v7720_v59 }
  0xe9   : > { %v741_v37 = vpack.c.bf16 %v7475_v17, %v7723_v34 }
  0xea   : > { %v2112_v54 = vpop.f32.mrf.mxu1  ;;  %v1180_v53 = vunpack.c.h.b16 %v737_v47 }
  0xeb   : > { %v7735_v44 = vadd.f32 %v2112_v54, %v2023_v11  ;;  %v578_v11 = vrot.slane %v7475_v17, 2  ;;  %v580_v54 = vrot.slane %v7478_v52, 2 }
  0xed   : > { %v7751_v5 = vsel %vm546_vm1, %v577_v26, %v578_v11  ;;  %v7754_v52 = vsel %vm546_vm1, %v578_v11, %v580_v54 }
  0xee   : > { %v2063_v10 = vpop.f32.mrf.mxu2  ;;  %v738_v39 = vpack.c.bf16 %v7751_v5, %v7503_v57  ;;  %v742_v26 = vpack.c.bf16 %v7754_v52, %v7506_v33  ;;  %v582_v33 = vrot.slane %v7540_v58, 2  ;;  %v583_v57 = vrot.slane %v7556_v61, 2 }
  0xef   : > { %v2152_v40 = vpop.f32.mrf.mxu3 }
  0xf0   : > { %v7737_v20 = vadd.f32 %v2152_v40, %v2063_v10  ;;  %v2026_v41 = vpop.f32.mrf.mxu0  ;;  %v1181_v11 = vunpack.c.l.b16 %v738_v39  ;;  %v1188_v17 = vunpack.c.l.b16 %v742_v26  ;;  %v1182_v54 = vunpack.c.h.b16 %v738_v39 }
  0xf1   : > { %v7779_v39 = vsel %vm546_vm1, %v582_v33, %v583_v57 }
  0xf2   : > { %11311 = vst [vmem:[#allocation63_spill] sm:$0xff] %v7737_v20  ;;  %v2115_v35 = vpop.f32.mrf.mxu1 }
  0xf3   : > { %v7742_v18 = vadd.f32 %v2115_v35, %v2026_v41  ;;  %2203 = vmatmul.bf16.gmra.mxu2 %v1365_v21  ;;  %2381 = vmatmul.bf16.gmra.mxu0 %v1367_v14  ;;  %v6770_v21 = vld [vmem:[%s11060_s1 + $0x220] sm:$0xff]  ;;  %v1186_v14 = vunpack.c.l.b16 %v741_v37  ;;  %v1189_v41 = vunpack.c.h.b16 %v742_v26  ;;  %11314 = vst [vmem:[#allocation66_spill] sm:$0xff] %v7779_v39 }
  0xf4   : > { %2292 = vmatmul.bf16.gmra.mxu3 %v1366_v9  ;;  %v1179_v9 = vunpack.c.l.b16 %v737_v47  ;;  %2712 = vmatpush.bf16.msra.mxu0 %v6770_v21  ;;  %v585_v47 = vrot.slane %v7559_v63, 2  ;;  %v745_v63 = vpack.c.bf16 %v7540_v58, %v7751_v5 }
  0xf5   : > { %2470 = vmatmul.bf16.gmra.mxu1 %v1368_v49  ;;  %v1187_v49 = vunpack.c.h.b16 %v741_v37 }
  0xf6   : > { %v2066_v48 = vpop.f32.mrf.mxu2  ;;  %v7782_v26 = vsel %vm546_vm1, %v583_v57, %v585_v47 }
  0xf7   : > { %v2155_v15 = vpop.f32.mrf.mxu3  ;;  %11315 = vst [vmem:[#allocation67_spill] sm:$0xff] %v7782_v26  ;;  %v750_v33 = vpack.c.bf16 %v7782_v26, %v7587_v8  ;;  %v6919_v8 = vld [vmem:[%s7130_s25 + $0xc8] sm:$0xff] }
  0xf8   : > { %v7756_v46 = vadd.f32 %v2155_v15, %v2066_v48  ;;  %v2028_v38 = vpop.f32.mrf.mxu0  ;;  %v1372_v48 = vpack.c.b16 %v1186_v14, %v1179_v9  ;;  %v1373_v15 = vpack.c.b16 %v1187_v49, %v1180_v53  ;;  %v746_v53 = vpack.c.bf16 %v7779_v39, %v7584_v36 }
  0xf9   : > { %v588_v36 = vrot.slane %v6919_v8, 2 }
  0xfa   : > { %11312 = vst [vmem:[#allocation64_spill] sm:$0xff] %v7756_v46  ;;  %v2117_v10 = vpop.f32.mrf.mxu1  ;;  %v1195_v58 = vunpack.c.l.b16 %v746_v53 }
  0xfb   : > { %v7766_v40 = vadd.f32 %v2117_v10, %v2028_v38  ;;  %v1374_v38 = vpack.c.b16 %v1188_v17, %v1181_v11  ;;  %v1375_v10 = vpack.c.b16 %v1189_v41, %v1182_v54  ;;  %v1193_v17 = vunpack.c.l.b16 %v745_v63 }
  0xfc   : > { %v1194_v41 = vunpack.c.h.b16 %v745_v63 }
  0xfe   : > { %v2068_v35 = vpop.f32.mrf.mxu2 }
  0xff   : > { %v2157_v0 = vpop.f32.mrf.mxu3 }
 0x100   : > { %v7771_v45 = vadd.f32 %v2157_v0, %v2068_v35  ;;  %v2031_v37 = vpop.f32.mrf.mxu0  ;;  %v1202_v0 = vunpack.c.l.b16 %v750_v33 }
 0x102   : > { %11313 = vst [vmem:[#allocation65_spill] sm:$0xff] %v7771_v45  ;;  %v2120_v62 = vpop.f32.mrf.mxu1 }
 0x103   : > { %v7776_v46 = vadd.f32 %v2120_v62, %v2031_v37  ;;  %2208 = vmatmul.bf16.gmra.mxu2 %v1372_v48  ;;  %2386 = vmatmul.bf16.gmra.mxu0 %v1374_v38  ;;  %v749_v62 = vpack.c.bf16 %v7556_v61, %v7754_v52  ;;  %v1196_v61 = vunpack.c.h.b16 %v746_v53  ;;  %v1203_v48 = vunpack.c.h.b16 %v750_v33  ;;  %v6753_v53 = vld [vmem:[%s11060_s1 + $0x198] sm:$0xff] }
 0x104   : > { %2297 = vmatmul.bf16.gmra.mxu3 %v1373_v15  ;;  %v6761_v33 = vld [vmem:[%s11060_s1 + $0x1d8] sm:$0xff]  ;;  %2535 = vmatpush.bf16.msra.mxu2 %v6753_v53 }
 0x105   : > { %2475 = vmatmul.bf16.gmra.mxu1 %v1375_v10  ;;  %v1200_v54 = vunpack.c.l.b16 %v749_v62  ;;  %v1201_v35 = vunpack.c.h.b16 %v749_v62  ;;  %2624 = vmatpush.bf16.msra.mxu3 %v6761_v33 }
 0x106   : > { %v2071_v21 = vpop.f32.mrf.mxu2 }
 0x107   : > { %v2160_v9 = vpop.f32.mrf.mxu3  ;;  %v1379_v47 = vpack.c.b16 %v1200_v54, %v1193_v17  ;;  %v1380_v37 = vpack.c.b16 %v1201_v35, %v1194_v41 }
 0x108   : > { %v7784_v14 = vadd.f32 %v2160_v9, %v2071_v21  ;;  %v2033_v49 = vpop.f32.mrf.mxu0  ;;  %v1381_v21 = vpack.c.b16 %v1202_v0, %v1195_v58  ;;  %v1382_v9 = vpack.c.b16 %v1203_v48, %v1196_v61  ;;  %v757_v58 = vpack.c.bf16 %v6919_v8, %v7782_v26 }
 0x10a   : > { %11316 = vst [vmem:[#allocation68_spill] sm:$0xff] %v7784_v14  ;;  %v2122_v11 = vpop.f32.mrf.mxu1  ;;  %v6920_v14 = vld [vmem:[%s7130_s25 + $0xd0] sm:$0x3] }
 0x10b   : > { %v7794_v57 = vadd.f32 %v2122_v11, %v2033_v49  ;;  %v6918_v49 = vld [vmem:[%s7130_s25 + $0xc0] sm:$0xff]  ;;  %v590_v63 = vrot.slane %v6920_v14, 2 }
 0x10c   : > { %v587_v11 = vrot.slane %v6918_v49, 2  ;;  %v753_v35 = vpack.c.bf16 %v6918_v49, %v7779_v39 }
 0x10d   : > { %v7813_v14 = vsel %vm546_vm1, %v588_v36, %v590_v63  ;;  %v6769_v63 = vld [vmem:[%s11060_s1 + $0x218] sm:$0xff] }
 0x10e   : > { %v2073_v15 = vpop.f32.mrf.mxu2  ;;  %v7810_v17 = vsel %vm546_vm1, %v587_v11, %v588_v36  ;;  %11319 = vst [vmem:[#allocation71_spill] sm:$0xff] %v7813_v14  ;;  %v758_v61 = vpack.c.bf16 %v7813_v14, %v7169_v25  ;;  %2713 = vmatpush.bf16.msra.mxu0 %v6769_v63  ;;  %v6922_v25 = vld [vmem:[%s7130_s25 + $0xe0] sm:$0xff] }
 0x10f   : > { %v2162_v38 = vpop.f32.mrf.mxu3  ;;  %11318 = vst [vmem:[#allocation70_spill] sm:$0xff] %v7810_v17  ;;  %v754_v0 = vpack.c.bf16 %v7810_v17, %v7166_v24  ;;  %v593_v24 = vrot.slane %v6922_v25, 2 }
 0x110   : > { %v7796_v10 = vadd.f32 %v2162_v38, %v2073_v15  ;;  %v2036_v62 = vpop.f32.mrf.mxu0  ;;  %v1207_v38 = vunpack.c.l.b16 %v753_v35  ;;  %v1216_v49 = vunpack.c.l.b16 %v758_v61  ;;  %v1217_v11 = vunpack.c.h.b16 %v758_v61 }
 0x111   : > { %v1210_v8 = vunpack.c.h.b16 %v754_v0 }
 0x112   : > { %11317 = vst [vmem:[#allocation69_spill] sm:$0xff] %v7796_v10  ;;  %v2125_v45 = vpop.f32.mrf.mxu1 }
 0x113   : > { %v7801_v20 = vadd.f32 %v2125_v45, %v2036_v62  ;;  %2213 = vmatmul.bf16.gmra.mxu2 %v1379_v47  ;;  %2391 = vmatmul.bf16.gmra.mxu0 %v1381_v21  ;;  %v1214_v47 = vunpack.c.l.b16 %v757_v58  ;;  %v1215_v21 = vunpack.c.h.b16 %v757_v58  ;;  %v6921_v58 = vld [vmem:[%s7130_s25 + $0xd8] sm:$0xff] }
 0x114   : > { %2302 = vmatmul.bf16.gmra.mxu3 %v1380_v37  ;;  %v1208_v37 = vunpack.c.h.b16 %v753_v35  ;;  %v1389_v35 = vpack.c.b16 %v1217_v11, %v1210_v8 }
 0x115   : > { %2480 = vmatmul.bf16.gmra.mxu1 %v1382_v9  ;;  %v1209_v9 = vunpack.c.l.b16 %v754_v0 }
 0x116   : > { %v2076_v45 = vpop.f32.mrf.mxu2 }
 0x117   : > { %v2165_v54 = vpop.f32.mrf.mxu3 }
 0x118   : > { %v7815_v41 = vadd.f32 %v2165_v54, %v2076_v45  ;;  %v2038_v48 = vpop.f32.mrf.mxu0  ;;  %v1386_v45 = vpack.c.b16 %v1214_v47, %v1207_v38  ;;  %v1387_v54 = vpack.c.b16 %v1215_v21, %v1208_v37 }
 0x11a   : > { %11320 = vst [vmem:[#allocation72_spill] sm:$0xff] %v7815_v41  ;;  %v2127_v15 = vpop.f32.mrf.mxu1  ;;  %v6923_v41 = vld [vmem:[%s7130_s25 + $0xe8] sm:$0x3] }
 0x11b   : > { %v7823_v36 = vadd.f32 %v2127_v15, %v2038_v48  ;;  %v1388_v48 = vpack.c.b16 %v1216_v49, %v1209_v9  ;;  %v592_v15 = vrot.slane %v6921_v58, 2  ;;  %v595_v0 = vrot.slane %v6923_v41, 2 }
 0x11c   : > { %v761_v41 = vpack.c.bf16 %v6921_v58, %v7810_v17  ;;  %v765_v49 = vpack.c.bf16 %v6922_v25, %v7813_v14  ;;  %v6926_v14 = vld [vmem:[%s7130_s25 + $0x100] sm:$0x3] }
 0x11d   : > { %v7836_v38 = vsel %vm546_vm1, %v592_v15, %v593_v24  ;;  %v7839_v47 = vsel %vm546_vm1, %v593_v24, %v595_v0 }
 0x11e   : > { %v2078_v62 = vpop.f32.mrf.mxu2  ;;  %11322 = vst [vmem:[#allocation74_spill] sm:$0xff] %v7836_v38  ;;  %v766_v8 = vpack.c.bf16 %v7839_v47, %v7229_v2  ;;  %v1221_v24 = vunpack.c.l.b16 %v761_v41 }
 0x11f   : > { %v2167_v53 = vpop.f32.mrf.mxu3  ;;  %11323 = vst [vmem:[#allocation75_spill] sm:$0xff] %v7839_v47 }
 0x120   : > { %v7828_v33 = vadd.f32 %v2167_v53, %v2078_v62  ;;  %v2041_v61 = vpop.f32.mrf.mxu0  ;;  %v1228_v53 = vunpack.c.l.b16 %v765_v49  ;;  %v1231_v58 = vunpack.c.h.b16 %v766_v8 }
 0x122   : > { %11321 = vst [vmem:[#allocation73_spill] sm:$0xff] %v7828_v33  ;;  %v2130_v10 = vpop.f32.mrf.mxu1 }
 0x123   : > { %v7833_v26 = vadd.f32 %v2130_v10, %v2041_v61  ;;  %2218 = vmatmul.bf16.gmra.mxu2 %v1386_v45  ;;  %2396 = vmatmul.bf16.gmra.mxu0 %v1388_v48  ;;  %v762_v10 = vpack.c.bf16 %v7836_v38, %v7226_v1  ;;  %v1222_v45 = vunpack.c.h.b16 %v761_v41  ;;  %v600_v41 = vrot.slane %v6926_v14, 2  ;;  %v6760_v14 = vld [vmem:[%s11060_s1 + $0x1d0] sm:$0xff] }
 0x124   : > { %2307 = vmatmul.bf16.gmra.mxu3 %v1387_v54  ;;  %v1229_v54 = vunpack.c.h.b16 %v765_v49 }
 0x125   : > { %2485 = vmatmul.bf16.gmra.mxu1 %v1389_v35  ;;  %v1223_v48 = vunpack.c.l.b16 %v762_v10  ;;  %v1230_v35 = vunpack.c.l.b16 %v766_v8  ;;  %v1224_v25 = vunpack.c.h.b16 %v762_v10  ;;  %v6752_v10 = vld [vmem:[%s11060_s1 + $0x190] sm:$0xff]  ;;  %2625 = vmatpush.bf16.msra.mxu3 %v6760_v14 }
 0x126   : > { %v2081_v37 = vpop.f32.mrf.mxu2  ;;  %2536 = vmatpush.bf16.msra.mxu2 %v6752_v10 }
 0x127   : > { %v2170_v21 = vpop.f32.mrf.mxu3  ;;  %v1395_v2 = vpack.c.b16 %v1230_v35, %v1223_v48  ;;  %v11328_v35 = vld [vmem:[#allocation16_spill] sm:$0xff] }
 0x128   : > { %v7841_v9 = vadd.f32 %v2170_v21, %v2081_v37  ;;  %v2043_v11 = vpop.f32.mrf.mxu0  ;;  %v1393_v37 = vpack.c.b16 %v1228_v53, %v1221_v24  ;;  %v1394_v21 = vpack.c.b16 %v1229_v54, %v1222_v45 }
 0x12a   : > { %11324 = vst [vmem:[#allocation76_spill] sm:$0xff] %v7841_v9  ;;  %v2132_v63 = vpop.f32.mrf.mxu1  ;;  %v6925_v9 = vld [vmem:[%s7130_s25 + $0xf8] sm:$0xff] }
 0x12b   : > { %v7849_v62 = vadd.f32 %v2132_v63, %v2043_v11  ;;  %v1396_v11 = vpack.c.b16 %v1231_v58, %v1224_v25  ;;  %v6924_v63 = vld [vmem:[%s7130_s25 + $0xf0] sm:$0xff]  ;;  %v598_v33 = vrot.slane %v6925_v9, 2 }
 0x12c   : > { %v597_v1 = vrot.slane %v6924_v63, 2  ;;  %v769_v54 = vpack.c.bf16 %v6924_v63, %v7836_v38 }
 0x12d   : > { %v7863_v24 = vsel %vm546_vm1, %v598_v33, %v600_v41 }
 0x12e   : > { %v2083_v15 = vpop.f32.mrf.mxu2  ;;  %v7860_v8 = vsel %vm546_vm1, %v597_v1, %v598_v33  ;;  %11327 = vst [vmem:[#allocation79_spill] sm:$0xff] %v7863_v24  ;;  %v774_v33 = vpack.c.bf16 %v7863_v24, %v11328_v35 }
 0x12f   : > { %v2172_v0 = vpop.f32.mrf.mxu3  ;;  %11326 = vst [vmem:[#allocation78_spill] sm:$0xff] %v7860_v8  ;;  %v770_v1 = vpack.c.bf16 %v7860_v8, %v7277_v42  ;;  %v6927_v42 = vld [vmem:[%s7130_s25 + $0x108] sm:$0xff] }
 0x130   : > { %v7851_v61 = vadd.f32 %v2172_v0, %v2083_v15  ;;  %v2362_v49 = vpop.f32.mrf.mxu0  ;;  %v1235_v0 = vunpack.c.l.b16 %v769_v54  ;;  %v1245_v10 = vunpack.c.h.b16 %v774_v33 }
 0x131   : > { %v1237_v41 = vunpack.c.l.b16 %v770_v1 }
 0x132   : > { %11325 = vst [vmem:[#allocation77_spill] sm:$0xff] %v7851_v61  ;;  %v2451_v17 = vpop.f32.mrf.mxu1  ;;  %v602_v61 = vrot.slane %v6927_v42, 2 }
 0x133   : > { %2223 = vmatmul.bf16.gmra.mxu2 %v1393_v37  ;;  %2401 = vmatmul.bf16.gmra.mxu0 %v1395_v2  ;;  %v773_v2 = vpack.c.bf16 %v6925_v9, %v7839_v47  ;;  %v1238_v9 = vunpack.c.h.b16 %v770_v1  ;;  %v6928_v1 = vld [vmem:[%s7130_s25 + $0x110] sm:$0xff] }
 0x134   : > { %2312 = vmatmul.bf16.gmra.mxu3 %v1394_v21  ;;  %v603_v47 = vrot.slane %v6928_v1, 2 }
 0x135   : > { %2490 = vmatmul.bf16.gmra.mxu1 %v1396_v11  ;;  %v1242_v21 = vunpack.c.l.b16 %v773_v2  ;;  %v1236_v11 = vunpack.c.h.b16 %v769_v54  ;;  %v1243_v63 = vunpack.c.h.b16 %v773_v2  ;;  %v1403_v35 = vpack.c.b16 %v1245_v10, %v1238_v9  ;;  %v11331_v10 = vld [vmem:[#allocation23_spill] sm:$0xff] }
 0x136   : > { %v2184_v53 = vpop.f32.mrf.mxu2  ;;  %v781_v9 = vpack.c.bf16 %v6928_v1, %v7863_v24 }
 0x137   : > { %v2273_v45 = vpop.f32.mrf.mxu3  ;;  %v2185_v48 = vadd.f32 %v2184_v53, %v7626_v7  ;;  %v1244_v7 = vunpack.c.l.b16 %v774_v33  ;;  %v6768_v53 = vld [vmem:[%s11060_s1 + $0x210] sm:$0xff]  ;;  %v1401_v54 = vpack.c.b16 %v1243_v63, %v1236_v11  ;;  %v6929_v33 = vld [vmem:[%s7130_s25 + $0x118] sm:$0x3] }
 0x138   : > { %v2364_v58 = vpop.f32.mrf.mxu0  ;;  %2714 = vmatpush.bf16.msra.mxu0 %v6768_v53 }
 0x139   : > { %v2274_v25 = vadd.f32 %v2273_v45, %v2185_v48  ;;  %v1402_v2 = vpack.c.b16 %v1244_v7, %v1237_v41  ;;  %v777_v41 = vpack.c.bf16 %v6927_v42, %v7860_v8  ;;  %v1257_v42 = vunpack.c.h.b16 %v781_v9 }
 0x13a   : > { %v2453_v15 = vpop.f32.mrf.mxu1 }
 0x13b   : > { %v2363_v37 = vadd.f32 %v2362_v49, %v2274_v25  ;;  %v1400_v25 = vpack.c.b16 %v1242_v21, %v1235_v0  ;;  %v7887_v0 = vsel %vm546_vm1, %v602_v61, %v603_v47 }
 0x13d   : > { %v7875_v14 = vadd.f32 %v2451_v17, %v2363_v37  ;;  %v605_v17 = vrot.slane %v6929_v33, 2 }
 0x13e   : > { %v2186_v45 = vpop.f32.mrf.mxu2 }
 0x13f   : > { %11329 = vst [vmem:[#allocation80_spill] sm:$0xff] %v7875_v14  ;;  %v2275_v48 = vpop.f32.mrf.mxu3  ;;  %v2187_v49 = vadd.f32 %v2186_v45, %v7648_v56  ;;  %v7890_v21 = vsel %vm546_vm1, %v603_v47, %v605_v17  ;;  %v1249_v45 = vunpack.c.l.b16 %v777_v41 }
 0x140   : > { %v2367_v14 = vpop.f32.mrf.mxu0 }
 0x141   : > { %v2276_v37 = vadd.f32 %v2275_v48, %v2187_v49  ;;  %v1256_v48 = vunpack.c.l.b16 %v781_v9  ;;  %v1250_v49 = vunpack.c.h.b16 %v777_v41  ;;  %v6931_v41 = vld [vmem:[%s7130_s25 + $0x128] sm:$0xff]  ;;  %v6932_v9 = vld [vmem:[%s7130_s25 + $0x130] sm:$0x3] }
 0x142   : > { %v2456_v38 = vpop.f32.mrf.mxu1 }
 0x143   : > { %2228 = vmatmul.bf16.gmra.mxu2 %v1400_v25  ;;  %v2365_v39 = vadd.f32 %v2364_v58, %v2276_v37  ;;  %2406 = vmatmul.bf16.gmra.mxu0 %v1402_v2  ;;  %v778_v58 = vpack.c.bf16 %v7887_v0, %v11331_v10  ;;  %v608_v10 = vrot.slane %v6931_v41, 2 }
 0x144   : > { %2317 = vmatmul.bf16.gmra.mxu3 %v1401_v54 }
 0x145   : > { %2495 = vmatmul.bf16.gmra.mxu1 %v1403_v35  ;;  %v7884_v56 = vadd.f32 %v2453_v15, %v2365_v39  ;;  %v11332_v35 = vld [vmem:[#allocation24_spill] sm:$0xff]  ;;  %v1251_v25 = vunpack.c.l.b16 %v778_v58  ;;  %v1252_v54 = vunpack.c.h.b16 %v778_v58 }
 0x146   : > { %v2189_v11 = vpop.f32.mrf.mxu2  ;;  %v782_v39 = vpack.c.bf16 %v7890_v21, %v11332_v35 }
 0x147   : > { %11330 = vst [vmem:[#allocation81_spill] sm:$0xff] %v7884_v56  ;;  %v2278_v63 = vpop.f32.mrf.mxu3  ;;  %v2190_v7 = vadd.f32 %v2189_v11, %v7658_v27  ;;  %v1407_v11 = vpack.c.b16 %v1256_v48, %v1249_v45  ;;  %v610_v56 = vrot.slane %v6932_v9, 2  ;;  %v6759_v48 = vld [vmem:[%s11060_s1 + $0x1c8] sm:$0xff] }
 0x148   : > { %v2369_v61 = vpop.f32.mrf.mxu0  ;;  %v1258_v27 = vunpack.c.l.b16 %v782_v39  ;;  %v1259_v2 = vunpack.c.h.b16 %v782_v39  ;;  %2626 = vmatpush.bf16.msra.mxu3 %v6759_v48  ;;  %v6767_v9 = vld [vmem:[%s11060_s1 + $0x208] sm:$0xff] }
 0x149   : > { %v2279_v15 = vadd.f32 %v2278_v63, %v2190_v7  ;;  %v1408_v63 = vpack.c.b16 %v1257_v42, %v1250_v49  ;;  %2715 = vmatpush.bf16.msra.mxu0 %v6767_v9  ;;  %v11340_v9 = vld [vmem:[#allocation40_spill] sm:$0xff] }
 0x14a   : > { %v2458_v53 = vpop.f32.mrf.mxu1  ;;  %v1409_v7 = vpack.c.b16 %v1258_v27, %v1251_v25  ;;  %v11335_v25 = vld [vmem:[#allocation31_spill] sm:$0xff]  ;;  %v11336_v27 = vld [vmem:[#allocation32_spill] sm:$0xff] }
 0x14b   : > { %v2368_v47 = vadd.f32 %v2367_v14, %v2279_v15  ;;  %v1410_v14 = vpack.c.b16 %v1259_v2, %v1252_v54  ;;  %v6930_v15 = vld [vmem:[%s7130_s25 + $0x120] sm:$0xff] }
 0x14c   : > { %v607_v35 = vrot.slane %v6930_v15, 2  ;;  %v785_v49 = vpack.c.bf16 %v6930_v15, %v7887_v0 }
 0x14d   : > { %v7899_v1 = vadd.f32 %v2456_v38, %v2368_v47  ;;  %v7914_v47 = vsel %vm546_vm1, %v608_v10, %v610_v56 }
 0x14e   : > { %v2191_v33 = vpop.f32.mrf.mxu2  ;;  %v7911_v45 = vsel %vm546_vm1, %v607_v35, %v608_v10  ;;  %11334 = vst [vmem:[#allocation83_spill] sm:$0xff] %v7914_v47  ;;  %v790_v56 = vpack.c.bf16 %v7914_v47, %v11336_v27 }
 0x14f   : > { %v2280_v17 = vpop.f32.mrf.mxu3  ;;  %v2192_v37 = vadd.f32 %v2191_v33, %v7676_v30  ;;  %v6751_v30 = vld [vmem:[%s11060_s1 + $0x188] sm:$0xff]  ;;  %v786_v35 = vpack.c.bf16 %v7911_v45, %v11335_v25  ;;  %v1263_v33 = vunpack.c.l.b16 %v785_v49 }
 0x150   : > { %v2372_v8 = vpop.f32.mrf.mxu0  ;;  %2537 = vmatpush.bf16.msra.mxu2 %v6751_v30  ;;  %v1273_v15 = vunpack.c.h.b16 %v790_v56 }
 0x151   : > { %v2281_v24 = vadd.f32 %v2280_v17, %v2192_v37 }
 0x152   : > { %v2461_v58 = vpop.f32.mrf.mxu1 }
 0x153   : > { %2233 = vmatmul.bf16.gmra.mxu2 %v1407_v11  ;;  %v2370_v38 = vadd.f32 %v2369_v61, %v2281_v24  ;;  %2411 = vmatmul.bf16.gmra.mxu0 %v1409_v7  ;;  %v1264_v11 = vunpack.c.h.b16 %v785_v49  ;;  %v1265_v7 = vunpack.c.l.b16 %v786_v35 }
 0x154   : > { %2322 = vmatmul.bf16.gmra.mxu3 %v1408_v63 }
 0x155   : > { %2500 = vmatmul.bf16.gmra.mxu1 %v1410_v14  ;;  %v7908_v39 = vadd.f32 %v2458_v53, %v2370_v38  ;;  %v789_v53 = vpack.c.bf16 %v6931_v41, %v7890_v21  ;;  %v1266_v14 = vunpack.c.h.b16 %v786_v35  ;;  %v6934_v35 = vld [vmem:[%s7130_s25 + $0x140] sm:$0xff] }
 0x156   : > { %v2194_v24 = vpop.f32.mrf.mxu2 }
 0x157   : > { %11333 = vst [vmem:[#allocation82_spill] sm:$0xff] %v7908_v39  ;;  %v2283_v61 = vpop.f32.mrf.mxu3  ;;  %v2195_v42 = vadd.f32 %v2194_v24, %v7683_v4  ;;  %v1270_v37 = vunpack.c.l.b16 %v789_v53  ;;  %v1271_v63 = vunpack.c.h.b16 %v789_v53  ;;  %v1272_v4 = vunpack.c.l.b16 %v790_v56  ;;  %v6935_v56 = vld [vmem:[%s7130_s25 + $0x148] sm:$0x3] }
 0x158   : > { %v2374_v54 = vpop.f32.mrf.mxu0  ;;  %v1417_v49 = vpack.c.b16 %v1273_v15, %v1266_v14  ;;  %v797_v14 = vpack.c.bf16 %v6934_v35, %v7914_v47  ;;  %v11339_v15 = vld [vmem:[#allocation39_spill] sm:$0xff] }
 0x159   : > { %v2284_v10 = vadd.f32 %v2283_v61, %v2195_v42  ;;  %v1414_v48 = vpack.c.b16 %v1270_v37, %v1263_v33  ;;  %v1415_v24 = vpack.c.b16 %v1271_v63, %v1264_v11  ;;  %v1416_v61 = vpack.c.b16 %v1272_v4, %v1265_v7  ;;  %v6933_v42 = vld [vmem:[%s7130_s25 + $0x138] sm:$0xff] }
 0x15a   : > { %v2463_v2 = vpop.f32.mrf.mxu1  ;;  %v612_v53 = vrot.slane %v6933_v42, 2  ;;  %v793_v7 = vpack.c.bf16 %v6933_v42, %v7911_v45 }
 0x15b   : > { %v2373_v17 = vadd.f32 %v2372_v8, %v2284_v10  ;;  %v613_v10 = vrot.slane %v6934_v35, 2 }
 0x15d   : > { %v7926_v41 = vadd.f32 %v2461_v58, %v2373_v17  ;;  %v615_v58 = vrot.slane %v6935_v56, 2  ;;  %v7938_v33 = vsel %vm546_vm1, %v612_v53, %v613_v10 }
 0x15e   : > { %v2196_v38 = vpop.f32.mrf.mxu2 }
 0x15f   : > { %11337 = vst [vmem:[#allocation84_spill] sm:$0xff] %v7926_v41  ;;  %v2285_v30 = vpop.f32.mrf.mxu3  ;;  %v2197_v8 = vadd.f32 %v2196_v38, %v7707_v51  ;;  %v7941_v37 = vsel %vm546_vm1, %v613_v10, %v615_v58 }
 0x160   : > { %v2377_v27 = vpop.f32.mrf.mxu0 }
 0x161   : > { %v2286_v17 = vadd.f32 %v2285_v30, %v2197_v8  ;;  %v1277_v8 = vunpack.c.l.b16 %v793_v7 }
 0x162   : > { %v2466_v25 = vpop.f32.mrf.mxu1 }
 0x163   : > { %2238 = vmatmul.bf16.gmra.mxu2 %v1414_v48  ;;  %v2375_v41 = vadd.f32 %v2374_v54, %v2286_v17  ;;  %2416 = vmatmul.bf16.gmra.mxu0 %v1416_v61  ;;  %v794_v54 = vpack.c.bf16 %v7938_v33, %v11339_v15  ;;  %v1278_v61 = vunpack.c.h.b16 %v793_v7  ;;  %v6937_v7 = vld [vmem:[%s7130_s25 + $0x158] sm:$0xff] }
 0x164   : > { %2327 = vmatmul.bf16.gmra.mxu3 %v1415_v24  ;;  %v1284_v24 = vunpack.c.l.b16 %v797_v14  ;;  %v618_v15 = vrot.slane %v6937_v7, 2 }
 0x165   : > { %2505 = vmatmul.bf16.gmra.mxu1 %v1417_v49  ;;  %v7935_v51 = vadd.f32 %v2463_v2, %v2375_v41  ;;  %v798_v2 = vpack.c.bf16 %v7941_v37, %v11340_v9  ;;  %v1285_v49 = vunpack.c.h.b16 %v797_v14  ;;  %v1279_v42 = vunpack.c.l.b16 %v794_v54  ;;  %v6938_v14 = vld [vmem:[%s7130_s25 + $0x160] sm:$0x3] }
 0x166   : > { %v2199_v11 = vpop.f32.mrf.mxu2  ;;  %v1280_v53 = vunpack.c.h.b16 %v794_v54 }
 0x167   : > { %11338 = vst [vmem:[#allocation85_spill] sm:$0xff] %v7935_v51  ;;  %v2288_v63 = vpop.f32.mrf.mxu3  ;;  %v2200_v4 = vadd.f32 %v2199_v11, %v7717_v29  ;;  %v1286_v29 = vunpack.c.l.b16 %v798_v2  ;;  %v1287_v35 = vunpack.c.h.b16 %v798_v2  ;;  %v1421_v11 = vpack.c.b16 %v1284_v24, %v1277_v8  ;;  %v6758_v24 = vld [vmem:[%s11060_s1 + $0x1c0] sm:$0xff] }
 0x168   : > { %v2379_v38 = vpop.f32.mrf.mxu0  ;;  %v620_v51 = vrot.slane %v6938_v14, 2  ;;  %2627 = vmatpush.bf16.msra.mxu3 %v6758_v24  ;;  %v6766_v14 = vld [vmem:[%s11060_s1 + $0x200] sm:$0xff]  ;;  %v6939_v24 = vld [vmem:[%s7130_s25 + $0x168] sm:$0xff] }
 0x169   : > { %v2289_v41 = vadd.f32 %v2288_v63, %v2200_v4  ;;  %v1422_v63 = vpack.c.b16 %v1285_v49, %v1278_v61  ;;  %v1423_v4 = vpack.c.b16 %v1286_v29, %v1279_v42  ;;  %v11341_v42 = vld [vmem:[#allocation47_spill] sm:$0xff]  ;;  %v11342_v29 = vld [vmem:[#allocation48_spill] sm:$0xff]  ;;  %2716 = vmatpush.bf16.msra.mxu0 %v6766_v14 }
 0x16a   : > { %v2468_v30 = vpop.f32.mrf.mxu1 }
 0x16b   : > { %v2378_v48 = vadd.f32 %v2377_v27, %v2289_v41  ;;  %v1424_v27 = vpack.c.b16 %v1287_v35, %v1280_v53  ;;  %v6936_v41 = vld [vmem:[%s7130_s25 + $0x150] sm:$0xff] }
 0x16c   : > { %v617_v9 = vrot.slane %v6936_v41, 2  ;;  %v801_v61 = vpack.c.bf16 %v6936_v41, %v7938_v33 }
 0x16d   : > { %v7950_v10 = vadd.f32 %v2466_v25, %v2378_v48  ;;  %v7965_v48 = vsel %vm546_vm1, %v618_v15, %v620_v51 }
 0x16e   : > { %v2201_v56 = vpop.f32.mrf.mxu2  ;;  %v7962_v8 = vsel %vm546_vm1, %v617_v9, %v618_v15  ;;  %v806_v51 = vpack.c.bf16 %v7965_v48, %v11342_v29 }
 0x16f   : > { %v2290_v58 = vpop.f32.mrf.mxu3  ;;  %v2202_v17 = vadd.f32 %v2201_v56, %v7735_v44  ;;  %v6750_v44 = vld [vmem:[%s11060_s1 + $0x180] sm:$0xff]  ;;  %v802_v9 = vpack.c.bf16 %v7962_v8, %v11341_v42  ;;  %v1291_v56 = vunpack.c.l.b16 %v801_v61 }
 0x170   : > { %v2382_v47 = vpop.f32.mrf.mxu0  ;;  %2538 = vmatpush.bf16.msra.mxu2 %v6750_v44  ;;  %v1301_v41 = vunpack.c.h.b16 %v806_v51 }
 0x171   : > { %v2291_v39 = vadd.f32 %v2290_v58, %v2202_v17 }
 0x172   : > { %v2471_v54 = vpop.f32.mrf.mxu1 }
 0x173   : > { %2243 = vmatmul.bf16.gmra.mxu2 %v1421_v11  ;;  %v2380_v25 = vadd.f32 %v2379_v38, %v2291_v39  ;;  %2421 = vmatmul.bf16.gmra.mxu0 %v1423_v4  ;;  %v1292_v11 = vunpack.c.h.b16 %v801_v61  ;;  %v1300_v4 = vunpack.c.l.b16 %v806_v51 }
 0x174   : > { %2332 = vmatmul.bf16.gmra.mxu3 %v1422_v63  ;;  %v1293_v63 = vunpack.c.l.b16 %v802_v9 }
 0x175   : > { %2510 = vmatmul.bf16.gmra.mxu1 %v1424_v27  ;;  %v7959_v2 = vadd.f32 %v2468_v30, %v2380_v25  ;;  %v805_v30 = vpack.c.bf16 %v6937_v7, %v7941_v37  ;;  %v1294_v27 = vunpack.c.h.b16 %v802_v9 }
 0x176   : > { %v2204_v39 = vpop.f32.mrf.mxu2  ;;  %v1430_v51 = vpack.c.b16 %v1300_v4, %v1293_v63 }
 0x177   : > { %v2293_v38 = vpop.f32.mrf.mxu3  ;;  %v2205_v49 = vadd.f32 %v2204_v39, %v7742_v18  ;;  %v1298_v17 = vunpack.c.l.b16 %v805_v30  ;;  %v1299_v18 = vunpack.c.h.b16 %v805_v30  ;;  %v622_v39 = vrot.slane %v6939_v24, 2 }
 0x178   : > { %v2384_v53 = vpop.f32.mrf.mxu0 }
 0x179   : > { %v2294_v15 = vadd.f32 %v2293_v38, %v2205_v49  ;;  %v1428_v38 = vpack.c.b16 %v1298_v17, %v1291_v56  ;;  %v1429_v61 = vpack.c.b16 %v1299_v18, %v1292_v11  ;;  %v6940_v49 = vld [vmem:[%s7130_s25 + $0x170] sm:$0xff]  ;;  %v809_v18 = vpack.c.bf16 %v6939_v24, %v7962_v8 }
 0x17a   : > { %v7977_v35 = vpop.f32.mrf.mxu1  ;;  %v623_v30 = vrot.slane %v6940_v49, 2  ;;  %v813_v63 = vpack.c.bf16 %v6940_v49, %v7965_v48  ;;  %v702_v24 = vpack.c.bf16 %v7638_v23, %v7638_v23 }
 0x17b   : > { %11343 = vst [vmem:[#allocation86_spill] sm:$0xff] %v7977_v35  ;;  %v2383_v58 = vadd.f32 %v2382_v47, %v2294_v15  ;;  %v6941_v15 = vld [vmem:[%s7130_s25 + $0x178] sm:$0x3] }
 0x17c   : > { %v625_v9 = vrot.slane %v6941_v15, 2 }
 0x17d   : > { %v7979_v7 = vadd.f32 %v2471_v54, %v2383_v58  ;;  %v1431_v54 = vpack.c.b16 %v1301_v41, %v1294_v27  ;;  %v697_v41 = vpack.c.bf16 %v7635_v43, %v7635_v43  ;;  %v8012_v43 = vld [vmem:[%s7130_s25 + $0x180] sm:$0xff] }
 0x17e   : > { %v2206_v25 = vpop.f32.mrf.mxu2  ;;  %v7994_v56 = vsel %vm546_vm1, %v623_v30, %v625_v9 }
 0x17f   : > { %v2295_v44 = vpop.f32.mrf.mxu3  ;;  %v2207_v47 = vadd.f32 %v2206_v25, %v7766_v40  ;;  %v7991_v40 = vsel %vm546_vm1, %v622_v39, %v623_v30  ;;  %v814_v27 = vpack.c.bf16 %v7994_v56, %v7578_v28  ;;  %v1312_v39 = vunpack.c.l.b16 %v813_v63 }
 0x180   : > { %v2387_v29 = vpop.f32.mrf.mxu0 }
 0x181   : > { %v2296_v58 = vadd.f32 %v2295_v44, %v2207_v47  ;;  %v1306_v47 = vunpack.c.h.b16 %v809_v18  ;;  %v1314_v30 = vunpack.c.l.b16 %v814_v27  ;;  %v1315_v9 = vunpack.c.h.b16 %v814_v27 }
 0x182   : > { %v2476_v42 = vpop.f32.mrf.mxu1 }
 0x183   : > { %2248 = vmatmul.bf16.gmra.mxu2 %v1428_v38  ;;  %v7988_v35 = vadd.f32 %v2384_v53, %v2296_v58  ;;  %2426 = vmatmul.bf16.gmra.mxu0 %v1430_v51  ;;  %v810_v53 = vpack.c.bf16 %v7991_v40, %v7575_v16  ;;  %v381_v58 = vld [vmem:[%s7130_s25 + $0x190] sm:$0x3] }
 0x184   : > { %2337 = vmatmul.bf16.gmra.mxu3 %v1429_v61  ;;  %v1313_v61 = vunpack.c.h.b16 %v813_v63 }
 0x185   : > { %11344 = vst [vmem:[#allocation87_spill] sm:$0xff] %v7988_v35  ;;  %2515 = vmatmul.bf16.gmra.mxu1 %v1431_v54  ;;  %v1307_v49 = vunpack.c.l.b16 %v810_v53  ;;  %v1308_v15 = vunpack.c.h.b16 %v810_v53  ;;  %v8015_v54 = vld [vmem:[%s7130_s25 + $0x188] sm:$0xff]  ;;  %v672_v35 = vrot.slane %v381_v58, 2 }
 0x186   : > { %v2209_v17 = vpop.f32.mrf.mxu2  ;;  %v1436_v63 = vpack.c.b16 %v1313_v61, %v1306_v47  ;;  %v663_v27 = vrot.slane %v8015_v54, 1 }
 0x187   : > { %v2298_v11 = vpop.f32.mrf.mxu3  ;;  %v2210_v4 = vadd.f32 %v2209_v17, %v7776_v46  ;;  %v1305_v46 = vunpack.c.l.b16 %v809_v18  ;;  %v8018_v17 = vunpack.c.l.b16 %v697_v41  ;;  %v1438_v53 = vpack.c.b16 %v1315_v9, %v1308_v15 }
 0x188   : > { %v2389_v25 = vpop.f32.mrf.mxu0  ;;  %v669_v41 = vrot.slane %v8012_v43, 2  ;;  %v821_v9 = vpack.c.bf16 %v8015_v54, %v7994_v56 }
 0x189   : > { %v2299_v14 = vadd.f32 %v2298_v11, %v2210_v4  ;;  %v8020_v11 = vunpack.c.l.b16 %v702_v24  ;;  %v1435_v18 = vpack.c.b16 %v1312_v39, %v1305_v46  ;;  %v670_v24 = vrot.slane %v8015_v54, 2 }
 0x18a   : > { %v8005_v44 = vpop.f32.mrf.mxu1 }
 0x18b   : > { %11345 = vst [vmem:[#allocation88_spill] sm:$0xff] %v8005_v44  ;;  %v2388_v38 = vadd.f32 %v2387_v29, %v2299_v14  ;;  %v1437_v14 = vpack.c.b16 %v1314_v30, %v1307_v49  ;;  %v1341_v46 = vpack.c.b16 %v8020_v11, %v8018_v17  ;;  %v8038_v61 = vsel %vm546_vm1, %v669_v41, %v670_v24 }
 0x18c   : > { %11349 = vst [vmem:[#allocation92_spill] sm:$0xff] %v8038_v61  ;;  %v8041_v49 = vsel %vm546_vm1, %v670_v24, %v672_v35 }
 0x18d   : > { %v8009_v51 = vadd.f32 %v2476_v42, %v2388_v38  ;;  %v662_v42 = vrot.slane %v8012_v43, 1  ;;  %v665_v38 = vrot.slane %v381_v58, 1  ;;  %11350 = vst [vmem:[#allocation93_spill] sm:$0xff] %v8041_v49 }
 0x18e   : > { %v2211_v23 = vpop.f32.mrf.mxu2 }
 0x18f   : > { %v2300_v4 = vpop.f32.mrf.mxu3  ;;  %v2212_v29 = vadd.f32 %v2211_v23, %v7794_v57  ;;  %v8032_v39 = vsel %vm433_vm0, %v662_v42, %v663_v27  ;;  %v8035_v47 = vsel %vm433_vm0, %v663_v27, %v665_v38 }
 0x190   : > { %v2392_v16 = vpop.f32.mrf.mxu0  ;;  %11347 = vst [vmem:[#allocation90_spill] sm:$0xff] %v8032_v39  ;;  %v818_v58 = vpack.c.bf16 %v8038_v61, %v8032_v39  ;;  %v822_v17 = vpack.c.bf16 %v8041_v49, %v8035_v47 }
 0x191   : > { %v2301_v28 = vadd.f32 %v2300_v4, %v2212_v29  ;;  %11348 = vst [vmem:[#allocation91_spill] sm:$0xff] %v8035_v47 }
 0x192   : > { %v2481_v44 = vpop.f32.mrf.mxu1  ;;  %v1322_v42 = vunpack.c.h.b16 %v818_v58  ;;  %v1329_v27 = vunpack.c.h.b16 %v822_v17 }
 0x193   : > { %2253 = vmatmul.bf16.gmra.mxu2 %v1435_v18  ;;  %v8027_v57 = vadd.f32 %v2389_v25, %v2301_v28  ;;  %2431 = vmatmul.bf16.gmra.mxu0 %v1437_v14  ;;  %v817_v25 = vpack.c.bf16 %v8012_v43, %v7991_v40  ;;  %v1326_v18 = vunpack.c.l.b16 %v821_v9  ;;  %v1327_v14 = vunpack.c.h.b16 %v821_v9 }
 0x194   : > { %2342 = vmatmul.bf16.gmra.mxu3 %v1436_v63  ;;  %v1445_v49 = vpack.c.b16 %v1329_v27, %v1322_v42  ;;  %v707_v27 = vpack.c.bf16 %v7661_v50, %v7661_v50  ;;  %v11354_v50 = vld [vmem:[#allocation29_spill] sm:$0xff] }
 0x195   : > { %11346 = vst [vmem:[#allocation89_spill] sm:$0xff] %v8027_v57  ;;  %2520 = vmatmul.bf16.gmra.mxu1 %v1438_v53  ;;  %v1319_v4 = vunpack.c.l.b16 %v817_v25  ;;  %v1320_v63 = vunpack.c.h.b16 %v817_v25  ;;  %v1321_v53 = vunpack.c.l.b16 %v818_v58 }
 0x196   : > { %v2214_v30 = vpop.f32.mrf.mxu2 }
 0x197   : > { %v2303_v28 = vpop.f32.mrf.mxu3  ;;  %v2215_v15 = vadd.f32 %v2214_v30, %v7801_v20  ;;  %v1328_v20 = vunpack.c.l.b16 %v822_v17  ;;  %v1442_v57 = vpack.c.b16 %v1326_v18, %v1319_v4 }
 0x198   : > { %v2394_v23 = vpop.f32.mrf.mxu0 }
 0x199   : > { %v2304_v11 = vadd.f32 %v2303_v28, %v2215_v15  ;;  %v1443_v28 = vpack.c.b16 %v1327_v14, %v1320_v63  ;;  %v1444_v15 = vpack.c.b16 %v1328_v20, %v1321_v53  ;;  %v11352_v53 = vld [vmem:[#allocation21_spill] sm:$0xff] }
 0x19a   : > { %v8052_v35 = vpop.f32.mrf.mxu1 }
 0x19b   : > { %11351 = vst [vmem:[#allocation94_spill] sm:$0xff] %v8052_v35  ;;  %v2393_v29 = vadd.f32 %v2392_v16, %v2304_v11 }
 0x19d   : > { %v8054_v38 = vadd.f32 %v2481_v44, %v2393_v29 }
 0x19e   : > { %v2216_v41 = vpop.f32.mrf.mxu2 }
 0x19f   : > { %v2305_v24 = vpop.f32.mrf.mxu3  ;;  %v2217_v30 = vadd.f32 %v2216_v41, %v7823_v36 }
 0x1a0   : > { %v2397_v61 = vpop.f32.mrf.mxu0 }
 0x1a1   : > { %v2306_v35 = vadd.f32 %v2305_v24, %v2217_v30 }
 0x1a2   : > { %v2486_v16 = vpop.f32.mrf.mxu1 }
 0x1a3   : > { %2258 = vmatmul.bf16.gmra.mxu2 %v1442_v57  ;;  %v8057_v25 = vadd.f32 %v2394_v23, %v2306_v35  ;;  %2436 = vmatmul.bf16.gmra.mxu0 %v1444_v15  ;;  %v1127_v15 = vunpack.c.l.b16 %v707_v27 }
 0x1a4   : > { %2347 = vmatmul.bf16.gmra.mxu3 %v1443_v28 }
 0x1a5   : > { %2525 = vmatmul.bf16.gmra.mxu1 %v1445_v49  ;;  %v11353_v49 = vld [vmem:[#allocation22_spill] sm:$0xff] }
 0x1a6   : > { %v2219_v9 = vpop.f32.mrf.mxu2 }
 0x1a7   : > { %v2308_v44 = vpop.f32.mrf.mxu3  ;;  %v2220_v58 = vadd.f32 %v2219_v9, %v7833_v26 }
 0x1a8   : > { %v2399_v11 = vpop.f32.mrf.mxu0 }
 0x1a9   : > { %v2309_v17 = vadd.f32 %v2308_v44, %v2220_v58 }
 0x1aa   : > { %v8060_v36 = vpop.f32.mrf.mxu1 }
 0x1ab   : > { %v2398_v4 = vadd.f32 %v2397_v61, %v2309_v17 }
 0x1ad   : > { %v8062_v29 = vadd.f32 %v2486_v16, %v2398_v4  ;;  %v11355_v4 = vld [vmem:[#allocation30_spill] sm:$0xff] }
 0x1ae   : > { %v2221_v18 = vpop.f32.mrf.mxu2 }
 0x1af   : > { %v2310_v63 = vpop.f32.mrf.mxu3  ;;  %v2222_v57 = vadd.f32 %v2221_v18, %v7849_v62  ;;  %v712_v62 = vpack.c.bf16 %v7664_v19, %v7664_v19 }
 0x1b0   : > { %v2402_v23 = vpop.f32.mrf.mxu0 }
 0x1b1   : > { %v2311_v14 = vadd.f32 %v2310_v63, %v2222_v57  ;;  %v1136_v16 = vunpack.c.l.b16 %v712_v62 }
 0x1b2   : > { %v2491_v35 = vpop.f32.mrf.mxu1 }
 0x1b3   : > { %2539 = vmatmul.bf16.vlgmr.msra.gmra.mxu2 %v11352_v53  ;;  %v8067_v20 = vadd.f32 %v2399_v11, %v2311_v14  ;;  %2717 = vmatmul.bf16.vlgmr.msra.gmra.mxu0 %v1341_v46 }
 0x1b4   : > { %2628 = vmatmul.bf16.vlgmr.msra.gmra.mxu3 %v11353_v49 }
 0x1b6   : > { %v2224_v26 = vpop.f32.mrf.mxu2 }
 0x1b7   : > { %v2313_v42 = vpop.f32.mrf.mxu3  ;;  %v2225_v61 = vadd.f32 %v2224_v26, %v7640_v55  ;;  %v1350_v55 = vpack.c.b16 %v1136_v16, %v1127_v15  ;;  %v11357_v16 = vld [vmem:[#allocation38_spill] sm:$0xff] }
 0x1b8   : > { %v2404_v24 = vpop.f32.mrf.mxu0 }
 0x1b9   : > { %v2314_v41 = vadd.f32 %v2313_v42, %v2225_v61 }
 0x1ba   : > { %v8074_v28 = vpop.f32.mrf.mxu1 }
 0x1bb   : > { %v2403_v30 = vadd.f32 %v2402_v23, %v2314_v41  ;;  %v716_v23 = vpack.c.bf16 %v7692_v22, %v7692_v22  ;;  %v11356_v22 = vld [vmem:[#allocation37_spill] sm:$0xff] }
 0x1bd   : > { %v8076_v9 = vadd.f32 %v2491_v35, %v2403_v30  ;;  %v1143_v26 = vunpack.c.l.b16 %v716_v23 }
 0x1be   : > { %v2226_v46 = vpop.f32.mrf.mxu2 }
 0x1bf   : > { %v2315_v44 = vpop.f32.mrf.mxu3  ;;  %v2227_v58 = vadd.f32 %v2226_v46, %v7653_v32  ;;  %v720_v32 = vpack.c.bf16 %v7695_v31, %v7695_v31 }
 0x1c0   : > { %v2407_v11 = vpop.f32.mrf.mxu0 }
 0x1c1   : > { %v2316_v17 = vadd.f32 %v2315_v44, %v2227_v58  ;;  %v1150_v42 = vunpack.c.l.b16 %v720_v32 }
 0x1c2   : > { %v2496_v18 = vpop.f32.mrf.mxu1 }
 0x1c3   : > { %2544 = vmatmul.bf16.gmra.mxu2 %v11354_v50  ;;  %v8081_v19 = vadd.f32 %v2404_v24, %v2316_v17  ;;  %2722 = vmatmul.bf16.gmra.mxu0 %v1350_v55  ;;  %v724_v55 = vpack.c.bf16 %v7720_v59, %v7720_v59  ;;  %v11359_v59 = vld [vmem:[#allocation46_spill] sm:$0xff] }
 0x1c4   : > { %2633 = vmatmul.bf16.gmra.mxu3 %v11355_v4 }
 0x1c6   : > { %v2229_v63 = vpop.f32.mrf.mxu2 }
 0x1c7   : > { %v2318_v57 = vpop.f32.mrf.mxu3  ;;  %v2230_v14 = vadd.f32 %v2229_v63, %v7666_v12  ;;  %v1357_v12 = vpack.c.b16 %v1150_v42, %v1143_v26 }
 0x1c8   : > { %v2409_v53 = vpop.f32.mrf.mxu0 }
 0x1c9   : > { %v2319_v35 = vadd.f32 %v2318_v57, %v2230_v14 }
 0x1ca   : > { %v8091_v24 = vpop.f32.mrf.mxu1 }
 0x1cb   : > { %v2408_v49 = vadd.f32 %v2407_v11, %v2319_v35 }
 0x1cd   : > { %v8088_v61 = vadd.f32 %v2496_v18, %v2408_v49  ;;  %v1157_v18 = vunpack.c.l.b16 %v724_v55  ;;  %v11358_v49 = vld [vmem:[#allocation45_spill] sm:$0xff] }
 0x1ce   : > { %v2231_v27 = vpop.f32.mrf.mxu2 }
 0x1cf   : > { %v2320_v62 = vpop.f32.mrf.mxu3  ;;  %v2232_v41 = vadd.f32 %v2231_v27, %v7678_v13  ;;  %v728_v13 = vpack.c.bf16 %v7723_v34, %v7723_v34 }
 0x1d0   : > { %v2412_v15 = vpop.f32.mrf.mxu0 }
 0x1d1   : > { %v2321_v30 = vadd.f32 %v2320_v62, %v2232_v41  ;;  %v1164_v63 = vunpack.c.l.b16 %v728_v13  ;;  %v732_v62 = vpack.c.bf16 %v7751_v5, %v7751_v5 }
 0x1d2   : > { %v2501_v50 = vpop.f32.mrf.mxu1 }
 0x1d3   : > { %2549 = vmatmul.bf16.gmra.mxu2 %v11356_v22  ;;  %v8095_v31 = vadd.f32 %v2409_v53, %v2321_v30  ;;  %2727 = vmatmul.bf16.gmra.mxu0 %v1357_v12  ;;  %v1364_v35 = vpack.c.b16 %v1164_v63, %v1157_v18  ;;  %v11364_v63 = vld [vmem:[#allocation66_spill] sm:$0xff] }
 0x1d4   : > { %2638 = vmatmul.bf16.gmra.mxu3 %v11357_v16 }
 0x1d6   : > { %v2234_v46 = vpop.f32.mrf.mxu2 }
 0x1d7   : > { %v2323_v44 = vpop.f32.mrf.mxu3  ;;  %v2235_v58 = vadd.f32 %v2234_v46, %v7697_v6 }
 0x1d8   : > { %v2414_v11 = vpop.f32.mrf.mxu0 }
 0x1d9   : > { %v2324_v17 = vadd.f32 %v2323_v44, %v2235_v58  ;;  %v11360_v44 = vld [vmem:[#allocation63_spill] sm:$0xff] }
 0x1db   : > { %v2413_v4 = vadd.f32 %v2412_v15, %v2324_v17  ;;  %v1171_v15 = vunpack.c.l.b16 %v732_v62 }
 0x1dd   : > { %v8102_v57 = vadd.f32 %v2501_v50, %v2413_v4  ;;  %v11363_v4 = vld [vmem:[#allocation64_spill] sm:$0xff] }
 0x1de   : > { %v2236_v14 = vpop.f32.mrf.mxu2 }
 0x1df   : > { %v2325_v23 = vpop.f32.mrf.mxu3  ;;  %v2237_v32 = vadd.f32 %v2236_v14, %v7712_v3  ;;  %v736_v3 = vpack.c.bf16 %v7754_v52, %v7754_v52  ;;  %v740_v14 = vpack.c.bf16 %v11364_v63, %v11364_v63 }
 0x1e0   : > { %v2417_v53 = vpop.f32.mrf.mxu0 }
 0x1e1   : > { %v2326_v6 = vadd.f32 %v2325_v23, %v2237_v32  ;;  %v1178_v22 = vunpack.c.l.b16 %v736_v3  ;;  %v11365_v23 = vld [vmem:[#allocation67_spill] sm:$0xff] }
 0x1e2   : > { %v744_v32 = vpack.c.bf16 %v11365_v23, %v11365_v23 }
 0x1e3   : > { %2554 = vmatmul.bf16.gmra.mxu2 %v11358_v49  ;;  %v8107_v34 = vadd.f32 %v2414_v11, %v2326_v6  ;;  %2732 = vmatmul.bf16.gmra.mxu0 %v1364_v35  ;;  %v1371_v55 = vpack.c.b16 %v1178_v22, %v1171_v15  ;;  %v11362_v11 = vld [vmem:[#allocation54_spill] sm:$0xff]  ;;  %v1185_v49 = vunpack.c.l.b16 %v740_v14  ;;  %v11367_v15 = vld [vmem:[#allocation61_spill] sm:$0xff] }
 0x1e4   : > { %2643 = vmatmul.bf16.gmra.mxu3 %v11359_v59  ;;  %v1192_v59 = vunpack.c.l.b16 %v744_v32  ;;  %v11368_v22 = vld [vmem:[#allocation62_spill] sm:$0xff]  ;;  %v11372_v32 = vld [vmem:[#allocation69_spill] sm:$0xff] }
 0x1e6   : > { %v2239_v26 = vpop.f32.mrf.mxu2  ;;  %v1378_v3 = vpack.c.b16 %v1192_v59, %v1185_v49 }
 0x1e7   : > { %v2328_v42 = vpop.f32.mrf.mxu3  ;;  %v2240_v27 = vadd.f32 %v2239_v26, %v7725_v60  ;;  %v11361_v60 = vld [vmem:[#allocation53_spill] sm:$0xff] }
 0x1e8   : > { %v2419_v12 = vpop.f32.mrf.mxu0 }
 0x1e9   : > { %v2329_v41 = vadd.f32 %v2328_v42, %v2240_v27  ;;  %v11366_v27 = vld [vmem:[#allocation65_spill] sm:$0xff] }
 0x1eb   : > { %v8114_v30 = vadd.f32 %v2417_v53, %v2329_v41 }
 0x1ee   : > { %v2241_v16 = vpop.f32.mrf.mxu2 }
 0x1ef   : > { %v2330_v46 = vpop.f32.mrf.mxu3  ;;  %v2242_v58 = vadd.f32 %v2241_v16, %v11360_v44 }
 0x1f0   : > { %v2422_v17 = vpop.f32.mrf.mxu0 }
 0x1f1   : > { %v2331_v13 = vadd.f32 %v2330_v46, %v2242_v58  ;;  %v11369_v58 = vld [vmem:[#allocation68_spill] sm:$0xff] }
 0x1f3   : > { %2559 = vmatmul.bf16.gmra.mxu2 %v11361_v60  ;;  %v8119_v5 = vadd.f32 %v2419_v12, %v2331_v13  ;;  %2737 = vmatmul.bf16.gmra.mxu0 %v1371_v55  ;;  %v11370_v13 = vld [vmem:[#allocation70_spill] sm:$0xff]  ;;  %v11371_v60 = vld [vmem:[#allocation71_spill] sm:$0xff] }
 0x1f4   : > { %2648 = vmatmul.bf16.gmra.mxu3 %v11362_v11  ;;  %v752_v11 = vpack.c.bf16 %v11371_v60, %v11371_v60 }
 0x1f6   : > { %v2244_v52 = vpop.f32.mrf.mxu2  ;;  %v1206_v63 = vunpack.c.l.b16 %v752_v11 }
 0x1f7   : > { %v2333_v50 = vpop.f32.mrf.mxu3  ;;  %v2245_v18 = vadd.f32 %v2244_v52, %v11363_v4 }
 0x1f8   : > { %v2424_v6 = vpop.f32.mrf.mxu0 }
 0x1f9   : > { %v2334_v35 = vadd.f32 %v2333_v50, %v2245_v18 }
 0x1fb   : > { %v8126_v53 = vadd.f32 %v2422_v17, %v2334_v35  ;;  %v748_v17 = vpack.c.bf16 %v11370_v13, %v11370_v13 }
 0x1fd   : > { %v1199_v18 = vunpack.c.l.b16 %v748_v17 }
 0x1fe   : > { %v2246_v26 = vpop.f32.mrf.mxu2 }
 0x1ff   : > { %v2335_v42 = vpop.f32.mrf.mxu3  ;;  %v2247_v62 = vadd.f32 %v2246_v26, %v11366_v27  ;;  %v11373_v26 = vld [vmem:[#allocation7_spill] sm:$0xff] }
 0x200   : > { %v2427_v12 = vpop.f32.mrf.mxu0 }
 0x201   : > { %v2336_v41 = vadd.f32 %v2335_v42, %v2247_v62  ;;  %v11374_v42 = vld [vmem:[#allocation8_spill] sm:$0xff] }
 0x203   : > { %2564 = vmatmul.bf16.gmra.mxu2 %v11367_v15  ;;  %v8131_v16 = vadd.f32 %v2424_v6, %v2336_v41  ;;  %2742 = vmatmul.bf16.gmra.mxu0 %v1378_v3  ;;  %v1385_v6 = vpack.c.b16 %v1206_v63, %v1199_v18  ;;  %v11376_v41 = vld [vmem:[#allocation72_spill] sm:$0xff]  ;;  %v11377_v15 = vld [vmem:[#allocation74_spill] sm:$0xff] }
 0x204   : > { %2653 = vmatmul.bf16.gmra.mxu3 %v11368_v22  ;;  %v756_v22 = vpack.c.bf16 %v11377_v15, %v11377_v15 }
 0x206   : > { %v2249_v46 = vpop.f32.mrf.mxu2  ;;  %v1213_v17 = vunpack.c.l.b16 %v756_v22 }
 0x207   : > { %v2338_v44 = vpop.f32.mrf.mxu3  ;;  %v2250_v55 = vadd.f32 %v2249_v46, %v11369_v58  ;;  %v11378_v46 = vld [vmem:[#allocation75_spill] sm:$0xff] }
 0x208   : > { %v2429_v50 = vpop.f32.mrf.mxu0 }
 0x209   : > { %v2339_v52 = vadd.f32 %v2338_v44, %v2250_v55  ;;  %v760_v44 = vpack.c.bf16 %v11378_v46, %v11378_v46 }
 0x20b   : > { %v8138_v4 = vadd.f32 %v2427_v12, %v2339_v52  ;;  %v1220_v60 = vunpack.c.l.b16 %v760_v44 }
 0x20d   : > { %v1392_v63 = vpack.c.b16 %v1220_v60, %v1213_v17  ;;  %v11388_v60 = vld [vmem:[#allocation77_spill] sm:$0xff] }
 0x20e   : > { %v2251_v14 = vpop.f32.mrf.mxu2 }
 0x20f   : > { %v2340_v23 = vpop.f32.mrf.mxu3  ;;  %v2252_v35 = vadd.f32 %v2251_v14, %v11372_v32  ;;  %v11381_v32 = vld [vmem:[#allocation13_spill] sm:$0xff] }
 0x210   : > { %v2432_v59 = vpop.f32.mrf.mxu0 }
 0x211   : > { %v2341_v49 = vadd.f32 %v2340_v23, %v2252_v35  ;;  %v11382_v35 = vld [vmem:[#allocation14_spill] sm:$0xff] }
 0x213   : > { %2569 = vmatmul.bf16.gmra.mxu2 %v11373_v26  ;;  %v8143_v27 = vadd.f32 %v2429_v50, %v2341_v49  ;;  %2747 = vmatmul.bf16.gmra.mxu0 %v1385_v6  ;;  %v11380_v50 = vld [vmem:[#allocation73_spill] sm:$0xff] }
 0x214   : > { %2658 = vmatmul.bf16.gmra.mxu3 %v11374_v42 }
 0x215   : > { %11375 = vst [vmem:[#allocation21_spill] sm:$0xff] %v8143_v27 }
 0x216   : > { %v2254_v62 = vpop.f32.mrf.mxu2 }
 0x217   : > { %v2343_v3 = vpop.f32.mrf.mxu3  ;;  %v2255_v12 = vadd.f32 %v2254_v62, %v11376_v41  ;;  %v11385_v62 = vld [vmem:[#allocation78_spill] sm:$0xff]  ;;  %v11386_v41 = vld [vmem:[#allocation79_spill] sm:$0xff] }
 0x218   : > { %v2434_v55 = vpop.f32.mrf.mxu0 }
 0x219   : > { %v2344_v58 = vadd.f32 %v2343_v3, %v2255_v12  ;;  %v764_v3 = vpack.c.bf16 %v11385_v62, %v11385_v62  ;;  %v768_v12 = vpack.c.bf16 %v11386_v41, %v11386_v41 }
 0x21b   : > { %v8150_v13 = vadd.f32 %v2432_v59, %v2344_v58  ;;  %v11384_v59 = vld [vmem:[#allocation76_spill] sm:$0xff]  ;;  %v1227_v44 = vunpack.c.l.b16 %v764_v3  ;;  %v1234_v58 = vunpack.c.l.b16 %v768_v12 }
 0x21d   : > { %11379 = vst [vmem:[#allocation22_spill] sm:$0xff] %v8150_v13 }
 0x21e   : > { %v2256_v11 = vpop.f32.mrf.mxu2 }
 0x21f   : > { %v2345_v52 = vpop.f32.mrf.mxu3  ;;  %v2257_v18 = vadd.f32 %v2256_v11, %v11380_v50 }
 0x220   : > { %v2437_v23 = vpop.f32.mrf.mxu0 }
 0x221   : > { %v2346_v14 = vadd.f32 %v2345_v52, %v2257_v18  ;;  %v1399_v52 = vpack.c.b16 %v1234_v58, %v1227_v44  ;;  %v11393_v58 = vld [vmem:[#allocation81_spill] sm:$0xff] }
 0x223   : > { %2574 = vmatmul.bf16.gmra.mxu2 %v11381_v32  ;;  %v8155_v6 = vadd.f32 %v2434_v55, %v2346_v14  ;;  %2752 = vmatmul.bf16.gmra.mxu0 %v1392_v63  ;;  %v11389_v63 = vld [vmem:[#allocation19_spill] sm:$0xff]  ;;  %v11390_v14 = vld [vmem:[#allocation20_spill] sm:$0xff] }
 0x224   : > { %2663 = vmatmul.bf16.gmra.mxu3 %v11382_v35 }
 0x225   : > { %11383 = vst [vmem:[#allocation29_spill] sm:$0xff] %v8155_v6 }
 0x226   : > { %v2259_v49 = vpop.f32.mrf.mxu2 }
 0x227   : > { %v2348_v26 = vpop.f32.mrf.mxu3  ;;  %v2260_v42 = vadd.f32 %v2259_v49, %v11384_v59  ;;  %v772_v59 = vpack.c.bf16 %v7887_v0, %v7887_v0  ;;  %v11395_v0 = vld [vmem:[#allocation28_spill] sm:$0xff] }
 0x228   : > { %v2439_v22 = vpop.f32.mrf.mxu0 }
 0x229   : > { %v2349_v15 = vadd.f32 %v2348_v26, %v2260_v42  ;;  %v776_v42 = vpack.c.bf16 %v7890_v21, %v7890_v21  ;;  %v1241_v12 = vunpack.c.l.b16 %v772_v59 }
 0x22b   : > { %v8162_v46 = vadd.f32 %v2437_v23, %v2349_v15  ;;  %v11392_v23 = vld [vmem:[#allocation80_spill] sm:$0xff]  ;;  %v1248_v15 = vunpack.c.l.b16 %v776_v42 }
 0x22d   : > { %11387 = vst [vmem:[#allocation30_spill] sm:$0xff] %v8162_v46 }
 0x22e   : > { %v2261_v17 = vpop.f32.mrf.mxu2 }
 0x22f   : > { %v2350_v55 = vpop.f32.mrf.mxu3  ;;  %v2262_v11 = vadd.f32 %v2261_v17, %v11388_v60 }
 0x230   : > { %v2718_v18 = vpop.f32.mrf.mxu0 }
 0x231   : > { %v2351_v50 = vadd.f32 %v2350_v55, %v2262_v11  ;;  %v1406_v55 = vpack.c.b16 %v1248_v15, %v1241_v12  ;;  %v11397_v15 = vld [vmem:[#allocation82_spill] sm:$0xff] }
 0x233   : > { %2579 = vmatmul.bf16.gmra.mxu2 %v11389_v63  ;;  %v8167_v32 = vadd.f32 %v2439_v22, %v2351_v50  ;;  %2757 = vmatmul.bf16.gmra.mxu0 %v1399_v52  ;;  %v11394_v50 = vld [vmem:[#allocation27_spill] sm:$0xff] }
 0x234   : > { %2668 = vmatmul.bf16.gmra.mxu3 %v11390_v14  ;;  %v780_v14 = vpack.c.bf16 %v7911_v45, %v7911_v45  ;;  %v11399_v45 = vld [vmem:[#allocation36_spill] sm:$0xff] }
 0x235   : > { %11391 = vst [vmem:[#allocation37_spill] sm:$0xff] %v8167_v32 }
 0x236   : > { %v2540_v35 = vpop.f32.mrf.mxu2  ;;  %v1255_v42 = vunpack.c.l.b16 %v780_v14 }
 0x237   : > { %v2629_v49 = vpop.f32.mrf.mxu3  ;;  %v2541_v26 = vadd.f32 %v2540_v35, %v11392_v23  ;;  %v11396_v35 = vld [vmem:[#allocation83_spill] sm:$0xff] }
 0x238   : > { %v2720_v3 = vpop.f32.mrf.mxu0 }
 0x239   : > { %v2630_v62 = vadd.f32 %v2629_v49, %v2541_v26  ;;  %v784_v49 = vpack.c.bf16 %v11396_v35, %v11396_v35 }
 0x23b   : > { %v8174_v41 = vadd.f32 %v2718_v18, %v2630_v62  ;;  %v1262_v62 = vunpack.c.l.b16 %v784_v49 }
 0x23e   : > { %v2542_v44 = vpop.f32.mrf.mxu2 }
 0x23f   : > { %v2631_v22 = vpop.f32.mrf.mxu3  ;;  %v2543_v17 = vadd.f32 %v2542_v44, %v11393_v58 }
 0x240   : > { %v2723_v11 = vpop.f32.mrf.mxu0 }
 0x241   : > { %v2632_v60 = vadd.f32 %v2631_v22, %v2543_v17  ;;  %v1413_v22 = vpack.c.b16 %v1262_v62, %v1255_v42  ;;  %v11401_v62 = vld [vmem:[#allocation85_spill] sm:$0xff] }
 0x243   : > { %v8177_v52 = vadd.f32 %v2720_v3, %v2632_v60  ;;  %2584 = vmatmul.bf16.gmra.mxu2 %v11394_v50  ;;  %2762 = vmatmul.bf16.gmra.mxu0 %v1406_v55  ;;  %v11398_v55 = vld [vmem:[#allocation35_spill] sm:$0xff] }
 0x244   : > { %2673 = vmatmul.bf16.gmra.mxu3 %v11395_v0 }
 0x246   : > { %v2545_v21 = vpop.f32.mrf.mxu2 }
 0x247   : > { %v2634_v63 = vpop.f32.mrf.mxu3  ;;  %v2546_v18 = vadd.f32 %v2545_v21, %v7899_v1  ;;  %v788_v21 = vpack.c.bf16 %v7938_v33, %v7938_v33  ;;  %v11403_v33 = vld [vmem:[#allocation44_spill] sm:$0xff] }
 0x248   : > { %v2725_v26 = vpop.f32.mrf.mxu0 }
 0x249   : > { %v2635_v23 = vadd.f32 %v2634_v63, %v2546_v18  ;;  %v792_v63 = vpack.c.bf16 %v7941_v37, %v7941_v37  ;;  %v1269_v49 = vunpack.c.l.b16 %v788_v21 }
 0x24b   : > { %v8186_v59 = vadd.f32 %v2723_v11, %v2635_v23  ;;  %v11400_v11 = vld [vmem:[#allocation84_spill] sm:$0xff]  ;;  %v1276_v23 = vunpack.c.l.b16 %v792_v63 }
 0x24e   : > { %v2547_v3 = vpop.f32.mrf.mxu2 }
 0x24f   : > { %v2636_v12 = vpop.f32.mrf.mxu3  ;;  %v2548_v44 = vadd.f32 %v2547_v3, %v11397_v15 }
 0x250   : > { %v2728_v17 = vpop.f32.mrf.mxu0 }
 0x251   : > { %v2637_v58 = vadd.f32 %v2636_v12, %v2548_v44  ;;  %v1420_v12 = vpack.c.b16 %v1276_v23, %v1269_v49 }
 0x253   : > { %v8189_v1 = vadd.f32 %v2725_v26, %v2637_v58  ;;  %2589 = vmatmul.bf16.gmra.mxu2 %v11398_v55  ;;  %2767 = vmatmul.bf16.gmra.mxu0 %v1413_v22  ;;  %v11402_v58 = vld [vmem:[#allocation43_spill] sm:$0xff] }
 0x254   : > { %2678 = vmatmul.bf16.gmra.mxu3 %v11399_v45  ;;  %v796_v45 = vpack.c.bf16 %v7962_v8, %v7962_v8  ;;  %v11405_v8 = vld [vmem:[#allocation52_spill] sm:$0xff] }
 0x256   : > { %v2550_v60 = vpop.f32.mrf.mxu2  ;;  %v1283_v21 = vunpack.c.l.b16 %v796_v45 }
 0x257   : > { %v2639_v50 = vpop.f32.mrf.mxu3  ;;  %v2551_v0 = vadd.f32 %v2550_v60, %v11400_v11  ;;  %v800_v60 = vpack.c.bf16 %v7965_v48, %v7965_v48 }
 0x258   : > { %v2730_v14 = vpop.f32.mrf.mxu0 }
 0x259   : > { %v2640_v18 = vadd.f32 %v2639_v50, %v2551_v0  ;;  %v1290_v63 = vunpack.c.l.b16 %v800_v60 }
 0x25b   : > { %v8198_v35 = vadd.f32 %v2728_v17, %v2640_v18  ;;  %v1427_v23 = vpack.c.b16 %v1290_v63, %v1283_v21  ;;  %v811_v21 = vpack.c.bf16 %v8032_v39, %v8012_v43 }
 0x25d   : > { %v1310_v43 = vunpack.c.h.b16 %v811_v21 }
 0x25e   : > { %v2552_v26 = vpop.f32.mrf.mxu2 }
 0x25f   : > { %v2641_v42 = vpop.f32.mrf.mxu3  ;;  %v2553_v3 = vadd.f32 %v2552_v26, %v11401_v62  ;;  %v11404_v62 = vld [vmem:[#allocation51_spill] sm:$0xff] }
 0x260   : > { %v2733_v44 = vpop.f32.mrf.mxu0 }
 0x261   : > { %v2642_v15 = vadd.f32 %v2641_v42, %v2553_v3 }
 0x263   : > { %v8201_v22 = vadd.f32 %v2730_v14, %v2642_v15  ;;  %2594 = vmatmul.bf16.gmra.mxu2 %v11402_v58  ;;  %2772 = vmatmul.bf16.gmra.mxu0 %v1420_v12  ;;  %v804_v15 = vpack.c.bf16 %v7991_v40, %v7991_v40 }
 0x264   : > { %2683 = vmatmul.bf16.gmra.mxu3 %v11403_v33 }
 0x266   : > { %v2555_v37 = vpop.f32.mrf.mxu2 }
 0x267   : > { %v2644_v55 = vpop.f32.mrf.mxu3  ;;  %v2556_v17 = vadd.f32 %v2555_v37, %v7950_v10  ;;  %v1297_v37 = vunpack.c.l.b16 %v804_v15 }
 0x268   : > { %v2735_v11 = vpop.f32.mrf.mxu0 }
 0x269   : > { %v2645_v50 = vadd.f32 %v2644_v55, %v2556_v17 }
 0x26b   : > { %v8210_v0 = vadd.f32 %v2733_v44, %v2645_v50 }
 0x26e   : > { %v2557_v18 = vpop.f32.mrf.mxu2 }
 0x26f   : > { %v2646_v14 = vpop.f32.mrf.mxu3  ;;  %v2558_v49 = vadd.f32 %v2557_v18, %v7959_v2  ;;  %v808_v2 = vpack.c.bf16 %v7994_v56, %v7994_v56  ;;  %v815_v18 = vpack.c.bf16 %v8035_v47, %v8015_v54  ;;  %v384_v54 = vld [vmem:[%s7130_s25 + $0x1a8] sm:$0x3] }
 0x270   : > { %v2738_v42 = vpop.f32.mrf.mxu0 }
 0x271   : > { %v2647_v26 = vadd.f32 %v2646_v14, %v2558_v49  ;;  %v1304_v55 = vunpack.c.l.b16 %v808_v2  ;;  %v11408_v14 = vld [vmem:[#allocation92_spill] sm:$0xff] }
 0x272   : > { %v812_v49 = vpack.c.bf16 %v11408_v14, %v11408_v14  ;;  %v382_v2 = vld [vmem:[%s7130_s25 + $0x198] sm:$0xff] }
 0x273   : > { %v8213_v10 = vadd.f32 %v2735_v11, %v2647_v26  ;;  %2599 = vmatmul.bf16.gmra.mxu2 %v11404_v62  ;;  %2777 = vmatmul.bf16.gmra.mxu0 %v1427_v23  ;;  %v1434_v60 = vpack.c.b16 %v1304_v55, %v1297_v37  ;;  %v11407_v11 = vld [vmem:[#allocation60_spill] sm:$0xff]  ;;  %v11409_v23 = vld [vmem:[#allocation93_spill] sm:$0xff]  ;;  %v686_v14 = vrot.slane %v382_v2, 2 }
 0x274   : > { %2688 = vmatmul.bf16.gmra.mxu3 %v11405_v8  ;;  %v816_v26 = vpack.c.bf16 %v11409_v23, %v11409_v23  ;;  %v1309_v8 = vunpack.c.l.b16 %v811_v21  ;;  %v1311_v15 = vunpack.c.l.b16 %v812_v49  ;;  %v689_v21 = vrot.slane %v384_v54, 2 }
 0x276   : > { %v2560_v48 = vpop.f32.mrf.mxu2 }
 0x277   : > { %v2649_v3 = vpop.f32.mrf.mxu3  ;;  %v2561_v12 = vadd.f32 %v2560_v48, %v7979_v7  ;;  %v11406_v7 = vld [vmem:[#allocation59_spill] sm:$0xff] }
 0x278   : > { %v8222_v58 = vpop.f32.mrf.mxu0 }
 0x279   : > { %v2650_v44 = vadd.f32 %v2649_v3, %v2561_v12  ;;  %v1316_v3 = vunpack.c.l.b16 %v815_v18  ;;  %v1317_v12 = vunpack.c.h.b16 %v815_v18 }
 0x27b   : > { %v8224_v33 = vadd.f32 %v2738_v42, %v2650_v44  ;;  %v383_v44 = vld [vmem:[%s7130_s25 + $0x1a0] sm:$0xff] }
 0x27c   : > { %v687_v23 = vrot.slane %v383_v44, 2 }
 0x27e   : > { %v8226_v17 = vpop.f32.mrf.mxu2 }
 0x27f   : > { %v8228_v45 = vpop.f32.mrf.mxu3 }
 0x280   : > { %v2743_v50 = vpop.f32.mrf.mxu0 }
 0x283   : > { %2604 = vmatmul.bf16.gmra.mxu2 %v11406_v7  ;;  %2782 = vmatmul.bf16.gmra.mxu0 %v1434_v60  ;;  %v1439_v60 = vpack.c.b16 %v1316_v3, %v1309_v8  ;;  %v1440_v7 = vpack.c.b16 %v1317_v12, %v1310_v43 }
 0x284   : > { %2693 = vmatmul.bf16.gmra.mxu3 %v11407_v11  ;;  %v679_v11 = vrot.slane %v382_v2, 1 }
 0x286   : > { %v2565_v40 = vpop.f32.mrf.mxu2 }
 0x287   : > { %v2654_v56 = vpop.f32.mrf.mxu3  ;;  %v2566_v63 = vadd.f32 %v2565_v40, %v8009_v51  ;;  %v1318_v51 = vunpack.c.l.b16 %v816_v26  ;;  %v680_v40 = vrot.slane %v383_v44, 1  ;;  %v688_v26 = vsel %vm546_vm1, %v686_v14, %v687_v23 }
 0x288   : > { %v8241_v62 = vpop.f32.mrf.mxu0 }
 0x289   : > { %v2655_v42 = vadd.f32 %v2654_v56, %v2566_v63  ;;  %v1441_v56 = vpack.c.b16 %v1318_v51, %v1311_v15  ;;  %v682_v63 = vrot.slane %v384_v54, 1  ;;  %v681_v18 = vsel %vm433_vm0, %v679_v11, %v680_v40 }
 0x28a   : > { %v819_v43 = vpack.c.bf16 %v681_v18, %v382_v2  ;;  %v820_v51 = vpack.c.bf16 %v688_v26, %v688_v26 }
 0x28b   : > { %v8243_v48 = vadd.f32 %v2743_v50, %v2655_v42  ;;  %v683_v49 = vsel %vm433_vm0, %v680_v40, %v682_v63  ;;  %v690_v42 = vsel %vm546_vm1, %v687_v23, %v689_v21 }
 0x28c   : > { %v823_v15 = vpack.c.bf16 %v683_v49, %v383_v44  ;;  %v824_v39 = vpack.c.bf16 %v690_v42, %v690_v42  ;;  %v1324_v40 = vunpack.c.h.b16 %v819_v43  ;;  %v1325_v14 = vunpack.c.l.b16 %v820_v51  ;;  %v6781_v42 = vld [vmem:[%s11064_s5 + $0x38] sm:$0xff] }
 0x28d   : > { %4881 = vmatpush.bf16.msra.mxu1 %v6781_v42 }
 0x28e   : > { %v8248_v37 = vpop.f32.mrf.mxu2  ;;  %v1331_v63 = vunpack.c.h.b16 %v823_v15  ;;  %v1332_v47 = vunpack.c.l.b16 %v824_v39 }
 0x28f   : > { %v8250_v55 = vpop.f32.mrf.mxu3 }
 0x290   : > { %v2748_v50 = vpop.f32.mrf.mxu0  ;;  %v1448_v44 = vpack.c.b16 %v1332_v47, %v1325_v14 }
 0x293   : > { %2609 = vmatmul.bf16.gmra.mxu2 %v1439_v60  ;;  %2787 = vmatmul.bf16.gmra.mxu0 %v1441_v56  ;;  %v1330_v56 = vunpack.c.l.b16 %v823_v15 }
 0x294   : > { %2698 = vmatmul.bf16.gmra.mxu3 %v1440_v7  ;;  %v1323_v7 = vunpack.c.l.b16 %v819_v43 }
 0x296   : > { %v2570_v8 = vpop.f32.mrf.mxu2  ;;  %v1446_v2 = vpack.c.b16 %v1330_v56, %v1323_v7 }
 0x297   : > { %v2659_v3 = vpop.f32.mrf.mxu3  ;;  %v2571_v12 = vadd.f32 %v2570_v8, %v8054_v38  ;;  %v1447_v38 = vpack.c.b16 %v1331_v63, %v1324_v40 }
 0x298   : > { %v8257_v60 = vpop.f32.mrf.mxu0 }
 0x299   : > { %v2660_v54 = vadd.f32 %v2659_v3, %v2571_v12 }
 0x29b   : > { %v8259_v11 = vadd.f32 %v2748_v50, %v2660_v54 }
 0x29e   : > { %v8261_v23 = vpop.f32.mrf.mxu2 }
 0x29f   : > { %v8263_v21 = vpop.f32.mrf.mxu3 }
 0x2a0   : > { %v2753_v18 = vpop.f32.mrf.mxu0 }
 0x2a3   : > { %2614 = vmatmul.bf16.gmra.mxu2 %v1446_v2  ;;  %2792 = vmatmul.bf16.gmra.mxu0 %v1448_v44  ;;  %v8286_v2 = vpop.f32.mrf.mxu1 }
 0x2a4   : > { %2703 = vmatmul.bf16.gmra.mxu3 %v1447_v38 }
 0x2a6   : > { %v2575_v49 = vpop.f32.mrf.mxu2 }
 0x2a7   : > { %v2664_v26 = vpop.f32.mrf.mxu3  ;;  %v2576_v50 = vadd.f32 %v2575_v49, %v8062_v29 }
 0x2a8   : > { %v8269_v8 = vpop.f32.mrf.mxu0 }
 0x2a9   : > { %v2665_v39 = vadd.f32 %v2664_v26, %v2576_v50 }
 0x2ab   : > { %v8271_v3 = vadd.f32 %v2753_v18, %v2665_v39 }
 0x2ae   : > { %v8273_v43 = vpop.f32.mrf.mxu2 }
 0x2af   : > { %v8275_v47 = vpop.f32.mrf.mxu3 }
 0x2b0   : > { %v2758_v12 = vpop.f32.mrf.mxu0 }
 0x2b6   : > { %v2580_v15 = vpop.f32.mrf.mxu2 }
 0x2b7   : > { %v2669_v51 = vpop.f32.mrf.mxu3  ;;  %v2581_v54 = vadd.f32 %v2580_v15, %v8076_v9  ;;  %v6780_v9 = vld [vmem:[%s11064_s5 + $0x30] sm:$0xff] }
 0x2b8   : > { %v8278_v7 = vpop.f32.mrf.mxu0  ;;  %4882 = vmatpush.bf16.msra.mxu1 %v6780_v9 }
 0x2b9   : > { %v2670_v29 = vadd.f32 %v2669_v51, %v2581_v54 }
 0x2bb   : > { %v8280_v56 = vadd.f32 %v2758_v12, %v2670_v29  ;;  %v8300_v12 = vpop.f32.mrf.mxu1 }
 0x2be   : > { %v8282_v40 = vpop.f32.mrf.mxu2 }
 0x2bf   : > { %v8284_v63 = vpop.f32.mrf.mxu3 }
 0x2c0   : > { %v2763_v14 = vpop.f32.mrf.mxu0 }
 0x2c3   : > { %v8303_v29 = vpop.f32.mrf.mxu1 }
 0x2c6   : > { %v2585_v38 = vpop.f32.mrf.mxu2 }
 0x2c7   : > { %v2674_v44 = vpop.f32.mrf.mxu3  ;;  %v2586_v18 = vadd.f32 %v2585_v38, %v8088_v61 }
 0x2c8   : > { %v8292_v26 = vpop.f32.mrf.mxu0 }
 0x2c9   : > { %v2675_v49 = vadd.f32 %v2674_v44, %v2586_v18 }
 0x2cb   : > { %v8294_v50 = vadd.f32 %v2763_v14, %v2675_v49  ;;  %v8310_v14 = vld [vmem:[%s11061_s2] ss:$0 sm:$0xff] }
 0x2cc   : > { %v8316_v9 = vadd.f32 %v8310_v14, %v8177_v52  ;;  %v8330_v46 = vadd.f32 %v8310_v14, %v8186_v59  ;;  %v8336_v52 = vadd.f32 %v8310_v14, %v8189_v1  ;;  %v8348_v59 = vadd.f32 %v8310_v14, %v8198_v35  ;;  %v11417_v35 = vld [vmem:[#allocation94_spill] sm:$0xff] }
 0x2cd   : > { %v8353_v1 = vadd.f32 %v8310_v14, %v8201_v22  ;;  %v2484_v22 = vadd.f32 %v11417_v35, %v8057_v25  ;;  %v8382_v25 = vadd.f32 %v8310_v14, %v8224_v33 }
 0x2ce   : > { %v8296_v42 = vpop.f32.mrf.mxu2  ;;  %11410 = vst [vmem:[#allocation38_spill] sm:$0xff] %v8316_v9 }
 0x2cf   : > { %v8298_v39 = vpop.f32.mrf.mxu3  ;;  %11416 = vst [vmem:[#allocation46_spill] sm:$0xff] %v8348_v59 }
 0x2d0   : > { %v2768_v15 = vpop.f32.mrf.mxu0 }
 0x2d6   : > { %v2590_v51 = vpop.f32.mrf.mxu2 }
 0x2d7   : > { %v2679_v54 = vpop.f32.mrf.mxu3  ;;  %v2591_v61 = vadd.f32 %v2590_v51, %v8102_v57  ;;  %v11411_v57 = vld [vmem:[#allocation87_spill] sm:$0xff]  ;;  %v11412_v51 = vld [vmem:[#allocation86_spill] sm:$0xff] }
 0x2d8   : > { %v8305_v44 = vpop.f32.mrf.mxu0 }
 0x2d9   : > { %v2680_v38 = vadd.f32 %v2679_v54, %v2591_v61  ;;  %v2474_v54 = vadd.f32 %v11412_v51, %v11411_v57  ;;  %v8326_v61 = vadd.f32 %v8310_v14, %v8174_v41  ;;  %v11414_v57 = vld [vmem:[#allocation89_spill] sm:$0xff]  ;;  %v11415_v51 = vld [vmem:[#allocation88_spill] sm:$0xff]  ;;  %v8343_v41 = vpop.f32.mrf.mxu1 }
 0x2da   : > { %v2479_v13 = vadd.f32 %v11415_v51, %v11414_v57 }
 0x2db   : > { %v8312_v18 = vadd.f32 %v2768_v15, %v2680_v38  ;;  %11413 = vst [vmem:[#allocation45_spill] sm:$0xff] %v8326_v61  ;;  %v2834_v15 = vadd.f32 %v8316_v9, %v8326_v61  ;;  %v2563_v38 = vadd.f32 %v8226_v17, %v2474_v54 }
 0x2dc   : > { %v2568_v54 = vadd.f32 %v8248_v37, %v2479_v13  ;;  %v8372_v13 = vadd.f32 %v8310_v14, %v8213_v10 }
 0x2dd   : > { %v2835_v27 = vadd.f32 %v2834_v15, %v8330_v46  ;;  %v2652_v17 = vadd.f32 %v8228_v45, %v2563_v38  ;;  %v8362_v15 = vadd.f32 %v8310_v14, %v8210_v0  ;;  %v2573_v0 = vadd.f32 %v8261_v23, %v2484_v22 }
 0x2de   : > { %v8318_v49 = vpop.f32.mrf.mxu2  ;;  %v8396_v22 = vadd.f32 %v8310_v14, %v8243_v48  ;;  %v2499_v48 = vadd.f32 %v8091_v24, %v8095_v31  ;;  %v8426_v31 = vadd.f32 %v8310_v14, %v8271_v3 }
 0x2df   : > { %v8320_v32 = vpop.f32.mrf.mxu3  ;;  %v2836_v9 = vadd.f32 %v2835_v27, %v8336_v52  ;;  %v6779_v27 = vld [vmem:[%s11064_s5 + $0x28] sm:$0xff]  ;;  %v2741_v37 = vadd.f32 %v8222_v58, %v2652_v17  ;;  %v2662_v17 = vadd.f32 %v8263_v21, %v2573_v0 }
 0x2e0   : > { %v8339_v6 = vpop.f32.mrf.mxu0  ;;  %4883 = vmatpush.bf16.msra.mxu1 %v6779_v27 }
 0x2e1   : > { %v2837_v51 = vadd.f32 %v2836_v9, %v8348_v59  ;;  %v2657_v9 = vadd.f32 %v8250_v55, %v2568_v54  ;;  %v2513_v10 = vpop.f32.mrf.mxu1  ;;  %v8388_v58 = vadd.f32 %v8310_v14, %v2741_v37  ;;  %v2751_v21 = vadd.f32 %v8257_v60, %v2662_v17 }
 0x2e3   : > { %v2838_v45 = vadd.f32 %v2837_v51, %v8353_v1  ;;  %v2489_v51 = vadd.f32 %v8060_v36, %v8067_v20  ;;  %v2746_v55 = vadd.f32 %v8241_v62, %v2657_v9  ;;  %v2494_v36 = vadd.f32 %v8074_v28, %v8081_v19 }
 0x2e4   : > { %v8414_v28 = vadd.f32 %v8310_v14, %v8259_v11  ;;  %v8418_v9 = vadd.f32 %v8310_v14, %v2751_v21  ;;  %v2504_v11 = vadd.f32 %v8286_v2, %v8107_v34  ;;  %v8442_v34 = vadd.f32 %v8310_v14, %v8280_v56 }
 0x2e5   : > { %v2839_v59 = vadd.f32 %v2838_v45, %v8362_v15  ;;  %v2578_v23 = vadd.f32 %v8273_v43, %v2489_v51  ;;  %v2583_v45 = vadd.f32 %v8282_v40, %v2494_v36  ;;  %v2588_v40 = vadd.f32 %v8296_v42, %v2499_v48 }
 0x2e6   : > { %v2595_v61 = vpop.f32.mrf.mxu2  ;;  %v2509_v2 = vadd.f32 %v8303_v29, %v8119_v5  ;;  %v8457_v5 = vadd.f32 %v8310_v14, %v8294_v50  ;;  %v2514_v29 = vadd.f32 %v2513_v10, %v8131_v16  ;;  %v8470_v16 = vadd.f32 %v8310_v14, %v8312_v18 }
 0x2e7   : > { %v8357_v57 = vpop.f32.mrf.mxu3  ;;  %v2840_v35 = vadd.f32 %v2839_v59, %v8372_v13  ;;  %v8402_v59 = vadd.f32 %v8310_v14, %v2746_v55  ;;  %v2667_v43 = vadd.f32 %v8275_v47, %v2578_v23  ;;  %v2672_v47 = vadd.f32 %v8284_v63, %v2583_v45 }
 0x2e8   : > { %v8376_v38 = vpop.f32.mrf.mxu0  ;;  %v2677_v42 = vadd.f32 %v8298_v39, %v2588_v40  ;;  %v2507_v23 = vadd.f32 %v8300_v12, %v8114_v30 }
 0x2e9   : > { %v2841_v33 = vadd.f32 %v2840_v35, %v8382_v25  ;;  %v2756_v60 = vadd.f32 %v8269_v8, %v2667_v43  ;;  %v2516_v35 = vpop.f32.mrf.mxu1  ;;  %v2761_v63 = vadd.f32 %v8278_v7, %v2672_v47 }
 0x2ea   : > { %v2596_v36 = vadd.f32 %v2595_v61, %v2507_v23  ;;  %v2766_v39 = vadd.f32 %v8292_v26, %v2677_v42  ;;  %v2517_v50 = vadd.f32 %v2516_v35, %v8138_v4  ;;  %v6778_v4 = vld [vmem:[%s11064_s5 + $0x20] sm:$0xff] }
 0x2eb   : > { %v2842_v20 = vadd.f32 %v2841_v33, %v8388_v58  ;;  %v8432_v8 = vadd.f32 %v8310_v14, %v2756_v60  ;;  %v2593_v33 = vadd.f32 %v8318_v49, %v2504_v11  ;;  %v8448_v7 = vadd.f32 %v8310_v14, %v2761_v63  ;;  %4884 = vmatpush.bf16.msra.mxu1 %v6778_v4  ;;  %v11418_v23 = vld [vmem:[#allocation21_spill] sm:$0xff] }
 0x2ec   : > { %v2512_v49 = vadd.f32 %v8343_v41, %v8126_v53  ;;  %v2685_v45 = vadd.f32 %v8357_v57, %v2596_v36  ;;  %v8463_v53 = vadd.f32 %v8310_v14, %v2766_v39 }
 0x2ed   : > { %v2843_v37 = vadd.f32 %v2842_v20, %v8396_v22  ;;  %v2682_v21 = vadd.f32 %v8320_v32, %v2593_v33 }
 0x2ee   : > { %v2597_v54 = vpop.f32.mrf.mxu2  ;;  %v2774_v57 = vadd.f32 %v8339_v6, %v2685_v45 }
 0x2ef   : > { %v2686_v27 = vpop.f32.mrf.mxu3  ;;  %v2844_v19 = vadd.f32 %v2843_v37, %v8402_v59  ;;  %v2598_v56 = vadd.f32 %v2597_v54, %v2509_v2  ;;  %v2771_v32 = vadd.f32 %v8305_v44, %v2682_v21 }
 0x2f0   : > { %v8404_v62 = vpop.f32.mrf.mxu0  ;;  %v8483_v6 = vadd.f32 %v8310_v14, %v2774_v57 }
 0x2f1   : > { %v2845_v24 = vadd.f32 %v2844_v19, %v8414_v28  ;;  %v2518_v61 = vpop.f32.mrf.mxu1  ;;  %v2687_v41 = vadd.f32 %v2686_v27, %v2598_v56 }
 0x2f2   : > { %v2519_v33 = vadd.f32 %v2518_v61, %v11418_v23  ;;  %v11419_v61 = vld [vmem:[#allocation22_spill] sm:$0xff] }
 0x2f3   : > { %v2846_v17 = vadd.f32 %v2845_v24, %v8418_v9  ;;  %v2776_v44 = vadd.f32 %v8376_v38, %v2687_v41 }
 0x2f5   : > { %v2847_v3 = vadd.f32 %v2846_v17, %v8426_v31  ;;  %v8488_v38 = vadd.f32 %v8310_v14, %v2776_v44 }
 0x2f6   : > { %v2600_v0 = vpop.f32.mrf.mxu2 }
 0x2f7   : > { %v2689_v51 = vpop.f32.mrf.mxu3  ;;  %v2848_v20 = vadd.f32 %v2847_v3, %v8432_v8  ;;  %v2601_v26 = vadd.f32 %v2600_v0, %v2512_v49  ;;  %v8475_v0 = vadd.f32 %v8310_v14, %v2771_v32 }
 0x2f8   : > { %v2780_v55 = vpop.f32.mrf.mxu0 }
 0x2f9   : > { %v2849_v43 = vadd.f32 %v2848_v20, %v8442_v34  ;;  %v2690_v10 = vadd.f32 %v2689_v51, %v2601_v26  ;;  %v2521_v17 = vpop.f32.mrf.mxu1 }
 0x2fa   : > { %v2522_v45 = vadd.f32 %v2521_v17, %v11419_v61 }
 0x2fb   : > { %v2850_v48 = vadd.f32 %v2849_v43, %v8448_v7  ;;  %v2779_v51 = vadd.f32 %v8404_v62, %v2690_v10  ;;  %v11420_v10 = vld [vmem:[#allocation29_spill] sm:$0xff] }
 0x2fd   : > { %v2851_v19 = vadd.f32 %v2850_v48, %v8457_v5  ;;  %v8493_v2 = vadd.f32 %v8310_v14, %v2779_v51 }
 0x2fe   : > { %v2602_v30 = vpop.f32.mrf.mxu2 }
 0x2ff   : > { %v2691_v12 = vpop.f32.mrf.mxu3  ;;  %v2603_v54 = vadd.f32 %v2602_v30, %v2514_v29  ;;  %v2852_v60 = vadd.f32 %v2851_v19, %v8463_v53 }
 0x300   : > { %v2783_v37 = vpop.f32.mrf.mxu0 }
 0x301   : > { %v2692_v27 = vadd.f32 %v2691_v12, %v2603_v54  ;;  %v2853_v18 = vadd.f32 %v2852_v60, %v8470_v16  ;;  %v2523_v26 = vpop.f32.mrf.mxu1 }
 0x302   : > { %v2524_v60 = vadd.f32 %v2523_v26, %v11420_v10 }
 0x303   : > { %v2854_v63 = vadd.f32 %v2853_v18, %v8475_v0  ;;  %v2781_v42 = vadd.f32 %v2780_v55, %v2692_v27 }
 0x305   : > { %v2855_v3 = vadd.f32 %v2854_v63, %v8483_v6  ;;  %v8497_v30 = vadd.f32 %v8310_v14, %v2781_v42 }
 0x306   : > { %v2605_v47 = vpop.f32.mrf.mxu2 }
 0x307   : > { %v2694_v40 = vpop.f32.mrf.mxu3  ;;  %v2606_v24 = vadd.f32 %v2605_v47, %v2517_v50  ;;  %v2856_v39 = vadd.f32 %v2855_v3, %v8488_v38 }
 0x308   : > { %v2785_v11 = vpop.f32.mrf.mxu0 }
 0x309   : > { %v2695_v35 = vadd.f32 %v2694_v40, %v2606_v24  ;;  %v2857_v49 = vadd.f32 %v2856_v39, %v8493_v2  ;;  %v2526_v18 = vpop.f32.mrf.mxu1 }
 0x30b   : > { %v2784_v36 = vadd.f32 %v2783_v37, %v2695_v35  ;;  %v2858_v56 = vadd.f32 %v2857_v49, %v8497_v30 }
 0x30d   : > { %v2828_v55 = vadd.f32 %v8310_v14, %v2784_v36 }
 0x30e   : > { %v2607_v20 = vpop.f32.mrf.mxu2 }
 0x30f   : > { %v2696_v62 = vpop.f32.mrf.mxu3  ;;  %v2608_v12 = vadd.f32 %v2607_v20, %v2519_v33  ;;  %v2859_v37 = vadd.f32 %v2858_v56, %v2828_v55  ;;  %v7006_v56 = vmov 256.0  }
 0x310   : > { %v2788_v29 = vpop.f32.mrf.mxu0  ;;  %6912 = vrcp.f32 %v7006_v56 }
 0x311   : > { %v2697_v21 = vadd.f32 %v2696_v62, %v2608_v12  ;;  %v2528_v62 = vpop.f32.mrf.mxu1  ;;  %v11422_v12 = vld [vmem:[#allocation37_spill] sm:$0xff] }
 0x312   : > { %v2529_v49 = vadd.f32 %v2528_v62, %v11422_v12 }
 0x313   : > { %v2786_v43 = vadd.f32 %v2785_v11, %v2697_v21  ;;  %v11421_v11 = vld [vmem:[#allocation30_spill] sm:$0xff] }
 0x314   : > { %v2527_v17 = vadd.f32 %v2526_v18, %v11421_v11 }
 0x315   : > { %v2829_v48 = vadd.f32 %v8310_v14, %v2786_v43 }
 0x316   : > { %v2610_v32 = vpop.f32.mrf.mxu2 }
 0x317   : > { %v2699_v41 = vpop.f32.mrf.mxu3  ;;  %v2860_v54 = vadd.f32 %v2859_v37, %v2829_v48  ;;  %v2611_v19 = vadd.f32 %v2610_v32, %v2522_v45  ;;  %v6913_v32 = vpop.eup %6912 }
 0x318   : > { %v2790_v40 = vpop.f32.mrf.mxu0  ;;  %vm2876_vm2 = vweird.f32 %v6913_v32 }
 0x319   : > { %v2700_v50 = vadd.f32 %v2699_v41, %v2611_v19  ;;  %v2872_v19 = vmul.f32 256.0, %v6913_v32 }
 0x31b   : > { %v2789_v57 = vadd.f32 %v2788_v29, %v2700_v50  ;;  %v2873_v10 = vsub.f32 1.0, %v2872_v19 }
 0x31d   : > { %v2830_v47 = vadd.f32 %v8310_v14, %v2789_v57 }
 0x31e   : > { %v2612_v44 = vpop.f32.mrf.mxu2 }
 0x31f   : > { %v2701_v27 = vpop.f32.mrf.mxu3  ;;  %v2861_v24 = vadd.f32 %v2860_v54, %v2830_v47  ;;  %v2613_v4 = vadd.f32 %v2612_v44, %v2524_v60  ;;  %v2874_v44 = vmul.f32 %v6913_v32, %v2873_v10 }
 0x320   : > { %v2793_v36 = vpop.f32.mrf.mxu0 }
 0x321   : > { %v2702_v51 = vadd.f32 %v2701_v27, %v2613_v4  ;;  %v2875_v4 = vadd.f32 %v6913_v32, %v2874_v44 }
 0x323   : > { %v2791_v35 = vadd.f32 %v2790_v40, %v2702_v51  ;;  %v8511_v51 = vsel %vm2876_vm2, %v6913_v32, %v2875_v4 }
 0x324   : > { %11423 = vst [vmem:[#allocation63_spill] sm:$0xff] %v8511_v51 }
 0x325   : > { %v2831_v63 = vadd.f32 %v8310_v14, %v2791_v35 }
 0x326   : > { %v2615_v42 = vpop.f32.mrf.mxu2 }
 0x327   : > { %v2704_v23 = vpop.f32.mrf.mxu3  ;;  %v2862_v33 = vadd.f32 %v2861_v24, %v2831_v63  ;;  %v2616_v3 = vadd.f32 %v2615_v42, %v2527_v17 }
 0x328   : > { %v2795_v37 = vpop.f32.mrf.mxu0 }
 0x329   : > { %v2705_v20 = vadd.f32 %v2704_v23, %v2616_v3  ;;  %v11424_v3 = vld [vmem:[#allocation45_spill] sm:$0xff] }
 0x32b   : > { %v2794_v39 = vadd.f32 %v2793_v36, %v2705_v20 }
 0x32d   : > { %v2832_v21 = vadd.f32 %v8310_v14, %v2794_v39  ;;  %v11426_v39 = vld [vmem:[#allocation46_spill] sm:$0xff] }
 0x32e   : > { %v2617_v43 = vpop.f32.mrf.mxu2 }
 0x32f   : > { %v2863_v29 = vadd.f32 %v2862_v33, %v2832_v21  ;;  %v2618_v61 = vadd.f32 %v2617_v43, %v2529_v49  ;;  %v2706_v45 = vpop.f32.mrf.mxu3 }
 0x331   : > { %v2707_v26 = vadd.f32 %v2706_v45, %v2618_v61 }
 0x333   : > { %v2796_v41 = vadd.f32 %v2795_v37, %v2707_v26 }
 0x335   : > { %v2833_v54 = vadd.f32 %v8310_v14, %v2796_v41 }
 0x337   : > { %v2864_v50 = vadd.f32 %v2863_v29, %v2833_v54 }
 0x339   : > { %v2865_v57 = vrot.slane %v2864_v50, 4 }
 0x33b   : > { %v2866_v60 = vadd.f32 %v2865_v57, %v2864_v50 }
 0x33d   : > { %v2867_v40 = vrot.slane %v2866_v60, 2 }
 0x33f   : > { %v2868_v27 = vadd.f32 %v2867_v40, %v2866_v60 }
 0x341   : > { %v2869_v24 = vrot.slane %v2868_v27, 1 }
 0x343   : > { %v2870_v18 = vadd.f32 %v2869_v24, %v2868_v27 }
 0x345   : > { %v8514_v35 = vmul.f32 %v8511_v51, %v2870_v18 }
 0x347   : > { %v8517_v11 = vsub.f32 %v2828_v55, %v8514_v35  ;;  %v8520_v14 = vsub.f32 %v2829_v48, %v8514_v35  ;;  %v8523_v17 = vsub.f32 %v2830_v47, %v8514_v35  ;;  %v8526_v42 = vsub.f32 %v2831_v63, %v8514_v35  ;;  %v11425_v55 = vld [vmem:[#allocation38_spill] sm:$0xff] }
 0x348   : > { %v8529_v23 = vsub.f32 %v2832_v21, %v8514_v35  ;;  %v8532_v33 = vsub.f32 %v2833_v54, %v8514_v35  ;;  %v8536_v36 = vsub.f32 %v11424_v3, %v8514_v35  ;;  %v8540_v48 = vsub.f32 %v11425_v55, %v8514_v35 }
 0x349   : > { %v8544_v47 = vsub.f32 %v8330_v46, %v8514_v35  ;;  %v8552_v62 = vsub.f32 %v8336_v52, %v8514_v35  ;;  %v8556_v12 = vsub.f32 %v11426_v39, %v8514_v35  ;;  %v8562_v46 = vsub.f32 %v8353_v1, %v8514_v35 }
 0x34a   : > { %v2911_v63 = vmul.f32 %v8536_v36, %v8536_v36  ;;  %v2912_v20 = vmul.f32 %v8540_v48, %v8540_v48  ;;  %v8568_v52 = vsub.f32 %v8362_v15, %v8514_v35  ;;  %v8574_v45 = vsub.f32 %v8372_v13, %v8514_v35 }
 0x34b   : > { %v2913_v49 = vmul.f32 %v8544_v47, %v8544_v47  ;;  %v2914_v56 = vmul.f32 %v8552_v62, %v8552_v62  ;;  %v2915_v29 = vmul.f32 %v8556_v12, %v8556_v12  ;;  %v2916_v1 = vmul.f32 %v8562_v46, %v8562_v46 }
 0x34c   : > { %v2943_v21 = vadd.f32 %v2912_v20, %v2911_v63  ;;  %v8580_v37 = vsub.f32 %v8382_v25, %v8514_v35  ;;  %v2917_v15 = vmul.f32 %v8568_v52, %v8568_v52  ;;  %v8586_v41 = vsub.f32 %v8388_v58, %v8514_v35 }
 0x34d   : > { %v2918_v13 = vmul.f32 %v8574_v45, %v8574_v45  ;;  %v8592_v19 = vsub.f32 %v8396_v22, %v8514_v35  ;;  %v8598_v57 = vsub.f32 %v8402_v59, %v8514_v35  ;;  %v8604_v60 = vsub.f32 %v8414_v28, %v8514_v35 }
 0x34e   : > { %v2944_v43 = vadd.f32 %v2943_v21, %v2913_v49  ;;  %v2919_v25 = vmul.f32 %v8580_v37, %v8580_v37  ;;  %v2920_v58 = vmul.f32 %v8586_v41, %v8586_v41  ;;  %v8610_v44 = vsub.f32 %v8418_v9, %v8514_v35 }
 0x34f   : > { %v2921_v22 = vmul.f32 %v8592_v19, %v8592_v19  ;;  %v2922_v59 = vmul.f32 %v8598_v57, %v8598_v57  ;;  %v8616_v24 = vsub.f32 %v8426_v31, %v8514_v35  ;;  %v2923_v28 = vmul.f32 %v8604_v60, %v8604_v60 }
 0x350   : > { %v2945_v61 = vadd.f32 %v2944_v43, %v2914_v56  ;;  %v8622_v18 = vsub.f32 %v8432_v8, %v8514_v35  ;;  %v2924_v9 = vmul.f32 %v8610_v44, %v8610_v44  ;;  %v8628_v55 = vsub.f32 %v8442_v34, %v8514_v35 }
 0x351   : > { %v2925_v31 = vmul.f32 %v8616_v24, %v8616_v24  ;;  %v8634_v20 = vsub.f32 %v8448_v7, %v8514_v35  ;;  %v8640_v49 = vsub.f32 %v8457_v5, %v8514_v35  ;;  %v8646_v56 = vsub.f32 %v8463_v53, %v8514_v35 }
 0x352   : > { %v2946_v26 = vadd.f32 %v2945_v61, %v2915_v29  ;;  %v2926_v8 = vmul.f32 %v8622_v18, %v8622_v18  ;;  %v2927_v34 = vmul.f32 %v8628_v55, %v8628_v55  ;;  %v8652_v29 = vsub.f32 %v8470_v16, %v8514_v35 }
 0x353   : > { %v2928_v7 = vmul.f32 %v8634_v20, %v8634_v20  ;;  %v2929_v5 = vmul.f32 %v8640_v49, %v8640_v49  ;;  %v2930_v53 = vmul.f32 %v8646_v56, %v8646_v56 }
 0x354   : > { %v2947_v32 = vadd.f32 %v2946_v26, %v2916_v1  ;;  %v8658_v1 = vsub.f32 %v8475_v0, %v8514_v35  ;;  %v2931_v16 = vmul.f32 %v8652_v29, %v8652_v29 }
 0x356   : > { %v2948_v54 = vadd.f32 %v2947_v32, %v2917_v15  ;;  %v8664_v15 = vsub.f32 %v8483_v6, %v8514_v35  ;;  %v2932_v0 = vmul.f32 %v8658_v1, %v8658_v1 }
 0x358   : > { %v2949_v50 = vadd.f32 %v2948_v54, %v2918_v13  ;;  %v8670_v13 = vsub.f32 %v8488_v38, %v8514_v35  ;;  %v2933_v6 = vmul.f32 %v8664_v15, %v8664_v15 }
 0x35a   : > { %v2950_v10 = vadd.f32 %v2949_v50, %v2919_v25  ;;  %v8676_v25 = vsub.f32 %v8493_v2, %v8514_v35  ;;  %v2934_v38 = vmul.f32 %v8670_v13, %v8670_v13 }
 0x35c   : > { %v2951_v40 = vadd.f32 %v2950_v10, %v2920_v58  ;;  %v8682_v58 = vsub.f32 %v8497_v30, %v8514_v35  ;;  %v2938_v30 = vmul.f32 %v8520_v14, %v8520_v14 }
 0x35e   : > { %v2952_v27 = vadd.f32 %v2951_v40, %v2921_v22  ;;  %v2935_v22 = vmul.f32 %v8676_v25, %v8676_v25  ;;  %v2936_v2 = vmul.f32 %v8682_v58, %v8682_v58 }
 0x360   : > { %v2953_v4 = vadd.f32 %v2952_v27, %v2922_v59  ;;  %v2937_v27 = vmul.f32 %v8517_v11, %v8517_v11 }
 0x362   : > { %v2954_v3 = vadd.f32 %v2953_v4, %v2923_v28  ;;  %v2939_v4 = vmul.f32 %v8523_v17, %v8523_v17 }
 0x364   : > { %v2955_v63 = vadd.f32 %v2954_v3, %v2924_v9  ;;  %v2940_v3 = vmul.f32 %v8526_v42, %v8526_v42 }
 0x366   : > { %v2956_v39 = vadd.f32 %v2955_v63, %v2925_v31  ;;  %v2941_v63 = vmul.f32 %v8529_v23, %v8529_v23 }
 0x368   : > { %v2957_v21 = vadd.f32 %v2956_v39, %v2926_v8  ;;  %v2942_v39 = vmul.f32 %v8532_v33, %v8532_v33 }
 0x36a   : > { %v2958_v43 = vadd.f32 %v2957_v21, %v2927_v34 }
 0x36c   : > { %v2959_v61 = vadd.f32 %v2958_v43, %v2928_v7 }
 0x36e   : > { %v2960_v26 = vadd.f32 %v2959_v61, %v2929_v5 }
 0x370   : > { %v2961_v32 = vadd.f32 %v2960_v26, %v2930_v53 }
 0x372   : > { %v2962_v54 = vadd.f32 %v2961_v32, %v2931_v16 }
 0x374   : > { %v2963_v50 = vadd.f32 %v2962_v54, %v2932_v0 }
 0x376   : > { %v2964_v10 = vadd.f32 %v2963_v50, %v2933_v6 }
 0x378   : > { %v2965_v40 = vadd.f32 %v2964_v10, %v2934_v38  ;;  %v6789_v38 = vld [vmem:[%s11064_s5 + $0x78] sm:$0xff] }
 0x379   : > { %v6797_v10 = vld [vmem:[%s11064_s5 + $0xb8] sm:$0xff]  ;;  %4970 = vmatpush.bf16.msrb.mxu2 %v6789_v38 }
 0x37a   : > { %v2966_v59 = vadd.f32 %v2965_v40, %v2935_v22  ;;  %v6805_v22 = vld [vmem:[%s11064_s5 + $0xf8] sm:$0xff]  ;;  %5059 = vmatpush.bf16.msrb.mxu3 %v6797_v10 }
 0x37b   : > { %5148 = vmatpush.bf16.msrb.mxu0 %v6805_v22 }
 0x37c   : > { %v2967_v28 = vadd.f32 %v2966_v59, %v2936_v2  ;;  %v8715_v2 = vld [vmem:[%s11062_s3] ss:$0 sm:$0xff] }
 0x37e   : > { %v2968_v35 = vadd.f32 %v2967_v28, %v2937_v27  ;;  %v6788_v27 = vld [vmem:[%s11064_s5 + $0x70] sm:$0xff] }
 0x37f   : > { %v6796_v28 = vld [vmem:[%s11064_s5 + $0xb0] sm:$0xff]  ;;  %4971 = vmatpush.bf16.msrb.mxu2 %v6788_v27 }
 0x380   : > { %v2969_v9 = vadd.f32 %v2968_v35, %v2938_v30  ;;  %v6804_v30 = vld [vmem:[%s11064_s5 + $0xf0] sm:$0xff]  ;;  %5060 = vmatpush.bf16.msrb.mxu3 %v6796_v28 }
 0x381   : > { %5149 = vmatpush.bf16.msrb.mxu0 %v6804_v30 }
 0x382   : > { %v2970_v31 = vadd.f32 %v2969_v9, %v2939_v4  ;;  %v8729_v4 = vld [vmem:[%s11063_s4] ss:$0 sm:$0xff] }
 0x384   : > { %v2971_v8 = vadd.f32 %v2970_v31, %v2940_v3 }
 0x386   : > { %v2972_v34 = vadd.f32 %v2971_v8, %v2941_v63 }
 0x388   : > { %v2973_v21 = vadd.f32 %v2972_v34, %v2942_v39 }
 0x38a   : > { %v2974_v7 = vrot.slane %v2973_v21, 4 }
 0x38c   : > { %v2975_v43 = vadd.f32 %v2974_v7, %v2973_v21 }
 0x38e   : > { %v2976_v5 = vrot.slane %v2975_v43, 2 }
 0x390   : > { %v2977_v61 = vadd.f32 %v2976_v5, %v2975_v43 }
 0x392   : > { %v2978_v53 = vrot.slane %v2977_v61, 1 }
 0x394   : > { %v2979_v26 = vadd.f32 %v2978_v53, %v2977_v61 }
 0x396   : > { %v2980_v16 = vmul.f32 %v2979_v26, %v8511_v51 }
 0x398   : > { %v2981_v32 = vadd.f32 1e-05, %v2980_v16 }
 0x39a   : > { %6914 = vrsqrt.f32 %v2981_v32  ;;  %vm2988_vm4 = vweird.f32 %v2981_v32 }
 0x3a0   : > { %v6915_v0 = vpop.eup %6914 }
 0x3a1   : > { %v2983_v54 = vmul.f32 %v6915_v0, %v2981_v32  ;;  %vm2989_vm3 = vweird.f32 %v6915_v0 }
 0x3a2   : > { %vm2990_vm5 = vmor %vm2988_vm4, %vm2989_vm3 }
 0x3a3   : > { %v2984_v6 = vmul.f32 %v6915_v0, %v2983_v54 }
 0x3a5   : > { %v2985_v50 = vmul.f32 0.5, %v2984_v6 }
 0x3a7   : > { %v2986_v40 = vsub.f32 1.5, %v2985_v50  ;;  %v6793_v50 = vld [vmem:[%s11064_s5 + $0x98] sm:$0xff] }
 0x3a9   : > { %v2987_v59 = vmul.f32 %v6915_v0, %v2986_v40 }
 0x3ab   : > { %v2991_v35 = vsel %vm2990_vm5, %v6915_v0, %v2987_v59  ;;  %v6801_v59 = vld [vmem:[%s11064_s5 + $0xd8] sm:$0xff] }
 0x3ac   : > { %v3023_v9 = vmul.f32 %v2991_v35, %v8532_v33  ;;  %v2992_v3 = vmul.f32 %v2991_v35, %v8536_v36  ;;  %v2993_v31 = vmul.f32 %v2991_v35, %v8540_v48  ;;  %v2994_v63 = vmul.f32 %v2991_v35, %v8544_v47  ;;  %v6787_v48 = vld [vmem:[%s11064_s5 + $0x68] sm:$0xff] }
 0x3ad   : > { %v2995_v8 = vmul.f32 %v2991_v35, %v8552_v62  ;;  %v2996_v39 = vmul.f32 %v2991_v35, %v8556_v12  ;;  %v2997_v34 = vmul.f32 %v2991_v35, %v8562_v46  ;;  %v2998_v7 = vmul.f32 %v2991_v35, %v8568_v52  ;;  %v6795_v47 = vld [vmem:[%s11064_s5 + $0xa8] sm:$0xff]  ;;  %4972 = vmatpush.bf16.msrb.mxu2 %v6787_v48 }
 0x3ae   : > { %v3059_v21 = vmul.f32 %v8715_v2, %v3023_v9  ;;  %v2999_v33 = vmul.f32 %v2991_v35, %v8574_v45  ;;  %v3000_v36 = vmul.f32 %v2991_v35, %v8580_v37  ;;  %v6803_v62 = vld [vmem:[%s11064_s5 + $0xe8] sm:$0xff]  ;;  %v3001_v12 = vmul.f32 %v2991_v35, %v8586_v41  ;;  %5061 = vmatpush.bf16.msrb.mxu3 %v6795_v47 }
 0x3af   : > { %v3002_v46 = vmul.f32 %v2991_v35, %v8592_v19  ;;  %v3003_v52 = vmul.f32 %v2991_v35, %v8598_v57  ;;  %v3004_v45 = vmul.f32 %v2991_v35, %v8604_v60  ;;  %v3005_v43 = vmul.f32 %v2991_v35, %v8610_v44  ;;  %5150 = vmatpush.bf16.msrb.mxu0 %v6803_v62 }
 0x3b0   : > { %v8756_v37 = vadd.f32 %v8729_v4, %v3059_v21  ;;  %v3006_v5 = vmul.f32 %v2991_v35, %v8616_v24  ;;  %v3007_v61 = vmul.f32 %v2991_v35, %v8622_v18  ;;  %v3008_v53 = vmul.f32 %v2991_v35, %v8628_v55  ;;  %v6786_v18 = vld [vmem:[%s11064_s5 + $0x60] sm:$0xff] }
 0x3b1   : > { %v3009_v41 = vmul.f32 %v2991_v35, %v8634_v20  ;;  %v3010_v19 = vmul.f32 %v2991_v35, %v8640_v49  ;;  %v3011_v57 = vmul.f32 %v2991_v35, %v8646_v56  ;;  %v3012_v26 = vmul.f32 %v2991_v35, %v8652_v29  ;;  %v6794_v55 = vld [vmem:[%s11064_s5 + $0xa0] sm:$0xff]  ;;  %4973 = vmatpush.bf16.msrb.mxu2 %v6786_v18 }
 0x3b2   : > { %11427 = vst [vmem:[#allocation53_spill] sm:$0xff] %v8756_v37  ;;  %v11152_v60 = vmax.f32 %v8756_v37, 0.0  ;;  %v3013_v44 = vmul.f32 %v2991_v35, %v8658_v1  ;;  %v3014_v24 = vmul.f32 %v2991_v35, %v8664_v15  ;;  %v6802_v20 = vld [vmem:[%s11064_s5 + $0xe0] sm:$0xff]  ;;  %v3015_v49 = vmul.f32 %v2991_v35, %v8670_v13  ;;  %5062 = vmatpush.bf16.msrb.mxu3 %v6794_v55  ;;  %v6791_v55 = vld [vmem:[%s11064_s5 + $0x88] sm:$0xff] }
 0x3b3   : > { %v3016_v56 = vmul.f32 %v2991_v35, %v8676_v25  ;;  %v3017_v29 = vmul.f32 %v2991_v35, %v8682_v58  ;;  %v3018_v1 = vmul.f32 %v2991_v35, %v8517_v11  ;;  %v3019_v16 = vmul.f32 %v2991_v35, %v8520_v14  ;;  %5151 = vmatpush.bf16.msrb.mxu0 %v6802_v20 }
 0x3b4   : > { %v8784_v15 = vrot.slane %v11152_v60, 7  ;;  %v3020_v32 = vmul.f32 %v2991_v35, %v8523_v17  ;;  %v3021_v0 = vmul.f32 %v2991_v35, %v8526_v42  ;;  %v3022_v54 = vmul.f32 %v2991_v35, %v8529_v23  ;;  %v6777_v42 = vld [vmem:[%s11064_s5 + $0x18] sm:$0xff] }
 0x3b5   : > { %v3028_v13 = vmul.f32 %v8715_v2, %v2992_v3  ;;  %v3029_v25 = vmul.f32 %v8715_v2, %v2993_v31  ;;  %v3030_v58 = vmul.f32 %v8715_v2, %v2994_v63  ;;  %v3031_v11 = vmul.f32 %v8715_v2, %v2995_v8  ;;  %v6785_v23 = vld [vmem:[%s11064_s5 + $0x58] sm:$0xff]  ;;  %4885 = vmatpush.bf16.msra.mxu1 %v6777_v42 }
 0x3b6   : > { %11428 = vst [vmem:[#allocation54_spill] sm:$0xff] %v8784_v15  ;;  %v3032_v6 = vmul.f32 %v8715_v2, %v2996_v39  ;;  %v3033_v14 = vmul.f32 %v8715_v2, %v2997_v34  ;;  %v3034_v17 = vmul.f32 %v8715_v2, %v2998_v7  ;;  %v3035_v38 = vmul.f32 %v8715_v2, %v2999_v33  ;;  %v6776_v7 = vld [vmem:[%s11064_s5 + $0x10] sm:$0xff] }
 0x3b7   : > { %v3036_v10 = vmul.f32 %v8715_v2, %v3000_v36  ;;  %v3037_v22 = vmul.f32 %v8715_v2, %v3001_v12  ;;  %v3038_v40 = vmul.f32 %v8715_v2, %v3002_v46  ;;  %v3039_v27 = vmul.f32 %v8715_v2, %v3003_v52  ;;  %4974 = vmatpush.bf16.msrb.mxu2 %v6785_v23  ;;  %v6784_v33 = vld [vmem:[%s11064_s5 + $0x50] sm:$0xff] }
 0x3b8   : > { %v3040_v28 = vmul.f32 %v8715_v2, %v3004_v45  ;;  %v3041_v30 = vmul.f32 %v8715_v2, %v3005_v43  ;;  %v3042_v35 = vmul.f32 %v8715_v2, %v3006_v5  ;;  %v3043_v9 = vmul.f32 %v8715_v2, %v3007_v61  ;;  %5063 = vmatpush.bf16.msrb.mxu3 %v6793_v50  ;;  %v6792_v36 = vld [vmem:[%s11064_s5 + $0x90] sm:$0xff] }
 0x3b9   : > { %v3044_v3 = vmul.f32 %v8715_v2, %v3008_v53  ;;  %v3045_v31 = vmul.f32 %v8715_v2, %v3009_v41  ;;  %v3046_v63 = vmul.f32 %v8715_v2, %v3010_v19  ;;  %v3047_v8 = vmul.f32 %v8715_v2, %v3011_v57  ;;  %5152 = vmatpush.bf16.msrb.mxu0 %v6801_v59  ;;  %v6800_v46 = vld [vmem:[%s11064_s5 + $0xd0] sm:$0xff]  ;;  %v6775_v57 = vld [vmem:[%s11064_s5 + $0x8] sm:$0xff] }
 0x3ba   : > { %v3048_v39 = vmul.f32 %v8715_v2, %v3012_v26  ;;  %v3049_v34 = vmul.f32 %v8715_v2, %v3013_v44  ;;  %v3050_v21 = vmul.f32 %v8715_v2, %v3014_v24  ;;  %v3051_v48 = vmul.f32 %v8715_v2, %v3015_v49  ;;  %4886 = vmatpush.bf16.msra.mxu1 %v6776_v7 }
 0x3bb   : > { %v3052_v47 = vmul.f32 %v8715_v2, %v3016_v56  ;;  %v3053_v62 = vmul.f32 %v8715_v2, %v3017_v29  ;;  %v3054_v12 = vmul.f32 %v8715_v2, %v3018_v1  ;;  %v3055_v52 = vmul.f32 %v8715_v2, %v3019_v16  ;;  %4975 = vmatpush.bf16.msrb.mxu2 %v6784_v33  ;;  %v6799_v1 = vld [vmem:[%s11064_s5 + $0xc8] sm:$0xff] }
 0x3bc   : > { %v3056_v45 = vmul.f32 %v8715_v2, %v3020_v32  ;;  %v3057_v43 = vmul.f32 %v8715_v2, %v3021_v0  ;;  %v3058_v5 = vmul.f32 %v8715_v2, %v3022_v54  ;;  %v8846_v61 = vadd.f32 %v8729_v4, %v3028_v13  ;;  %v6783_v2 = vld [vmem:[%s11064_s5 + $0x48] sm:$0xff]  ;;  %5064 = vmatpush.bf16.msrb.mxu3 %v6792_v36  ;;  %v6774_v13 = vld [vmem:[%s11064_s5] sm:$0xff] }
 0x3bd   : > { %v8849_v53 = vadd.f32 %v8729_v4, %v3029_v25  ;;  %v8852_v41 = vadd.f32 %v8729_v4, %v3030_v58  ;;  %v8855_v19 = vadd.f32 %v8729_v4, %v3031_v11  ;;  %v8864_v26 = vadd.f32 %v8729_v4, %v3032_v6  ;;  %5153 = vmatpush.bf16.msrb.mxu0 %v6800_v46 }
 0x3be   : > { %v8867_v44 = vadd.f32 %v8729_v4, %v3033_v14  ;;  %v8870_v24 = vadd.f32 %v8729_v4, %v3034_v17  ;;  %v8873_v18 = vadd.f32 %v8729_v4, %v3035_v38  ;;  %v8879_v20 = vadd.f32 %v8729_v4, %v3036_v10  ;;  %4887 = vmatpush.bf16.msra.mxu1 %v6775_v57  ;;  %v6782_v14 = vld [vmem:[%s11064_s5 + $0x40] sm:$0xff] }
 0x3bf   : > { %v8882_v49 = vadd.f32 %v8729_v4, %v3037_v22  ;;  %v8885_v56 = vadd.f32 %v8729_v4, %v3038_v40  ;;  %v8888_v29 = vadd.f32 %v8729_v4, %v3039_v27  ;;  %v8894_v16 = vadd.f32 %v8729_v4, %v3040_v28  ;;  %4976 = vmatpush.bf16.msrb.mxu2 %v6783_v2  ;;  %v6790_v38 = vld [vmem:[%s11064_s5 + $0x80] sm:$0xff] }
 0x3c0   : > { %v8897_v32 = vadd.f32 %v8729_v4, %v3041_v30  ;;  %v8900_v0 = vadd.f32 %v8729_v4, %v3042_v35  ;;  %v8903_v54 = vadd.f32 %v8729_v4, %v3043_v9  ;;  %v8909_v25 = vadd.f32 %v8729_v4, %v3044_v3  ;;  %5065 = vmatpush.bf16.msrb.mxu3 %v6791_v55  ;;  %v6798_v27 = vld [vmem:[%s11064_s5 + $0xc0] sm:$0xff] }
 0x3c1   : > { %v8912_v58 = vadd.f32 %v8729_v4, %v3045_v31  ;;  %v8915_v11 = vadd.f32 %v8729_v4, %v3046_v63  ;;  %v8918_v6 = vadd.f32 %v8729_v4, %v3047_v8  ;;  %v8924_v17 = vadd.f32 %v8729_v4, %v3048_v39  ;;  %5154 = vmatpush.bf16.msrb.mxu0 %v6799_v1 }
 0x3c2   : > { %v8927_v42 = vadd.f32 %v8729_v4, %v3049_v34  ;;  %v8930_v23 = vadd.f32 %v8729_v4, %v3050_v21  ;;  %v8933_v50 = vadd.f32 %v8729_v4, %v3051_v48  ;;  %v8939_v10 = vadd.f32 %v8729_v4, %v3052_v47  ;;  %4888 = vmatpush.bf16.msra.mxu1 %v6774_v13 }
 0x3c3   : > { %v8942_v22 = vadd.f32 %v8729_v4, %v3053_v62  ;;  %v8945_v40 = vadd.f32 %v8729_v4, %v3054_v12  ;;  %v8948_v59 = vadd.f32 %v8729_v4, %v3055_v52  ;;  %v8954_v28 = vadd.f32 %v8729_v4, %v3056_v45  ;;  %4977 = vmatpush.bf16.msrb.mxu2 %v6782_v14  ;;  %v6813_v52 = vld [vmem:[%s11064_s5 + $0x138] sm:$0xff] }
 0x3c4   : > { %v8957_v30 = vadd.f32 %v8729_v4, %v3057_v43  ;;  %v8960_v35 = vadd.f32 %v8729_v4, %v3058_v5  ;;  %v3096_v9 = vmax.f32 %v8846_v61, 0.0  ;;  %v11155_v3 = vmax.f32 %v8849_v53, 0.0  ;;  %5066 = vmatpush.bf16.msrb.mxu3 %v6790_v38 }
 0x3c5   : > { %v3098_v31 = vmax.f32 %v8852_v41, 0.0  ;;  %v11153_v63 = vmax.f32 %v8855_v19, 0.0  ;;  %v3100_v8 = vmax.f32 %v8864_v26, 0.0  ;;  %v11154_v39 = vmax.f32 %v8867_v44, 0.0  ;;  %5155 = vmatpush.bf16.msrb.mxu0 %v6798_v27 }
 0x3c6   : > { %v3102_v34 = vmax.f32 %v8870_v24, 0.0  ;;  %v11156_v21 = vmax.f32 %v8873_v18, 0.0  ;;  %v3104_v4 = vmax.f32 %v8879_v20, 0.0  ;;  %v11159_v7 = vmax.f32 %v8882_v49, 0.0  ;;  %5237 = vmatpush.bf16.msrb.mxu1 %v6813_v52 }
 0x3c7   : > { %v3106_v33 = vmax.f32 %v8885_v56, 0.0  ;;  %v11161_v36 = vmax.f32 %v8888_v29, 0.0  ;;  %v3108_v48 = vmax.f32 %v8894_v16, 0.0  ;;  %v3110_v62 = vmax.f32 %v8900_v0, 0.0 }
 0x3c8   : > { %v3112_v46 = vmax.f32 %v8909_v25, 0.0  ;;  %v3114_v43 = vmax.f32 %v8915_v11, 0.0  ;;  %v3116_v61 = vmax.f32 %v8924_v17, 0.0  ;;  %v3118_v57 = vmax.f32 %v8930_v23, 0.0 }
 0x3c9   : > { %v3120_v26 = vmax.f32 %v8939_v10, 0.0  ;;  %v3122_v55 = vmax.f32 %v8945_v40, 0.0  ;;  %v3124_v56 = vmax.f32 %v8954_v28, 0.0  ;;  %v3126_v16 = vmax.f32 %v8960_v35, 0.0 }
 0x3ca   : > { %v8996_v0 = vrot.slane %v3098_v31, 1  ;;  %v8998_v13 = vrot.slane %v3096_v9, 1  ;;  %v9000_v25 = vrot.slane %v3100_v8, 1  ;;  %v9002_v11 = vrot.slane %v3102_v34, 1 }
 0x3cb   : > { %v9004_v14 = vrot.slane %v3104_v4, 1  ;;  %v9006_v17 = vrot.slane %v3106_v33, 1  ;;  %v9008_v23 = vrot.slane %v3108_v48, 1  ;;  %v9010_v38 = vrot.slane %v3110_v62, 1 }
 0x3cc   : > { %v9012_v10 = vrot.slane %v3112_v46, 1  ;;  %v9014_v40 = vrot.slane %v3114_v43, 1  ;;  %v9016_v27 = vrot.slane %v3116_v61, 1  ;;  %v9018_v28 = vrot.slane %v3118_v57, 1 }
 0x3cd   : > { %v9020_v35 = vrot.slane %v3120_v26, 1  ;;  %v9022_v52 = vrot.slane %v3122_v55, 1  ;;  %v9024_v60 = vrot.slane %v3124_v56, 1  ;;  %v9026_v1 = vrot.slane %v3126_v16, 1 }
 0x3ce   : > { %11429 = vst [vmem:[#allocation64_spill] sm:$0xff] %v9016_v27  ;;  %v3193_v20 = vrot.slane %v3098_v31, 7  ;;  %v3194_v24 = vrot.slane %v11153_v63, 7  ;;  %v3196_v2 = vrot.slane %v3096_v9, 7  ;;  %v3197_v41 = vrot.slane %v11155_v3, 7 }
 0x3cf   : > { %11430 = vst [vmem:[#allocation66_spill] sm:$0xff] %v9018_v28  ;;  %v9032_v5 = vrot.slane %v3100_v8, 7  ;;  %v9036_v45 = vrot.slane %v11154_v39, 7  ;;  %v9038_v12 = vrot.slane %v3102_v34, 7  ;;  %v9042_v47 = vrot.slane %v11156_v21, 7 }
 0x3d0   : > { %11431 = vst [vmem:[#allocation67_spill] sm:$0xff] %v9020_v35  ;;  %v9044_v31 = vrot.slane %v3104_v4, 7  ;;  %v9048_v9 = vrot.slane %v11159_v7, 7  ;;  %v9050_v63 = vrot.slane %v3106_v33, 7  ;;  %v9054_v8 = vrot.slane %v11161_v36, 7 }
 0x3d1   : > { %11432 = vst [vmem:[#allocation65_spill] sm:$0xff] %v9022_v52  ;;  %v9056_v39 = vrot.slane %v3108_v48, 7  ;;  %v11435_v34 = vmax.f32 %v8897_v32, 0.0  ;;  %v9062_v21 = vrot.slane %v3110_v62, 7  ;;  %v11436_v4 = vmax.f32 %v8903_v54, 0.0 }
 0x3d2   : > { %11433 = vst [vmem:[#allocation61_spill] sm:$0xff] %v9024_v60  ;;  %v9068_v7 = vrot.slane %v3112_v46, 7  ;;  %v11437_v33 = vmax.f32 %v8912_v58, 0.0  ;;  %v9074_v36 = vrot.slane %v3114_v43, 7  ;;  %v11438_v48 = vmax.f32 %v8918_v6, 0.0 }
 0x3d3   : > { %11434 = vst [vmem:[#allocation62_spill] sm:$0xff] %v9026_v1  ;;  %v9060_v3 = vrot.slane %v11435_v34, 7  ;;  %v9066_v51 = vrot.slane %v11436_v4, 7  ;;  %v9080_v34 = vrot.slane %v3116_v61, 7  ;;  %v11440_v62 = vmax.f32 %v8927_v42, 0.0 }
 0x3d4   : > { %v9072_v37 = vrot.slane %v11437_v33, 7  ;;  %v9078_v1 = vrot.slane %v11438_v48, 7  ;;  %v9086_v4 = vrot.slane %v3118_v57, 7  ;;  %v11443_v46 = vmax.f32 %v8933_v50, 0.0 }
 0x3d5   : > { %11439 = vst [vmem:[#allocation68_spill] sm:$0xff] %v9080_v34  ;;  %v9084_v15 = vrot.slane %v11440_v62, 7  ;;  %v9092_v33 = vrot.slane %v3120_v26, 7  ;;  %v11446_v43 = vmax.f32 %v8942_v22, 0.0  ;;  %v9098_v48 = vrot.slane %v3122_v55, 7 }
 0x3d6   : > { %11442 = vst [vmem:[#allocation71_spill] sm:$0xff] %v9086_v4  ;;  %v9090_v60 = vrot.slane %v11443_v46, 7  ;;  %v11449_v61 = vmax.f32 %v8948_v59, 0.0  ;;  %v9104_v62 = vrot.slane %v3124_v56, 7  ;;  %v11452_v57 = vmax.f32 %v8957_v30, 0.0 }
 0x3d7   : > { %11441 = vst [vmem:[#allocation70_spill] sm:$0xff] %v9084_v15  ;;  %v9096_v52 = vrot.slane %v11446_v43, 7  ;;  %v9110_v46 = vrot.slane %v3126_v16, 7  ;;  %v11455_v26 = vmax.f32 %v8855_v19, 0.0  ;;  %v11456_v43 = vmax.f32 %v8849_v53, 0.0 }
 0x3d8   : > { %11444 = vst [vmem:[#allocation69_spill] sm:$0xff] %v9090_v60  ;;  %v9102_v35 = vrot.slane %v11449_v61, 7  ;;  %v9108_v28 = vrot.slane %v11452_v57, 7  ;;  %v11457_v55 = vmax.f32 %v8867_v44, 0.0  ;;  %v11458_v61 = vmax.f32 %v8873_v18, 0.0 }
 0x3d9   : > { %11445 = vst [vmem:[#allocation7_spill] sm:$0xff] %v9092_v33  ;;  %v3289_v33 = vrot.slane %v11455_v26, 5  ;;  %v11460_v16 = vmax.f32 %v8888_v29, 0.0  ;;  %v11461_v19 = vmax.f32 %v8897_v32, 0.0  ;;  %v11462_v44 = vmax.f32 %v8903_v54, 0.0 }
 0x3da   : > { %11447 = vst [vmem:[#allocation8_spill] sm:$0xff] %v9096_v52  ;;  %v3290_v52 = vrot.slane %v11456_v43, 5  ;;  %v9122_v56 = vrot.slane %v11458_v61, 5  ;;  %v11463_v18 = vmax.f32 %v8912_v58, 0.0  ;;  %v11466_v29 = vmax.f32 %v8927_v42, 0.0 }
 0x3db   : > { %11448 = vst [vmem:[#allocation72_spill] sm:$0xff] %v9098_v48  ;;  %v9118_v48 = vrot.slane %v11457_v55, 5  ;;  %v9134_v53 = vrot.slane %v11461_v19, 5  ;;  %v9138_v26 = vrot.slane %v11462_v44, 5  ;;  %v11468_v32 = vmax.f32 %v8933_v50, 0.0 }
 0x3dc   : > { %11450 = vst [vmem:[#allocation74_spill] sm:$0xff] %v9102_v35  ;;  %v9142_v43 = vrot.slane %v11463_v18, 5  ;;  %v9150_v55 = vrot.slane %v11466_v29, 5  ;;  %v11470_v54 = vmax.f32 %v8942_v22, 0.0  ;;  %v11472_v58 = vmax.f32 %v8948_v59, 0.0 }
 0x3dd   : > { %11451 = vst [vmem:[#allocation75_spill] sm:$0xff] %v9104_v62  ;;  %v11459_v62 = vmax.f32 %v8882_v49, 0.0  ;;  %v11464_v49 = vmax.f32 %v8918_v6, 0.0  ;;  %v9154_v61 = vrot.slane %v11468_v32, 5  ;;  %v11474_v6 = vmax.f32 %v8957_v30, 0.0 }
 0x3de   : > { %11453 = vst [vmem:[#allocation73_spill] sm:$0xff] %v9108_v28  ;;  %v9162_v19 = vrot.slane %v11472_v58, 5  ;;  %v9170_v42 = vsel %vm3192_vm6, %v8996_v0, %v3193_v20  ;;  %v3322_v50 = vsel %vm3192_vm6, %v8998_v13, %v3196_v2  ;;  %v3337_v18 = vsel %vm3192_vm6, %v3194_v24, %v3289_v33 }
 0x3df   : > { %11454 = vst [vmem:[#allocation13_spill] sm:$0xff] %v9110_v46  ;;  %v9126_v57 = vrot.slane %v11459_v62, 5  ;;  %v9130_v46 = vrot.slane %v11460_v16, 5  ;;  %v9146_v62 = vrot.slane %v11464_v49, 5  ;;  %v9158_v16 = vrot.slane %v11470_v54, 5 }
 0x3e0   : > { %11467 = vst [vmem:[#allocation76_spill] sm:$0xff] %v9150_v55  ;;  %v9166_v44 = vrot.slane %v11474_v6, 5  ;;  %v3195_v22 = vsel %vm3192_vm6, %v3193_v20, %v3194_v24  ;;  %v3488_v49 = vrot.slane %v9170_v42, 2  ;;  %v3491_v59 = vrot.slane %v3337_v18, 2 }
 0x3e1   : > { %11465 = vst [vmem:[#allocation14_spill] sm:$0xff] %v9146_v62  ;;  %v3383_v29 = vrot.slane %v9170_v42, 1  ;;  %v3384_v32 = vrot.slane %v3195_v22, 1  ;;  %v3386_v30 = vrot.slane %v3337_v18, 1  ;;  %v3489_v54 = vrot.slane %v3195_v22, 2 }
 0x3e2   : > { %11469 = vst [vmem:[#allocation78_spill] sm:$0xff] %v9154_v61  ;;  %v3198_v58 = vsel %vm3192_vm6, %v3196_v2, %v3197_v41  ;;  %v3338_v0 = vsel %vm3192_vm6, %v3197_v41, %v3290_v52  ;;  %v3388_v13 = vrot.slane %v3322_v50, 1  ;;  %v3493_v62 = vrot.slane %v3322_v50, 2 }
 0x3e3   : > { %11471 = vst [vmem:[#allocation79_spill] sm:$0xff] %v9158_v16  ;;  %v9181_v6 = vsel %vm433_vm0, %v3383_v29, %v3384_v32  ;;  %v3391_v33 = vrot.slane %v3338_v0, 1  ;;  %v9184_v24 = vsel %vm433_vm0, %v3384_v32, %v3386_v30  ;;  %v9189_v28 = vsel %vm546_vm1, %v3488_v49, %v3489_v54 }
 0x3e4   : > { %11473 = vst [vmem:[#allocation77_spill] sm:$0xff] %v9162_v19  ;;  %v3609_v20 = vpack.c.bf16 %v9181_v6, %v9170_v42  ;;  %v9192_v18 = vsel %vm546_vm1, %v3489_v54, %v3491_v59  ;;  %v3613_v41 = vpack.c.bf16 %v9184_v24, %v3195_v22  ;;  %v3610_v2 = vpack.c.bf16 %v3322_v50, %v9189_v28 }
 0x3e5   : > { %11475 = vst [vmem:[#allocation19_spill] sm:$0xff] %v9166_v44  ;;  %v3389_v44 = vrot.slane %v3198_v58, 1  ;;  %v3614_v52 = vpack.c.bf16 %v3198_v58, %v9192_v18 }
 0x3e6   : > { %11476 = vst [vmem:[#allocation20_spill] sm:$0xff] %v9181_v6  ;;  %v4005_v19 = vunpack.c.l.b16 %v3609_v20  ;;  %v4006_v32 = vunpack.c.h.b16 %v3609_v20  ;;  %v4012_v6 = vunpack.c.l.b16 %v3613_v41  ;;  %v4013_v16 = vunpack.c.h.b16 %v3613_v41 }
 0x3e7   : > { %11477 = vst [vmem:[#allocation80_spill] sm:$0xff] %v9184_v24  ;;  %v3390_v29 = vsel %vm433_vm0, %v3388_v13, %v3389_v44  ;;  %v3392_v30 = vsel %vm433_vm0, %v3389_v44, %v3391_v33  ;;  %v4007_v49 = vunpack.c.l.b16 %v3610_v2  ;;  %v4014_v61 = vunpack.c.l.b16 %v3614_v52 }
 0x3e8   : > { %11478 = vst [vmem:[#allocation81_spill] sm:$0xff] %v9189_v28  ;;  %v3617_v35 = vpack.c.bf16 %v3390_v29, %v3322_v50  ;;  %v4008_v4 = vunpack.c.h.b16 %v3610_v2  ;;  %v4015_v59 = vunpack.c.h.b16 %v3614_v52  ;;  %v3622_v54 = vpack.c.bf16 %v3392_v30, %v3198_v58 }
 0x3e9   : > { %11479 = vst [vmem:[#allocation27_spill] sm:$0xff] %v9192_v18  ;;  %v9199_v24 = vpack.c.b16 %v4012_v6, %v4005_v19  ;;  %v9201_v55 = vpack.c.b16 %v4013_v16, %v4006_v32  ;;  %v4229_v27 = vpack.c.b16 %v4014_v61, %v4007_v49  ;;  %v3494_v44 = vrot.slane %v3198_v58, 2  ;;  %v6812_v19 = vld [vmem:[%s11064_s5 + $0x130] sm:$0xff] }
 0x3ea   : > { %v4019_v60 = vunpack.c.l.b16 %v3617_v35  ;;  %v4020_v34 = vunpack.c.h.b16 %v3617_v35  ;;  %v4230_v13 = vpack.c.b16 %v4015_v59, %v4008_v4  ;;  %v4028_v15 = vunpack.c.l.b16 %v3622_v54  ;;  %5238 = vmatpush.bf16.msrb.mxu1 %v6812_v19 }
 0x3eb   : > { %11480 = vst [vmem:[#allocation28_spill] sm:$0xff] %v9199_v24  ;;  %v4029_v20 = vunpack.c.h.b16 %v3622_v54  ;;  %4889 = vmatmul.bf16.vlgmr.msra.gmra.mxu1 %v9199_v24  ;;  %4978 = vmatmul.bf16.vlgmr.msrb.gmra.mxu2 %v9201_v55  ;;  %v3496_v33 = vrot.slane %v3338_v0, 2  ;;  %v3201_v41 = vsel %vm3192_vm6, %v9032_v5, %v9036_v45  ;;  %v3323_v16 = vsel %vm3192_vm6, %v9000_v25, %v9032_v5 }
 0x3ec   : > { %11481 = vst [vmem:[#allocation83_spill] sm:$0xff] %v9201_v55  ;;  %5067 = vmatmul.bf16.vlgmr.msrb.gmra.mxu3 %v4229_v27  ;;  %5156 = vmatmul.bf16.vlgmr.msrb.gmra.mxu0 %v4230_v13  ;;  %v9211_v35 = vpack.c.b16 %v4028_v15, %v4019_v60  ;;  %v3627_v61 = vpack.c.bf16 %v3323_v16, %v9189_v28  ;;  %v3393_v50 = vrot.slane %v3323_v16, 1 }
 0x3ed   : > { %v4235_v4 = vpack.c.b16 %v4029_v20, %v4020_v34  ;;  %v3495_v58 = vsel %vm546_vm1, %v3493_v62, %v3494_v44  ;;  %v3497_v0 = vsel %vm546_vm1, %v3494_v44, %v3496_v33  ;;  %v3631_v6 = vpack.c.bf16 %v3201_v41, %v9192_v18 }
 0x3ee   : > { %v3339_v5 = vsel %vm3192_vm6, %v9036_v45, %v9118_v48  ;;  %v9223_v60 = vpack.c.bf16 %v3495_v58, %v3390_v29  ;;  %v9225_v15 = vpack.c.bf16 %v3497_v0, %v3392_v30  ;;  %v3618_v25 = vpack.c.bf16 %v9170_v42, %v3495_v58 }
 0x3ef   : > { %v3623_v27 = vpack.c.bf16 %v3195_v22, %v3497_v0  ;;  %v4037_v34 = vunpack.c.l.b16 %v3627_v61  ;;  %v4044_v2 = vunpack.c.l.b16 %v3631_v6  ;;  %v4038_v52 = vunpack.c.h.b16 %v3627_v61 }
 0x3f0   : > { %v4045_v62 = vunpack.c.h.b16 %v3631_v6  ;;  %v4021_v48 = vunpack.c.l.b16 %v3618_v25  ;;  %v4022_v30 = vunpack.c.h.b16 %v3618_v25  ;;  %v3394_v22 = vrot.slane %v3201_v41, 1 }
 0x3f1   : > { %v4030_v29 = vunpack.c.l.b16 %v3623_v27  ;;  %v4031_v54 = vunpack.c.h.b16 %v3623_v27  ;;  %v9232_v13 = vpack.c.b16 %v4044_v2, %v4037_v34  ;;  %v3396_v20 = vrot.slane %v3339_v5, 1 }
 0x3f2   : > { %v9234_v42 = vpack.c.b16 %v4045_v62, %v4038_v52  ;;  %v3204_v61 = vsel %vm3192_vm6, %v9038_v12, %v9042_v47  ;;  %v3324_v19 = vsel %vm3192_vm6, %v9002_v11, %v9038_v12  ;;  %v9243_v58 = vsel %vm433_vm0, %v3393_v50, %v3394_v22 }
 0x3f3   : > { %v4236_v44 = vpack.c.b16 %v4030_v29, %v4021_v48  ;;  %v4237_v33 = vpack.c.b16 %v4031_v54, %v4022_v30  ;;  %11482 = vst [vmem:[#allocation82_spill] sm:$0xff] %v9243_v58  ;;  %v9246_v0 = vsel %vm433_vm0, %v3394_v22, %v3396_v20  ;;  %v3498_v6 = vrot.slane %v3323_v16, 2 }
 0x3f4   : > { %11483 = vst [vmem:[#allocation35_spill] sm:$0xff] %v9246_v0  ;;  %v3499_v25 = vrot.slane %v3201_v41, 2  ;;  %v3620_v27 = vpack.c.bf16 %v9243_v58, %v3323_v16  ;;  %v3625_v34 = vpack.c.bf16 %v9246_v0, %v3201_v41  ;;  %v3501_v2 = vrot.slane %v3339_v5, 2 }
 0x3f5   : > { %v3340_v52 = vsel %vm3192_vm6, %v9042_v47, %v9122_v56  ;;  %v3398_v12 = vrot.slane %v3324_v19, 1  ;;  %v3399_v11 = vrot.slane %v3204_v61, 1  ;;  %v3504_v59 = vrot.slane %v3204_v61, 2 }
 0x3f6   : > { %v9254_v62 = vsel %vm546_vm1, %v3498_v6, %v3499_v25  ;;  %v3401_v50 = vrot.slane %v3340_v52, 1  ;;  %v4025_v48 = vunpack.c.l.b16 %v3620_v27  ;;  %v4034_v29 = vunpack.c.l.b16 %v3625_v34 }
 0x3f7   : > { %11484 = vst [vmem:[#allocation36_spill] sm:$0xff] %v9254_v62  ;;  %v4026_v30 = vunpack.c.h.b16 %v3620_v27  ;;  %v4035_v54 = vunpack.c.h.b16 %v3625_v34  ;;  %v9257_v22 = vsel %vm546_vm1, %v3499_v25, %v3501_v2  ;;  %v3635_v41 = vpack.c.bf16 %v3324_v19, %v9254_v62 }
 0x3f8   : > { %11485 = vst [vmem:[#allocation84_spill] sm:$0xff] %v9257_v22  ;;  %v9261_v16 = vsel %vm433_vm0, %v3398_v12, %v3399_v11  ;;  %v9264_v47 = vsel %vm433_vm0, %v3399_v11, %v3401_v50  ;;  %v9266_v56 = vpack.c.b16 %v4034_v29, %v4025_v48  ;;  %v3639_v20 = vpack.c.bf16 %v3204_v61, %v9257_v22 }
 0x3f9   : > { %11486 = vst [vmem:[#allocation85_spill] sm:$0xff] %v9261_v16  ;;  %v9268_v5 = vpack.c.b16 %v4035_v54, %v4026_v30  ;;  %v3629_v6 = vpack.c.bf16 %v9261_v16, %v3324_v19  ;;  %v4051_v27 = vunpack.c.l.b16 %v3635_v41  ;;  %v4052_v34 = vunpack.c.h.b16 %v3635_v41 }
 0x3fa   : > { %11487 = vst [vmem:[#allocation43_spill] sm:$0xff] %v9264_v47  ;;  %v3633_v25 = vpack.c.bf16 %v9264_v47, %v3204_v61  ;;  %v3207_v2 = vsel %vm3192_vm6, %v9044_v31, %v9048_v9  ;;  %v4058_v12 = vunpack.c.l.b16 %v3639_v20  ;;  %v4059_v11 = vunpack.c.h.b16 %v3639_v20 }
 0x3fb   : > { %11488 = vst [vmem:[#allocation44_spill] sm:$0xff] %v9266_v56  ;;  %4894 = vmatmul.bf16.gmra.mxu1 %v9211_v35  ;;  %4983 = vmatmul.bf16.gmra.mxu2 %v4235_v4  ;;  %v4041_v50 = vunpack.c.l.b16 %v3629_v6  ;;  %v4042_v48 = vunpack.c.h.b16 %v3629_v6  ;;  %v3325_v54 = vsel %vm3192_vm6, %v9004_v14, %v9044_v31  ;;  %v3503_v41 = vrot.slane %v3324_v19, 2 }
 0x3fc   : > { %11489 = vst [vmem:[#allocation51_spill] sm:$0xff] %v9268_v5  ;;  %5072 = vmatmul.bf16.gmra.mxu3 %v4236_v44  ;;  %5161 = vmatmul.bf16.gmra.mxu0 %v4237_v33  ;;  %v4048_v29 = vunpack.c.l.b16 %v3633_v25  ;;  %v4049_v30 = vunpack.c.h.b16 %v3633_v25  ;;  %v9280_v45 = vpack.c.b16 %v4058_v12, %v4051_v27  ;;  %v9282_v49 = vpack.c.b16 %v4059_v11, %v4052_v34 }
 0x3fd   : > { %v3506_v35 = vrot.slane %v3340_v52, 2  ;;  %v3341_v44 = vsel %vm3192_vm6, %v9048_v9, %v9126_v57  ;;  %v3403_v33 = vrot.slane %v3325_v54, 1  ;;  %v9292_v6 = vsel %vm546_vm1, %v3503_v41, %v3504_v59 }
 0x3fe   : > { %v9284_v4 = vpack.c.b16 %v4048_v29, %v4041_v50  ;;  %v9286_v20 = vpack.c.b16 %v4049_v30, %v4042_v48  ;;  %11492 = vst [vmem:[#allocation60_spill] sm:$0xff] %v9292_v6  ;;  %v3404_v31 = vrot.slane %v3207_v2, 1  ;;  %v3406_v19 = vrot.slane %v3341_v44, 1 }
 0x3ff   : > { %v9295_v14 = vsel %vm546_vm1, %v3504_v59, %v3506_v35  ;;  %v3643_v61 = vpack.c.bf16 %v3325_v54, %v9292_v6  ;;  %v3210_v27 = vsel %vm3192_vm6, %v9050_v63, %v9054_v8  ;;  %v3326_v9 = vsel %vm3192_vm6, %v9006_v17, %v9050_v63 }
 0x400   : > { %11490 = vst [vmem:[#allocation52_spill] sm:$0xff] %v9284_v4  ;;  %v3647_v52 = vpack.c.bf16 %v3207_v2, %v9295_v14  ;;  %v9306_v57 = vsel %vm433_vm0, %v3403_v33, %v3404_v31  ;;  %v9309_v59 = vsel %vm433_vm0, %v3404_v31, %v3406_v19  ;;  %v3508_v34 = vrot.slane %v3325_v54, 2 }
 0x401   : > { %11491 = vst [vmem:[#allocation59_spill] sm:$0xff] %v9286_v20  ;;  %v3509_v25 = vrot.slane %v3207_v2, 2  ;;  %v4065_v12 = vunpack.c.l.b16 %v3643_v61  ;;  %v4066_v50 = vunpack.c.h.b16 %v3643_v61  ;;  %v3637_v29 = vpack.c.bf16 %v9306_v57, %v3325_v54 }
 0x402   : > { %11493 = vst [vmem:[#allocation92_spill] sm:$0xff] %v9295_v14  ;;  %v4072_v11 = vunpack.c.l.b16 %v3647_v52  ;;  %v4073_v48 = vunpack.c.h.b16 %v3647_v52  ;;  %v3641_v30 = vpack.c.bf16 %v9309_v59, %v3207_v2  ;;  %v3511_v63 = vrot.slane %v3341_v44, 2 }
 0x403   : > { %11494 = vst [vmem:[#allocation93_spill] sm:$0xff] %v9306_v57  ;;  %v9314_v41 = vsel %vm546_vm1, %v3508_v34, %v3509_v25  ;;  %v3342_v31 = vsel %vm3192_vm6, %v9054_v8, %v9130_v46  ;;  %v4055_v19 = vunpack.c.l.b16 %v3637_v29  ;;  %v4056_v52 = vunpack.c.h.b16 %v3637_v29 }
 0x404   : > { %11495 = vst [vmem:[#allocation87_spill] sm:$0xff] %v9309_v59  ;;  %v9316_v17 = vpack.c.b16 %v4072_v11, %v4065_v12  ;;  %v9318_v35 = vpack.c.b16 %v4073_v48, %v4066_v50  ;;  %v3651_v33 = vpack.c.bf16 %v3326_v9, %v9314_v41  ;;  %v4062_v61 = vunpack.c.l.b16 %v3641_v30 }
 0x405   : > { %11496 = vst [vmem:[#allocation86_spill] sm:$0xff] %v9314_v41  ;;  %v4063_v54 = vunpack.c.h.b16 %v3641_v30  ;;  %v9325_v2 = vsel %vm546_vm1, %v3509_v25, %v3511_v63  ;;  %v3408_v44 = vrot.slane %v3326_v9, 1  ;;  %v3409_v48 = vrot.slane %v3210_v27, 1 }
 0x406   : > { %11497 = vst [vmem:[#allocation89_spill] sm:$0xff] %v9325_v2  ;;  %v4079_v34 = vunpack.c.l.b16 %v3651_v33  ;;  %v4080_v32 = vunpack.c.h.b16 %v3651_v33  ;;  %v9327_v12 = vpack.c.b16 %v4062_v61, %v4055_v19  ;;  %v3655_v50 = vpack.c.bf16 %v3210_v27, %v9325_v2 }
 0x407   : > { %v9329_v11 = vpack.c.b16 %v4063_v54, %v4056_v52  ;;  %v3411_v59 = vrot.slane %v3342_v31, 1  ;;  %v3213_v8 = vsel %vm3192_vm6, %v9056_v39, %v9060_v3  ;;  %v3327_v46 = vsel %vm3192_vm6, %v9008_v23, %v9056_v39 }
 0x408   : > { %11498 = vst [vmem:[#allocation88_spill] sm:$0xff] %v9327_v12  ;;  %v3513_v25 = vrot.slane %v3326_v9, 2  ;;  %v4086_v29 = vunpack.c.l.b16 %v3655_v50  ;;  %v4087_v30 = vunpack.c.h.b16 %v3655_v50  ;;  %v9339_v63 = vsel %vm433_vm0, %v3408_v44, %v3409_v48 }
 0x409   : > { %11499 = vst [vmem:[#allocation94_spill] sm:$0xff] %v9329_v11  ;;  %v3514_v33 = vrot.slane %v3210_v27, 2  ;;  %v9342_v19 = vsel %vm433_vm0, %v3409_v48, %v3411_v59  ;;  %v3645_v61 = vpack.c.bf16 %v9339_v63, %v3326_v9  ;;  %v3516_v52 = vrot.slane %v3342_v31, 2  ;;  %v6811_v9 = vld [vmem:[%s11064_s5 + $0x128] sm:$0xff] }
 0x40a   : > { %11500 = vst [vmem:[#allocation21_spill] sm:$0xff] %v9339_v63  ;;  %v3343_v54 = vsel %vm3192_vm6, %v9060_v3, %v9134_v53  ;;  %v9350_v39 = vpack.c.b16 %v4086_v29, %v4079_v34  ;;  %v9352_v23 = vpack.c.b16 %v4087_v30, %v4080_v32  ;;  %v3649_v44 = vpack.c.bf16 %v9342_v19, %v3210_v27 }
 0x40b   : > { %11501 = vst [vmem:[#allocation22_spill] sm:$0xff] %v9342_v19  ;;  %4899 = vmatmul.bf16.gmra.mxu1 %v9199_v24  ;;  %4988 = vmatmul.bf16.gmra.mxu2 %v9201_v55  ;;  %v3413_v50 = vrot.slane %v3327_v46, 1  ;;  %v4069_v3 = vunpack.c.l.b16 %v3645_v61  ;;  %v4070_v53 = vunpack.c.h.b16 %v3645_v61  ;;  %v9361_v59 = vsel %vm546_vm1, %v3513_v25, %v3514_v33 }
 0x40c   : > { %5077 = vmatmul.bf16.gmra.mxu3 %v9232_v13  ;;  %5166 = vmatmul.bf16.gmra.mxu0 %v9234_v42  ;;  %11502 = vst [vmem:[#allocation29_spill] sm:$0xff] %v9361_v59  ;;  %v9364_v31 = vsel %vm546_vm1, %v3514_v33, %v3516_v52  ;;  %v4076_v32 = vunpack.c.l.b16 %v3649_v44  ;;  %v4077_v34 = vunpack.c.h.b16 %v3649_v44  ;;  %v3659_v27 = vpack.c.bf16 %v3327_v46, %v9361_v59 }
 0x40d   : > { %11503 = vst [vmem:[#allocation30_spill] sm:$0xff] %v9364_v31  ;;  %v3663_v13 = vpack.c.bf16 %v3213_v8, %v9364_v31  ;;  %5239 = vmatpush.bf16.msrb.mxu1 %v6811_v9  ;;  %v3414_v42 = vrot.slane %v3213_v8, 1  ;;  %v3416_v48 = vrot.slane %v3343_v54, 1  ;;  %v3216_v29 = vsel %vm3192_vm6, %v9062_v21, %v9066_v51 }
 0x40e   : > { %v3328_v25 = vsel %vm3192_vm6, %v9010_v38, %v9062_v21  ;;  %v9374_v30 = vpack.c.b16 %v4076_v32, %v4069_v3  ;;  %v9376_v33 = vpack.c.b16 %v4077_v34, %v4070_v53  ;;  %v4093_v61 = vunpack.c.l.b16 %v3659_v27 }
 0x40f   : > { %v4100_v52 = vunpack.c.l.b16 %v3663_v13  ;;  %v4094_v44 = vunpack.c.h.b16 %v3659_v27  ;;  %v4101_v19 = vunpack.c.h.b16 %v3663_v13  ;;  %v9379_v9 = vsel %vm433_vm0, %v3413_v50, %v3414_v42 }
 0x410   : > { %11504 = vst [vmem:[#allocation37_spill] sm:$0xff] %v9374_v30  ;;  %v9382_v31 = vsel %vm433_vm0, %v3414_v42, %v3416_v48  ;;  %v3653_v63 = vpack.c.bf16 %v9379_v9, %v3327_v46  ;;  %v3518_v38 = vrot.slane %v3327_v46, 2  ;;  %v3519_v53 = vrot.slane %v3213_v8, 2 }
 0x411   : > { %11505 = vst [vmem:[#allocation45_spill] sm:$0xff] %v9376_v33  ;;  %v9384_v59 = vpack.c.b16 %v4100_v52, %v4093_v61  ;;  %v3657_v21 = vpack.c.bf16 %v9382_v31, %v3213_v8  ;;  %v9388_v3 = vpack.c.b16 %v4101_v19, %v4094_v44  ;;  %v3521_v32 = vrot.slane %v3343_v54, 2 }
 0x412   : > { %11506 = vst [vmem:[#allocation38_spill] sm:$0xff] %v9379_v9  ;;  %v3344_v34 = vsel %vm3192_vm6, %v9066_v51, %v9138_v26  ;;  %v4083_v50 = vunpack.c.l.b16 %v3653_v63  ;;  %v4084_v13 = vunpack.c.h.b16 %v3653_v63  ;;  %v9394_v48 = vsel %vm546_vm1, %v3518_v38, %v3519_v53 }
 0x413   : > { %11507 = vst [vmem:[#allocation46_spill] sm:$0xff] %v9382_v31  ;;  %v4090_v27 = vunpack.c.l.b16 %v3657_v21  ;;  %v4091_v42 = vunpack.c.h.b16 %v3657_v21  ;;  %v9397_v61 = vsel %vm546_vm1, %v3519_v53, %v3521_v32  ;;  %v3418_v52 = vrot.slane %v3328_v25, 1 }
 0x414   : > { %11508 = vst [vmem:[#allocation95_spill] sm:$0xff] %v9394_v48  ;;  %v3419_v46 = vrot.slane %v3216_v29, 1  ;;  %v3667_v54 = vpack.c.bf16 %v3328_v25, %v9394_v48  ;;  %v3671_v51 = vpack.c.bf16 %v3216_v29, %v9397_v61  ;;  %v3421_v63 = vrot.slane %v3344_v34, 1 }
 0x415   : > { %11509 = vst [vmem:[#allocation96_spill] sm:$0xff] %v9397_v61  ;;  %v9399_v19 = vpack.c.b16 %v4090_v27, %v4083_v50  ;;  %v9401_v8 = vpack.c.b16 %v4091_v42, %v4084_v13  ;;  %v3219_v44 = vsel %vm3192_vm6, %v9068_v7, %v9072_v37  ;;  %v3329_v21 = vsel %vm3192_vm6, %v9012_v10, %v9068_v7 }
 0x416   : > { %v9406_v26 = vsel %vm433_vm0, %v3418_v52, %v3419_v46  ;;  %v4107_v38 = vunpack.c.l.b16 %v3667_v54  ;;  %v4114_v53 = vunpack.c.l.b16 %v3671_v51  ;;  %v4108_v32 = vunpack.c.h.b16 %v3667_v54 }
 0x417   : > { %11510 = vst [vmem:[#allocation97_spill] sm:$0xff] %v9406_v26  ;;  %v4115_v50 = vunpack.c.h.b16 %v3671_v51  ;;  %v9415_v27 = vsel %vm433_vm0, %v3419_v46, %v3421_v63  ;;  %v3661_v13 = vpack.c.bf16 %v9406_v26, %v3328_v25  ;;  %v3523_v42 = vrot.slane %v3328_v25, 2 }
 0x418   : > { %11511 = vst [vmem:[#allocation98_spill] sm:$0xff] %v9415_v27  ;;  %v3524_v52 = vrot.slane %v3216_v29, 2  ;;  %v9418_v61 = vpack.c.b16 %v4114_v53, %v4107_v38  ;;  %v3665_v48 = vpack.c.bf16 %v9415_v27, %v3216_v29  ;;  %v3526_v9 = vrot.slane %v3344_v34, 2 }
 0x419   : > { %v9420_v31 = vpack.c.b16 %v4115_v50, %v4108_v32  ;;  %v4097_v2 = vunpack.c.l.b16 %v3661_v13  ;;  %v4098_v7 = vunpack.c.h.b16 %v3661_v13  ;;  %v3345_v46 = vsel %vm3192_vm6, %v9072_v37, %v9142_v43 }
 0x41a   : > { %v9424_v10 = vsel %vm546_vm1, %v3523_v42, %v3524_v52  ;;  %v4104_v25 = vunpack.c.l.b16 %v3665_v48  ;;  %v4105_v54 = vunpack.c.h.b16 %v3665_v48  ;;  %v9432_v51 = vsel %vm546_vm1, %v3524_v52, %v3526_v9 }
 0x41b   : > { %11512 = vst [vmem:[#allocation99_spill] sm:$0xff] %v9424_v10  ;;  %4904 = vmatmul.bf16.gmra.mxu1 %v9266_v56  ;;  %4993 = vmatmul.bf16.gmra.mxu2 %v9268_v5  ;;  %v3675_v29 = vpack.c.bf16 %v3329_v21, %v9424_v10  ;;  %v3679_v34 = vpack.c.bf16 %v3219_v44, %v9432_v51  ;;  %v3423_v63 = vrot.slane %v3329_v21, 1  ;;  %v3424_v38 = vrot.slane %v3219_v44, 1  ;;  %v11515_v10 = vld [vmem:[#allocation14_spill] sm:$0xff] }
 0x41c   : > { %11513 = vst [vmem:[#allocation100_spill] sm:$0xff] %v9432_v51  ;;  %5082 = vmatmul.bf16.gmra.mxu3 %v9280_v45  ;;  %5171 = vmatmul.bf16.gmra.mxu0 %v9282_v49  ;;  %v3426_v37 = vrot.slane %v3345_v46, 1  ;;  %v9438_v43 = vpack.c.b16 %v4104_v25, %v4097_v2  ;;  %v9440_v53 = vpack.c.b16 %v4105_v54, %v4098_v7  ;;  %v3528_v54 = vrot.slane %v3329_v21, 2  ;;  %v11533_v56 = vld [vmem:[#allocation78_spill] sm:$0xff] }
 0x41d   : > { %v4121_v32 = vunpack.c.l.b16 %v3675_v29  ;;  %v4122_v48 = vunpack.c.h.b16 %v3675_v29  ;;  %v4128_v50 = vunpack.c.l.b16 %v3679_v34  ;;  %v4129_v9 = vunpack.c.h.b16 %v3679_v34 }
 0x41e   : > { %v9443_v13 = vsel %vm433_vm0, %v3423_v63, %v3424_v38  ;;  %v9446_v45 = vsel %vm433_vm0, %v3424_v38, %v3426_v37  ;;  %v3222_v2 = vsel %vm3192_vm6, %v9074_v36, %v9078_v1  ;;  %v3330_v52 = vsel %vm3192_vm6, %v9014_v40, %v9074_v36 }
 0x41f   : > { %v3669_v49 = vpack.c.bf16 %v9443_v13, %v3329_v21  ;;  %v3673_v42 = vpack.c.bf16 %v9446_v45, %v3219_v44  ;;  %v9456_v7 = vpack.c.b16 %v4128_v50, %v4121_v32  ;;  %v9458_v25 = vpack.c.b16 %v4129_v9, %v4122_v48  ;;  %v11517_v50 = vld [vmem:[#allocation70_spill] sm:$0xff]  ;;  %v11518_v9 = vld [vmem:[#allocation68_spill] sm:$0xff] }
 0x420   : > { %v3529_v29 = vrot.slane %v3219_v44, 2  ;;  %v3531_v27 = vrot.slane %v3345_v46, 2  ;;  %v3346_v26 = vsel %vm3192_vm6, %v9078_v1, %v11515_v10  ;;  %v3428_v41 = vrot.slane %v3330_v52, 1 }
 0x421   : > { %v4111_v34 = vunpack.c.l.b16 %v3669_v49  ;;  %v4118_v63 = vunpack.c.l.b16 %v3673_v42  ;;  %v4112_v38 = vunpack.c.h.b16 %v3669_v49  ;;  %v4119_v37 = vunpack.c.h.b16 %v3673_v42  ;;  %v11519_v49 = vld [vmem:[#allocation64_spill] sm:$0xff] }
 0x422   : > { %v9461_v51 = vsel %vm546_vm1, %v3528_v54, %v3529_v29  ;;  %v3429_v44 = vrot.slane %v3222_v2, 1  ;;  %v9472_v32 = vsel %vm546_vm1, %v3529_v29, %v3531_v27  ;;  %v3431_v48 = vrot.slane %v3346_v26, 1 }
 0x423   : > { %11514 = vst [vmem:[#allocation101_spill] sm:$0xff] %v9461_v51  ;;  %v9466_v36 = vpack.c.b16 %v4118_v63, %v4111_v34  ;;  %v9468_v40 = vpack.c.b16 %v4119_v37, %v4112_v38  ;;  %v3683_v21 = vpack.c.bf16 %v3330_v52, %v9461_v51  ;;  %v9477_v46 = vsel %vm3192_vm6, %v11518_v9, %v11517_v50 }
 0x424   : > { %11516 = vst [vmem:[#allocation14_spill] sm:$0xff] %v9472_v32  ;;  %v3331_v1 = vsel %vm3192_vm6, %v11519_v49, %v11518_v9  ;;  %v3687_v10 = vpack.c.bf16 %v3222_v2, %v9472_v32  ;;  %v9484_v34 = vsel %vm433_vm0, %v3428_v41, %v3429_v44  ;;  %v9487_v27 = vsel %vm433_vm0, %v3429_v44, %v3431_v48 }
 0x425   : > { %v4135_v42 = vunpack.c.l.b16 %v3683_v21  ;;  %v4136_v54 = vunpack.c.h.b16 %v3683_v21  ;;  %v3677_v29 = vpack.c.bf16 %v9484_v34, %v3330_v52  ;;  %v3533_v63 = vrot.slane %v3330_v52, 2  ;;  %v11521_v21 = vld [vmem:[#allocation76_spill] sm:$0xff] }
 0x426   : > { %v3534_v38 = vrot.slane %v3222_v2, 2  ;;  %v4142_v37 = vunpack.c.l.b16 %v3687_v10  ;;  %v4143_v57 = vunpack.c.h.b16 %v3687_v10  ;;  %v3681_v14 = vpack.c.bf16 %v9487_v27, %v3222_v2 }
 0x427   : > { %v3536_v47 = vrot.slane %v3346_v26, 2  ;;  %v4125_v9 = vunpack.c.l.b16 %v3677_v29  ;;  %v4126_v49 = vunpack.c.h.b16 %v3677_v29  ;;  %v3347_v41 = vsel %vm3192_vm6, %v11517_v50, %v11521_v21 }
 0x428   : > { %v9492_v6 = vsel %vm546_vm1, %v3533_v63, %v3534_v38  ;;  %v9497_v44 = vpack.c.b16 %v4142_v37, %v4135_v42  ;;  %v9499_v48 = vpack.c.b16 %v4143_v57, %v4136_v54  ;;  %v4132_v52 = vunpack.c.l.b16 %v3681_v14  ;;  %v11527_v37 = vld [vmem:[#allocation69_spill] sm:$0xff] }
 0x429   : > { %11520 = vst [vmem:[#allocation70_spill] sm:$0xff] %v9492_v6  ;;  %v4133_v16 = vunpack.c.h.b16 %v3681_v14  ;;  %v9502_v10 = vsel %vm546_vm1, %v3534_v38, %v3536_v47  ;;  %v3691_v26 = vpack.c.bf16 %v3331_v1, %v9492_v6  ;;  %v3433_v2 = vrot.slane %v3331_v1, 1  ;;  %v6810_v47 = vld [vmem:[%s11064_s5 + $0x120] sm:$0xff] }
 0x42a   : > { %11522 = vst [vmem:[#allocation68_spill] sm:$0xff] %v9497_v44  ;;  %v3434_v29 = vrot.slane %v9477_v46, 1  ;;  %v9508_v63 = vpack.c.b16 %v4132_v52, %v4125_v9  ;;  %v3695_v57 = vpack.c.bf16 %v9477_v46, %v9502_v10  ;;  %v3436_v14 = vrot.slane %v3347_v41, 1  ;;  %5240 = vmatpush.bf16.msrb.mxu1 %v6810_v47 }
 0x42b   : > { %11523 = vst [vmem:[#allocation64_spill] sm:$0xff] %v9499_v48  ;;  %4909 = vmatmul.bf16.gmra.mxu1 %v9284_v4  ;;  %4998 = vmatmul.bf16.gmra.mxu2 %v9286_v20  ;;  %v9510_v50 = vpack.c.b16 %v4133_v16, %v4126_v49  ;;  %v4149_v42 = vunpack.c.l.b16 %v3691_v26  ;;  %v4150_v54 = vunpack.c.h.b16 %v3691_v26  ;;  %v11528_v16 = vld [vmem:[#allocation71_spill] sm:$0xff]  ;;  %v11529_v26 = vld [vmem:[#allocation66_spill] sm:$0xff]  ;;  %v3538_v20 = vrot.slane %v3331_v1, 2 }
 0x42c   : > { %11524 = vst [vmem:[#allocation76_spill] sm:$0xff] %v9502_v10  ;;  %5087 = vmatmul.bf16.gmra.mxu3 %v9316_v17  ;;  %5176 = vmatmul.bf16.gmra.mxu0 %v9318_v35  ;;  %v9520_v38 = vsel %vm433_vm0, %v3433_v2, %v3434_v29  ;;  %v3228_v9 = vsel %vm3192_vm6, %v11528_v16, %v11527_v37  ;;  %v4156_v49 = vunpack.c.l.b16 %v3695_v57  ;;  %v4157_v21 = vunpack.c.h.b16 %v3695_v57 }
 0x42d   : > { %11525 = vst [vmem:[#allocation102_spill] sm:$0xff] %v9508_v63  ;;  %v9526_v52 = vsel %vm433_vm0, %v3434_v29, %v3436_v14  ;;  %v3685_v17 = vpack.c.bf16 %v9520_v38, %v3331_v1  ;;  %v3332_v2 = vsel %vm3192_vm6, %v11529_v26, %v11528_v16  ;;  %v3539_v4 = vrot.slane %v9477_v46, 2 }
 0x42e   : > { %11526 = vst [vmem:[#allocation103_spill] sm:$0xff] %v9510_v50  ;;  %v3689_v35 = vpack.c.bf16 %v9526_v52, %v9477_v46  ;;  %v9535_v22 = vpack.c.b16 %v4156_v49, %v4149_v42  ;;  %v9537_v0 = vpack.c.b16 %v4157_v21, %v4150_v54  ;;  %v3541_v58 = vrot.slane %v3347_v41, 2 }
 0x42f   : > { %v4139_v57 = vunpack.c.l.b16 %v3685_v17  ;;  %v4140_v29 = vunpack.c.h.b16 %v3685_v17  ;;  %v9540_v47 = vsel %vm546_vm1, %v3538_v20, %v3539_v4  ;;  %v3348_v1 = vsel %vm3192_vm6, %v11527_v37, %v11533_v56  ;;  %v11537_v37 = vld [vmem:[#allocation8_spill] sm:$0xff] }
 0x430   : > { %11530 = vst [vmem:[#allocation69_spill] sm:$0xff] %v9535_v22  ;;  %v4146_v14 = vunpack.c.l.b16 %v3689_v35  ;;  %v4147_v62 = vunpack.c.h.b16 %v3689_v35  ;;  %v3699_v5 = vpack.c.bf16 %v3332_v2, %v9540_v47  ;;  %v3438_v16 = vrot.slane %v3332_v2, 1 }
 0x431   : > { %11531 = vst [vmem:[#allocation71_spill] sm:$0xff] %v9537_v0  ;;  %v3439_v46 = vrot.slane %v3228_v9, 1  ;;  %v9551_v49 = vsel %vm546_vm1, %v3539_v4, %v3541_v58  ;;  %v3441_v21 = vrot.slane %v3348_v1, 1  ;;  %v11539_v58 = vld [vmem:[#allocation67_spill] sm:$0xff]  ;;  %v3543_v18 = vrot.slane %v3332_v2, 2 }
 0x432   : > { %11532 = vst [vmem:[#allocation66_spill] sm:$0xff] %v9540_v47  ;;  %v9546_v42 = vpack.c.b16 %v4146_v14, %v4139_v57  ;;  %v9548_v54 = vpack.c.b16 %v4147_v62, %v4140_v29  ;;  %v3703_v20 = vpack.c.bf16 %v3228_v9, %v9551_v49  ;;  %v4163_v17 = vunpack.c.l.b16 %v3699_v5  ;;  %v11538_v57 = vld [vmem:[#allocation7_spill] sm:$0xff] }
 0x433   : > { %11536 = vst [vmem:[#allocation105_spill] sm:$0xff] %v9551_v49  ;;  %v4164_v41 = vunpack.c.h.b16 %v3699_v5  ;;  %v9555_v35 = vsel %vm433_vm0, %v3438_v16, %v3439_v46  ;;  %v9558_v26 = vsel %vm433_vm0, %v3439_v46, %v3441_v21  ;;  %v3231_v62 = vsel %vm3192_vm6, %v11538_v57, %v11537_v37 }
 0x434   : > { %11534 = vst [vmem:[#allocation78_spill] sm:$0xff] %v9546_v42  ;;  %v3693_v56 = vpack.c.bf16 %v9555_v35, %v3332_v2  ;;  %v3333_v4 = vsel %vm3192_vm6, %v11539_v58, %v11538_v57  ;;  %v4170_v29 = vunpack.c.l.b16 %v3703_v20  ;;  %v4171_v14 = vunpack.c.h.b16 %v3703_v20  ;;  %v11544_v20 = vld [vmem:[#allocation79_spill] sm:$0xff] }
 0x435   : > { %11535 = vst [vmem:[#allocation104_spill] sm:$0xff] %v9548_v54  ;;  %v3697_v5 = vpack.c.bf16 %v9558_v26, %v3228_v9  ;;  %v3544_v55 = vrot.slane %v3228_v9, 2  ;;  %v3546_v46 = vrot.slane %v3348_v1, 2  ;;  %v3349_v2 = vsel %vm3192_vm6, %v11537_v37, %v11544_v20 }
 0x436   : > { %v4153_v16 = vunpack.c.l.b16 %v3693_v56  ;;  %v4154_v28 = vunpack.c.h.b16 %v3693_v56  ;;  %v9568_v21 = vpack.c.b16 %v4170_v29, %v4163_v17  ;;  %v9570_v24 = vpack.c.b16 %v4171_v14, %v4164_v41  ;;  %v11548_v14 = vld [vmem:[#allocation72_spill] sm:$0xff] }
 0x437   : > { %v4160_v54 = vunpack.c.l.b16 %v3697_v5  ;;  %v4161_v42 = vunpack.c.h.b16 %v3697_v5  ;;  %v9573_v0 = vsel %vm546_vm1, %v3543_v18, %v3544_v55  ;;  %v9576_v57 = vsel %vm546_vm1, %v3544_v55, %v3546_v46  ;;  %v11547_v18 = vld [vmem:[#allocation74_spill] sm:$0xff]  ;;  %v11549_v5 = vld [vmem:[#allocation65_spill] sm:$0xff] }
 0x438   : > { %11540 = vst [vmem:[#allocation8_spill] sm:$0xff] %v9568_v21  ;;  %v3443_v58 = vrot.slane %v3333_v4, 1  ;;  %v3707_v1 = vpack.c.bf16 %v3333_v4, %v9573_v0  ;;  %v3711_v17 = vpack.c.bf16 %v3231_v62, %v9576_v57  ;;  %v3444_v41 = vrot.slane %v3231_v62, 1 }
 0x439   : > { %11541 = vst [vmem:[#allocation7_spill] sm:$0xff] %v9570_v24  ;;  %v9581_v56 = vpack.c.b16 %v4160_v54, %v4153_v16  ;;  %v9583_v9 = vpack.c.b16 %v4161_v42, %v4154_v28  ;;  %v3446_v29 = vrot.slane %v3349_v2, 1  ;;  %v3234_v55 = vsel %vm3192_vm6, %v11548_v14, %v11547_v18 }
 0x43a   : > { %11542 = vst [vmem:[#allocation67_spill] sm:$0xff] %v9573_v0  ;;  %v3334_v46 = vsel %vm3192_vm6, %v11549_v5, %v11548_v14  ;;  %v4177_v28 = vunpack.c.l.b16 %v3707_v1  ;;  %v4184_v42 = vunpack.c.l.b16 %v3711_v17  ;;  %v4178_v54 = vunpack.c.h.b16 %v3707_v1 }
 0x43b   : > { %11543 = vst [vmem:[#allocation106_spill] sm:$0xff] %v9576_v57  ;;  %4914 = vmatmul.bf16.gmra.mxu1 %v9327_v12  ;;  %5003 = vmatmul.bf16.gmra.mxu2 %v9329_v11  ;;  %v4185_v37 = vunpack.c.h.b16 %v3711_v17  ;;  %v9598_v16 = vsel %vm433_vm0, %v3443_v58, %v3444_v41  ;;  %v9601_v20 = vsel %vm433_vm0, %v3444_v41, %v3446_v29  ;;  %v3549_v14 = vrot.slane %v3231_v62, 2  ;;  %v11553_v17 = vld [vmem:[#allocation77_spill] sm:$0xff] }
 0x43c   : > { %11545 = vst [vmem:[#allocation79_spill] sm:$0xff] %v9581_v56  ;;  %5092 = vmatmul.bf16.gmra.mxu3 %v9350_v39  ;;  %5181 = vmatmul.bf16.gmra.mxu0 %v9352_v23  ;;  %v9603_v5 = vpack.c.b16 %v4184_v42, %v4177_v28  ;;  %v3701_v11 = vpack.c.bf16 %v9598_v16, %v3333_v4  ;;  %v3551_v23 = vrot.slane %v3349_v2, 2  ;;  %v3448_v41 = vrot.slane %v3334_v46, 1 }
 0x43d   : > { %11546 = vst [vmem:[#allocation107_spill] sm:$0xff] %v9583_v9  ;;  %v3548_v9 = vrot.slane %v3333_v4, 2  ;;  %v9605_v12 = vpack.c.b16 %v4185_v37, %v4178_v54  ;;  %v3705_v1 = vpack.c.bf16 %v9601_v20, %v3231_v62  ;;  %v3350_v58 = vsel %vm3192_vm6, %v11547_v18, %v11553_v17  ;;  %v11558_v18 = vld [vmem:[#allocation75_spill] sm:$0xff] }
 0x43e   : > { %11550 = vst [vmem:[#allocation74_spill] sm:$0xff] %v9603_v5  ;;  %v4167_v29 = vunpack.c.l.b16 %v3701_v11  ;;  %v4168_v24 = vunpack.c.h.b16 %v3701_v11  ;;  %v9616_v42 = vsel %vm546_vm1, %v3549_v14, %v3551_v23  ;;  %v3449_v54 = vrot.slane %v3234_v55, 1 }
 0x43f   : > { %11551 = vst [vmem:[#allocation72_spill] sm:$0xff] %v9605_v12  ;;  %v9610_v39 = vsel %vm546_vm1, %v3548_v9, %v3549_v14  ;;  %v4174_v56 = vunpack.c.l.b16 %v3705_v1  ;;  %v4175_v28 = vunpack.c.h.b16 %v3705_v1  ;;  %v3451_v62 = vrot.slane %v3350_v58, 1  ;;  %v11557_v12 = vld [vmem:[#allocation73_spill] sm:$0xff] }
 0x440   : > { %11552 = vst [vmem:[#allocation65_spill] sm:$0xff] %v9610_v39  ;;  %v3715_v4 = vpack.c.bf16 %v3334_v46, %v9610_v39  ;;  %v3719_v2 = vpack.c.bf16 %v3234_v55, %v9616_v42  ;;  %v3237_v17 = vsel %vm3192_vm6, %v11558_v18, %v11557_v12  ;;  %v9628_v1 = vsel %vm433_vm0, %v3448_v41, %v3449_v54 }
 0x441   : > { %11554 = vst [vmem:[#allocation77_spill] sm:$0xff] %v9616_v42  ;;  %v9619_v37 = vpack.c.b16 %v4174_v56, %v4167_v29  ;;  %v9621_v9 = vpack.c.b16 %v4175_v28, %v4168_v24  ;;  %v9631_v14 = vsel %vm433_vm0, %v3449_v54, %v3451_v62  ;;  %v3709_v56 = vpack.c.bf16 %v9628_v1, %v3334_v46  ;;  %v11559_v29 = vld [vmem:[#allocation61_spill] sm:$0xff] }
 0x442   : > { %v4191_v5 = vunpack.c.l.b16 %v3715_v4  ;;  %v4192_v11 = vunpack.c.h.b16 %v3715_v4  ;;  %v4198_v23 = vunpack.c.l.b16 %v3719_v2  ;;  %v4199_v21 = vunpack.c.h.b16 %v3719_v2 }
 0x443   : > { %11555 = vst [vmem:[#allocation108_spill] sm:$0xff] %v9619_v37  ;;  %v3713_v24 = vpack.c.bf16 %v9631_v14, %v3234_v55  ;;  %v3335_v28 = vsel %vm3192_vm6, %v11559_v29, %v11558_v18  ;;  %v3554_v37 = vrot.slane %v3234_v55, 2  ;;  %v3556_v22 = vrot.slane %v3350_v58, 2  ;;  %v11563_v29 = vld [vmem:[#allocation54_spill] sm:$0xff] }
 0x444   : > { %11556 = vst [vmem:[#allocation109_spill] sm:$0xff] %v9621_v9  ;;  %v3553_v9 = vrot.slane %v3334_v46, 2  ;;  %v9638_v4 = vpack.c.b16 %v4198_v23, %v4191_v5  ;;  %v9640_v41 = vpack.c.b16 %v4199_v21, %v4192_v11  ;;  %v4181_v50 = vunpack.c.l.b16 %v3709_v56  ;;  %v11561_v5 = vld [vmem:[#allocation19_spill] sm:$0xff] }
 0x445   : > { %v4188_v54 = vunpack.c.l.b16 %v3713_v24  ;;  %v4182_v62 = vunpack.c.h.b16 %v3709_v56  ;;  %v4189_v63 = vunpack.c.h.b16 %v3713_v24  ;;  %v9646_v48 = vsel %vm546_vm1, %v3554_v37, %v3556_v22 }
 0x446   : > { %v9643_v2 = vsel %vm546_vm1, %v3553_v9, %v3554_v37  ;;  %v3727_v55 = vpack.c.bf16 %v3237_v17, %v9646_v48  ;;  %v3351_v21 = vsel %vm3192_vm6, %v11557_v12, %v11561_v5  ;;  %v3453_v18 = vrot.slane %v3335_v28, 1 }
 0x447   : > { %v9648_v44 = vpack.c.b16 %v4188_v54, %v4181_v50  ;;  %v3723_v46 = vpack.c.bf16 %v3335_v28, %v9643_v2  ;;  %v9655_v58 = vpack.c.b16 %v4189_v63, %v4182_v62  ;;  %v3454_v11 = vrot.slane %v3237_v17, 1  ;;  %v11564_v54 = vld [vmem:[#allocation13_spill] sm:$0xff] }
 0x448   : > { %v3456_v23 = vrot.slane %v3351_v21, 1  ;;  %v4212_v56 = vunpack.c.l.b16 %v3727_v55  ;;  %v4213_v22 = vunpack.c.h.b16 %v3727_v55  ;;  %v6809_v55 = vld [vmem:[%s11064_s5 + $0x118] sm:$0xff] }
 0x449   : > { %11560 = vst [vmem:[#allocation73_spill] sm:$0xff] %v9648_v44  ;;  %v4205_v9 = vunpack.c.l.b16 %v3723_v46  ;;  %v4206_v24 = vunpack.c.h.b16 %v3723_v46  ;;  %v9658_v50 = vsel %vm433_vm0, %v3453_v18, %v3454_v11  ;;  %v9666_v44 = vsel %vm3192_vm6, %v11564_v54, %v11563_v29  ;;  %5241 = vmatpush.bf16.msrb.mxu1 %v6809_v55 }
 0x44a   : > { %11562 = vst [vmem:[#allocation75_spill] sm:$0xff] %v9655_v58  ;;  %v9661_v37 = vsel %vm433_vm0, %v3454_v11, %v3456_v23  ;;  %v3717_v62 = vpack.c.bf16 %v9658_v50, %v3335_v28  ;;  %v3558_v46 = vrot.slane %v3335_v28, 2  ;;  %v3559_v18 = vrot.slane %v3237_v17, 2 }
 0x44b   : > { %4919 = vmatmul.bf16.gmra.mxu1 %v9374_v30  ;;  %5008 = vmatmul.bf16.gmra.mxu2 %v9376_v33  ;;  %v9670_v12 = vpack.c.b16 %v4212_v56, %v4205_v9  ;;  %v9672_v63 = vpack.c.b16 %v4213_v22, %v4206_v24  ;;  %v3721_v5 = vpack.c.bf16 %v9661_v37, %v3237_v17  ;;  %v3561_v11 = vrot.slane %v3351_v21, 2 }
 0x44c   : > { %5097 = vmatmul.bf16.gmra.mxu3 %v9384_v59  ;;  %5186 = vmatmul.bf16.gmra.mxu0 %v9388_v3  ;;  %v11566_v23 = vunpack.c.l.b16 %v9223_v60  ;;  %v11567_v9 = vunpack.c.l.b16 %v9225_v15  ;;  %v4195_v24 = vunpack.c.l.b16 %v3717_v62  ;;  %v4196_v28 = vunpack.c.h.b16 %v3717_v62  ;;  %v11568_v59 = vld [vmem:[#allocation62_spill] sm:$0xff] }
 0x44d   : > { %11565 = vst [vmem:[#allocation61_spill] sm:$0xff] %v9672_v63  ;;  %v9690_v3 = vsel %vm3192_vm6, %v11568_v59, %v11564_v54  ;;  %v11569_v22 = vunpack.c.h.b16 %v9223_v60  ;;  %v11570_v33 = vunpack.c.h.b16 %v9225_v15  ;;  %v4202_v17 = vunpack.c.l.b16 %v3721_v5 }
 0x44e   : > { %v9685_v56 = vpack.c.b16 %v11567_v9, %v11566_v23  ;;  %v4203_v21 = vunpack.c.h.b16 %v3721_v5  ;;  %v9699_v63 = vsel %vm546_vm1, %v3558_v46, %v3559_v18  ;;  %v9702_v23 = vsel %vm546_vm1, %v3559_v18, %v3561_v11 }
 0x44f   : > { %v9696_v30 = vpack.c.b16 %v11570_v33, %v11569_v22  ;;  %v3731_v62 = vpack.c.bf16 %v9690_v3, %v9699_v63  ;;  %v3733_v54 = vpack.c.bf16 %v9666_v44, %v9702_v23  ;;  %v9708_v60 = vpack.c.b16 %v4202_v17, %v4195_v24  ;;  %v11571_v22 = vld [vmem:[#allocation53_spill] sm:$0xff] }
 0x450   : > { %v9710_v15 = vpack.c.b16 %v4203_v21, %v4196_v28  ;;  %v3676_v18 = vpack.c.bf16 %v9461_v51, %v9443_v13  ;;  %v3680_v11 = vpack.c.bf16 %v9472_v32, %v9446_v45  ;;  %v3684_v24 = vpack.c.bf16 %v9492_v6, %v9484_v34 }
 0x451   : > { %v4219_v33 = vunpack.c.l.b16 %v3731_v62  ;;  %v4223_v55 = vunpack.c.l.b16 %v3733_v54  ;;  %v4220_v9 = vunpack.c.h.b16 %v3731_v62  ;;  %v4224_v5 = vunpack.c.h.b16 %v3733_v54 }
 0x452   : > { %v3688_v28 = vpack.c.bf16 %v9502_v10, %v9487_v27  ;;  %v11572_v17 = vmax.f32 %v11571_v22, 0.0  ;;  %v4123_v62 = vunpack.c.l.b16 %v3676_v18  ;;  %v4130_v54 = vunpack.c.l.b16 %v3680_v11 }
 0x453   : > { %v9712_v59 = vpack.c.b16 %v4223_v55, %v4219_v33  ;;  %v9714_v46 = vpack.c.b16 %v4224_v5, %v4220_v9  ;;  %v4131_v33 = vunpack.c.h.b16 %v3680_v11  ;;  %v4137_v55 = vunpack.c.l.b16 %v3684_v24 }
 0x454   : > { %v3304_v21 = vrot.slane %v11572_v17, 5  ;;  %v4144_v13 = vunpack.c.l.b16 %v3688_v28  ;;  %v9731_v9 = vpack.c.b16 %v4130_v54, %v4123_v62  ;;  %v4138_v45 = vunpack.c.h.b16 %v3684_v24 }
 0x455   : > { %v4145_v5 = vunpack.c.h.b16 %v3688_v28  ;;  %v3692_v34 = vpack.c.bf16 %v9540_v47, %v9520_v38  ;;  %v3696_v22 = vpack.c.bf16 %v9551_v49, %v9526_v52  ;;  %v3704_v24 = vpack.c.bf16 %v9576_v57, %v9558_v26 }
 0x456   : > { %v9737_v27 = vpack.c.b16 %v4144_v13, %v4137_v55  ;;  %v3708_v13 = vpack.c.bf16 %v9610_v39, %v9598_v16  ;;  %v3712_v52 = vpack.c.bf16 %v9616_v42, %v9601_v20  ;;  %v3720_v26 = vpack.c.bf16 %v9646_v48, %v9631_v14 }
 0x457   : > { %v9743_v11 = vpack.c.b16 %v4145_v5, %v4138_v45  ;;  %v4151_v17 = vunpack.c.l.b16 %v3692_v34  ;;  %v4152_v62 = vunpack.c.h.b16 %v3692_v34  ;;  %v4158_v28 = vunpack.c.l.b16 %v3696_v22 }
 0x458   : > { %v4159_v54 = vunpack.c.h.b16 %v3696_v22  ;;  %v4173_v55 = vunpack.c.h.b16 %v3704_v24  ;;  %v3716_v5 = vpack.c.bf16 %v9643_v2, %v9628_v1  ;;  %v4186_v16 = vunpack.c.l.b16 %v3712_v52 }
 0x459   : > { %v4180_v20 = vunpack.c.h.b16 %v3708_v13  ;;  %v4201_v1 = vunpack.c.h.b16 %v3720_v26  ;;  %v3724_v14 = vpack.c.bf16 %v9699_v63, %v9658_v50  ;;  %v6808_v50 = vld [vmem:[%s11064_s5 + $0x110] sm:$0xff] }
 0x45a   : > { %v9753_v45 = vpack.c.b16 %v4159_v54, %v4152_v62  ;;  %v4200_v62 = vunpack.c.l.b16 %v3720_v26  ;;  %v4194_v42 = vunpack.c.h.b16 %v3716_v5  ;;  %v3352_v26 = vsel %vm3192_vm6, %v11563_v29, %v3304_v21  ;;  %5242 = vmatpush.bf16.msrb.mxu1 %v6808_v50 }
 0x45b   : > { %4924 = vmatmul.bf16.gmra.mxu1 %v9399_v19  ;;  %5013 = vmatmul.bf16.gmra.mxu2 %v9401_v8 }
 0x45c   : > { %5102 = vmatmul.bf16.gmra.mxu3 %v9418_v61  ;;  %5191 = vmatmul.bf16.gmra.mxu0 %v9420_v31  ;;  %v3595_v61 = vrot.slane %v9690_v3, 1  ;;  %v4124_v31 = vunpack.c.h.b16 %v3676_v18  ;;  %v3700_v18 = vpack.c.bf16 %v9573_v0, %v9555_v35  ;;  %v9751_v35 = vpack.c.b16 %v4158_v28, %v4151_v17 }
 0x45d   : > { %v4187_v17 = vunpack.c.h.b16 %v3712_v52  ;;  %v4193_v28 = vunpack.c.l.b16 %v3716_v5  ;;  %v4207_v52 = vunpack.c.l.b16 %v3724_v14  ;;  %v4208_v5 = vunpack.c.h.b16 %v3724_v14 }
 0x45e   : > { %v9735_v6 = vpack.c.b16 %v4131_v33, %v4124_v31  ;;  %v4165_v38 = vunpack.c.l.b16 %v3700_v18  ;;  %v4166_v31 = vunpack.c.h.b16 %v3700_v18  ;;  %v4172_v33 = vunpack.c.l.b16 %v3704_v24 }
 0x45f   : > { %v4179_v24 = vunpack.c.l.b16 %v3708_v13  ;;  %v9783_v13 = vpack.c.b16 %v4201_v1, %v4194_v42  ;;  %v3605_v42 = vrot.slane %v3352_v26, 2 }
 0x460   : > { %v9759_v22 = vpack.c.b16 %v4172_v33, %v4165_v38  ;;  %v9761_v18 = vpack.c.b16 %v4173_v55, %v4166_v31  ;;  %v9771_v38 = vpack.c.b16 %v4187_v17, %v4180_v20  ;;  %v9773_v31 = vpack.c.b16 %v4200_v62, %v4193_v28 }
 0x461   : > { %v9765_v54 = vpack.c.b16 %v4186_v16, %v4179_v24  ;;  %v3728_v33 = vpack.c.bf16 %v9702_v23, %v9661_v37  ;;  %v3596_v55 = vrot.slane %v9666_v44, 1  ;;  %11575 = vst [vmem:[#allocation13_spill] sm:$0xff] %v9783_v13  ;;  %v3598_v20 = vrot.slane %v3352_v26, 1 }
 0x462   : > { %11573 = vst [vmem:[#allocation19_spill] sm:$0xff] %v9771_v38  ;;  %v3603_v28 = vrot.slane %v9666_v44, 2 }
 0x463   : > { %11574 = vst [vmem:[#allocation54_spill] sm:$0xff] %v9773_v31  ;;  %v4214_v24 = vunpack.c.l.b16 %v3728_v33  ;;  %v4215_v16 = vunpack.c.h.b16 %v3728_v33  ;;  %v3597_v37 = vsel %vm433_vm0, %v3595_v61, %v3596_v55  ;;  %v3599_v29 = vsel %vm433_vm0, %v3596_v55, %v3598_v20 }
 0x464   : > { %v3729_v61 = vpack.c.bf16 %v3599_v29, %v9666_v44 }
 0x465   : > { %v9791_v14 = vpack.c.b16 %v4214_v24, %v4207_v52  ;;  %v9793_v57 = vpack.c.b16 %v4215_v16, %v4208_v5 }
 0x466   : > { %v4216_v52 = vunpack.c.l.b16 %v3729_v61  ;;  %v4217_v24 = vunpack.c.h.b16 %v3729_v61  ;;  %v11583_v61 = vld [vmem:[#allocation64_spill] sm:$0xff] }
 0x467   : > { %11576 = vst [vmem:[#allocation62_spill] sm:$0xff] %v9791_v14  ;;  %v6828_v14 = vld [vmem:[%s11064_s5 + $0x1b0] sm:$0xff] }
 0x468   : > { %v4890_v34 = vpop.f32.mrf.mxu1  ;;  %11577 = vst [vmem:[#allocation53_spill] sm:$0xff] %v9793_v57  ;;  %v6820_v57 = vld [vmem:[%s11064_s5 + $0x170] sm:$0xff] }
 0x469   : > { %v9763_v39 = vpop.f32.mrf.mxu0 }
 0x46b   : > { %4929 = vmatmul.bf16.gmra.mxu1 %v9438_v43  ;;  %5018 = vmatmul.bf16.gmra.mxu2 %v9440_v53 }
 0x46c   : > { %5107 = vmatmul.bf16.gmra.mxu3 %v9456_v7  ;;  %5196 = vmatmul.bf16.gmra.mxu0 %v9458_v25  ;;  %v3725_v7 = vpack.c.bf16 %v3597_v37, %v9690_v3  ;;  %v3602_v25 = vrot.slane %v9690_v3, 2 }
 0x46e   : > { %v4979_v17 = vpop.f32.mrf.mxu2  ;;  %v4209_v33 = vunpack.c.l.b16 %v3725_v7  ;;  %v4210_v50 = vunpack.c.h.b16 %v3725_v7  ;;  %v3604_v0 = vsel %vm546_vm1, %v3602_v25, %v3603_v28 }
 0x46f   : > { %v4980_v62 = vadd.f32 %v4979_v17, %v4890_v34  ;;  %v5068_v1 = vpop.f32.mrf.mxu3  ;;  %v3606_v34 = vsel %vm546_vm1, %v3603_v28, %v3605_v42  ;;  %v3732_v26 = vpack.c.bf16 %v3604_v0, %v3597_v37 }
 0x470   : > { %v4892_v21 = vpop.f32.mrf.mxu1  ;;  %v3734_v5 = vpack.c.bf16 %v3606_v34, %v3599_v29  ;;  %v9803_v55 = vpack.c.b16 %v4216_v52, %v4209_v33  ;;  %v9805_v20 = vpack.c.b16 %v4217_v24, %v4210_v50  ;;  %v11582_v29 = vld [vmem:[#allocation68_spill] sm:$0xff] }
 0x471   : > { %v9798_v49 = vadd.f32 %v5068_v1, %v4980_v62  ;;  %v9800_v3 = vpop.f32.mrf.mxu0  ;;  %v4221_v16 = vunpack.c.l.b16 %v3732_v26  ;;  %v4222_v17 = vunpack.c.h.b16 %v3732_v26 }
 0x472   : > { %11578 = vst [vmem:[#allocation110_spill] sm:$0xff] %v9803_v55  ;;  %v4225_v44 = vunpack.c.l.b16 %v3734_v5  ;;  %v4226_v7 = vunpack.c.h.b16 %v3734_v5  ;;  %v3718_v5 = vpack.c.bf16 %v9699_v63, %v9699_v63 }
 0x473   : > { %11579 = vst [vmem:[#allocation111_spill] sm:$0xff] %v9805_v20  ;;  %v11597_v20 = vld [vmem:[#allocation79_spill] sm:$0xff] }
 0x474   : > { %v9807_v25 = vpack.c.b16 %v4225_v44, %v4221_v16  ;;  %v9809_v62 = vpack.c.b16 %v4226_v7, %v4222_v17  ;;  %v3722_v16 = vpack.c.bf16 %v9702_v23, %v9702_v23  ;;  %v3726_v7 = vpack.c.bf16 %v3604_v0, %v3604_v0 }
 0x476   : > { %v4981_v47 = vpop.f32.mrf.mxu2  ;;  %11580 = vst [vmem:[#allocation112_spill] sm:$0xff] %v9807_v25 }
 0x477   : > { %11581 = vst [vmem:[#allocation113_spill] sm:$0xff] %v9809_v62  ;;  %v4982_v1 = vadd.f32 %v4981_v47, %v4892_v21  ;;  %v5070_v10 = vpop.f32.mrf.mxu3  ;;  %v3714_v21 = vpack.c.bf16 %v9646_v48, %v9646_v48 }
 0x478   : > { %v4895_v28 = vpop.f32.mrf.mxu1 }
 0x479   : > { %v9811_v37 = vadd.f32 %v5070_v10, %v4982_v1  ;;  %v9813_v42 = vpop.f32.mrf.mxu0  ;;  %v3710_v10 = vpack.c.bf16 %v9643_v2, %v9643_v2  ;;  %v9833_v44 = vunpack.c.l.b16 %v3714_v21 }
 0x47b   : > { %4934 = vmatmul.bf16.gmra.mxu1 %v9466_v36  ;;  %5023 = vmatmul.bf16.gmra.mxu2 %v9468_v40  ;;  %v9831_v17 = vunpack.c.l.b16 %v3710_v10  ;;  %11585 = vst [vmem:[#allocation64_spill] sm:$0xff] %v9833_v44 }
 0x47c   : > { %5112 = vmatmul.bf16.gmra.mxu3 %v11582_v29  ;;  %5201 = vmatmul.bf16.gmra.mxu0 %v11583_v61  ;;  %v4204_v29 = vunpack.c.l.b16 %v3722_v16  ;;  %v3730_v61 = vpack.c.bf16 %v3606_v34, %v3606_v34  ;;  %v11589_v34 = vld [vmem:[#allocation102_spill] sm:$0xff]  ;;  %v11592_v16 = vld [vmem:[#allocation71_spill] sm:$0xff] }
 0x47d   : > { %11584 = vst [vmem:[#allocation68_spill] sm:$0xff] %v9831_v17  ;;  %v11594_v17 = vld [vmem:[#allocation104_spill] sm:$0xff] }
 0x47e   : > { %v4984_v33 = vpop.f32.mrf.mxu2  ;;  %v9841_v23 = vunpack.c.l.b16 %v3730_v61 }
 0x47f   : > { %v4985_v50 = vadd.f32 %v4984_v33, %v4895_v28  ;;  %v5073_v26 = vpop.f32.mrf.mxu3  ;;  %v4197_v28 = vunpack.c.l.b16 %v3718_v5  ;;  %v11591_v5 = vld [vmem:[#allocation69_spill] sm:$0xff] }
 0x480   : > { %v4897_v52 = vpop.f32.mrf.mxu1  ;;  %11588 = vst [vmem:[#allocation116_spill] sm:$0xff] %v9841_v23 }
 0x481   : > { %v9819_v24 = vadd.f32 %v5073_v26, %v4985_v50  ;;  %v9821_v47 = vpop.f32.mrf.mxu0  ;;  %v9837_v50 = vunpack.c.l.b16 %v3726_v7  ;;  %v9839_v26 = vpack.c.b16 %v4204_v29, %v4197_v28  ;;  %v6807_v7 = vld [vmem:[%s11064_s5 + $0x108] sm:$0xff] }
 0x482   : > { %5243 = vmatpush.bf16.msrb.mxu1 %v6807_v7  ;;  %v11595_v7 = vld [vmem:[#allocation8_spill] sm:$0xff] }
 0x483   : > { %11586 = vst [vmem:[#allocation114_spill] sm:$0xff] %v9837_v50 }
 0x484   : > { %11587 = vst [vmem:[#allocation115_spill] sm:$0xff] %v9839_v26  ;;  %v11593_v26 = vld [vmem:[#allocation78_spill] sm:$0xff] }
 0x486   : > { %v4986_v1 = vpop.f32.mrf.mxu2 }
 0x487   : > { %v4987_v33 = vadd.f32 %v4986_v1, %v4897_v52  ;;  %v5075_v2 = vpop.f32.mrf.mxu3  ;;  %v11590_v52 = vld [vmem:[#allocation103_spill] sm:$0xff] }
 0x488   : > { %v4900_v63 = vpop.f32.mrf.mxu1 }
 0x489   : > { %v9843_v10 = vadd.f32 %v5075_v2, %v4987_v33  ;;  %v9845_v21 = vpop.f32.mrf.mxu0 }
 0x48b   : > { %4939 = vmatmul.bf16.gmra.mxu1 %v11589_v34  ;;  %5028 = vmatmul.bf16.gmra.mxu2 %v11590_v52 }
 0x48c   : > { %5117 = vmatmul.bf16.gmra.mxu3 %v11591_v5  ;;  %5206 = vmatmul.bf16.gmra.mxu0 %v11592_v16 }
 0x48e   : > { %v4989_v1 = vpop.f32.mrf.mxu2 }
 0x48f   : > { %v4990_v28 = vadd.f32 %v4989_v1, %v4900_v63  ;;  %v5078_v29 = vpop.f32.mrf.mxu3  ;;  %v11596_v63 = vld [vmem:[#allocation7_spill] sm:$0xff] }
 0x490   : > { %v4902_v61 = vpop.f32.mrf.mxu1 }
 0x491   : > { %v9856_v33 = vadd.f32 %v5078_v29, %v4990_v28  ;;  %v9858_v2 = vpop.f32.mrf.mxu0 }
 0x496   : > { %v4991_v0 = vpop.f32.mrf.mxu2 }
 0x497   : > { %v4992_v48 = vadd.f32 %v4991_v0, %v4902_v61  ;;  %v5080_v50 = vpop.f32.mrf.mxu3 }
 0x498   : > { %v4905_v23 = vpop.f32.mrf.mxu1 }
 0x499   : > { %v9860_v5 = vadd.f32 %v5080_v50, %v4992_v48  ;;  %v9862_v16 = vpop.f32.mrf.mxu0 }
 0x49b   : > { %4944 = vmatmul.bf16.gmra.mxu1 %v11593_v26  ;;  %5033 = vmatmul.bf16.gmra.mxu2 %v11594_v17 }
 0x49c   : > { %5122 = vmatmul.bf16.gmra.mxu3 %v11595_v7  ;;  %5211 = vmatmul.bf16.gmra.mxu0 %v11596_v63  ;;  %v11598_v7 = vld [vmem:[#allocation107_spill] sm:$0xff]  ;;  %v11599_v63 = vld [vmem:[#allocation74_spill] sm:$0xff] }
 0x49e   : > { %v4994_v1 = vpop.f32.mrf.mxu2 }
 0x49f   : > { %v4995_v28 = vadd.f32 %v4994_v1, %v4905_v23  ;;  %v5083_v29 = vpop.f32.mrf.mxu3  ;;  %v11600_v23 = vld [vmem:[#allocation72_spill] sm:$0xff]  ;;  %v6806_v1 = vld [vmem:[%s11064_s5 + $0x100] sm:$0xff] }
 0x4a0   : > { %v4907_v44 = vpop.f32.mrf.mxu1  ;;  %5244 = vmatpush.bf16.msrb.mxu1 %v6806_v1  ;;  %v6819_v1 = vld [vmem:[%s11064_s5 + $0x168] sm:$0xff] }
 0x4a1   : > { %v9868_v32 = vadd.f32 %v5083_v29, %v4995_v28  ;;  %v9870_v0 = vpop.f32.mrf.mxu0  ;;  %v6829_v28 = vld [vmem:[%s11064_s5 + $0x1b8] sm:$0xff] }
 0x4a2   : > { %v6837_v29 = vld [vmem:[%s11064_s5 + $0x1f8] sm:$0xff]  ;;  %5415 = vmatpush.bf16.msra.mxu3 %v6829_v28  ;;  %v6835_v28 = vld [vmem:[%s11064_s5 + $0x1e8] sm:$0xff] }
 0x4a3   : > { %5504 = vmatpush.bf16.msra.mxu0 %v6837_v29 }
 0x4a6   : > { %v4996_v48 = vpop.f32.mrf.mxu2  ;;  %5416 = vmatpush.bf16.msra.mxu3 %v6828_v14 }
 0x4a7   : > { %v4997_v50 = vadd.f32 %v4996_v48, %v4907_v44  ;;  %v5085_v61 = vpop.f32.mrf.mxu3  ;;  %v6821_v44 = vld [vmem:[%s11064_s5 + $0x178] sm:$0xff] }
 0x4a8   : > { %v4910_v51 = vpop.f32.mrf.mxu1  ;;  %5326 = vmatpush.bf16.msra.mxu2 %v6821_v44  ;;  %v6827_v44 = vld [vmem:[%s11064_s5 + $0x1a8] sm:$0xff] }
 0x4a9   : > { %v9872_v62 = vadd.f32 %v5085_v61, %v4997_v50  ;;  %v9874_v25 = vpop.f32.mrf.mxu0 }
 0x4aa   : > { %5417 = vmatpush.bf16.msra.mxu3 %v6827_v44  ;;  %v11605_v44 = vld [vmem:[#allocation109_spill] sm:$0xff] }
 0x4ab   : > { %4949 = vmatmul.bf16.gmra.mxu1 %v11597_v20  ;;  %5038 = vmatmul.bf16.gmra.mxu2 %v11598_v7 }
 0x4ac   : > { %5127 = vmatmul.bf16.gmra.mxu3 %v11599_v63  ;;  %5216 = vmatmul.bf16.gmra.mxu0 %v11600_v23 }
 0x4ad   : > { %5327 = vmatpush.bf16.msra.mxu2 %v6820_v57 }
 0x4ae   : > { %v4999_v48 = vpop.f32.mrf.mxu2 }
 0x4af   : > { %v5000_v50 = vadd.f32 %v4999_v48, %v4910_v51  ;;  %v5088_v61 = vpop.f32.mrf.mxu3  ;;  %v6836_v51 = vld [vmem:[%s11064_s5 + $0x1f0] sm:$0xff] }
 0x4b0   : > { %v4912_v63 = vpop.f32.mrf.mxu1  ;;  %5505 = vmatpush.bf16.msra.mxu0 %v6836_v51  ;;  %v6826_v51 = vld [vmem:[%s11064_s5 + $0x1a0] sm:$0xff] }
 0x4b1   : > { %v9892_v23 = vadd.f32 %v5088_v61, %v5000_v50  ;;  %v9894_v55 = vpop.f32.mrf.mxu0  ;;  %5328 = vmatpush.bf16.msra.mxu2 %v6819_v1  ;;  %v6818_v61 = vld [vmem:[%s11064_s5 + $0x160] sm:$0xff]  ;;  %v11604_v1 = vld [vmem:[#allocation108_spill] sm:$0xff]  ;;  %5418 = vmatpush.bf16.msra.mxu3 %v6826_v51  ;;  %v6824_v51 = vld [vmem:[%s11064_s5 + $0x190] sm:$0xff] }
 0x4b2   : > { %11601 = vst [vmem:[#allocation102_spill] sm:$0xff] %v9894_v55 }
 0x4b4   : > { %5506 = vmatpush.bf16.msra.mxu0 %v6835_v28  ;;  %v6817_v28 = vld [vmem:[%s11064_s5 + $0x158] sm:$0xff] }
 0x4b5   : > { %5329 = vmatpush.bf16.msra.mxu2 %v6818_v61  ;;  %v6816_v61 = vld [vmem:[%s11064_s5 + $0x150] sm:$0xff] }
 0x4b6   : > { %v5001_v29 = vpop.f32.mrf.mxu2 }
 0x4b7   : > { %v5002_v48 = vadd.f32 %v5001_v29, %v4912_v63  ;;  %v5090_v50 = vpop.f32.mrf.mxu3  ;;  %v6834_v63 = vld [vmem:[%s11064_s5 + $0x1e0] sm:$0xff]  ;;  %v6825_v29 = vld [vmem:[%s11064_s5 + $0x198] sm:$0xff] }
 0x4b8   : > { %v4915_v57 = vpop.f32.mrf.mxu1  ;;  %5507 = vmatpush.bf16.msra.mxu0 %v6834_v63  ;;  %5419 = vmatpush.bf16.msra.mxu3 %v6825_v29  ;;  %v6832_v63 = vld [vmem:[%s11064_s5 + $0x1d0] sm:$0xff] }
 0x4b9   : > { %v9914_v14 = vadd.f32 %v5090_v50, %v5002_v48  ;;  %v9922_v13 = vpop.f32.mrf.mxu0  ;;  %v6833_v50 = vld [vmem:[%s11064_s5 + $0x1d8] sm:$0xff]  ;;  %5330 = vmatpush.bf16.msra.mxu2 %v6817_v28  ;;  %v6823_v28 = vld [vmem:[%s11064_s5 + $0x188] sm:$0xff] }
 0x4ba   : > { %11603 = vst [vmem:[#allocation69_spill] sm:$0xff] %v9922_v13 }
 0x4bb   : > { %11602 = vst [vmem:[#allocation103_spill] sm:$0xff] %v9914_v14  ;;  %4954 = vmatmul.bf16.gmra.mxu1 %v11604_v1  ;;  %5043 = vmatmul.bf16.gmra.mxu2 %v11605_v44 }
 0x4bc   : > { %5132 = vmatmul.bf16.gmra.mxu3 %v9638_v4  ;;  %5221 = vmatmul.bf16.gmra.mxu0 %v9640_v41 }
 0x4bd   : > { %5508 = vmatpush.bf16.msra.mxu0 %v6833_v50  ;;  %5331 = vmatpush.bf16.msra.mxu2 %v6816_v61  ;;  %v6814_v61 = vld [vmem:[%s11064_s5 + $0x140] sm:$0xff] }
 0x4be   : > { %v5004_v48 = vpop.f32.mrf.mxu2  ;;  %5420 = vmatpush.bf16.msra.mxu3 %v6824_v51  ;;  %v6822_v51 = vld [vmem:[%s11064_s5 + $0x180] sm:$0xff] }
 0x4bf   : > { %v5005_v31 = vadd.f32 %v5004_v48, %v4915_v57  ;;  %v5093_v4 = vpop.f32.mrf.mxu3  ;;  %v6831_v48 = vld [vmem:[%s11064_s5 + $0x1c8] sm:$0xff] }
 0x4c0   : > { %v4917_v13 = vpop.f32.mrf.mxu1 }
 0x4c1   : > { %v9940_v41 = vadd.f32 %v5093_v4, %v5005_v31  ;;  %v9951_v57 = vpop.f32.mrf.mxu0  ;;  %v6815_v31 = vld [vmem:[%s11064_s5 + $0x148] sm:$0xff]  ;;  %5509 = vmatpush.bf16.msra.mxu0 %v6832_v63  ;;  %v6830_v63 = vld [vmem:[%s11064_s5 + $0x1c0] sm:$0xff] }
 0x4c2   : > { %11607 = vst [vmem:[#allocation78_spill] sm:$0xff] %v9951_v57  ;;  %5332 = vmatpush.bf16.msra.mxu2 %v6815_v31  ;;  %5421 = vmatpush.bf16.msra.mxu3 %v6823_v28  ;;  %v11610_v31 = vld [vmem:[#allocation61_spill] sm:$0xff]  ;;  %v6845_v28 = vld [vmem:[%s11064_s5 + $0x238] sm:$0xff] }
 0x4c3   : > { %11606 = vst [vmem:[#allocation71_spill] sm:$0xff] %v9940_v41  ;;  %5593 = vmatpush.bf16.msra.mxu1 %v6845_v28 }
 0x4c5   : > { %5510 = vmatpush.bf16.msra.mxu0 %v6831_v48 }
 0x4c6   : > { %v5006_v29 = vpop.f32.mrf.mxu2  ;;  %5333 = vmatpush.bf16.msra.mxu2 %v6814_v61  ;;  %5422 = vmatpush.bf16.msra.mxu3 %v6822_v51 }
 0x4c7   : > { %v5007_v50 = vadd.f32 %v5006_v29, %v4917_v13  ;;  %v5095_v4 = vpop.f32.mrf.mxu3  ;;  %v11609_v13 = vld [vmem:[#allocation73_spill] sm:$0xff] }
 0x4c8   : > { %v4920_v41 = vpop.f32.mrf.mxu1 }
 0x4c9   : > { %v9962_v57 = vadd.f32 %v5095_v4, %v5007_v50  ;;  %v9980_v29 = vpop.f32.mrf.mxu0  ;;  %5511 = vmatpush.bf16.msra.mxu0 %v6830_v63 }
 0x4ca   : > { %11611 = vst [vmem:[#allocation8_spill] sm:$0xff] %v9980_v29 }
 0x4cb   : > { %11608 = vst [vmem:[#allocation104_spill] sm:$0xff] %v9962_v57  ;;  %4959 = vmatmul.bf16.gmra.mxu1 %v11609_v13  ;;  %5048 = vmatmul.bf16.gmra.mxu2 %v9655_v58 }
 0x4cc   : > { %5137 = vmatmul.bf16.gmra.mxu3 %v9670_v12  ;;  %5226 = vmatmul.bf16.gmra.mxu0 %v11610_v31 }
 0x4ce   : > { %v5009_v48 = vpop.f32.mrf.mxu2 }
 0x4cf   : > { %v5010_v50 = vadd.f32 %v5009_v48, %v4920_v41  ;;  %v5098_v4 = vpop.f32.mrf.mxu3 }
 0x4d0   : > { %v4922_v57 = vpop.f32.mrf.mxu1 }
 0x4d1   : > { %v9982_v55 = vadd.f32 %v5098_v4, %v5010_v50  ;;  %v9984_v31 = vpop.f32.mrf.mxu0 }
 0x4d2   : > { %11613 = vst [vmem:[#allocation79_spill] sm:$0xff] %v9984_v31 }
 0x4d3   : > { %11612 = vst [vmem:[#allocation7_spill] sm:$0xff] %v9982_v55 }
 0x4d6   : > { %v5011_v14 = vpop.f32.mrf.mxu2 }
 0x4d7   : > { %v5012_v12 = vadd.f32 %v5011_v14, %v4922_v57  ;;  %v5100_v58 = vpop.f32.mrf.mxu3 }
 0x4d8   : > { %v4925_v13 = vpop.f32.mrf.mxu1 }
 0x4d9   : > { %v9986_v38 = vadd.f32 %v5100_v58, %v5012_v12  ;;  %v9994_v14 = vpop.f32.mrf.mxu0  ;;  %v6844_v12 = vld [vmem:[%s11064_s5 + $0x230] sm:$0xff] }
 0x4da   : > { %11616 = vst [vmem:[#allocation72_spill] sm:$0xff] %v9994_v14  ;;  %5594 = vmatpush.bf16.msra.mxu1 %v6844_v12 }
 0x4db   : > { %11614 = vst [vmem:[#allocation107_spill] sm:$0xff] %v9986_v38  ;;  %4964 = vmatmul.bf16.gmra.mxu1 %v9708_v60  ;;  %5053 = vmatmul.bf16.gmra.mxu2 %v9710_v15 }
 0x4dc   : > { %5142 = vmatmul.bf16.gmra.mxu3 %v9712_v59  ;;  %5231 = vmatmul.bf16.gmra.mxu0 %v9714_v46  ;;  %v11619_v46 = vld [vmem:[#allocation28_spill] sm:$0xff] }
 0x4de   : > { %v5014_v41 = vpop.f32.mrf.mxu2 }
 0x4df   : > { %v5015_v61 = vadd.f32 %v5014_v41, %v4925_v13  ;;  %v5103_v51 = vpop.f32.mrf.mxu3  ;;  %v11620_v13 = vld [vmem:[#allocation83_spill] sm:$0xff] }
 0x4e0   : > { %v4927_v63 = vpop.f32.mrf.mxu1 }
 0x4e1   : > { %v9992_v28 = vadd.f32 %v5103_v51, %v5015_v61  ;;  %v10000_v59 = vpop.f32.mrf.mxu0 }
 0x4e2   : > { %11618 = vst [vmem:[#allocation109_spill] sm:$0xff] %v10000_v59  ;;  %v11625_v59 = vld [vmem:[#allocation27_spill] sm:$0xff] }
 0x4e3   : > { %11615 = vst [vmem:[#allocation74_spill] sm:$0xff] %v9992_v28 }
 0x4e6   : > { %v5016_v57 = vpop.f32.mrf.mxu2 }
 0x4e7   : > { %v5017_v48 = vadd.f32 %v5016_v57, %v4927_v63  ;;  %v5105_v58 = vpop.f32.mrf.mxu3 }
 0x4e8   : > { %v4930_v50 = vpop.f32.mrf.mxu1 }
 0x4e9   : > { %v9996_v4 = vadd.f32 %v5105_v58, %v5017_v48  ;;  %v11623_v48 = vld [vmem:[#allocation81_spill] sm:$0xff]  ;;  %v11624_v58 = vld [vmem:[#allocation80_spill] sm:$0xff]  ;;  %v10013_v31 = vpop.f32.mrf.mxu0 }
 0x4ea   : > { %11626 = vst [vmem:[#allocation28_spill] sm:$0xff] %v10013_v31 }
 0x4eb   : > { %11617 = vst [vmem:[#allocation108_spill] sm:$0xff] %v9996_v4  ;;  %5245 = vmatmul.bf16.vlgmr.msrb.gmra.mxu1 %v9685_v56  ;;  %5334 = vmatmul.bf16.vlgmr.msra.gmra.mxu2 %v9696_v30  ;;  %v11622_v56 = vld [vmem:[#allocation20_spill] sm:$0xff]  ;;  %v3624_v4 = vpack.c.bf16 %v11625_v59, %v11624_v58 }
 0x4ec   : > { %5423 = vmatmul.bf16.vlgmr.msra.gmra.mxu3 %v11619_v46  ;;  %5512 = vmatmul.bf16.vlgmr.msra.gmra.mxu0 %v11620_v13  ;;  %v3619_v30 = vpack.c.bf16 %v11623_v48, %v11622_v56  ;;  %v11628_v56 = vld [vmem:[#allocation44_spill] sm:$0xff] }
 0x4ed   : > { %v4032_v14 = vunpack.c.l.b16 %v3624_v4  ;;  %v4033_v28 = vunpack.c.h.b16 %v3624_v4 }
 0x4ee   : > { %v5019_v41 = vpop.f32.mrf.mxu2  ;;  %v4023_v46 = vunpack.c.l.b16 %v3619_v30  ;;  %v4024_v13 = vunpack.c.h.b16 %v3619_v30 }
 0x4ef   : > { %v5020_v61 = vadd.f32 %v5019_v41, %v4930_v50  ;;  %v5108_v51 = vpop.f32.mrf.mxu3 }
 0x4f0   : > { %v4932_v63 = vpop.f32.mrf.mxu1 }
 0x4f1   : > { %v10007_v57 = vadd.f32 %v5108_v51, %v5020_v61  ;;  %v4238_v61 = vpack.c.b16 %v4032_v14, %v4023_v46  ;;  %v4239_v51 = vpack.c.b16 %v4033_v28, %v4024_v13  ;;  %v10019_v4 = vpop.f32.mrf.mxu0  ;;  %v11635_v14 = vld [vmem:[#allocation84_spill] sm:$0xff] }
 0x4f2   : > { %11630 = vst [vmem:[#allocation20_spill] sm:$0xff] %v10019_v4 }
 0x4f3   : > { %11621 = vst [vmem:[#allocation61_spill] sm:$0xff] %v10007_v57  ;;  %v11629_v57 = vld [vmem:[#allocation51_spill] sm:$0xff] }
 0x4f6   : > { %v5021_v38 = vpop.f32.mrf.mxu2 }
 0x4f7   : > { %v5022_v29 = vadd.f32 %v5021_v38, %v4932_v63  ;;  %v5110_v12 = vpop.f32.mrf.mxu3  ;;  %v11632_v38 = vld [vmem:[#allocation82_spill] sm:$0xff]  ;;  %v11633_v63 = vld [vmem:[#allocation36_spill] sm:$0xff] }
 0x4f8   : > { %v4935_v50 = vpop.f32.mrf.mxu1 }
 0x4f9   : > { %v10015_v41 = vadd.f32 %v5110_v12, %v5022_v29  ;;  %v3628_v29 = vpack.c.bf16 %v11633_v63, %v11632_v38  ;;  %v11634_v12 = vld [vmem:[#allocation35_spill] sm:$0xff] }
 0x4fa   : > { %v3632_v28 = vpack.c.bf16 %v11635_v14, %v11634_v12  ;;  %v11639_v38 = vld [vmem:[#allocation59_spill] sm:$0xff] }
 0x4fb   : > { %11627 = vst [vmem:[#allocation83_spill] sm:$0xff] %v10015_v41  ;;  %5250 = vmatmul.bf16.gmra.mxu1 %v4238_v61  ;;  %5339 = vmatmul.bf16.gmra.mxu2 %v4239_v51  ;;  %v4039_v46 = vunpack.c.l.b16 %v3628_v29  ;;  %v4040_v61 = vunpack.c.h.b16 %v3628_v29  ;;  %v6843_v29 = vld [vmem:[%s11064_s5 + $0x228] sm:$0xff] }
 0x4fc   : > { %5428 = vmatmul.bf16.gmra.mxu3 %v11628_v56  ;;  %5517 = vmatmul.bf16.gmra.mxu0 %v11629_v57  ;;  %v4046_v13 = vunpack.c.l.b16 %v3632_v28  ;;  %v4047_v51 = vunpack.c.h.b16 %v3632_v28 }
 0x4fd   : > { %5595 = vmatpush.bf16.msra.mxu1 %v6843_v29 }
 0x4fe   : > { %v5024_v58 = vpop.f32.mrf.mxu2  ;;  %v4245_v4 = vpack.c.b16 %v4046_v13, %v4039_v46  ;;  %v4246_v55 = vpack.c.b16 %v4047_v51, %v4040_v61  ;;  %v11641_v46 = vld [vmem:[#allocation85_spill] sm:$0xff]  ;;  %v11642_v13 = vld [vmem:[#allocation60_spill] sm:$0xff] }
 0x4ff   : > { %v5025_v59 = vadd.f32 %v5024_v58, %v4935_v50  ;;  %v5113_v30 = vpop.f32.mrf.mxu3  ;;  %v3636_v61 = vpack.c.bf16 %v11642_v13, %v11641_v46  ;;  %v11647_v46 = vld [vmem:[#allocation88_spill] sm:$0xff] }
 0x500   : > { %v4937_v31 = vpop.f32.mrf.mxu1 }
 0x501   : > { %v10021_v48 = vadd.f32 %v5113_v30, %v5025_v59  ;;  %v10029_v59 = vpop.f32.mrf.mxu0  ;;  %v11638_v30 = vld [vmem:[#allocation52_spill] sm:$0xff] }
 0x502   : > { %11637 = vst [vmem:[#allocation51_spill] sm:$0xff] %v10029_v59 }
 0x503   : > { %11631 = vst [vmem:[#allocation80_spill] sm:$0xff] %v10021_v48 }
 0x506   : > { %v5026_v56 = vpop.f32.mrf.mxu2 }
 0x507   : > { %v5027_v57 = vadd.f32 %v5026_v56, %v4937_v31  ;;  %v5115_v41 = vpop.f32.mrf.mxu3 }
 0x508   : > { %v4940_v50 = vpop.f32.mrf.mxu1 }
 0x509   : > { %v10027_v58 = vadd.f32 %v5115_v41, %v5027_v57  ;;  %v10042_v57 = vpop.f32.mrf.mxu0 }
 0x50a   : > { %11645 = vst [vmem:[#allocation36_spill] sm:$0xff] %v10042_v57 }
 0x50b   : > { %11636 = vst [vmem:[#allocation44_spill] sm:$0xff] %v10027_v58  ;;  %5255 = vmatmul.bf16.gmra.mxu1 %v4245_v4  ;;  %5344 = vmatmul.bf16.gmra.mxu2 %v4246_v55  ;;  %v11643_v4 = vld [vmem:[#allocation43_spill] sm:$0xff]  ;;  %v11644_v55 = vld [vmem:[#allocation92_spill] sm:$0xff]  ;;  %v4054_v58 = vunpack.c.h.b16 %v3636_v61 }
 0x50c   : > { %5433 = vmatmul.bf16.gmra.mxu3 %v11638_v30  ;;  %5522 = vmatmul.bf16.gmra.mxu0 %v11639_v38  ;;  %v3640_v51 = vpack.c.bf16 %v11644_v55, %v11643_v4  ;;  %v4053_v30 = vunpack.c.l.b16 %v3636_v61 }
 0x50e   : > { %v5029_v12 = vpop.f32.mrf.mxu2  ;;  %v4060_v38 = vunpack.c.l.b16 %v3640_v51  ;;  %v4061_v59 = vunpack.c.h.b16 %v3640_v51 }
 0x50f   : > { %v5030_v31 = vadd.f32 %v5029_v12, %v4940_v50  ;;  %v5118_v28 = vpop.f32.mrf.mxu3 }
 0x510   : > { %v4942_v41 = vpop.f32.mrf.mxu1 }
 0x511   : > { %v10036_v56 = vadd.f32 %v5118_v28, %v5030_v31  ;;  %v4252_v31 = vpack.c.b16 %v4060_v38, %v4053_v30  ;;  %v4253_v28 = vpack.c.b16 %v4061_v59, %v4054_v58  ;;  %v10048_v4 = vpop.f32.mrf.mxu0  ;;  %v11654_v30 = vld [vmem:[#allocation89_spill] sm:$0xff] }
 0x512   : > { %11649 = vst [vmem:[#allocation52_spill] sm:$0xff] %v10048_v4 }
 0x513   : > { %11640 = vst [vmem:[#allocation82_spill] sm:$0xff] %v10036_v56  ;;  %v11648_v56 = vld [vmem:[#allocation94_spill] sm:$0xff] }
 0x516   : > { %v5031_v48 = vpop.f32.mrf.mxu2 }
 0x517   : > { %v5032_v14 = vadd.f32 %v5031_v48, %v4942_v41  ;;  %v5120_v29 = vpop.f32.mrf.mxu3  ;;  %v11651_v48 = vld [vmem:[#allocation93_spill] sm:$0xff]  ;;  %v11652_v41 = vld [vmem:[#allocation86_spill] sm:$0xff] }
 0x518   : > { %v4945_v50 = vpop.f32.mrf.mxu1 }
 0x519   : > { %v10044_v12 = vadd.f32 %v5120_v29, %v5032_v14  ;;  %v3644_v14 = vpack.c.bf16 %v11652_v41, %v11651_v48  ;;  %v11653_v29 = vld [vmem:[#allocation87_spill] sm:$0xff]  ;;  %v10056_v4 = vpop.f32.mrf.mxu0  ;;  %v11657_v48 = vld [vmem:[#allocation37_spill] sm:$0xff] }
 0x51a   : > { %v3648_v58 = vpack.c.bf16 %v11654_v30, %v11653_v29  ;;  %11655 = vst [vmem:[#allocation85_spill] sm:$0xff] %v10056_v4 }
 0x51b   : > { %11646 = vst [vmem:[#allocation35_spill] sm:$0xff] %v10044_v12  ;;  %5260 = vmatmul.bf16.gmra.mxu1 %v4252_v31  ;;  %5349 = vmatmul.bf16.gmra.mxu2 %v4253_v28  ;;  %v4067_v59 = vunpack.c.l.b16 %v3644_v14  ;;  %v4068_v31 = vunpack.c.h.b16 %v3644_v14  ;;  %v6842_v14 = vld [vmem:[%s11064_s5 + $0x220] sm:$0xff] }
 0x51c   : > { %5438 = vmatmul.bf16.gmra.mxu3 %v11647_v46  ;;  %5527 = vmatmul.bf16.gmra.mxu0 %v11648_v56  ;;  %v4074_v38 = vunpack.c.l.b16 %v3648_v58  ;;  %v4075_v28 = vunpack.c.h.b16 %v3648_v58 }
 0x51d   : > { %5596 = vmatpush.bf16.msra.mxu1 %v6842_v14 }
 0x51e   : > { %v5034_v55 = vpop.f32.mrf.mxu2 }
 0x51f   : > { %v5035_v13 = vadd.f32 %v5034_v55, %v4945_v50  ;;  %v5123_v61 = vpop.f32.mrf.mxu3 }
 0x520   : > { %v4947_v51 = vpop.f32.mrf.mxu1 }
 0x521   : > { %v10050_v57 = vadd.f32 %v5123_v61, %v5035_v13  ;;  %v4259_v13 = vpack.c.b16 %v4074_v38, %v4067_v59  ;;  %v4260_v61 = vpack.c.b16 %v4075_v28, %v4068_v31  ;;  %v11661_v59 = vld [vmem:[#allocation29_spill] sm:$0xff]  ;;  %v11662_v31 = vld [vmem:[#allocation22_spill] sm:$0xff] }
 0x522   : > { %v11663_v28 = vld [vmem:[#allocation30_spill] sm:$0xff] }
 0x523   : > { %11650 = vst [vmem:[#allocation59_spill] sm:$0xff] %v10050_v57  ;;  %v11658_v57 = vld [vmem:[#allocation45_spill] sm:$0xff] }
 0x526   : > { %v5036_v46 = vpop.f32.mrf.mxu2 }
 0x527   : > { %v5037_v56 = vadd.f32 %v5036_v46, %v4947_v51  ;;  %v5125_v12 = vpop.f32.mrf.mxu3 }
 0x528   : > { %v4950_v55 = vpop.f32.mrf.mxu1 }
 0x529   : > { %v10058_v50 = vadd.f32 %v5125_v12, %v5037_v56  ;;  %v11660_v12 = vld [vmem:[#allocation21_spill] sm:$0xff]  ;;  %v3656_v56 = vpack.c.bf16 %v11663_v28, %v11662_v31 }
 0x52a   : > { %v3652_v38 = vpack.c.bf16 %v11661_v59, %v11660_v12 }
 0x52b   : > { %11656 = vst [vmem:[#allocation43_spill] sm:$0xff] %v10058_v50  ;;  %5265 = vmatmul.bf16.gmra.mxu1 %v4259_v13  ;;  %5354 = vmatmul.bf16.gmra.mxu2 %v4260_v61  ;;  %v10071_v13 = vpop.f32.mrf.mxu0  ;;  %v4088_v61 = vunpack.c.l.b16 %v3656_v56  ;;  %v4089_v50 = vunpack.c.h.b16 %v3656_v56 }
 0x52c   : > { %5443 = vmatmul.bf16.gmra.mxu3 %v11657_v48  ;;  %5532 = vmatmul.bf16.gmra.mxu0 %v11658_v57  ;;  %v4081_v57 = vunpack.c.l.b16 %v3652_v38  ;;  %v4082_v48 = vunpack.c.h.b16 %v3652_v38 }
 0x52e   : > { %v5039_v29 = vpop.f32.mrf.mxu2 }
 0x52f   : > { %v5040_v51 = vadd.f32 %v5039_v29, %v4950_v55  ;;  %v5128_v58 = vpop.f32.mrf.mxu3 }
 0x530   : > { %v4952_v46 = vpop.f32.mrf.mxu1 }
 0x531   : > { %v10065_v30 = vadd.f32 %v5128_v58, %v5040_v51  ;;  %v4266_v51 = vpack.c.b16 %v4088_v61, %v4081_v57  ;;  %v4267_v58 = vpack.c.b16 %v4089_v50, %v4082_v48  ;;  %v11669_v57 = vld [vmem:[#allocation96_spill] sm:$0xff] }
 0x533   : > { %11659 = vst [vmem:[#allocation88_spill] sm:$0xff] %v10065_v30  ;;  %v10075_v12 = vpop.f32.mrf.mxu0 }
 0x536   : > { %v5041_v41 = vpop.f32.mrf.mxu2 }
 0x537   : > { %v5042_v4 = vadd.f32 %v5041_v41, %v4952_v46  ;;  %v5130_v14 = vpop.f32.mrf.mxu3  ;;  %v11666_v41 = vld [vmem:[#allocation38_spill] sm:$0xff]  ;;  %v11667_v46 = vld [vmem:[#allocation95_spill] sm:$0xff] }
 0x538   : > { %v4955_v55 = vpop.f32.mrf.mxu1 }
 0x539   : > { %v10073_v29 = vadd.f32 %v5130_v14, %v5042_v4  ;;  %v3660_v4 = vpack.c.bf16 %v11667_v46, %v11666_v41  ;;  %v11668_v14 = vld [vmem:[#allocation46_spill] sm:$0xff]  ;;  %v6841_v41 = vld [vmem:[%s11064_s5 + $0x218] sm:$0xff] }
 0x53a   : > { %v3664_v50 = vpack.c.bf16 %v11669_v57, %v11668_v14  ;;  %5597 = vmatpush.bf16.msra.mxu1 %v6841_v41 }
 0x53b   : > { %11664 = vst [vmem:[#allocation94_spill] sm:$0xff] %v10073_v29  ;;  %5270 = vmatmul.bf16.gmra.mxu1 %v4266_v51  ;;  %5359 = vmatmul.bf16.gmra.mxu2 %v4267_v58  ;;  %v4095_v61 = vunpack.c.l.b16 %v3660_v4  ;;  %v4096_v51 = vunpack.c.h.b16 %v3660_v4  ;;  %v10085_v29 = vpop.f32.mrf.mxu0 }
 0x53c   : > { %5448 = vmatmul.bf16.gmra.mxu3 %v9399_v19  ;;  %5537 = vmatmul.bf16.gmra.mxu0 %v9401_v8  ;;  %v4102_v48 = vunpack.c.l.b16 %v3664_v50  ;;  %v4103_v58 = vunpack.c.h.b16 %v3664_v50 }
 0x53e   : > { %v5044_v31 = vpop.f32.mrf.mxu2 }
 0x53f   : > { %v5045_v30 = vadd.f32 %v5044_v31, %v4955_v55  ;;  %v5133_v38 = vpop.f32.mrf.mxu3 }
 0x540   : > { %v4957_v56 = vpop.f32.mrf.mxu1 }
 0x541   : > { %v10079_v28 = vadd.f32 %v5133_v38, %v5045_v30  ;;  %v4273_v30 = vpack.c.b16 %v4102_v48, %v4095_v61  ;;  %v4274_v38 = vpack.c.b16 %v4103_v58, %v4096_v51  ;;  %v11672_v61 = vld [vmem:[#allocation97_spill] sm:$0xff]  ;;  %v11673_v48 = vld [vmem:[#allocation99_spill] sm:$0xff]  ;;  %v11674_v58 = vld [vmem:[#allocation98_spill] sm:$0xff] }
 0x542   : > { %v3668_v51 = vpack.c.bf16 %v11673_v48, %v11672_v61 }
 0x543   : > { %11665 = vst [vmem:[#allocation93_spill] sm:$0xff] %v10079_v28  ;;  %v10094_v50 = vpop.f32.mrf.mxu0 }
 0x544   : > { %11671 = vst [vmem:[#allocation37_spill] sm:$0xff] %v10094_v50 }
 0x546   : > { %v5046_v19 = vpop.f32.mrf.mxu2 }
 0x547   : > { %v5047_v8 = vadd.f32 %v5046_v19, %v4957_v56  ;;  %v5135_v59 = vpop.f32.mrf.mxu3 }
 0x548   : > { %v4960_v55 = vpop.f32.mrf.mxu1 }
 0x549   : > { %v10087_v31 = vadd.f32 %v5135_v59, %v5047_v8 }
 0x54b   : > { %11670 = vst [vmem:[#allocation87_spill] sm:$0xff] %v10087_v31  ;;  %5275 = vmatmul.bf16.gmra.mxu1 %v4273_v30  ;;  %5364 = vmatmul.bf16.gmra.mxu2 %v4274_v38  ;;  %v4110_v38 = vunpack.c.h.b16 %v3668_v51 }
 0x54c   : > { %5453 = vmatmul.bf16.gmra.mxu3 %v9438_v43  ;;  %5542 = vmatmul.bf16.gmra.mxu0 %v9440_v53  ;;  %v11675_v43 = vld [vmem:[#allocation100_spill] sm:$0xff]  ;;  %v4109_v53 = vunpack.c.l.b16 %v3668_v51 }
 0x54d   : > { %v3672_v8 = vpack.c.bf16 %v11675_v43, %v11674_v58 }
 0x54e   : > { %v5049_v4 = vpop.f32.mrf.mxu2 }
 0x54f   : > { %v5050_v14 = vadd.f32 %v5049_v4, %v4960_v55  ;;  %v5138_v56 = vpop.f32.mrf.mxu3  ;;  %v4116_v30 = vunpack.c.l.b16 %v3672_v8  ;;  %v4117_v31 = vunpack.c.h.b16 %v3672_v8 }
 0x550   : > { %v4962_v59 = vpop.f32.mrf.mxu1 }
 0x551   : > { %v10096_v19 = vadd.f32 %v5138_v56, %v5050_v14  ;;  %v4280_v46 = vpack.c.b16 %v4116_v30, %v4109_v53  ;;  %v4281_v50 = vpack.c.b16 %v4117_v31, %v4110_v38  ;;  %v10104_v14 = vpop.f32.mrf.mxu0  ;;  %v5158_v31 = vadd.f32 %v9763_v39, %v9798_v49 }
 0x556   : > { %v5051_v28 = vpop.f32.mrf.mxu2 }
 0x557   : > { %v5052_v57 = vadd.f32 %v5051_v28, %v4962_v59  ;;  %v5140_v41 = vpop.f32.mrf.mxu3 }
 0x558   : > { %v4965_v55 = vpop.f32.mrf.mxu1 }
 0x559   : > { %v10102_v4 = vadd.f32 %v5140_v41, %v5052_v57  ;;  %v10110_v28 = vpop.f32.mrf.mxu0  ;;  %v5160_v41 = vadd.f32 %v9800_v3, %v9811_v37 }
 0x55b   : > { %5280 = vmatmul.bf16.gmra.mxu1 %v4280_v46  ;;  %5369 = vmatmul.bf16.gmra.mxu2 %v4281_v50 }
 0x55c   : > { %5458 = vmatmul.bf16.gmra.mxu3 %v9466_v36  ;;  %5547 = vmatmul.bf16.gmra.mxu0 %v9468_v40  ;;  %v6840_v40 = vld [vmem:[%s11064_s5 + $0x210] sm:$0xff] }
 0x55d   : > { %5598 = vmatpush.bf16.msra.mxu1 %v6840_v40 }
 0x55e   : > { %v5054_v56 = vpop.f32.mrf.mxu2 }
 0x55f   : > { %v5055_v61 = vadd.f32 %v5054_v56, %v4965_v55  ;;  %v5143_v51 = vpop.f32.mrf.mxu3 }
 0x560   : > { %v4967_v58 = vpop.f32.mrf.mxu1 }
 0x561   : > { %v10108_v8 = vadd.f32 %v5143_v51, %v5055_v61  ;;  %v10123_v30 = vpop.f32.mrf.mxu0  ;;  %v5163_v61 = vadd.f32 %v9813_v42, %v9819_v24  ;;  %v5165_v42 = vadd.f32 %v9821_v47, %v9843_v10  ;;  %v6839_v10 = vld [vmem:[%s11064_s5 + $0x208] sm:$0xff] }
 0x562   : > { %5599 = vmatpush.bf16.msra.mxu1 %v6839_v10 }
 0x566   : > { %v5056_v57 = vpop.f32.mrf.mxu2 }
 0x567   : > { %v5057_v59 = vadd.f32 %v5056_v57, %v4967_v58  ;;  %v5145_v53 = vpop.f32.mrf.mxu3 }
 0x568   : > { %v5246_v46 = vpop.f32.mrf.mxu1 }
 0x569   : > { %v10114_v50 = vadd.f32 %v5145_v53, %v5057_v59  ;;  %v5247_v36 = vadd.f32 %v5246_v46, %v5158_v31  ;;  %v10131_v51 = vpop.f32.mrf.mxu0 }
 0x56b   : > { %5285 = vmatmul.bf16.gmra.mxu1 %v9731_v9  ;;  %5374 = vmatmul.bf16.gmra.mxu2 %v9735_v6 }
 0x56c   : > { %5463 = vmatmul.bf16.gmra.mxu3 %v11589_v34  ;;  %5552 = vmatmul.bf16.gmra.mxu0 %v11590_v52 }
 0x56e   : > { %v5335_v38 = vpop.f32.mrf.mxu2 }
 0x56f   : > { %v5336_v49 = vadd.f32 %v5335_v38, %v5247_v36  ;;  %v5424_v39 = vpop.f32.mrf.mxu3 }
 0x570   : > { %v5248_v9 = vpop.f32.mrf.mxu1 }
 0x571   : > { %v10127_v55 = vadd.f32 %v5424_v39, %v5336_v49  ;;  %v5249_v6 = vadd.f32 %v5248_v9, %v5160_v41  ;;  %v10143_v36 = vpop.f32.mrf.mxu0  ;;  %v5170_v41 = vadd.f32 %v9858_v2, %v9860_v5 }
 0x576   : > { %v5337_v34 = vpop.f32.mrf.mxu2 }
 0x577   : > { %v5338_v56 = vadd.f32 %v5337_v34, %v5249_v6  ;;  %v5426_v52 = vpop.f32.mrf.mxu3 }
 0x578   : > { %v5251_v58 = vpop.f32.mrf.mxu1 }
 0x579   : > { %v10133_v57 = vadd.f32 %v5426_v52, %v5338_v56  ;;  %v5252_v59 = vadd.f32 %v5251_v58, %v5163_v61  ;;  %v10151_v47 = vpop.f32.mrf.mxu0  ;;  %v5173_v56 = vadd.f32 %v9862_v16, %v9868_v32 }
 0x57b   : > { %5290 = vmatmul.bf16.gmra.mxu1 %v9737_v27  ;;  %5379 = vmatmul.bf16.gmra.mxu2 %v9743_v11  ;;  %v5168_v11 = vadd.f32 %v9845_v21, %v9856_v33 }
 0x57c   : > { %5468 = vmatmul.bf16.gmra.mxu3 %v11593_v26  ;;  %5557 = vmatmul.bf16.gmra.mxu0 %v11594_v17 }
 0x57e   : > { %v5340_v3 = vpop.f32.mrf.mxu2 }
 0x57f   : > { %v5341_v37 = vadd.f32 %v5340_v3, %v5252_v59  ;;  %v5429_v53 = vpop.f32.mrf.mxu3  ;;  %v5175_v3 = vadd.f32 %v9870_v0, %v9872_v62  ;;  %v11676_v62 = vld [vmem:[#allocation19_spill] sm:$0xff]  ;;  %v11677_v0 = vld [vmem:[#allocation73_spill] sm:$0xff] }
 0x580   : > { %v5253_v24 = vpop.f32.mrf.mxu1 }
 0x581   : > { %v10141_v31 = vadd.f32 %v5429_v53, %v5341_v37  ;;  %v5254_v46 = vadd.f32 %v5253_v24, %v5165_v42  ;;  %v10162_v6 = vpop.f32.mrf.mxu0 }
 0x586   : > { %v5342_v40 = vpop.f32.mrf.mxu2 }
 0x587   : > { %v5343_v27 = vadd.f32 %v5342_v40, %v5254_v46  ;;  %v5431_v38 = vpop.f32.mrf.mxu3 }
 0x588   : > { %v5256_v26 = vpop.f32.mrf.mxu1 }
 0x589   : > { %v10147_v17 = vadd.f32 %v5431_v38, %v5343_v27  ;;  %v5257_v49 = vadd.f32 %v5256_v26, %v5168_v11  ;;  %v10174_v37 = vpop.f32.mrf.mxu0  ;;  %v11678_v27 = vld [vmem:[#allocation75_spill] sm:$0xff]  ;;  %v6838_v38 = vld [vmem:[%s11064_s5 + $0x200] sm:$0xff] }
 0x58a   : > { %5600 = vmatpush.bf16.msra.mxu1 %v6838_v38  ;;  %v11679_v26 = vld [vmem:[#allocation103_spill] sm:$0xff] }
 0x58b   : > { %5295 = vmatmul.bf16.gmra.mxu1 %v9751_v35  ;;  %5384 = vmatmul.bf16.gmra.mxu2 %v9753_v45  ;;  %v11687_v38 = vld [vmem:[#allocation7_spill] sm:$0xff] }
 0x58c   : > { %5473 = vmatmul.bf16.gmra.mxu3 %v11597_v20  ;;  %5562 = vmatmul.bf16.gmra.mxu0 %v11598_v7 }
 0x58e   : > { %v5345_v39 = vpop.f32.mrf.mxu2 }
 0x58f   : > { %v5346_v21 = vadd.f32 %v5345_v39, %v5257_v49  ;;  %v5434_v33 = vpop.f32.mrf.mxu3  ;;  %v11680_v49 = vld [vmem:[#allocation102_spill] sm:$0xff] }
 0x590   : > { %v5258_v35 = vpop.f32.mrf.mxu1  ;;  %v5180_v10 = vadd.f32 %v11680_v49, %v11679_v26 }
 0x591   : > { %v10160_v9 = vadd.f32 %v5434_v33, %v5346_v21  ;;  %v5259_v45 = vadd.f32 %v5258_v35, %v5170_v41  ;;  %v10182_v40 = vpop.f32.mrf.mxu0 }
 0x596   : > { %v5347_v20 = vpop.f32.mrf.mxu2 }
 0x597   : > { %v5348_v34 = vadd.f32 %v5347_v20, %v5259_v45  ;;  %v5436_v7 = vpop.f32.mrf.mxu3  ;;  %v11681_v20 = vld [vmem:[#allocation71_spill] sm:$0xff] }
 0x598   : > { %v5261_v52 = vpop.f32.mrf.mxu1 }
 0x599   : > { %v10166_v61 = vadd.f32 %v5436_v7, %v5348_v34  ;;  %v5262_v58 = vadd.f32 %v5261_v52, %v5173_v56  ;;  %v10195_v33 = vpop.f32.mrf.mxu0  ;;  %v11682_v34 = vld [vmem:[#allocation69_spill] sm:$0xff] }
 0x59a   : > { %v5183_v7 = vadd.f32 %v11682_v34, %v11681_v20 }
 0x59b   : > { %5300 = vmatmul.bf16.gmra.mxu1 %v9759_v22  ;;  %5389 = vmatmul.bf16.gmra.mxu2 %v9761_v18  ;;  %v5178_v18 = vadd.f32 %v9874_v25, %v9892_v23 }
 0x59c   : > { %5478 = vmatmul.bf16.gmra.mxu3 %v11604_v1  ;;  %5567 = vmatmul.bf16.gmra.mxu0 %v11605_v44 }
 0x59e   : > { %v5350_v2 = vpop.f32.mrf.mxu2 }
 0x59f   : > { %v5351_v5 = vadd.f32 %v5350_v2, %v5262_v58  ;;  %v5439_v59 = vpop.f32.mrf.mxu3  ;;  %v11683_v2 = vld [vmem:[#allocation54_spill] sm:$0xff] }
 0x5a0   : > { %v5263_v32 = vpop.f32.mrf.mxu1 }
 0x5a1   : > { %v10176_v16 = vadd.f32 %v5439_v59, %v5351_v5  ;;  %v5264_v53 = vadd.f32 %v5263_v32, %v5175_v3  ;;  %v11684_v5 = vld [vmem:[#allocation13_spill] sm:$0xff]  ;;  %v10205_v59 = vpop.f32.mrf.mxu0 }
 0x5a6   : > { %v5352_v42 = vpop.f32.mrf.mxu2 }
 0x5a7   : > { %v5353_v22 = vadd.f32 %v5352_v42, %v5264_v53  ;;  %v5441_v24 = vpop.f32.mrf.mxu3  ;;  %v11685_v42 = vld [vmem:[#allocation104_spill] sm:$0xff] }
 0x5a8   : > { %v5266_v1 = vpop.f32.mrf.mxu1 }
 0x5a9   : > { %v10180_v44 = vadd.f32 %v5441_v24, %v5353_v22  ;;  %v5267_v46 = vadd.f32 %v5266_v1, %v5178_v18  ;;  %v11686_v22 = vld [vmem:[#allocation78_spill] sm:$0xff] }
 0x5aa   : > { %v5185_v24 = vadd.f32 %v11686_v22, %v11685_v42 }
 0x5ab   : > { %5305 = vmatmul.bf16.gmra.mxu1 %v9765_v54  ;;  %5394 = vmatmul.bf16.gmra.mxu2 %v11676_v62 }
 0x5ac   : > { %5483 = vmatmul.bf16.gmra.mxu3 %v11677_v0  ;;  %5572 = vmatmul.bf16.gmra.mxu0 %v11678_v27 }
 0x5ae   : > { %v5355_v11 = vpop.f32.mrf.mxu2 }
 0x5af   : > { %v5356_v25 = vadd.f32 %v5355_v11, %v5267_v46  ;;  %v5444_v23 = vpop.f32.mrf.mxu3  ;;  %v11688_v11 = vld [vmem:[#allocation8_spill] sm:$0xff] }
 0x5b0   : > { %v5268_v39 = vpop.f32.mrf.mxu1 }
 0x5b1   : > { %v10193_v21 = vadd.f32 %v5444_v23, %v5356_v25  ;;  %v5269_v54 = vadd.f32 %v5268_v39, %v5180_v10  ;;  %v5188_v25 = vadd.f32 %v11688_v11, %v11687_v38  ;;  %v10213_v23 = vpop.f32.mrf.mxu0  ;;  %v11689_v39 = vld [vmem:[#allocation62_spill] sm:$0xff]  ;;  %v11697_v38 = vld [vmem:[#allocation112_spill] sm:$0xff]  ;;  %v11698_v11 = vld [vmem:[#allocation113_spill] sm:$0xff] }
 0x5b6   : > { %v5357_v41 = vpop.f32.mrf.mxu2 }
 0x5b7   : > { %v5358_v35 = vadd.f32 %v5357_v41, %v5269_v54  ;;  %v5446_v45 = vpop.f32.mrf.mxu3  ;;  %v11690_v54 = vld [vmem:[#allocation53_spill] sm:$0xff]  ;;  %v11691_v41 = vld [vmem:[#allocation110_spill] sm:$0xff] }
 0x5b8   : > { %v5271_v56 = vpop.f32.mrf.mxu1 }
 0x5b9   : > { %v10199_v52 = vadd.f32 %v5446_v45, %v5358_v35  ;;  %v5272_v58 = vadd.f32 %v5271_v56, %v5183_v7  ;;  %v11692_v35 = vld [vmem:[#allocation111_spill] sm:$0xff] }
 0x5ba   : > { %v11693_v7 = vld [vmem:[#allocation107_spill] sm:$0xff] }
 0x5bb   : > { %5310 = vmatmul.bf16.gmra.mxu1 %v11683_v2  ;;  %5399 = vmatmul.bf16.gmra.mxu2 %v11684_v5  ;;  %v11694_v56 = vld [vmem:[#allocation79_spill] sm:$0xff] }
 0x5bc   : > { %5488 = vmatmul.bf16.gmra.mxu3 %v9708_v60  ;;  %5577 = vmatmul.bf16.gmra.mxu0 %v9710_v15 }
 0x5be   : > { %v5360_v3 = vpop.f32.mrf.mxu2 }
 0x5bf   : > { %v5361_v32 = vadd.f32 %v5360_v3, %v5272_v58  ;;  %v5449_v53 = vpop.f32.mrf.mxu3  ;;  %v5190_v58 = vadd.f32 %v11694_v56, %v11693_v7  ;;  %v11701_v7 = vld [vmem:[#allocation81_spill] sm:$0xff] }
 0x5c0   : > { %v5273_v18 = vpop.f32.mrf.mxu1  ;;  %v3612_v56 = vpack.c.bf16 %v11701_v7, %v11701_v7  ;;  %v3621_v7 = vpack.c.bf16 %v11633_v63, %v11633_v63 }
 0x5c1   : > { %v10209_v1 = vadd.f32 %v5449_v53, %v5361_v32  ;;  %v5274_v46 = vadd.f32 %v5273_v18, %v5185_v24  ;;  %v10225_v32 = vpop.f32.mrf.mxu0  ;;  %v11695_v24 = vld [vmem:[#allocation74_spill] sm:$0xff]  ;;  %v11696_v18 = vld [vmem:[#allocation72_spill] sm:$0xff] }
 0x5c6   : > { %v5362_v62 = vpop.f32.mrf.mxu2 }
 0x5c7   : > { %v5363_v0 = vadd.f32 %v5362_v62, %v5274_v46  ;;  %v5451_v27 = vpop.f32.mrf.mxu3  ;;  %v5193_v46 = vadd.f32 %v11696_v18, %v11695_v24  ;;  %v11704_v24 = vld [vmem:[#allocation28_spill] sm:$0xff] }
 0x5c8   : > { %v5276_v26 = vpop.f32.mrf.mxu1 }
 0x5c9   : > { %v10215_v49 = vadd.f32 %v5451_v27, %v5363_v0  ;;  %v5277_v10 = vadd.f32 %v5276_v26, %v5188_v25  ;;  %v10233_v25 = vpop.f32.mrf.mxu0 }
 0x5cb   : > { %5315 = vmatmul.bf16.gmra.mxu1 %v11689_v39  ;;  %5404 = vmatmul.bf16.gmra.mxu2 %v11690_v54  ;;  %v11699_v54 = vld [vmem:[#allocation108_spill] sm:$0xff] }
 0x5cc   : > { %5493 = vmatmul.bf16.gmra.mxu3 %v11691_v41  ;;  %5582 = vmatmul.bf16.gmra.mxu0 %v11692_v35  ;;  %v11700_v41 = vld [vmem:[#allocation109_spill] sm:$0xff] }
 0x5cd   : > { %v5195_v35 = vadd.f32 %v11700_v41, %v11699_v54  ;;  %v11706_v54 = vld [vmem:[#allocation20_spill] sm:$0xff] }
 0x5ce   : > { %v5365_v45 = vpop.f32.mrf.mxu2 }
 0x5cf   : > { %v5366_v20 = vadd.f32 %v5365_v45, %v5277_v10  ;;  %v5454_v34 = vpop.f32.mrf.mxu3 }
 0x5d0   : > { %v5278_v2 = vpop.f32.mrf.mxu1 }
 0x5d1   : > { %v10223_v5 = vadd.f32 %v5454_v34, %v5366_v20  ;;  %v5279_v3 = vadd.f32 %v5278_v2, %v5190_v58  ;;  %v11702_v58 = vld [vmem:[#allocation27_spill] sm:$0xff] }
 0x5d2   : > { %v3616_v2 = vpack.c.bf16 %v11702_v58, %v11702_v58 }
 0x5d6   : > { %v5367_v53 = vpop.f32.mrf.mxu2 }
 0x5d7   : > { %v5368_v42 = vadd.f32 %v5367_v53, %v5279_v3  ;;  %v5456_v22 = vpop.f32.mrf.mxu3  ;;  %v4011_v3 = vunpack.c.l.b16 %v3612_v56  ;;  %v11707_v56 = vld [vmem:[#allocation84_spill] sm:$0xff] }
 0x5d8   : > { %v5281_v62 = vpop.f32.mrf.mxu1  ;;  %v3626_v58 = vpack.c.bf16 %v11707_v56, %v11707_v56 }
 0x5d9   : > { %v10229_v0 = vadd.f32 %v5456_v22, %v5368_v42  ;;  %v5282_v27 = vadd.f32 %v5281_v62, %v5193_v46  ;;  %v11703_v22 = vld [vmem:[#allocation61_spill] sm:$0xff] }
 0x5da   : > { %v5198_v18 = vadd.f32 %v11704_v24, %v11703_v22  ;;  %v11709_v22 = vld [vmem:[#allocation51_spill] sm:$0xff] }
 0x5db   : > { %5320 = vmatmul.bf16.gmra.mxu1 %v11697_v38  ;;  %5409 = vmatmul.bf16.gmra.mxu2 %v11698_v11 }
 0x5dc   : > { %5498 = vmatmul.bf16.gmra.mxu3 %v9708_v60  ;;  %5587 = vmatmul.bf16.gmra.mxu0 %v9710_v15  ;;  %v4018_v60 = vunpack.c.l.b16 %v3616_v2  ;;  %v4027_v2 = vunpack.c.l.b16 %v3621_v7  ;;  %v11712_v7 = vld [vmem:[#allocation60_spill] sm:$0xff] }
 0x5dd   : > { %v3630_v56 = vpack.c.bf16 %v11712_v7, %v11712_v7 }
 0x5de   : > { %v5370_v26 = vpop.f32.mrf.mxu2  ;;  %v4233_v38 = vpack.c.b16 %v4018_v60, %v4011_v3 }
 0x5df   : > { %v5371_v10 = vadd.f32 %v5370_v26, %v5282_v27  ;;  %v5459_v39 = vpop.f32.mrf.mxu3 }
 0x5e0   : > { %v5283_v45 = vpop.f32.mrf.mxu1 }
 0x5e1   : > { %v10239_v20 = vadd.f32 %v5459_v39, %v5371_v10  ;;  %v5284_v34 = vadd.f32 %v5283_v45, %v5195_v35  ;;  %v11705_v39 = vld [vmem:[#allocation83_spill] sm:$0xff] }
 0x5e2   : > { %v5200_v41 = vadd.f32 %v11706_v54, %v11705_v39  ;;  %v11711_v39 = vld [vmem:[#allocation36_spill] sm:$0xff] }
 0x5e6   : > { %v5372_v53 = vpop.f32.mrf.mxu2 }
 0x5e7   : > { %v5373_v15 = vadd.f32 %v5372_v53, %v5284_v34  ;;  %v5461_v42 = vpop.f32.mrf.mxu3  ;;  %v4036_v53 = vunpack.c.l.b16 %v3626_v58  ;;  %v11713_v58 = vld [vmem:[#allocation92_spill] sm:$0xff] }
 0x5e8   : > { %v5286_v46 = vpop.f32.mrf.mxu1 }
 0x5e9   : > { %v10247_v62 = vadd.f32 %v5461_v42, %v5373_v15  ;;  %v5287_v27 = vadd.f32 %v5286_v46, %v5198_v18  ;;  %v11708_v42 = vld [vmem:[#allocation80_spill] sm:$0xff] }
 0x5ea   : > { %v5203_v24 = vadd.f32 %v11709_v22, %v11708_v42  ;;  %v11714_v22 = vld [vmem:[#allocation82_spill] sm:$0xff] }
 0x5eb   : > { %5601 = vmatmul.bf16.vlgmr.msra.gmra.mxu1 %v4233_v38  ;;  %v4242_v38 = vpack.c.b16 %v4036_v53, %v4027_v2 }
 0x5ee   : > { %v5375_v11 = vpop.f32.mrf.mxu2 }
 0x5ef   : > { %v5376_v26 = vadd.f32 %v5375_v11, %v5287_v27  ;;  %v5464_v10 = vpop.f32.mrf.mxu3 }
 0x5f0   : > { %v5288_v35 = vpop.f32.mrf.mxu1 }
 0x5f1   : > { %v10251_v45 = vadd.f32 %v5464_v10, %v5376_v26  ;;  %v5289_v34 = vadd.f32 %v5288_v35, %v5200_v41  ;;  %v11710_v10 = vld [vmem:[#allocation44_spill] sm:$0xff] }
 0x5f2   : > { %v5205_v54 = vadd.f32 %v11711_v39, %v11710_v10  ;;  %v11716_v39 = vld [vmem:[#allocation35_spill] sm:$0xff] }
 0x5f6   : > { %v5377_v3 = vpop.f32.mrf.mxu2 }
 0x5f7   : > { %v5378_v60 = vadd.f32 %v5377_v3, %v5289_v34  ;;  %v5466_v15 = vpop.f32.mrf.mxu3  ;;  %v3634_v3 = vpack.c.bf16 %v11713_v58, %v11713_v58 }
 0x5f8   : > { %v5291_v18 = vpop.f32.mrf.mxu1 }
 0x5f9   : > { %v10259_v46 = vadd.f32 %v5466_v15, %v5378_v60  ;;  %v5292_v27 = vadd.f32 %v5291_v18, %v5203_v24  ;;  %v4043_v60 = vunpack.c.l.b16 %v3630_v56  ;;  %v4050_v15 = vunpack.c.l.b16 %v3634_v3  ;;  %v11715_v24 = vld [vmem:[#allocation52_spill] sm:$0xff]  ;;  %v11718_v3 = vld [vmem:[#allocation86_spill] sm:$0xff] }
 0x5fa   : > { %v5208_v18 = vadd.f32 %v11715_v24, %v11714_v22  ;;  %v11719_v22 = vld [vmem:[#allocation89_spill] sm:$0xff] }
 0x5fb   : > { %5606 = vmatmul.bf16.gmra.mxu1 %v4242_v38 }
 0x5fe   : > { %v5380_v11 = vpop.f32.mrf.mxu2 }
 0x5ff   : > { %v5381_v26 = vadd.f32 %v5380_v11, %v5292_v27  ;;  %v5469_v63 = vpop.f32.mrf.mxu3 }
 0x600   : > { %v5293_v41 = vpop.f32.mrf.mxu1 }
 0x601   : > { %v10263_v35 = vadd.f32 %v5469_v63, %v5381_v26  ;;  %v5294_v34 = vadd.f32 %v5293_v41, %v5205_v54  ;;  %v4249_v26 = vpack.c.b16 %v4050_v15, %v4043_v60  ;;  %v11717_v54 = vld [vmem:[#allocation85_spill] sm:$0xff]  ;;  %v11720_v15 = vld [vmem:[#allocation59_spill] sm:$0xff] }
 0x602   : > { %v5210_v41 = vadd.f32 %v11717_v54, %v11716_v39  ;;  %v5213_v24 = vadd.f32 %v10071_v13, %v11720_v15 }
 0x606   : > { %v5382_v2 = vpop.f32.mrf.mxu2 }
 0x607   : > { %v5383_v53 = vadd.f32 %v5382_v2, %v5294_v34  ;;  %v5471_v42 = vpop.f32.mrf.mxu3  ;;  %v3638_v2 = vpack.c.bf16 %v11718_v3, %v11718_v3 }
 0x608   : > { %v5296_v27 = vpop.f32.mrf.mxu1 }
 0x609   : > { %v10271_v38 = vadd.f32 %v5471_v42, %v5383_v53  ;;  %v5297_v11 = vadd.f32 %v5296_v27, %v5208_v18  ;;  %v3642_v53 = vpack.c.bf16 %v11719_v22, %v11719_v22  ;;  %v4057_v42 = vunpack.c.l.b16 %v3638_v2 }
 0x60b   : > { %5611 = vmatmul.bf16.gmra.mxu1 %v4249_v26  ;;  %v4064_v60 = vunpack.c.l.b16 %v3642_v53  ;;  %v10287_v26 = vpop.f32.mrf.mxu0  ;;  %v11724_v53 = vld [vmem:[#allocation88_spill] sm:$0xff] }
 0x60e   : > { %v5385_v63 = vpop.f32.mrf.mxu2 }
 0x60f   : > { %v5386_v10 = vadd.f32 %v5385_v63, %v5297_v11  ;;  %v5474_v7 = vpop.f32.mrf.mxu3  ;;  %v4256_v11 = vpack.c.b16 %v4064_v60, %v4057_v42  ;;  %v11721_v63 = vld [vmem:[#allocation43_spill] sm:$0xff]  ;;  %v5218_v42 = vadd.f32 %v10085_v29, %v11724_v53 }
 0x610   : > { %v5298_v56 = vpop.f32.mrf.mxu1 }
 0x611   : > { %v10275_v58 = vadd.f32 %v5474_v7, %v5386_v10  ;;  %v10277_v34 = vadd.f32 %v5298_v56, %v5210_v41  ;;  %v5215_v10 = vadd.f32 %v10075_v12, %v11721_v63  ;;  %v11722_v41 = vld [vmem:[#allocation29_spill] sm:$0xff]  ;;  %v11723_v56 = vld [vmem:[#allocation30_spill] sm:$0xff] }
 0x612   : > { %v3646_v7 = vpack.c.bf16 %v11722_v41, %v11722_v41  ;;  %v3650_v3 = vpack.c.bf16 %v11723_v56, %v11723_v56  ;;  %v11727_v41 = vld [vmem:[#allocation95_spill] sm:$0xff]  ;;  %v11728_v56 = vld [vmem:[#allocation96_spill] sm:$0xff] }
 0x613   : > { %v10297_v13 = vpop.f32.mrf.mxu0 }
 0x614   : > { %v4071_v2 = vunpack.c.l.b16 %v3646_v7  ;;  %v4078_v22 = vunpack.c.l.b16 %v3650_v3  ;;  %v3654_v7 = vpack.c.bf16 %v11727_v41, %v11727_v41  ;;  %v3658_v3 = vpack.c.bf16 %v11728_v56, %v11728_v56 }
 0x615   : > { %v3666_v56 = vpack.c.bf16 %v11675_v43, %v11675_v43  ;;  %v11731_v43 = vld [vmem:[#allocation101_spill] sm:$0xff] }
 0x616   : > { %v4263_v12 = vpack.c.b16 %v4078_v22, %v4071_v2  ;;  %v4085_v29 = vunpack.c.l.b16 %v3654_v7  ;;  %v4092_v53 = vunpack.c.l.b16 %v3658_v3  ;;  %v3662_v7 = vpack.c.bf16 %v11673_v48, %v11673_v48 }
 0x617   : > { %v5230_v48 = vadd.f32 %v10131_v51, %v10102_v4  ;;  %v5235_v51 = vadd.f32 %v10151_v47, %v10114_v50 }
 0x618   : > { %v5301_v18 = vpop.f32.mrf.mxu1  ;;  %v4099_v3 = vunpack.c.l.b16 %v3662_v7 }
 0x619   : > { %v10285_v27 = vadd.f32 %v5301_v18, %v5213_v24  ;;  %v11725_v18 = vld [vmem:[#allocation94_spill] sm:$0xff] }
 0x61b   : > { %5616 = vmatmul.bf16.gmra.mxu1 %v4256_v11  ;;  %v10303_v24 = vpop.f32.mrf.mxu0  ;;  %v11726_v11 = vld [vmem:[#allocation37_spill] sm:$0xff] }
 0x61c   : > { %v5220_v63 = vadd.f32 %v11726_v11, %v11725_v18  ;;  %v4270_v18 = vpack.c.b16 %v4092_v53, %v4085_v29  ;;  %v11730_v11 = vld [vmem:[#allocation87_spill] sm:$0xff]  ;;  %v5228_v29 = vadd.f32 %v10123_v30, %v10096_v19 }
 0x620   : > { %v5303_v39 = vpop.f32.mrf.mxu1 }
 0x621   : > { %v10291_v54 = vadd.f32 %v5303_v39, %v5215_v10 }
 0x628   : > { %v5306_v60 = vpop.f32.mrf.mxu1 }
 0x629   : > { %v10301_v15 = vadd.f32 %v5306_v60, %v5218_v42  ;;  %v11729_v42 = vld [vmem:[#allocation93_spill] sm:$0xff]  ;;  %v10315_v60 = vpop.f32.mrf.mxu0 }
 0x62a   : > { %v5223_v2 = vadd.f32 %v10104_v14, %v11729_v42  ;;  %v4106_v42 = vunpack.c.l.b16 %v3666_v56 }
 0x62b   : > { %5621 = vmatmul.bf16.gmra.mxu1 %v4263_v12 }
 0x630   : > { %v5308_v10 = vpop.f32.mrf.mxu1 }
 0x631   : > { %v10307_v39 = vadd.f32 %v5308_v10, %v5220_v63  ;;  %v5225_v63 = vadd.f32 %v10110_v28, %v11730_v11  ;;  %v10327_v14 = vpop.f32.mrf.mxu0  ;;  %v4277_v28 = vpack.c.b16 %v4106_v42, %v4099_v3  ;;  %v5233_v3 = vadd.f32 %v10143_v36, %v10108_v8 }
 0x638   : > { %v5311_v22 = vpop.f32.mrf.mxu1 }
 0x639   : > { %v10317_v12 = vadd.f32 %v5311_v22, %v5223_v2  ;;  %v10333_v22 = vpop.f32.mrf.mxu0 }
 0x63b   : > { %5626 = vmatmul.bf16.gmra.mxu1 %v4270_v18 }
 0x640   : > { %v5313_v10 = vpop.f32.mrf.mxu1 }
 0x641   : > { %v10321_v41 = vadd.f32 %v5313_v10, %v5225_v63  ;;  %v3670_v63 = vpack.c.bf16 %v11731_v43, %v11731_v43  ;;  %v11732_v10 = vld [vmem:[#allocation14_spill] sm:$0xff]  ;;  %v10343_v56 = vpop.f32.mrf.mxu0 }
 0x642   : > { %v3674_v7 = vpack.c.bf16 %v11732_v10, %v11732_v10 }
 0x643   : > { %v4113_v19 = vunpack.c.l.b16 %v3670_v63  ;;  %v11734_v63 = vld [vmem:[#allocation76_spill] sm:$0xff] }
 0x644   : > { %v4120_v30 = vunpack.c.l.b16 %v3674_v7  ;;  %v3682_v10 = vpack.c.bf16 %v11734_v63, %v11734_v63  ;;  %v5514_v7 = vadd.f32 %v10162_v6, %v10127_v55 }
 0x646   : > { %v4284_v4 = vpack.c.b16 %v4120_v30, %v4113_v19  ;;  %v4134_v36 = vunpack.c.l.b16 %v3682_v10  ;;  %v5519_v10 = vadd.f32 %v10182_v40, %v10141_v31 }
 0x648   : > { %v5316_v53 = vpop.f32.mrf.mxu1 }
 0x649   : > { %v10331_v2 = vadd.f32 %v5316_v53, %v5228_v29 }
 0x64b   : > { %5631 = vmatmul.bf16.gmra.mxu1 %v4277_v28  ;;  %v10351_v28 = vpop.f32.mrf.mxu0 }
 0x650   : > { %v5318_v18 = vpop.f32.mrf.mxu1 }
 0x651   : > { %v10337_v11 = vadd.f32 %v5318_v18, %v5230_v48  ;;  %v11733_v18 = vld [vmem:[#allocation70_spill] sm:$0xff] }
 0x652   : > { %v3678_v43 = vpack.c.bf16 %v11733_v18, %v11733_v18  ;;  %v11736_v18 = vld [vmem:[#allocation105_spill] sm:$0xff] }
 0x653   : > { %v10363_v47 = vpop.f32.mrf.mxu0 }
 0x654   : > { %v4127_v8 = vunpack.c.l.b16 %v3678_v43  ;;  %v3690_v43 = vpack.c.bf16 %v11736_v18, %v11736_v18  ;;  %v5524_v18 = vadd.f32 %v10205_v59, %v10160_v9 }
 0x656   : > { %v4291_v50 = vpack.c.b16 %v4134_v36, %v4127_v8  ;;  %v4148_v63 = vunpack.c.l.b16 %v3690_v43 }
 0x658   : > { %v5321_v42 = vpop.f32.mrf.mxu1 }
 0x659   : > { %v10347_v29 = vadd.f32 %v5321_v42, %v5233_v3  ;;  %v5516_v3 = vadd.f32 %v10174_v37, %v10133_v57 }
 0x65b   : > { %5636 = vmatmul.bf16.gmra.mxu1 %v4284_v4  ;;  %v10373_v55 = vpop.f32.mrf.mxu0 }
 0x660   : > { %v5323_v53 = vpop.f32.mrf.mxu1 }
 0x661   : > { %v10353_v48 = vadd.f32 %v5323_v53, %v5235_v51  ;;  %v11735_v51 = vld [vmem:[#allocation66_spill] sm:$0xff] }
 0x662   : > { %v3686_v53 = vpack.c.bf16 %v11735_v51, %v11735_v51  ;;  %v11738_v51 = vld [vmem:[#allocation106_spill] sm:$0xff] }
 0x663   : > { %v10379_v37 = vpop.f32.mrf.mxu0 }
 0x664   : > { %v4141_v6 = vunpack.c.l.b16 %v3686_v53  ;;  %v3698_v53 = vpack.c.bf16 %v11738_v51, %v11738_v51 }
 0x666   : > { %v4298_v57 = vpack.c.b16 %v4148_v63, %v4141_v6  ;;  %v4162_v40 = vunpack.c.l.b16 %v3698_v53  ;;  %v5529_v53 = vadd.f32 %v10225_v32, %v10176_v16  ;;  %v5536_v32 = vadd.f32 %v10297_v13, %v10199_v52 }
 0x667   : > { %v5544_v52 = vadd.f32 %v10327_v14, %v10223_v5  ;;  %v5551_v5 = vadd.f32 %v10351_v28, %v10247_v62  ;;  %v5559_v62 = vadd.f32 %v10379_v37, %v10263_v35  ;;  %v10474_v35 = vld [vmem:[%s11065_s6] ss:$0 sm:$0xff] }
 0x668   : > { %v5602_v19 = vpop.f32.mrf.mxu1 }
 0x669   : > { %v10361_v30 = vadd.f32 %v5602_v19, %v5514_v7  ;;  %v5521_v7 = vadd.f32 %v10195_v33, %v10147_v17  ;;  %v5526_v17 = vadd.f32 %v10213_v23, %v10166_v61  ;;  %v5531_v23 = vadd.f32 %v10233_v25, %v10180_v44 }
 0x66a   : > { %v5539_v44 = vadd.f32 %v10303_v24, %v10209_v1  ;;  %v5546_v24 = vadd.f32 %v10333_v22, %v10229_v0  ;;  %v5554_v0 = vadd.f32 %v10363_v47, %v10251_v45 }
 0x66b   : > { %5641 = vmatmul.bf16.gmra.mxu1 %v4291_v50  ;;  %v5560_v6 = vpop.f32.mrf.mxu0 }
 0x66c   : > { %v5561_v47 = vadd.f32 %v5560_v6, %v10271_v38 }
 0x670   : > { %v5604_v42 = vpop.f32.mrf.mxu1 }
 0x671   : > { %v10367_v4 = vadd.f32 %v5604_v42, %v5516_v3  ;;  %v11737_v3 = vld [vmem:[#allocation67_spill] sm:$0xff] }
 0x672   : > { %v3694_v42 = vpack.c.bf16 %v11737_v3, %v11737_v3 }
 0x673   : > { %v10480_v38 = vadd.f32 %v10474_v35, %v10367_v4 }
 0x674   : > { %v4155_v31 = vunpack.c.l.b16 %v3694_v42  ;;  %v5563_v42 = vpop.f32.mrf.mxu0 }
 0x675   : > { %v5564_v9 = vadd.f32 %v5563_v42, %v10275_v58 }
 0x678   : > { %v5607_v8 = vpop.f32.mrf.mxu1 }
 0x679   : > { %v10377_v36 = vadd.f32 %v5607_v8, %v5519_v10  ;;  %v4305_v10 = vpack.c.b16 %v4162_v40, %v4155_v31 }
 0x67b   : > { %5646 = vmatmul.bf16.gmra.mxu1 %v4298_v57  ;;  %v11739_v57 = vld [vmem:[#allocation65_spill] sm:$0xff] }
 0x680   : > { %v5609_v19 = vpop.f32.mrf.mxu1 }
 0x681   : > { %v10383_v50 = vadd.f32 %v5609_v19, %v5521_v7  ;;  %v3702_v7 = vpack.c.bf16 %v11739_v57, %v11739_v57  ;;  %v11740_v19 = vld [vmem:[#allocation77_spill] sm:$0xff]  ;;  %v11742_v57 = vld [vmem:[#allocation68_spill] sm:$0xff] }
 0x682   : > { %v3706_v3 = vpack.c.bf16 %v11740_v19, %v11740_v19 }
 0x683   : > { %v4169_v59 = vunpack.c.l.b16 %v3702_v7 }
 0x684   : > { %v4176_v51 = vunpack.c.l.b16 %v3706_v3 }
 0x686   : > { %v4312_v61 = vpack.c.b16 %v4176_v51, %v4169_v59 }
 0x688   : > { %v5612_v43 = vpop.f32.mrf.mxu1 }
 0x689   : > { %v10391_v63 = vadd.f32 %v5612_v43, %v5524_v18 }
 0x68b   : > { %5651 = vmatmul.bf16.gmra.mxu1 %v4305_v10  ;;  %v5534_v10 = vadd.f32 %v10287_v26, %v10193_v21  ;;  %v11744_v21 = vld [vmem:[#allocation115_spill] sm:$0xff]  ;;  %v5541_v26 = vadd.f32 %v10315_v60, %v10215_v49  ;;  %v5549_v49 = vadd.f32 %v10343_v56, %v10239_v20  ;;  %v5556_v20 = vadd.f32 %v10373_v55, %v10259_v46  ;;  %v5387_v56 = vpop.f32.mrf.mxu2 }
 0x690   : > { %v5614_v33 = vpop.f32.mrf.mxu1 }
 0x691   : > { %v10395_v8 = vadd.f32 %v5614_v33, %v5526_v17  ;;  %v11741_v33 = vld [vmem:[#allocation64_spill] sm:$0xff] }
 0x692   : > { %v11743_v16 = vpack.c.b16 %v11741_v33, %v11742_v57 }
 0x693   : > { %v5390_v45 = vpop.f32.mrf.mxu2 }
 0x698   : > { %v5617_v31 = vpop.f32.mrf.mxu1 }
 0x699   : > { %v10404_v40 = vadd.f32 %v5617_v31, %v5529_v53  ;;  %v11745_v53 = vld [vmem:[#allocation116_spill] sm:$0xff]  ;;  %v11746_v31 = vld [vmem:[#allocation114_spill] sm:$0xff] }
 0x69a   : > { %v11747_v1 = vpack.c.b16 %v11745_v53, %v11746_v31 }
 0x69b   : > { %5656 = vmatmul.bf16.gmra.mxu1 %v4312_v61  ;;  %v5392_v55 = vpop.f32.mrf.mxu2 }
 0x6a0   : > { %v5619_v18 = vpop.f32.mrf.mxu1 }
 0x6a1   : > { %v10408_v43 = vadd.f32 %v5619_v18, %v5531_v23 }
 0x6a3   : > { %v5395_v6 = vpop.f32.mrf.mxu2 }
 0x6a8   : > { %v5622_v58 = vpop.f32.mrf.mxu1 }
 0x6a9   : > { %v10412_v17 = vadd.f32 %v5622_v58, %v5534_v10 }
 0x6ab   : > { %5661 = vmatmul.bf16.gmra.mxu1 %v11743_v16  ;;  %v5476_v16 = vpop.f32.mrf.mxu3 }
 0x6b0   : > { %v5624_v7 = vpop.f32.mrf.mxu1 }
 0x6b1   : > { %v10419_v19 = vadd.f32 %v5624_v7, %v5536_v32  ;;  %v10460_v32 = vpop.f32.mrf.mxu0 }
 0x6b8   : > { %v5627_v25 = vpop.f32.mrf.mxu1 }
 0x6b9   : > { %v10423_v3 = vadd.f32 %v5627_v25, %v5539_v44  ;;  %v5479_v44 = vpop.f32.mrf.mxu3  ;;  %v10467_v46 = vpop.f32.mrf.mxu0 }
 0x6bb   : > { %5666 = vmatmul.bf16.gmra.mxu1 %v11744_v21 }
 0x6c0   : > { %v5629_v42 = vpop.f32.mrf.mxu1 }
 0x6c1   : > { %v10428_v59 = vadd.f32 %v5629_v42, %v5541_v26  ;;  %v10476_v37 = vpop.f32.mrf.mxu0 }
 0x6c8   : > { %v5632_v13 = vpop.f32.mrf.mxu1 }
 0x6c9   : > { %v10432_v51 = vadd.f32 %v5632_v13, %v5544_v52  ;;  %v5481_v52 = vpop.f32.mrf.mxu3  ;;  %v10484_v13 = vadd.f32 %v10474_v35, %v10361_v30 }
 0x6cb   : > { %5671 = vmatmul.bf16.gmra.mxu1 %v11747_v1  ;;  %v5718_v31 = vadd.f32 %v10480_v38, %v10484_v13  ;;  %v10494_v1 = vadd.f32 %v10474_v35, %v10383_v50  ;;  %v10511_v50 = vadd.f32 %v10474_v35, %v10404_v40  ;;  %v10526_v40 = vadd.f32 %v10474_v35, %v10419_v19 }
 0x6cc   : > { %v10541_v19 = vadd.f32 %v10474_v35, %v10432_v51 }
 0x6d0   : > { %v5634_v61 = vpop.f32.mrf.mxu1 }
 0x6d1   : > { %v10439_v23 = vadd.f32 %v5634_v61, %v5546_v24  ;;  %v10499_v24 = vadd.f32 %v10474_v35, %v10391_v63  ;;  %v5484_v30 = vpop.f32.mrf.mxu3 }
 0x6d8   : > { %v5637_v60 = vpop.f32.mrf.mxu1 }
 0x6d9   : > { %v10443_v18 = vadd.f32 %v5637_v60, %v5549_v49  ;;  %v10506_v49 = vpop.f32.mrf.mxu0 }
 0x6db   : > { %5676 = vmatmul.bf16.gmra.mxu1 %v11744_v21 }
 0x6e0   : > { %v5639_v14 = vpop.f32.mrf.mxu1 }
 0x6e1   : > { %v10448_v10 = vadd.f32 %v5639_v14, %v5551_v5  ;;  %v5397_v5 = vpop.f32.mrf.mxu2 }
 0x6e8   : > { %v5642_v22 = vpop.f32.mrf.mxu1 }
 0x6e9   : > { %v10452_v58 = vadd.f32 %v5642_v22, %v5554_v0  ;;  %v10516_v0 = vadd.f32 %v10474_v35, %v10408_v43 }
 0x6f0   : > { %v5644_v33 = vpop.f32.mrf.mxu1 }
 0x6f1   : > { %v10456_v57 = vadd.f32 %v5644_v33, %v5556_v20  ;;  %v5486_v33 = vpop.f32.mrf.mxu3 }
 0x6f8   : > { %v5647_v28 = vpop.f32.mrf.mxu1 }
 0x6f9   : > { %v10462_v7 = vadd.f32 %v5647_v28, %v5559_v62  ;;  %v10531_v28 = vadd.f32 %v10474_v35, %v10423_v3  ;;  %v10546_v3 = vadd.f32 %v10474_v35, %v10439_v23 }
 0x700   : > { %v5649_v25 = vpop.f32.mrf.mxu1 }
 0x701   : > { %v10465_v21 = vadd.f32 %v5649_v25, %v5561_v47  ;;  %v5575_v47 = vpop.f32.mrf.mxu0 }
 0x708   : > { %v5652_v26 = vpop.f32.mrf.mxu1 }
 0x709   : > { %v10469_v42 = vadd.f32 %v5652_v26, %v5564_v9  ;;  %v10488_v9 = vadd.f32 %v10474_v35, %v10377_v36  ;;  %v10504_v36 = vadd.f32 %v10474_v35, %v10395_v8  ;;  %v10521_v8 = vadd.f32 %v10474_v35, %v10412_v17  ;;  %v5400_v26 = vpop.f32.mrf.mxu2 }
 0x70a   : > { %v10536_v17 = vadd.f32 %v10474_v35, %v10428_v59  ;;  %v10552_v59 = vadd.f32 %v10474_v35, %v10443_v18  ;;  %v10564_v18 = vadd.f32 %v10474_v35, %v10452_v58 }
 0x70b   : > { %v5719_v4 = vadd.f32 %v5718_v31, %v10488_v9 }
 0x70d   : > { %v5720_v61 = vadd.f32 %v5719_v4, %v10494_v1 }
 0x70f   : > { %v5721_v60 = vadd.f32 %v5720_v61, %v10499_v24  ;;  %v5388_v61 = vadd.f32 %v5387_v56, %v10277_v34  ;;  %v5578_v34 = vpop.f32.mrf.mxu0 }
 0x710   : > { %v5654_v53 = vpop.f32.mrf.mxu1 }
 0x711   : > { %v5722_v63 = vadd.f32 %v5721_v60, %v10504_v36  ;;  %v5477_v23 = vadd.f32 %v5476_v16, %v5388_v61  ;;  %v5398_v16 = vadd.f32 %v5397_v5, %v10307_v39  ;;  %v10576_v61 = vadd.f32 %v10474_v35, %v10462_v7 }
 0x713   : > { %v5723_v22 = vadd.f32 %v5722_v63, %v10511_v50  ;;  %v5489_v63 = vpop.f32.mrf.mxu3  ;;  %v5566_v58 = vadd.f32 %v10460_v32, %v5477_v23  ;;  %v5487_v5 = vadd.f32 %v5486_v33, %v5398_v16  ;;  %v10589_v32 = vadd.f32 %v10474_v35, %v10469_v42 }
 0x715   : > { %v5724_v20 = vadd.f32 %v5723_v22, %v10516_v0  ;;  %v5655_v39 = vadd.f32 %v5654_v53, %v5566_v58 }
 0x717   : > { %v5725_v62 = vadd.f32 %v5724_v20, %v10521_v8  ;;  %v5391_v20 = vadd.f32 %v5390_v45, %v10285_v27 }
 0x718   : > { %v5657_v14 = vpop.f32.mrf.mxu1 }
 0x719   : > { %v5726_v25 = vadd.f32 %v5725_v62, %v10526_v40  ;;  %v10558_v62 = vadd.f32 %v10474_v35, %v10448_v10  ;;  %v5480_v27 = vadd.f32 %v5479_v44, %v5391_v20  ;;  %v10570_v10 = vadd.f32 %v10474_v35, %v10456_v57 }
 0x71a   : > { %v5401_v44 = vadd.f32 %v5400_v26, %v10317_v12  ;;  %v10583_v57 = vadd.f32 %v10474_v35, %v10465_v21  ;;  %v10594_v21 = vadd.f32 %v10474_v35, %v5655_v39 }
 0x71b   : > { %v5727_v31 = vadd.f32 %v5726_v25, %v10531_v28  ;;  %v5393_v25 = vadd.f32 %v5392_v55, %v10291_v54  ;;  %v5491_v20 = vpop.f32.mrf.mxu3 }
 0x71c   : > { %v5490_v26 = vadd.f32 %v5489_v63, %v5401_v44 }
 0x71d   : > { %v5728_v4 = vadd.f32 %v5727_v31, %v10536_v17  ;;  %v5396_v31 = vadd.f32 %v5395_v6, %v10301_v15  ;;  %v5482_v54 = vadd.f32 %v5481_v52, %v5393_v25  ;;  %v5569_v52 = vadd.f32 %v10467_v46, %v5480_v27 }
 0x71f   : > { %v5729_v60 = vadd.f32 %v5728_v4, %v10541_v19  ;;  %v5402_v4 = vpop.f32.mrf.mxu2  ;;  %v5485_v15 = vadd.f32 %v5484_v30, %v5396_v31  ;;  %v5658_v30 = vadd.f32 %v5657_v14, %v5569_v52  ;;  %v5571_v12 = vadd.f32 %v10476_v37, %v5482_v54 }
 0x720   : > { %v5659_v43 = vpop.f32.mrf.mxu1  ;;  %v5403_v33 = vadd.f32 %v5402_v4, %v10321_v41  ;;  %v5576_v37 = vadd.f32 %v5575_v47, %v5487_v5 }
 0x721   : > { %v5730_v51 = vadd.f32 %v5729_v60, %v10546_v3  ;;  %v5660_v53 = vadd.f32 %v5659_v43, %v5571_v12  ;;  %v5574_v46 = vadd.f32 %v10506_v49, %v5485_v15  ;;  %v10600_v42 = vadd.f32 %v10474_v35, %v5658_v30 }
 0x722   : > { %v5579_v43 = vadd.f32 %v5578_v34, %v5490_v26  ;;  %v5492_v16 = vadd.f32 %v5491_v20, %v5403_v33 }
 0x723   : > { %v5731_v56 = vadd.f32 %v5730_v51, %v10552_v59  ;;  %v5580_v51 = vpop.f32.mrf.mxu0  ;;  %v10604_v27 = vadd.f32 %v10474_v35, %v5660_v53  ;;  %v5494_v54 = vpop.f32.mrf.mxu3 }
 0x724   : > { %v5581_v44 = vadd.f32 %v5580_v51, %v5492_v16 }
 0x725   : > { %v5732_v45 = vadd.f32 %v5731_v56, %v10558_v62 }
 0x727   : > { %v5733_v55 = vadd.f32 %v5732_v45, %v10564_v18  ;;  %v5405_v25 = vpop.f32.mrf.mxu2 }
 0x728   : > { %v5662_v22 = vpop.f32.mrf.mxu1  ;;  %v5406_v58 = vadd.f32 %v5405_v25, %v10331_v2 }
 0x729   : > { %v5734_v60 = vadd.f32 %v5733_v55, %v10570_v10  ;;  %v5663_v14 = vadd.f32 %v5662_v22, %v5574_v46 }
 0x72a   : > { %v5495_v5 = vadd.f32 %v5494_v54, %v5406_v58 }
 0x72b   : > { %v5735_v7 = vadd.f32 %v5734_v60, %v10576_v61  ;;  %v10608_v41 = vadd.f32 %v10474_v35, %v5663_v14  ;;  %v5583_v22 = vpop.f32.mrf.mxu0  ;;  %v5496_v12 = vpop.f32.mrf.mxu3 }
 0x72d   : > { %v5736_v23 = vadd.f32 %v5735_v7, %v10583_v57 }
 0x72f   : > { %v5737_v56 = vadd.f32 %v5736_v23, %v10589_v32  ;;  %v5584_v23 = vadd.f32 %v5583_v22, %v5495_v5 }
 0x730   : > { %v5664_v6 = vpop.f32.mrf.mxu1 }
 0x731   : > { %v5738_v31 = vadd.f32 %v5737_v56, %v10594_v21  ;;  %v5665_v45 = vadd.f32 %v5664_v6, %v5576_v37  ;;  %v5407_v6 = vpop.f32.mrf.mxu2 }
 0x732   : > { %v5408_v26 = vadd.f32 %v5407_v6, %v10337_v11 }
 0x733   : > { %v5739_v49 = vadd.f32 %v5738_v31, %v10600_v42  ;;  %v10612_v47 = vadd.f32 %v10474_v35, %v5665_v45  ;;  %v5585_v46 = vpop.f32.mrf.mxu0 }
 0x734   : > { %v5497_v25 = vadd.f32 %v5496_v12, %v5408_v26 }
 0x735   : > { %v5740_v55 = vadd.f32 %v5739_v49, %v10604_v27 }
 0x736   : > { %v5586_v37 = vadd.f32 %v5585_v46, %v5497_v25  ;;  %v11748_v46 = vld [vmem:[#allocation63_spill] sm:$0xff] }
 0x737   : > { %v5741_v15 = vadd.f32 %v5740_v55, %v10608_v41 }
 0x738   : > { %v5667_v63 = vpop.f32.mrf.mxu1 }
 0x739   : > { %v5668_v4 = vadd.f32 %v5667_v63, %v5579_v43  ;;  %v5742_v39 = vadd.f32 %v5741_v15, %v10612_v47  ;;  %v5410_v33 = vpop.f32.mrf.mxu2  ;;  %v5499_v63 = vpop.f32.mrf.mxu3 }
 0x73a   : > { %v5411_v14 = vadd.f32 %v5410_v33, %v10347_v29 }
 0x73b   : > { %v5712_v34 = vadd.f32 %v10474_v35, %v5668_v4  ;;  %v5588_v49 = vpop.f32.mrf.mxu0 }
 0x73c   : > { %v5500_v43 = vadd.f32 %v5499_v63, %v5411_v14 }
 0x73d   : > { %v5743_v20 = vadd.f32 %v5742_v39, %v5712_v34 }
 0x73e   : > { %v5589_v55 = vadd.f32 %v5588_v49, %v5500_v43 }
 0x740   : > { %v5669_v60 = vpop.f32.mrf.mxu1 }
 0x741   : > { %v5670_v52 = vadd.f32 %v5669_v60, %v5581_v44  ;;  %v5412_v11 = vpop.f32.mrf.mxu2  ;;  %v5501_v15 = vpop.f32.mrf.mxu3 }
 0x742   : > { %v5413_v54 = vadd.f32 %v5412_v11, %v10353_v48 }
 0x743   : > { %v5713_v7 = vadd.f32 %v10474_v35, %v5670_v52  ;;  %v5590_v60 = vpop.f32.mrf.mxu0 }
 0x744   : > { %v5502_v44 = vadd.f32 %v5501_v15, %v5413_v54 }
 0x745   : > { %v5744_v30 = vadd.f32 %v5743_v20, %v5713_v7 }
 0x746   : > { %v5591_v39 = vadd.f32 %v5590_v60, %v5502_v44 }
 0x748   : > { %v5672_v2 = vpop.f32.mrf.mxu1 }
 0x749   : > { %v5673_v53 = vadd.f32 %v5672_v2, %v5584_v23 }
 0x74b   : > { %v5714_v51 = vadd.f32 %v10474_v35, %v5673_v53 }
 0x74d   : > { %v5745_v56 = vadd.f32 %v5744_v30, %v5714_v51 }
 0x750   : > { %v5674_v31 = vpop.f32.mrf.mxu1 }
 0x751   : > { %v5675_v45 = vadd.f32 %v5674_v31, %v5586_v37 }
 0x753   : > { %v5715_v16 = vadd.f32 %v10474_v35, %v5675_v45 }
 0x755   : > { %v5746_v4 = vadd.f32 %v5745_v56, %v5715_v16 }
 0x758   : > { %v5677_v22 = vpop.f32.mrf.mxu1 }
 0x759   : > { %v5678_v58 = vadd.f32 %v5677_v22, %v5589_v55 }
 0x75b   : > { %v5716_v6 = vadd.f32 %v10474_v35, %v5678_v58 }
 0x75d   : > { %v5747_v29 = vadd.f32 %v5746_v4, %v5716_v6 }
 0x760   : > { %v5679_v52 = vpop.f32.mrf.mxu1 }
 0x761   : > { %v5680_v5 = vadd.f32 %v5679_v52, %v5591_v39 }
 0x763   : > { %v5717_v20 = vadd.f32 %v10474_v35, %v5680_v5 }
 0x765   : > { %v5748_v30 = vadd.f32 %v5747_v29, %v5717_v20 }
 0x767   : > { %v5749_v12 = vrot.slane %v5748_v30, 4 }
 0x769   : > { %v5750_v26 = vadd.f32 %v5749_v12, %v5748_v30 }
 0x76b   : > { %v5751_v23 = vrot.slane %v5750_v26, 2 }
 0x76d   : > { %v5752_v2 = vadd.f32 %v5751_v23, %v5750_v26 }
 0x76f   : > { %v5753_v48 = vrot.slane %v5752_v2, 1 }
 0x771   : > { %v5754_v53 = vadd.f32 %v5753_v48, %v5752_v2 }
 0x773   : > { %v10627_v33 = vmul.f32 %v5754_v53, %v11748_v46 }
 0x775   : > { %v10630_v25 = vsub.f32 %v5712_v34, %v10627_v33  ;;  %v10633_v56 = vsub.f32 %v5713_v7, %v10627_v33  ;;  %v10636_v14 = vsub.f32 %v5714_v51, %v10627_v33  ;;  %v10639_v35 = vsub.f32 %v5715_v16, %v10627_v33 }
 0x776   : > { %v10642_v37 = vsub.f32 %v5716_v6, %v10627_v33  ;;  %v10645_v63 = vsub.f32 %v5717_v20, %v10627_v33  ;;  %v10649_v31 = vsub.f32 %v10484_v13, %v10627_v33  ;;  %v10653_v34 = vsub.f32 %v10480_v38, %v10627_v33 }
 0x777   : > { %v10657_v7 = vsub.f32 %v10488_v9, %v10627_v33  ;;  %v10665_v43 = vsub.f32 %v10494_v1, %v10627_v33  ;;  %v10669_v13 = vsub.f32 %v10499_v24, %v10627_v33  ;;  %v10675_v9 = vsub.f32 %v10504_v36, %v10627_v33 }
 0x778   : > { %v5788_v51 = vmul.f32 %v10649_v31, %v10649_v31  ;;  %v5789_v45 = vmul.f32 %v10653_v34, %v10653_v34  ;;  %v10681_v1 = vsub.f32 %v10511_v50, %v10627_v33  ;;  %v10687_v54 = vsub.f32 %v10516_v0, %v10627_v33 }
 0x779   : > { %v5790_v38 = vmul.f32 %v10657_v7, %v10657_v7  ;;  %v5791_v49 = vmul.f32 %v10665_v43, %v10665_v43  ;;  %v5792_v24 = vmul.f32 %v10669_v13, %v10669_v13  ;;  %v5793_v36 = vmul.f32 %v10675_v9, %v10675_v9 }
 0x77a   : > { %v5820_v16 = vadd.f32 %v5789_v45, %v5788_v51  ;;  %v10693_v22 = vsub.f32 %v10521_v8, %v10627_v33  ;;  %v5794_v50 = vmul.f32 %v10681_v1, %v10681_v1  ;;  %v10699_v15 = vsub.f32 %v10526_v40, %v10627_v33 }
 0x77b   : > { %v5795_v0 = vmul.f32 %v10687_v54, %v10687_v54  ;;  %v10705_v6 = vsub.f32 %v10531_v28, %v10627_v33  ;;  %v10711_v60 = vsub.f32 %v10536_v17, %v10627_v33  ;;  %v10717_v52 = vsub.f32 %v10541_v19, %v10627_v33 }
 0x77c   : > { %v5821_v11 = vadd.f32 %v5820_v16, %v5790_v38  ;;  %v5796_v8 = vmul.f32 %v10693_v22, %v10693_v22  ;;  %v5797_v40 = vmul.f32 %v10699_v15, %v10699_v15  ;;  %v10723_v20 = vsub.f32 %v10546_v3, %v10627_v33 }
 0x77d   : > { %v5798_v28 = vmul.f32 %v10705_v6, %v10705_v6  ;;  %v5799_v17 = vmul.f32 %v10711_v60, %v10711_v60  ;;  %v10729_v12 = vsub.f32 %v10552_v59, %v10627_v33  ;;  %v5800_v19 = vmul.f32 %v10717_v52, %v10717_v52 }
 0x77e   : > { %v5822_v4 = vadd.f32 %v5821_v11, %v5791_v49  ;;  %v10735_v23 = vsub.f32 %v10558_v62, %v10627_v33  ;;  %v5801_v3 = vmul.f32 %v10723_v20, %v10723_v20  ;;  %v10741_v48 = vsub.f32 %v10564_v18, %v10627_v33 }
 0x77f   : > { %v5802_v59 = vmul.f32 %v10729_v12, %v10729_v12  ;;  %v10747_v51 = vsub.f32 %v10570_v10, %v10627_v33  ;;  %v10753_v38 = vsub.f32 %v10576_v61, %v10627_v33  ;;  %v10759_v49 = vsub.f32 %v10583_v57, %v10627_v33 }
 0x780   : > { %v5823_v55 = vadd.f32 %v5822_v4, %v5792_v24  ;;  %v5803_v62 = vmul.f32 %v10735_v23, %v10735_v23  ;;  %v5804_v18 = vmul.f32 %v10741_v48, %v10741_v48  ;;  %v10765_v24 = vsub.f32 %v10589_v32, %v10627_v33 }
 0x781   : > { %v5805_v10 = vmul.f32 %v10747_v51, %v10747_v51  ;;  %v5806_v61 = vmul.f32 %v10753_v38, %v10753_v38  ;;  %v5807_v57 = vmul.f32 %v10759_v49, %v10759_v49 }
 0x782   : > { %v5824_v58 = vadd.f32 %v5823_v55, %v5793_v36  ;;  %v10771_v36 = vsub.f32 %v10594_v21, %v10627_v33  ;;  %v5808_v32 = vmul.f32 %v10765_v24, %v10765_v24 }
 0x784   : > { %v5825_v44 = vadd.f32 %v5824_v58, %v5794_v50  ;;  %v10777_v50 = vsub.f32 %v10600_v42, %v10627_v33  ;;  %v5809_v21 = vmul.f32 %v10771_v36, %v10771_v36 }
 0x786   : > { %v5826_v29 = vadd.f32 %v5825_v44, %v5795_v0  ;;  %v10783_v0 = vsub.f32 %v10604_v27, %v10627_v33  ;;  %v5810_v42 = vmul.f32 %v10777_v50, %v10777_v50 }
 0x788   : > { %v5827_v39 = vadd.f32 %v5826_v29, %v5796_v8  ;;  %v10789_v8 = vsub.f32 %v10608_v41, %v10627_v33  ;;  %v5811_v27 = vmul.f32 %v10783_v0, %v10783_v0 }
 0x78a   : > { %v5828_v5 = vadd.f32 %v5827_v39, %v5797_v40  ;;  %v10795_v40 = vsub.f32 %v10612_v47, %v10627_v33  ;;  %v5815_v47 = vmul.f32 %v10633_v56, %v10633_v56 }
 0x78c   : > { %v5829_v30 = vadd.f32 %v5828_v5, %v5798_v28  ;;  %v5812_v28 = vmul.f32 %v10789_v8, %v10789_v8  ;;  %v5813_v41 = vmul.f32 %v10795_v40, %v10795_v40 }
 0x78e   : > { %v5830_v26 = vadd.f32 %v5829_v30, %v5799_v17  ;;  %v5814_v30 = vmul.f32 %v10630_v25, %v10630_v25 }
 0x790   : > { %v5831_v2 = vadd.f32 %v5830_v26, %v5800_v19  ;;  %v5816_v26 = vmul.f32 %v10636_v14, %v10636_v14 }
 0x792   : > { %v5832_v53 = vadd.f32 %v5831_v2, %v5801_v3  ;;  %v5817_v2 = vmul.f32 %v10639_v35, %v10639_v35 }
 0x794   : > { %v5833_v45 = vadd.f32 %v5832_v53, %v5802_v59  ;;  %v5818_v53 = vmul.f32 %v10642_v37, %v10642_v37 }
 0x796   : > { %v5834_v16 = vadd.f32 %v5833_v45, %v5803_v62  ;;  %v5819_v45 = vmul.f32 %v10645_v63, %v10645_v63 }
 0x798   : > { %v5835_v11 = vadd.f32 %v5834_v16, %v5804_v18 }
 0x79a   : > { %v5836_v4 = vadd.f32 %v5835_v11, %v5805_v10 }
 0x79c   : > { %v5837_v55 = vadd.f32 %v5836_v4, %v5806_v61 }
 0x79e   : > { %v5838_v58 = vadd.f32 %v5837_v55, %v5807_v57 }
 0x7a0   : > { %v5839_v44 = vadd.f32 %v5838_v58, %v5808_v32 }
 0x7a2   : > { %v5840_v29 = vadd.f32 %v5839_v44, %v5809_v21 }
 0x7a4   : > { %v5841_v39 = vadd.f32 %v5840_v29, %v5810_v42 }
 0x7a6   : > { %v5842_v5 = vadd.f32 %v5841_v39, %v5811_v27 }
 0x7a8   : > { %v5843_v17 = vadd.f32 %v5842_v5, %v5812_v28  ;;  %v10819_v28 = vld [vmem:[%s11066_s7] ss:$0 sm:$0xff] }
 0x7aa   : > { %v5844_v19 = vadd.f32 %v5843_v17, %v5813_v41 }
 0x7ac   : > { %v5845_v33 = vadd.f32 %v5844_v19, %v5814_v30  ;;  %v11749_v19 = vld [vmem:[#allocation91_spill] sm:$0xff] }
 0x7ae   : > { %v5846_v3 = vadd.f32 %v5845_v33, %v5815_v47 }
 0x7b0   : > { %v5847_v59 = vadd.f32 %v5846_v3, %v5816_v26 }
 0x7b2   : > { %v5848_v62 = vadd.f32 %v5847_v59, %v5817_v2 }
 0x7b4   : > { %v5849_v18 = vadd.f32 %v5848_v62, %v5818_v53 }
 0x7b6   : > { %v5850_v16 = vadd.f32 %v5849_v18, %v5819_v45 }
 0x7b8   : > { %v5851_v10 = vrot.slane %v5850_v16, 4 }
 0x7ba   : > { %v5852_v11 = vadd.f32 %v5851_v10, %v5850_v16 }
 0x7bc   : > { %v5853_v61 = vrot.slane %v5852_v11, 2 }
 0x7be   : > { %v5854_v4 = vadd.f32 %v5853_v61, %v5852_v11 }
 0x7c0   : > { %v5855_v57 = vrot.slane %v5854_v4, 1 }
 0x7c2   : > { %v5856_v55 = vadd.f32 %v5855_v57, %v5854_v4 }
 0x7c4   : > { %v5857_v32 = vmul.f32 %v5856_v55, %v11748_v46  ;;  %v10827_v46 = vld [vmem:[%s11067_s8] ss:$0 sm:$0xff] }
 0x7c6   : > { %v5858_v58 = vadd.f32 1e-05, %v5857_v32 }
 0x7c8   : > { %6916 = vrsqrt.f32 %v5858_v58  ;;  %vm5865_vm8 = vweird.f32 %v5858_v58 }
 0x7ce   : > { %v6917_v21 = vpop.eup %6916 }
 0x7cf   : > { %v5860_v44 = vmul.f32 %v6917_v21, %v5858_v58  ;;  %vm5866_vm7 = vweird.f32 %v6917_v21 }
 0x7d0   : > { %vm5867_vm9 = vmor %vm5865_vm8, %vm5866_vm7 }
 0x7d1   : > { %v5861_v42 = vmul.f32 %v6917_v21, %v5860_v44 }
 0x7d3   : > { %v5862_v29 = vmul.f32 0.5, %v5861_v42 }
 0x7d5   : > { %v5863_v27 = vsub.f32 1.5, %v5862_v29  ;;  %v11751_v29 = vld [vmem:[#allocation12_spill] sm:$0xff] }
 0x7d7   : > { %v5864_v39 = vmul.f32 %v6917_v21, %v5863_v27  ;;  %v11752_v27 = vld [vmem:[#allocation17_spill] sm:$0xff] }
 0x7d9   : > { %v10822_v5 = vsel %vm5867_vm9, %v6917_v21, %v5864_v39 }
 0x7da   : > { %v5900_v41 = vmul.f32 %v10822_v5, %v10645_v63  ;;  %v5869_v33 = vmul.f32 %v10822_v5, %v10649_v31  ;;  %v5870_v26 = vmul.f32 %v10822_v5, %v10653_v34  ;;  %v5871_v63 = vmul.f32 %v10822_v5, %v10657_v7 }
 0x7db   : > { %v5872_v3 = vmul.f32 %v10822_v5, %v10665_v43  ;;  %v5873_v2 = vmul.f32 %v10822_v5, %v10669_v13  ;;  %v5874_v59 = vmul.f32 %v10822_v5, %v10675_v9  ;;  %v5875_v53 = vmul.f32 %v10822_v5, %v10681_v1 }
 0x7dc   : > { %v5936_v17 = vmul.f32 %v10819_v28, %v5900_v41  ;;  %v5905_v31 = vmul.f32 %v10819_v28, %v5869_v33  ;;  %v5906_v62 = vmul.f32 %v10819_v28, %v5870_v26  ;;  %v5907_v34 = vmul.f32 %v10819_v28, %v5871_v63  ;;  %v11754_v63 = vld [vmem:[#allocation25_spill] sm:$0xff] }
 0x7dd   : > { %v5876_v7 = vmul.f32 %v10822_v5, %v10687_v54  ;;  %v5908_v43 = vmul.f32 %v10819_v28, %v5872_v3  ;;  %v5877_v13 = vmul.f32 %v10822_v5, %v10693_v22  ;;  %v5909_v45 = vmul.f32 %v10819_v28, %v5873_v2 }
 0x7de   : > { %v5972_v30 = vadd.f32 %v10827_v46, %v5936_v17  ;;  %v5878_v9 = vmul.f32 %v10822_v5, %v10699_v15  ;;  %v5879_v1 = vmul.f32 %v10822_v5, %v10705_v6  ;;  %v5910_v18 = vmul.f32 %v10819_v28, %v5874_v59 }
 0x7df   : > { %v5911_v16 = vmul.f32 %v10819_v28, %v5875_v53  ;;  %v5941_v10 = vadd.f32 %v10827_v46, %v5905_v31  ;;  %v5942_v54 = vadd.f32 %v10827_v46, %v5906_v62  ;;  %v5943_v11 = vadd.f32 %v10827_v46, %v5907_v34  ;;  %v11755_v53 = vld [vmem:[#allocation26_spill] sm:$0xff] }
 0x7e0   : > { %v6004_v47 = vadd.f32 %v5972_v30, %v11749_v19  ;;  %v5880_v22 = vmul.f32 %v10822_v5, %v10711_v60  ;;  %v5912_v61 = vmul.f32 %v10819_v28, %v5876_v7  ;;  %v5944_v15 = vadd.f32 %v10827_v46, %v5908_v43  ;;  %v11753_v30 = vld [vmem:[#allocation18_spill] sm:$0xff]  ;;  %v11756_v7 = vld [vmem:[#allocation33_spill] sm:$0xff] }
 0x7e1   : > { %v5881_v6 = vmul.f32 %v10822_v5, %v10717_v52  ;;  %v5882_v4 = vmul.f32 %v10822_v5, %v10723_v20  ;;  %v5913_v57 = vmul.f32 %v10819_v28, %v5877_v13  ;;  %v5945_v55 = vadd.f32 %v10827_v46, %v5909_v45  ;;  %v11750_v52 = vld [vmem:[#allocation11_spill] sm:$0xff] }
 0x7e2   : > { %6036 = vst [vmem:[%s10836_s27 + $0xf8] sm:$0xff] %v6004_v47  ;;  %v5883_v32 = vmul.f32 %v10822_v5, %v10729_v12  ;;  %v5914_v60 = vmul.f32 %v10819_v28, %v5878_v9  ;;  %v5915_v58 = vmul.f32 %v10819_v28, %v5879_v1  ;;  %v5946_v21 = vadd.f32 %v10827_v46, %v5910_v18  ;;  %v11757_v9 = vld [vmem:[#allocation34_spill] sm:$0xff] }
 0x7e3   : > { %v5947_v44 = vadd.f32 %v10827_v46, %v5911_v16  ;;  %v5973_v42 = vadd.f32 %v5941_v10, %v11750_v52  ;;  %v5974_v20 = vadd.f32 %v5942_v54, %v11751_v29  ;;  %v5975_v39 = vadd.f32 %v5943_v11, %v11752_v27  ;;  %v11758_v10 = vld [vmem:[#allocation41_spill] sm:$0xff] }
 0x7e4   : > { %v5884_v41 = vmul.f32 %v10822_v5, %v10735_v23  ;;  %v5916_v12 = vmul.f32 %v10819_v28, %v5880_v22  ;;  %v5948_v17 = vadd.f32 %v10827_v46, %v5912_v61  ;;  %v5976_v19 = vadd.f32 %v5944_v15, %v11753_v30  ;;  %v11759_v61 = vld [vmem:[#allocation42_spill] sm:$0xff]  ;;  %v11764_v30 = vld [vmem:[#allocation5_spill] sm:$0xff] }
 0x7e5   : > { %v5885_v47 = vmul.f32 %v10822_v5, %v10741_v48  ;;  %v5917_v33 = vmul.f32 %v10819_v28, %v5881_v6  ;;  %v5949_v26 = vadd.f32 %v10827_v46, %v5913_v57  ;;  %v5977_v3 = vadd.f32 %v5945_v55, %v11754_v63  ;;  %6005 = vst [vmem:[%s10836_s27] sm:$0xff] %v5973_v42  ;;  %v11760_v57 = vld [vmem:[#allocation49_spill] sm:$0xff] }
 0x7e6   : > { %v5886_v23 = vmul.f32 %v10822_v5, %v10747_v51  ;;  %v5918_v2 = vmul.f32 %v10819_v28, %v5882_v4  ;;  %v5950_v59 = vadd.f32 %v10827_v46, %v5914_v60  ;;  %v5978_v31 = vadd.f32 %v5946_v21, %v11755_v53  ;;  %6006 = vst [vmem:[%s10836_s27 + $0x8] sm:$0xff] %v5974_v20  ;;  %v11762_v42 = vld [vmem:[#allocation57_spill] sm:$0xff] }
 0x7e7   : > { %v5887_v48 = vmul.f32 %v10822_v5, %v10753_v38  ;;  %v5919_v62 = vmul.f32 %v10819_v28, %v5883_v32  ;;  %v5951_v34 = vadd.f32 %v10827_v46, %v5915_v58  ;;  %v5979_v43 = vadd.f32 %v5947_v44, %v11756_v7  ;;  %6007 = vst [vmem:[%s10836_s27 + $0x10] sm:$0xff] %v5975_v39  ;;  %v11761_v58 = vld [vmem:[#allocation50_spill] sm:$0xff] }
 0x7e8   : > { %v5888_v51 = vmul.f32 %v10822_v5, %v10759_v49  ;;  %v5920_v13 = vmul.f32 %v10819_v28, %v5884_v41  ;;  %v5952_v45 = vadd.f32 %v10827_v46, %v5916_v12  ;;  %v5980_v1 = vadd.f32 %v5948_v17, %v11757_v9  ;;  %6008 = vst [vmem:[%s10836_s27 + $0x18] sm:$0xff] %v5976_v19  ;;  %v11763_v39 = vld [vmem:[#allocation58_spill] sm:$0xff] }
 0x7e9   : > { %v5889_v38 = vmul.f32 %v10822_v5, %v10765_v24  ;;  %v5921_v18 = vmul.f32 %v10819_v28, %v5885_v47  ;;  %v5953_v16 = vadd.f32 %v10827_v46, %v5917_v33  ;;  %v5981_v54 = vadd.f32 %v5949_v26, %v11758_v10  ;;  %6009 = vst [vmem:[%s10836_s27 + $0x20] sm:$0xff] %v5977_v3  ;;  %v11765_v26 = vld [vmem:[#allocation6_spill] sm:$0xff]  ;;  %v11771_v10 = vld [vmem:[#allocation24_spill] sm:$0xff] }
 0x7ea   : > { %v5890_v49 = vmul.f32 %v10822_v5, %v10771_v36  ;;  %v5922_v11 = vmul.f32 %v10819_v28, %v5886_v23  ;;  %v5954_v22 = vadd.f32 %v10827_v46, %v5918_v2  ;;  %v5982_v15 = vadd.f32 %v5950_v59, %v11759_v61  ;;  %6010 = vst [vmem:[%s10836_s27 + $0x28] sm:$0xff] %v5978_v31  ;;  %v11766_v2 = vld [vmem:[#allocation9_spill] sm:$0xff] }
 0x7eb   : > { %v5891_v24 = vmul.f32 %v10822_v5, %v10777_v50  ;;  %v5923_v6 = vmul.f32 %v10819_v28, %v5887_v48  ;;  %v5955_v4 = vadd.f32 %v10827_v46, %v5919_v62  ;;  %v5983_v55 = vadd.f32 %v5951_v34, %v11760_v57  ;;  %6011 = vst [vmem:[%s10836_s27 + $0x30] sm:$0xff] %v5979_v43  ;;  %v11767_v48 = vld [vmem:[#allocation10_spill] sm:$0xff]  ;;  %v11768_v43 = vld [vmem:[#allocation15_spill] sm:$0xff] }
 0x7ec   : > { %v5892_v36 = vmul.f32 %v10822_v5, %v10783_v0  ;;  %v5924_v32 = vmul.f32 %v10819_v28, %v5888_v51  ;;  %v5956_v60 = vadd.f32 %v10827_v46, %v5920_v13  ;;  %v5984_v21 = vadd.f32 %v5952_v45, %v11761_v58  ;;  %6012 = vst [vmem:[%s10836_s27 + $0x38] sm:$0xff] %v5980_v1  ;;  %v11769_v45 = vld [vmem:[#allocation16_spill] sm:$0xff]  ;;  %v11770_v1 = vld [vmem:[#allocation23_spill] sm:$0xff] }
 0x7ed   : > { %v5893_v50 = vmul.f32 %v10822_v5, %v10789_v8  ;;  %v5925_v44 = vmul.f32 %v10819_v28, %v5889_v38  ;;  %v5957_v52 = vadd.f32 %v10827_v46, %v5921_v18  ;;  %v5985_v29 = vadd.f32 %v5953_v16, %v11762_v42  ;;  %6013 = vst [vmem:[%s10836_s27 + $0x40] sm:$0xff] %v5981_v54  ;;  %v11774_v57 = vld [vmem:[#allocation39_spill] sm:$0xff] }
 0x7ee   : > { %v5894_v0 = vmul.f32 %v10822_v5, %v10795_v40  ;;  %v5926_v20 = vmul.f32 %v10819_v28, %v5890_v49  ;;  %v5958_v27 = vadd.f32 %v10827_v46, %v5922_v11  ;;  %v5986_v41 = vadd.f32 %v5954_v22, %v11763_v39  ;;  %6014 = vst [vmem:[%s10836_s27 + $0x48] sm:$0xff] %v5982_v15  ;;  %v11772_v22 = vld [vmem:[#allocation31_spill] sm:$0xff] }
 0x7ef   : > { %v5895_v8 = vmul.f32 %v10822_v5, %v10630_v25  ;;  %v5927_v12 = vmul.f32 %v10819_v28, %v5891_v24  ;;  %v5959_v17 = vadd.f32 %v10827_v46, %v5923_v6  ;;  %v5987_v19 = vadd.f32 %v5955_v4, %v11764_v30  ;;  %6015 = vst [vmem:[%s10836_s27 + $0x50] sm:$0xff] %v5983_v55  ;;  %v11773_v24 = vld [vmem:[#allocation32_spill] sm:$0xff]  ;;  %v11776_v58 = vld [vmem:[#allocation47_spill] sm:$0xff] }
 0x7f0   : > { %v5896_v40 = vmul.f32 %v10822_v5, %v10633_v56  ;;  %v5928_v47 = vmul.f32 %v10819_v28, %v5892_v36  ;;  %v5960_v33 = vadd.f32 %v10827_v46, %v5924_v32  ;;  %v5988_v63 = vadd.f32 %v5956_v60, %v11765_v26  ;;  %6016 = vst [vmem:[%s10836_s27 + $0x58] sm:$0xff] %v5984_v21  ;;  %v11775_v36 = vld [vmem:[#allocation40_spill] sm:$0xff] }
 0x7f1   : > { %v5897_v25 = vmul.f32 %v10822_v5, %v10636_v14  ;;  %v5929_v3 = vmul.f32 %v10819_v28, %v5893_v50  ;;  %v5961_v23 = vadd.f32 %v10827_v46, %v5925_v44  ;;  %v5989_v59 = vadd.f32 %v5957_v52, %v11766_v2  ;;  %6017 = vst [vmem:[%s10836_s27 + $0x60] sm:$0xff] %v5985_v29  ;;  %v11777_v50 = vld [vmem:[#allocation48_spill] sm:$0xff]  ;;  %v11778_v52 = vld [vmem:[#allocation55_spill] sm:$0xff] }
 0x7f2   : > { %v5898_v56 = vmul.f32 %v10822_v5, %v10639_v35  ;;  %v5930_v53 = vmul.f32 %v10819_v28, %v5894_v0  ;;  %v5962_v31 = vadd.f32 %v10827_v46, %v5926_v20  ;;  %v5990_v62 = vadd.f32 %v5958_v27, %v11767_v48  ;;  %6018 = vst [vmem:[%s10836_s27 + $0x68] sm:$0xff] %v5986_v41  ;;  %v11779_v29 = vld [vmem:[#allocation56_spill] sm:$0xff] }
 0x7f3   : > { %v5899_v14 = vmul.f32 %v10822_v5, %v10642_v37  ;;  %v5931_v34 = vmul.f32 %v10819_v28, %v5895_v8  ;;  %v5963_v7 = vadd.f32 %v10827_v46, %v5927_v12  ;;  %v5991_v51 = vadd.f32 %v5959_v17, %v11768_v43  ;;  %6019 = vst [vmem:[%s10836_s27 + $0x70] sm:$0xff] %v5987_v19 }
 0x7f4   : > { %v5932_v35 = vmul.f32 %v10819_v28, %v5896_v40  ;;  %v5964_v13 = vadd.f32 %v10827_v46, %v5928_v47  ;;  %v5992_v9 = vadd.f32 %v5960_v33, %v11769_v45  ;;  %6020 = vst [vmem:[%s10836_s27 + $0x78] sm:$0xff] %v5988_v63  ;;  %v5933_v37 = vmul.f32 %v10819_v28, %v5897_v25 }
 0x7f5   : > { %v5965_v5 = vadd.f32 %v10827_v46, %v5929_v3  ;;  %v5993_v38 = vadd.f32 %v5961_v23, %v11770_v1  ;;  %6021 = vst [vmem:[%s10836_s27 + $0x80] sm:$0xff] %v5989_v59  ;;  %v5934_v18 = vmul.f32 %v10819_v28, %v5898_v56  ;;  %v5966_v16 = vadd.f32 %v10827_v46, %v5930_v53 }
 0x7f6   : > { %v5994_v54 = vadd.f32 %v5962_v31, %v11771_v10  ;;  %6022 = vst [vmem:[%s10836_s27 + $0x88] sm:$0xff] %v5990_v62  ;;  %v5935_v49 = vmul.f32 %v10819_v28, %v5899_v14  ;;  %v5967_v11 = vadd.f32 %v10827_v46, %v5931_v34  ;;  %v5995_v61 = vadd.f32 %v5963_v7, %v11772_v22 }
 0x7f7   : > { %6023 = vst [vmem:[%s10836_s27 + $0x90] sm:$0xff] %v5991_v51  ;;  %v5968_v15 = vadd.f32 %v10827_v46, %v5932_v35  ;;  %v5996_v6 = vadd.f32 %v5964_v13, %v11773_v24  ;;  %v5969_v4 = vadd.f32 %v10827_v46, %v5933_v37  ;;  %v5997_v55 = vadd.f32 %v5965_v5, %v11774_v57 }
 0x7f8   : > { %6024 = vst [vmem:[%s10836_s27 + $0x98] sm:$0xff] %v5992_v9  ;;  %v5970_v28 = vadd.f32 %v10827_v46, %v5934_v18  ;;  %v5998_v32 = vadd.f32 %v5966_v16, %v11775_v36  ;;  %v5971_v60 = vadd.f32 %v10827_v46, %v5935_v49  ;;  %v5999_v21 = vadd.f32 %v5967_v11, %v11776_v58  ;;  %v11780_v46 = vld [vmem:[#allocation90_spill] sm:$0xff] }
 0x7f9   : > { %6025 = vst [vmem:[%s10836_s27 + $0xa0] sm:$0xff] %v5993_v38  ;;  %v6000_v44 = vadd.f32 %v5968_v15, %v11777_v50  ;;  %v6001_v42 = vadd.f32 %v5969_v4, %v11778_v52 }
 0x7fa   : > { %6026 = vst [vmem:[%s10836_s27 + $0xa8] sm:$0xff] %v5994_v54  ;;  %v6002_v0 = vadd.f32 %v5970_v28, %v11779_v29  ;;  %v6003_v20 = vadd.f32 %v5971_v60, %v11780_v46 }
 0x7fb   : > { %6027 = vst [vmem:[%s10836_s27 + $0xb0] sm:$0xff] %v5995_v61 }
 0x7fc   : > { %6028 = vst [vmem:[%s10836_s27 + $0xb8] sm:$0xff] %v5996_v6 }
 0x7fd   : > { %6029 = vst [vmem:[%s10836_s27 + $0xc0] sm:$0xff] %v5997_v55 }
 0x7fe   : > { %6030 = vst [vmem:[%s10836_s27 + $0xc8] sm:$0xff] %v5998_v32 }
 0x7ff   : > { %6031 = vst [vmem:[%s10836_s27 + $0xd0] sm:$0xff] %v5999_v21 }
 0x800   : > { %6032 = vst [vmem:[%s10836_s27 + $0xd8] sm:$0xff] %v6000_v44 }
 0x801   : > { %6033 = vst [vmem:[%s10836_s27 + $0xe0] sm:$0xff] %v6001_v42 }
 0x802   : > { %6034 = vst [vmem:[%s10836_s27 + $0xe8] sm:$0xff] %v6002_v0 }
 0x803   : > { %6035 = vst [vmem:[%s10836_s27 + $0xf0] sm:$0xff] %v6003_v20 }
 0x804   : > { %6969 = shalt.err (!%p6966_p3)
}
 0x805   : > { %s7007_s23 = smov 128   ;;  %s7008_s27 = smov 8  }
 0x806   : > { %6864 = dma.vmem_to_hbm [thread:$0]  (%p7097_p5), %s6051_s16, 4096, %s6053_s17, %s6038_s21, %s7007_s23, %s7007_s23, %s7008_s27  }
 0x807 PF: > { %p6870_p4 = scmp.ge.s32.totalorder %s7004_s12, 2  ;;  %s6067_s14 = sand.u32 1, %s6992_s30  }
 0x808   : > { %s6068_s25 = scalar_lea.sflag [#allocation3], %s6067_s14 }
 0x809   : > { %p6867_p7 = pnand %p6870_p4, %p7101_p6 }
 0x80b   : > { %p6868_p8 = pneg %p6867_p7 }
 0x80d   : > { %6987 = dma.done.wait (%p6868_p8), %s6068_s25, 4096  }
 0x80e   : > { %6989 = vsyncadd (%p6868_p8), %s6068_s25, 4294963200  ;;  %p19_p9 = scmp.ge.s32.totalorder %s7084_s15, 4   ;;  %s11781_s30 = smov %s6996_s10 }
 0x80f   : > { %s11782_s10 = smov %s7000_s11  ;;  %s11783_s11 = smov %s7095_s18 }
 0x810   : > { %s11784_s12 = smov %s7084_s15  ;;  %21 = sbr.rel (!%p19_p9) target bundleno = 3 (0x3), region = 91 }
 0x815   :  { %6074 = vsyncpa [#allocation3], 1 }
 0x816   :  { %6076 = vsyncpa [#allocation3 + $0x1], 1 }

</bundles_post_ra>
